<compile_context>
chip_gen: v7x
topology: tpu7x:2x2x1
jax: 0.10.0
libtpu: 0.0.40
codegen_flags: <defaults>
</compile_context>

<pallas_src>
import functools

import jax
import jax.numpy as jnp
from jax import lax
from jax.experimental import pallas as pl
from jax.experimental.pallas import tpu as pltpu

BN_EPS = 1e-5
NEG = -1e30  # mask value for padded policy logits


# ----------------------------------------------------------------------------
# Fused Pallas kernel (grid = (KT,) over fc1 K-chunks; convs run at step 0)
# ----------------------------------------------------------------------------
def _nnet2_fused_kernel(x_ref, w1_ref, sb1_ref, w2_ref, sb2_ref, w3_ref, sb3_ref,
                        wf1_ref, sbf1_ref, wh_ref, bh_ref,
                        pi_ref, vpad_ref,
                        pad_ref, fcin_ref, h1_ref):
    N, Hp, Wp, C = x_ref.shape          # (batch, board+2, board+2, 128)
    B = Hp - 2                          # board size (8)
    M = N * B * B                       # whole-batch matmul M dim (128)
    Hc = B - 2                          # valid conv3 output size (6)
    SPC = fcin_ref.shape[2] // C        # spatial positions per fc1 K-chunk
    A_PAD = pi_ref.shape[1]             # 128

    k = pl.program_id(0)

    def conv3x3_same(src_ref, w_ref, sb_ref):
        # 9 taps, each a single (M, C) x (C, C) MXU matmul over the whole batch.
        acc = None
        for dy in range(3):
            for dx in range(3):
                lhs = src_ref[:, dy:dy + B, dx:dx + B, :].reshape(M, C)
                t = jnp.dot(lhs, w_ref[dy * 3 + dx].astype(jnp.float32),
                            preferred_element_type=jnp.float32)
                acc = t if acc is None else acc + t
        # Single slab epilogue: folded BatchNorm scale/bias + ReLU.
        return jnp.maximum(acc * sb_ref[0:1, :] + sb_ref[1:2, :], 0.0)

    # ---- step 0: the whole conv stack + flatten; fc1 weight chunks for steps 1..
    #      prefetch in the background while this runs ----
    @pl.when(k == 0)
    def _():
        # conv1: input arrives pre-padded (1-px zero halo, channels zero-padded to C).
        pad_ref[...] = jnp.zeros(pad_ref.shape, jnp.float32)
        r1 = conv3x3_same(x_ref, w1_ref, sb1_ref)
        pad_ref[:, 1:B + 1, 1:B + 1, :] = r1.reshape(N, B, B, C)

        # conv2: reads conv1 activations from the zero-halo scratch, then reuses the
        # same buffer (halo still zero) for its own output.
        r2 = conv3x3_same(pad_ref, w2_ref, sb2_ref)
        pad_ref[:, 1:B + 1, 1:B + 1, :] = r2.reshape(N, B, B, C)

        # conv3: 'same' form over the zero halo keeps reshapes tile-aligned; only the
        # interior (the true valid conv output) is consumed by fc1.  Result reuses
        # the same halo buffer (valid output pixel (i, j) lands at (i+2, j+2)).
        r3 = conv3x3_same(pad_ref, w3_ref, sb3_ref)
        pad_ref[:, 1:B + 1, 1:B + 1, :] = r3.reshape(N, B, B, C)

        # Flatten the valid Hc x Hc x C interior in (h, w, c) order, grouped by fc1
        # K-chunk (lane-dense 128-wide stores); fc1 weight rows were permuted to this
        # order at pack time, removing the NHWC->NCHW transpose from the hot path.
        for i in range(Hc):
            for j in range(Hc):
                s = i * Hc + j
                fcin_ref[s // SPC, :, (s % SPC) * C:(s % SPC + 1) * C] = \
                    pad_ref[:, i + 2, j + 2, :]

        h1_ref[...] = jnp.zeros(h1_ref.shape, jnp.float32)

    # ---- every step: accumulate this K-chunk of fc1 (bf16 x bf16, f32 accumulate);
    #      the next chunk's weight DMA overlaps with this matmul ----
    h1_ref[...] += jnp.dot(fcin_ref[k].astype(jnp.bfloat16), wf1_ref[...],
                           preferred_element_type=jnp.float32)

    # ---- last step: folded BatchNorm1d, fused policy+value head, log-softmax/tanh ----
    @pl.when(k == pl.num_programs(0) - 1)
    def _():
        # fc1: Linear + folded BatchNorm1d (Dropout == identity in eval); no ReLU in
        # the reference module.
        h1 = h1_ref[...] * sbf1_ref[0:1, :] + sbf1_ref[1:2, :]

        # One (512 x 256) matmul for both heads: lanes [0,128) = policy logits
        # (padded columns carry a -1e30 bias so they vanish from the normalization),
        # lanes [128,256) = value (only column 128 is real, rest are exactly 0).
        heads = jnp.dot(h1, wh_ref[...].astype(jnp.float32),
                        preferred_element_type=jnp.float32) + bh_ref[...]

        logits = heads[:, :A_PAD]
        m = jnp.max(logits, axis=-1, keepdims=True)
        z = logits - m
        lse = jnp.log(jnp.sum(jnp.exp(z), axis=-1, keepdims=True))
        pi_ref[...] = z - lse

        # Lane-dense 128-wide value store; wrapper keeps column 0 (others = tanh(0)).
        vpad_ref[...] = jnp.tanh(heads[:, A_PAD:2 * A_PAD])


# ----------------------------------------------------------------------------
# Parameter packing (one-time) and the Pallas wrapper
# ----------------------------------------------------------------------------
def _fold_bn(lin_bias, bn):
    scale = bn["gamma"] / jnp.sqrt(bn["var"] + BN_EPS)
    bias = bn["beta"] + (lin_bias - bn["mean"]) * scale
    return scale, bias


def _fc1_chunks(hc):
    """Number of fc1 K-chunks (grid length); must divide the Hc*Hc spatial positions."""
    npos = hc * hc
    for kt in (4, 3, 2):
        if npos % kt == 0:
            return kt
    return 1


def pack_params(params, *, board_size, action_size):
    """One-time repack of PyTorch-layout parameters into kernel-ready tensors."""
    C = params["conv1"]["w"].shape[0]          # 128
    Hc = board_size - 2
    A_PAD = 128

    def prep_conv(p):
        w = p["w"]                             # (Cout, Cin, 3, 3)
        cout, cin = w.shape[0], w.shape[1]
        w9 = jnp.transpose(w, (2, 3, 1, 0)).reshape(9, cin, cout)
        if cin < C:                            # conv1: zero-pad Cin 2 -> 128 (exact)
            w9 = jnp.pad(w9, ((0, 0), (0, C - cin), (0, 0)))
        scale, bias = _fold_bn(p["b"], p["bn"])
        return (w9.astype(jnp.bfloat16),
                jnp.stack([scale, bias], axis=0).astype(jnp.float32))

    w1, sb1 = prep_conv(params["conv1"])
    w2, sb2 = prep_conv(params["conv2"])
    w3, sb3 = prep_conv(params["conv3"])

    # fc1: permute rows from PyTorch's (c, h, w) flatten order to the kernel's
    # (h, w, c) order; fold Linear bias + BatchNorm1d into scale/bias.
    wf = params["fc1"]["w"]                    # (512, C*Hc*Hc)
    f1 = wf.shape[0]
    wf1 = wf.reshape(f1, C, Hc, Hc).transpose(2, 3, 1, 0).reshape(Hc * Hc * C, f1)
    s1, b1 = _fold_bn(params["fc1"]["b"], params["fc1"]["bn"])

    # Fused heads: policy padded to 128 lanes (padded logits masked via -1e30 bias),
    # value padded to 128 lanes with zeros (only its column 0 is real).
    wpi = jnp.pad(params["fc2"]["w"].T, ((0, 0), (0, A_PAD - action_size)))
    bpi = jnp.pad(params["fc2"]["b"], (0, A_PAD - action_size), constant_values=NEG)
    wv = jnp.pad(params["fc3"]["w"].T, ((0, 0), (0, A_PAD - 1)))
    bv = jnp.pad(params["fc3"]["b"], (0, A_PAD - 1))
    whead = jnp.concatenate([wpi, wv], axis=1)               # (512, 256)
    bhead = jnp.concatenate([bpi, bv], axis=0).reshape(1, 2 * A_PAD)

    return dict(
        w1=w1, sb1=sb1, w2=w2, sb2=sb2, w3=w3, sb3=sb3,
        wf1=wf1.astype(jnp.bfloat16),
        sbf1=jnp.stack([s1, b1], axis=0).astype(jnp.float32),
        whead=whead.astype(jnp.bfloat16),
        bhead=bhead.astype(jnp.float32),
    )


def nnet2_forward_pallas(x, packed, *, board_size, action_size):
    """x: (N, 2, board, board) f32 -> (log_softmax pi (N, A), tanh value (N, 1))."""
    B = board_size
    x = x.reshape(-1, 2, B, B).astype(jnp.float32)
    N = x.shape[0]
    C = packed["w1"].shape[1]
    Hc = B - 2
    F1 = packed["wf1"].shape[1]
    A_PAD = packed["whead"].shape[1] // 2
    KT = _fc1_chunks(Hc)                       # fc1 K-chunks (grid length)
    KCH = (Hc * Hc // KT) * C                  # rows of fc1 weight per chunk

    # Only host-side prep: NCHW -> NHWC, zero-pad channels to 128 lanes and add the
    # 1-px conv1 halo.  Everything else happens inside the single fused kernel.
    xh = jnp.transpose(x, (0, 2, 3, 1))
    xh = jnp.pad(xh, ((0, 0), (1, 1), (1, 1), (0, C - xh.shape[-1])))

    grid_spec = pltpu.PrefetchScalarGridSpec(
        num_scalar_prefetch=0,
        grid=(KT,),
        in_specs=[
            pl.BlockSpec((N, B + 2, B + 2, C), lambda k: (0, 0, 0, 0)),  # x (halo'd)
            pl.BlockSpec((9, C, C), lambda k: (0, 0, 0)),                # w1
            pl.BlockSpec((2, C), lambda k: (0, 0)),                      # sb1
            pl.BlockSpec((9, C, C), lambda k: (0, 0, 0)),                # w2
            pl.BlockSpec((2, C), lambda k: (0, 0)),                      # sb2
            pl.BlockSpec((9, C, C), lambda k: (0, 0, 0)),                # w3
            pl.BlockSpec((2, C), lambda k: (0, 0)),                      # sb3
            pl.BlockSpec((KCH, F1), lambda k: (k, 0)),                   # fc1 w, streamed
            pl.BlockSpec((2, F1), lambda k: (0, 0)),                     # fc1 scale/bias
            pl.BlockSpec((F1, 2 * A_PAD), lambda k: (0, 0)),             # fused head w
            pl.BlockSpec((1, 2 * A_PAD), lambda k: (0, 0)),              # fused head b
        ],
        out_specs=[
            pl.BlockSpec((N, A_PAD), lambda k: (0, 0)),                  # log-softmax pi
            pl.BlockSpec((N, A_PAD), lambda k: (0, 0)),                  # padded value
        ],
        scratch_shapes=[
            pltpu.VMEM((N, B + 2, B + 2, C), jnp.float32),   # zero-halo conv buffer
            pltpu.VMEM((KT, N, KCH), jnp.float32),           # flattened fc1 input
            pltpu.VMEM((N, F1), jnp.float32),                # fc1 accumulator
        ])

    pi_pad, v_pad = pl.pallas_call(
        _nnet2_fused_kernel,
        out_shape=(jax.ShapeDtypeStruct((N, A_PAD), jnp.float32),
                   jax.ShapeDtypeStruct((N, A_PAD), jnp.float32)),
        grid_spec=grid_spec,
        compiler_params=pltpu.CompilerParams(
            dimension_semantics=("arbitrary",),      # sequential K accumulation
            vmem_limit_bytes=32 * 1024 * 1024),
    )(xh, packed["w1"], packed["sb1"], packed["w2"], packed["sb2"],
      packed["w3"], packed["sb3"], packed["wf1"], packed["sbf1"],
      packed["whead"], packed["bhead"])

    return pi_pad[:, :action_size], v_pad[:, :1]


# ----------------------------------------------------------------------------
# Deterministic synthetic parameters (shapes match the PyTorch module)
# ----------------------------------------------------------------------------
def init_params(key, board_size, action_size):
    C = 128
    flat = C * (board_size - 2) ** 2
    keys = iter(jax.random.split(key, 64))

    def conv_w(cin, cout):
        std = (2.0 / (cin * 9)) ** 0.5
        return std * jax.random.normal(next(keys), (cout, cin, 3, 3), jnp.float32)

    def lin_w(fin, fout):
        std = (1.0 / fin) ** 0.5
        return std * jax.random.normal(next(keys), (fout, fin), jnp.float32)

    def bias(c):
        return 0.05 * jax.random.normal(next(keys), (c,), jnp.float32)

    def bn(c):
        return dict(
            gamma=1.0 + 0.1 * jax.random.normal(next(keys), (c,), jnp.float32),
            beta=0.1 * jax.random.normal(next(keys), (c,), jnp.float32),
            mean=0.1 * jax.random.normal(next(keys), (c,), jnp.float32),
            var=1.0 + 0.5 * jax.random.uniform(next(keys), (c,), jnp.float32),
        )

    params = {}
    cins = [2, C, C]
    for i in range(3):
        params[f"conv{i + 1}"] = dict(w=conv_w(cins[i], C), b=bias(C), bn=bn(C))
    # TODO(synk): the spec's nn.BatchNorm1d(1024) is inconsistent with
    # nn.Linear(flat, 512); implemented as BatchNorm1d(512), the only runnable reading.
    params["fc1"] = dict(w=lin_w(flat, 512), b=bias(512), bn=bn(512))
    params["fc2"] = dict(w=lin_w(512, action_size), b=bias(action_size))
    params["fc3"] = dict(w=lin_w(512, 1), b=bias(1))
    return params


def quantize_weights_bf16(params):
    """Round conv/linear weight matrices to bf16 (the kernel's storage precision)."""
    out = {}
    for name, p in params.items():
        q = dict(p)
        q["w"] = p["w"].astype(jnp.bfloat16).astype(jnp.float32)
        out[name] = q
    return out


# ----------------------------------------------------------------------------
# Pure-JAX reference (mirrors the PyTorch forward in eval mode)
# ----------------------------------------------------------------------------
def nnet2_forward_reference(x, params, *, board_size, action_size):
    s = x.reshape(-1, 2, board_size, board_size)

    def conv_bn_relu(t, p, pad):
        y = lax.conv_general_dilated(t, p["w"], (1, 1), [(pad, pad), (pad, pad)],
                                     dimension_numbers=("NCHW", "OIHW", "NCHW"))
        y = y + p["b"][None, :, None, None]
        bn = p["bn"]
        y = (y - bn["mean"][None, :, None, None]) / jnp.sqrt(
            bn["var"][None, :, None, None] + BN_EPS)
        y = y * bn["gamma"][None, :, None, None] + bn["beta"][None, :, None, None]
        return jnp.maximum(y, 0.0)

    s = conv_bn_relu(s, params["conv1"], 1)
    s = conv_bn_relu(s, params["conv2"], 1)
    s = conv_bn_relu(s, params["conv3"], 0)
    s = s.reshape(s.shape[0], -1)

    # fc1: Linear + BatchNorm1d (+ Dropout == identity in eval); no ReLU in the spec.
    y = s @ params["fc1"]["w"].T + params["fc1"]["b"]
    bn = params["fc1"]["bn"]
    s = (y - bn["mean"]) / jnp.sqrt(bn["var"] + BN_EPS) * bn["gamma"] + bn["beta"]

    logits = s @ params["fc2"]["w"].T + params["fc2"]["b"]
    pi = jax.nn.log_softmax(logits, axis=1)
    val = jnp.tanh(s @ params["fc3"]["w"].T + params["fc3"]["b"])
    return pi, val


# ----------------------------------------------------------------------------
if __name__ == "__main__":
    board_size = 8
    action_size = board_size * board_size + 1      # 65
    batch = 2

    key = jax.random.PRNGKey(0)
    pkey, xkey = jax.random.split(key)
    params = init_params(pkey, board_size, action_size)
    # bf16 weight storage is part of the kernel design (halves weight DMA traffic);
    # quantize the reference's weights identically so the check isolates the kernel's
    # compute path.
    params = quantize_weights_bf16(params)
    x = jax.random.normal(xkey, (batch, 2, board_size, board_size), jnp.float32)

    packed = pack_params(params, board_size=board_size, action_size=action_size)
    fwd = jax.jit(functools.partial(nnet2_forward_pallas,
                                    board_size=board_size,
                                    action_size=action_size))
    pi, v = fwd(x, packed)
    jax.block_until_ready((pi, v))

    pi_ref, v_ref = nnet2_forward_reference(x, params,
                                            board_size=board_size,
                                            action_size=action_size)
    err_pi = float(jnp.max(jnp.abs(pi - pi_ref)))
    err_v = float(jnp.max(jnp.abs(v - v_ref)))
    assert err_pi < 1e-2 and err_v < 1e-2, (err_pi, err_v)

    print("KERNEL_OK")
</pallas_src>

<mosaic_0001>
module attributes {stable_mosaic.version = 11 : i64} {
  func.func @_nnet2_fused_kernel(%arg0: i32, %arg1: memref<2x10x10x128xf32, #tpu.memory_space<vmem>>, %arg2: memref<9x128x128xbf16, #tpu.memory_space<vmem>>, %arg3: memref<2x128xf32, #tpu.memory_space<vmem>>, %arg4: memref<9x128x128xbf16, #tpu.memory_space<vmem>>, %arg5: memref<2x128xf32, #tpu.memory_space<vmem>>, %arg6: memref<9x128x128xbf16, #tpu.memory_space<vmem>>, %arg7: memref<2x128xf32, #tpu.memory_space<vmem>>, %arg8: memref<1152x512xbf16, #tpu.memory_space<vmem>>, %arg9: memref<2x512xf32, #tpu.memory_space<vmem>>, %arg10: memref<512x256xbf16, #tpu.memory_space<vmem>>, %arg11: memref<1x256xf32, #tpu.memory_space<vmem>>, %arg12: memref<2x128xf32, #tpu.memory_space<vmem>>, %arg13: memref<2x128xf32, #tpu.memory_space<vmem>>, %arg14: memref<2x10x10x128xf32, #tpu.memory_space<vmem>>, %arg15: memref<4x2x1152xf32, #tpu.memory_space<vmem>>, %arg16: memref<2x512xf32, #tpu.memory_space<vmem>>) attributes {dimension_semantics = [#tpu.dimension_semantics<arbitrary>], iteration_bounds = array<i64: 4>, scalar_prefetch = 0 : i64, scratch_operands = 3 : i64, tpu.core_type = #tpu.core_type<tc>, window_params = [{pipeline_mode = #tpu.pipeline_mode<synchronous>, transform_indices = @transform_0, window_bounds = array<i64: 2, 10, 10, 128>}, {pipeline_mode = #tpu.pipeline_mode<synchronous>, transform_indices = @transform_1, window_bounds = array<i64: 9, 128, 128>}, {pipeline_mode = #tpu.pipeline_mode<synchronous>, transform_indices = @transform_2, window_bounds = array<i64: 2, 128>}, {pipeline_mode = #tpu.pipeline_mode<synchronous>, transform_indices = @transform_3, window_bounds = array<i64: 9, 128, 128>}, {pipeline_mode = #tpu.pipeline_mode<synchronous>, transform_indices = @transform_4, window_bounds = array<i64: 2, 128>}, {pipeline_mode = #tpu.pipeline_mode<synchronous>, transform_indices = @transform_5, window_bounds = array<i64: 9, 128, 128>}, {pipeline_mode = #tpu.pipeline_mode<synchronous>, transform_indices = @transform_6, window_bounds = array<i64: 2, 128>}, {transform_indices = @transform_7, window_bounds = array<i64: 1152, 512>}, {pipeline_mode = #tpu.pipeline_mode<synchronous>, transform_indices = @transform_8, window_bounds = array<i64: 2, 512>}, {pipeline_mode = #tpu.pipeline_mode<synchronous>, transform_indices = @transform_9, window_bounds = array<i64: 512, 256>}, {pipeline_mode = #tpu.pipeline_mode<synchronous>, transform_indices = @transform_10, window_bounds = array<i64: 1, 256>}, {pipeline_mode = #tpu.pipeline_mode<synchronous>, transform_indices = @transform_11, window_bounds = array<i64: 2, 128>}, {pipeline_mode = #tpu.pipeline_mode<synchronous>, transform_indices = @transform_12, window_bounds = array<i64: 2, 128>}]} {
    %c0_i32 = arith.constant 0 : i32
    %0 = arith.cmpi eq, %arg0, %c0_i32 : i32
    %1 = arith.extui %0 : i1 to i32
    %c0_i32_0 = arith.constant 0 : i32
    %2 = arith.cmpi ne, %1, %c0_i32_0 : i32
    scf.if %2 {
      %cst_9 = arith.constant 0.000000e+00 : f32
      %15 = vector.broadcast %cst_9 : f32 to vector<2x10x10x128xf32>
      %c0_10 = arith.constant 0 : index
      %c0_11 = arith.constant 0 : index
      %c0_12 = arith.constant 0 : index
      %c0_13 = arith.constant 0 : index
      %16 = vector.load %arg14[%c0_10, %c0_11, %c0_12, %c0_13] : memref<2x10x10x128xf32, #tpu.memory_space<vmem>>, vector<2x10x10x128xf32>
      tpu.vector_store %arg14[%c0_10, %c0_11, %c0_12, %c0_13], %15 {strides = array<i32>} : memref<2x10x10x128xf32, #tpu.memory_space<vmem>>, vector<2x10x10x128xf32>,
      %c0_14 = arith.constant 0 : index
      %c0_15 = arith.constant 0 : index
      %c0_16 = arith.constant 0 : index
      %c0_17 = arith.constant 0 : index
      %17 = vector.load %arg1[%c0_14, %c0_15, %c0_16, %c0_17] : memref<2x10x10x128xf32, #tpu.memory_space<vmem>>, vector<2x8x8x128xf32>
      %18 = vector.shape_cast %17 : vector<2x8x8x128xf32> to vector<128x128xf32>
      %c0_18 = arith.constant 0 : index
      %c0_19 = arith.constant 0 : index
      %c0_20 = arith.constant 0 : index
      %19 = vector.load %arg2[%c0_18, %c0_19, %c0_20] : memref<9x128x128xbf16, #tpu.memory_space<vmem>>, vector<1x128x128xbf16>
      %20 = vector.shape_cast %19 : vector<1x128x128xbf16> to vector<128x128xbf16>
      %21 = arith.extf %20 : vector<128x128xbf16> to vector<128x128xf32>
      %cst_21 = arith.constant dense<0.000000e+00> : vector<128x128xf32>
      %22 = tpu.matmul %18, %21, %cst_21 {dimension_numbers = #tpu.dot_dimension_numbers<[1], [0], [0], [1], [0, 0, 1, 1], [], []>} : vector<128x128xf32>, vector<128x128xf32>, vector<128x128xf32> -> vector<128x128xf32>
      %c0_22 = arith.constant 0 : index
      %c0_23 = arith.constant 0 : index
      %c1 = arith.constant 1 : index
      %c0_24 = arith.constant 0 : index
      %23 = vector.load %arg1[%c0_22, %c0_23, %c1, %c0_24] : memref<2x10x10x128xf32, #tpu.memory_space<vmem>>, vector<2x8x8x128xf32>
      %24 = vector.shape_cast %23 : vector<2x8x8x128xf32> to vector<128x128xf32>
      %c1_25 = arith.constant 1 : index
      %c0_26 = arith.constant 0 : index
      %c0_27 = arith.constant 0 : index
      %25 = vector.load %arg2[%c1_25, %c0_26, %c0_27] : memref<9x128x128xbf16, #tpu.memory_space<vmem>>, vector<1x128x128xbf16>
      %26 = vector.shape_cast %25 : vector<1x128x128xbf16> to vector<128x128xbf16>
      %27 = arith.extf %26 : vector<128x128xbf16> to vector<128x128xf32>
      %cst_28 = arith.constant dense<0.000000e+00> : vector<128x128xf32>
      %28 = tpu.matmul %24, %27, %cst_28 {dimension_numbers = #tpu.dot_dimension_numbers<[1], [0], [0], [1], [0, 0, 1, 1], [], []>} : vector<128x128xf32>, vector<128x128xf32>, vector<128x128xf32> -> vector<128x128xf32>
      %29 = arith.addf %22, %28 : vector<128x128xf32>
      %c0_29 = arith.constant 0 : index
      %c0_30 = arith.constant 0 : index
      %c2 = arith.constant 2 : index
      %c0_31 = arith.constant 0 : index
      %30 = vector.load %arg1[%c0_29, %c0_30, %c2, %c0_31] : memref<2x10x10x128xf32, #tpu.memory_space<vmem>>, vector<2x8x8x128xf32>
      %31 = vector.shape_cast %30 : vector<2x8x8x128xf32> to vector<128x128xf32>
      %c2_32 = arith.constant 2 : index
      %c0_33 = arith.constant 0 : index
      %c0_34 = arith.constant 0 : index
      %32 = vector.load %arg2[%c2_32, %c0_33, %c0_34] : memref<9x128x128xbf16, #tpu.memory_space<vmem>>, vector<1x128x128xbf16>
      %33 = vector.shape_cast %32 : vector<1x128x128xbf16> to vector<128x128xbf16>
      %34 = arith.extf %33 : vector<128x128xbf16> to vector<128x128xf32>
      %cst_35 = arith.constant dense<0.000000e+00> : vector<128x128xf32>
      %35 = tpu.matmul %31, %34, %cst_35 {dimension_numbers = #tpu.dot_dimension_numbers<[1], [0], [0], [1], [0, 0, 1, 1], [], []>} : vector<128x128xf32>, vector<128x128xf32>, vector<128x128xf32> -> vector<128x128xf32>
      %36 = arith.addf %29, %35 : vector<128x128xf32>
      %c0_36 = arith.constant 0 : index
      %c1_37 = arith.constant 1 : index
      %c0_38 = arith.constant 0 : index
      %c0_39 = arith.constant 0 : index
      %37 = vector.load %arg1[%c0_36, %c1_37, %c0_38, %c0_39] : memref<2x10x10x128xf32, #tpu.memory_space<vmem>>, vector<2x8x8x128xf32>
      %38 = vector.shape_cast %37 : vector<2x8x8x128xf32> to vector<128x128xf32>
      %c3 = arith.constant 3 : index
      %c0_40 = arith.constant 0 : index
      %c0_41 = arith.constant 0 : index
      %39 = vector.load %arg2[%c3, %c0_40, %c0_41] : memref<9x128x128xbf16, #tpu.memory_space<vmem>>, vector<1x128x128xbf16>
      %40 = vector.shape_cast %39 : vector<1x128x128xbf16> to vector<128x128xbf16>
      %41 = arith.extf %40 : vector<128x128xbf16> to vector<128x128xf32>
      %cst_42 = arith.constant dense<0.000000e+00> : vector<128x128xf32>
      %42 = tpu.matmul %38, %41, %cst_42 {dimension_numbers = #tpu.dot_dimension_numbers<[1], [0], [0], [1], [0, 0, 1, 1], [], []>} : vector<128x128xf32>, vector<128x128xf32>, vector<128x128xf32> -> vector<128x128xf32>
      %43 = arith.addf %36, %42 : vector<128x128xf32>
      %c0_43 = arith.constant 0 : index
      %c1_44 = arith.constant 1 : index
      %c1_45 = arith.constant 1 : index
      %c0_46 = arith.constant 0 : index
      %44 = vector.load %arg1[%c0_43, %c1_44, %c1_45, %c0_46] : memref<2x10x10x128xf32, #tpu.memory_space<vmem>>, vector<2x8x8x128xf32>
      %45 = vector.shape_cast %44 : vector<2x8x8x128xf32> to vector<128x128xf32>
      %c4 = arith.constant 4 : index
      %c0_47 = arith.constant 0 : index
      %c0_48 = arith.constant 0 : index
      %46 = vector.load %arg2[%c4, %c0_47, %c0_48] : memref<9x128x128xbf16, #tpu.memory_space<vmem>>, vector<1x128x128xbf16>
      %47 = vector.shape_cast %46 : vector<1x128x128xbf16> to vector<128x128xbf16>
      %48 = arith.extf %47 : vector<128x128xbf16> to vector<128x128xf32>
      %cst_49 = arith.constant dense<0.000000e+00> : vector<128x128xf32>
      %49 = tpu.matmul %45, %48, %cst_49 {dimension_numbers = #tpu.dot_dimension_numbers<[1], [0], [0], [1], [0, 0, 1, 1], [], []>} : vector<128x128xf32>, vector<128x128xf32>, vector<128x128xf32> -> vector<128x128xf32>
      %50 = arith.addf %43, %49 : vector<128x128xf32>
      %c0_50 = arith.constant 0 : index
      %c1_51 = arith.constant 1 : index
      %c2_52 = arith.constant 2 : index
      %c0_53 = arith.constant 0 : index
      %51 = vector.load %arg1[%c0_50, %c1_51, %c2_52, %c0_53] : memref<2x10x10x128xf32, #tpu.memory_space<vmem>>, vector<2x8x8x128xf32>
      %52 = vector.shape_cast %51 : vector<2x8x8x128xf32> to vector<128x128xf32>
      %c5 = arith.constant 5 : index
      %c0_54 = arith.constant 0 : index
      %c0_55 = arith.constant 0 : index
      %53 = vector.load %arg2[%c5, %c0_54, %c0_55] : memref<9x128x128xbf16, #tpu.memory_space<vmem>>, vector<1x128x128xbf16>
      %54 = vector.shape_cast %53 : vector<1x128x128xbf16> to vector<128x128xbf16>
      %55 = arith.extf %54 : vector<128x128xbf16> to vector<128x128xf32>
      %cst_56 = arith.constant dense<0.000000e+00> : vector<128x128xf32>
      %56 = tpu.matmul %52, %55, %cst_56 {dimension_numbers = #tpu.dot_dimension_numbers<[1], [0], [0], [1], [0, 0, 1, 1], [], []>} : vector<128x128xf32>, vector<128x128xf32>, vector<128x128xf32> -> vector<128x128xf32>
      %57 = arith.addf %50, %56 : vector<128x128xf32>
      %c0_57 = arith.constant 0 : index
      %c2_58 = arith.constant 2 : index
      %c0_59 = arith.constant 0 : index
      %c0_60 = arith.constant 0 : index
      %58 = vector.load %arg1[%c0_57, %c2_58, %c0_59, %c0_60] : memref<2x10x10x128xf32, #tpu.memory_space<vmem>>, vector<2x8x8x128xf32>
      %59 = vector.shape_cast %58 : vector<2x8x8x128xf32> to vector<128x128xf32>
      %c6 = arith.constant 6 : index
      %c0_61 = arith.constant 0 : index
      %c0_62 = arith.constant 0 : index
      %60 = vector.load %arg2[%c6, %c0_61, %c0_62] : memref<9x128x128xbf16, #tpu.memory_space<vmem>>, vector<1x128x128xbf16>
      %61 = vector.shape_cast %60 : vector<1x128x128xbf16> to vector<128x128xbf16>
      %62 = arith.extf %61 : vector<128x128xbf16> to vector<128x128xf32>
      %cst_63 = arith.constant dense<0.000000e+00> : vector<128x128xf32>
      %63 = tpu.matmul %59, %62, %cst_63 {dimension_numbers = #tpu.dot_dimension_numbers<[1], [0], [0], [1], [0, 0, 1, 1], [], []>} : vector<128x128xf32>, vector<128x128xf32>, vector<128x128xf32> -> vector<128x128xf32>
      %64 = arith.addf %57, %63 : vector<128x128xf32>
      %c0_64 = arith.constant 0 : index
      %c2_65 = arith.constant 2 : index
      %c1_66 = arith.constant 1 : index
      %c0_67 = arith.constant 0 : index
      %65 = vector.load %arg1[%c0_64, %c2_65, %c1_66, %c0_67] : memref<2x10x10x128xf32, #tpu.memory_space<vmem>>, vector<2x8x8x128xf32>
      %66 = vector.shape_cast %65 : vector<2x8x8x128xf32> to vector<128x128xf32>
      %c7 = arith.constant 7 : index
      %c0_68 = arith.constant 0 : index
      %c0_69 = arith.constant 0 : index
      %67 = vector.load %arg2[%c7, %c0_68, %c0_69] : memref<9x128x128xbf16, #tpu.memory_space<vmem>>, vector<1x128x128xbf16>
      %68 = vector.shape_cast %67 : vector<1x128x128xbf16> to vector<128x128xbf16>
      %69 = arith.extf %68 : vector<128x128xbf16> to vector<128x128xf32>
      %cst_70 = arith.constant dense<0.000000e+00> : vector<128x128xf32>
      %70 = tpu.matmul %66, %69, %cst_70 {dimension_numbers = #tpu.dot_dimension_numbers<[1], [0], [0], [1], [0, 0, 1, 1], [], []>} : vector<128x128xf32>, vector<128x128xf32>, vector<128x128xf32> -> vector<128x128xf32>
      %71 = arith.addf %64, %70 : vector<128x128xf32>
      %c0_71 = arith.constant 0 : index
      %c2_72 = arith.constant 2 : index
      %c2_73 = arith.constant 2 : index
      %c0_74 = arith.constant 0 : index
      %72 = vector.load %arg1[%c0_71, %c2_72, %c2_73, %c0_74] : memref<2x10x10x128xf32, #tpu.memory_space<vmem>>, vector<2x8x8x128xf32>
      %73 = vector.shape_cast %72 : vector<2x8x8x128xf32> to vector<128x128xf32>
      %c8 = arith.constant 8 : index
      %c0_75 = arith.constant 0 : index
      %c0_76 = arith.constant 0 : index
      %74 = vector.load %arg2[%c8, %c0_75, %c0_76] : memref<9x128x128xbf16, #tpu.memory_space<vmem>>, vector<1x128x128xbf16>
      %75 = vector.shape_cast %74 : vector<1x128x128xbf16> to vector<128x128xbf16>
      %76 = arith.extf %75 : vector<128x128xbf16> to vector<128x128xf32>
      %cst_77 = arith.constant dense<0.000000e+00> : vector<128x128xf32>
      %77 = tpu.matmul %73, %76, %cst_77 {dimension_numbers = #tpu.dot_dimension_numbers<[1], [0], [0], [1], [0, 0, 1, 1], [], []>} : vector<128x128xf32>, vector<128x128xf32>, vector<128x128xf32> -> vector<128x128xf32>
      %78 = arith.addf %71, %77 : vector<128x128xf32>
      %c0_78 = arith.constant 0 : index
      %c0_79 = arith.constant 0 : index
      %79 = vector.load %arg3[%c0_78, %c0_79] : memref<2x128xf32, #tpu.memory_space<vmem>>, vector<1x128xf32>
      %80 = vector.broadcast %79 : vector<1x128xf32> to vector<128x128xf32>
      %81 = arith.mulf %78, %80 : vector<128x128xf32>
      %c1_80 = arith.constant 1 : index
      %c0_81 = arith.constant 0 : index
      %82 = vector.load %arg3[%c1_80, %c0_81] : memref<2x128xf32, #tpu.memory_space<vmem>>, vector<1x128xf32>
      %83 = vector.broadcast %82 : vector<1x128xf32> to vector<128x128xf32>
      %84 = arith.addf %81, %83 : vector<128x128xf32>
      %cst_82 = arith.constant 0.000000e+00 : f32
      %85 = vector.broadcast %cst_82 : f32 to vector<128x128xf32>
      %86 = arith.maximumf %84, %85 : vector<128x128xf32>
      %87 = vector.shape_cast %86 : vector<128x128xf32> to vector<2x8x8x128xf32>
      %c0_83 = arith.constant 0 : index
      %c1_84 = arith.constant 1 : index
      %c1_85 = arith.constant 1 : index
      %c0_86 = arith.constant 0 : index
      %88 = vector.load %arg14[%c0_83, %c1_84, %c1_85, %c0_86] : memref<2x10x10x128xf32, #tpu.memory_space<vmem>>, vector<2x8x8x128xf32>
      tpu.vector_store %arg14[%c0_83, %c1_84, %c1_85, %c0_86], %87 {strides = array<i32>} : memref<2x10x10x128xf32, #tpu.memory_space<vmem>>, vector<2x8x8x128xf32>,
      %c0_87 = arith.constant 0 : index
      %c0_88 = arith.constant 0 : index
      %c0_89 = arith.constant 0 : index
      %c0_90 = arith.constant 0 : index
      %89 = vector.load %arg14[%c0_87, %c0_88, %c0_89, %c0_90] : memref<2x10x10x128xf32, #tpu.memory_space<vmem>>, vector<2x8x8x128xf32>
      %90 = vector.shape_cast %89 : vector<2x8x8x128xf32> to vector<128x128xf32>
      %c0_91 = arith.constant 0 : index
      %c0_92 = arith.constant 0 : index
      %c0_93 = arith.constant 0 : index
      %91 = vector.load %arg4[%c0_91, %c0_92, %c0_93] : memref<9x128x128xbf16, #tpu.memory_space<vmem>>, vector<1x128x128xbf16>
      %92 = vector.shape_cast %91 : vector<1x128x128xbf16> to vector<128x128xbf16>
      %93 = arith.extf %92 : vector<128x128xbf16> to vector<128x128xf32>
      %cst_94 = arith.constant dense<0.000000e+00> : vector<128x128xf32>
      %94 = tpu.matmul %90, %93, %cst_94 {dimension_numbers = #tpu.dot_dimension_numbers<[1], [0], [0], [1], [0, 0, 1, 1], [], []>} : vector<128x128xf32>, vector<128x128xf32>, vector<128x128xf32> -> vector<128x128xf32>
      %c0_95 = arith.constant 0 : index
      %c0_96 = arith.constant 0 : index
      %c1_97 = arith.constant 1 : index
      %c0_98 = arith.constant 0 : index
      %95 = vector.load %arg14[%c0_95, %c0_96, %c1_97, %c0_98] : memref<2x10x10x128xf32, #tpu.memory_space<vmem>>, vector<2x8x8x128xf32>
      %96 = vector.shape_cast %95 : vector<2x8x8x128xf32> to vector<128x128xf32>
      %c1_99 = arith.constant 1 : index
      %c0_100 = arith.constant 0 : index
      %c0_101 = arith.constant 0 : index
      %97 = vector.load %arg4[%c1_99, %c0_100, %c0_101] : memref<9x128x128xbf16, #tpu.memory_space<vmem>>, vector<1x128x128xbf16>
      %98 = vector.shape_cast %97 : vector<1x128x128xbf16> to vector<128x128xbf16>
      %99 = arith.extf %98 : vector<128x128xbf16> to vector<128x128xf32>
      %cst_102 = arith.constant dense<0.000000e+00> : vector<128x128xf32>
      %100 = tpu.matmul %96, %99, %cst_102 {dimension_numbers = #tpu.dot_dimension_numbers<[1], [0], [0], [1], [0, 0, 1, 1], [], []>} : vector<128x128xf32>, vector<128x128xf32>, vector<128x128xf32> -> vector<128x128xf32>
      %101 = arith.addf %94, %100 : vector<128x128xf32>
      %c0_103 = arith.constant 0 : index
      %c0_104 = arith.constant 0 : index
      %c2_105 = arith.constant 2 : index
      %c0_106 = arith.constant 0 : index
      %102 = vector.load %arg14[%c0_103, %c0_104, %c2_105, %c0_106] : memref<2x10x10x128xf32, #tpu.memory_space<vmem>>, vector<2x8x8x128xf32>
      %103 = vector.shape_cast %102 : vector<2x8x8x128xf32> to vector<128x128xf32>
      %c2_107 = arith.constant 2 : index
      %c0_108 = arith.constant 0 : index
      %c0_109 = arith.constant 0 : index
      %104 = vector.load %arg4[%c2_107, %c0_108, %c0_109] : memref<9x128x128xbf16, #tpu.memory_space<vmem>>, vector<1x128x128xbf16>
      %105 = vector.shape_cast %104 : vector<1x128x128xbf16> to vector<128x128xbf16>
      %106 = arith.extf %105 : vector<128x128xbf16> to vector<128x128xf32>
      %cst_110 = arith.constant dense<0.000000e+00> : vector<128x128xf32>
      %107 = tpu.matmul %103, %106, %cst_110 {dimension_numbers = #tpu.dot_dimension_numbers<[1], [0], [0], [1], [0, 0, 1, 1], [], []>} : vector<128x128xf32>, vector<128x128xf32>, vector<128x128xf32> -> vector<128x128xf32>
      %108 = arith.addf %101, %107 : vector<128x128xf32>
      %c0_111 = arith.constant 0 : index
      %c1_112 = arith.constant 1 : index
      %c0_113 = arith.constant 0 : index
      %c0_114 = arith.constant 0 : index
      %109 = vector.load %arg14[%c0_111, %c1_112, %c0_113, %c0_114] : memref<2x10x10x128xf32, #tpu.memory_space<vmem>>, vector<2x8x8x128xf32>
      %110 = vector.shape_cast %109 : vector<2x8x8x128xf32> to vector<128x128xf32>
      %c3_115 = arith.constant 3 : index
      %c0_116 = arith.constant 0 : index
      %c0_117 = arith.constant 0 : index
      %111 = vector.load %arg4[%c3_115, %c0_116, %c0_117] : memref<9x128x128xbf16, #tpu.memory_space<vmem>>, vector<1x128x128xbf16>
      %112 = vector.shape_cast %111 : vector<1x128x128xbf16> to vector<128x128xbf16>
      %113 = arith.extf %112 : vector<128x128xbf16> to vector<128x128xf32>
      %cst_118 = arith.constant dense<0.000000e+00> : vector<128x128xf32>
      %114 = tpu.matmul %110, %113, %cst_118 {dimension_numbers = #tpu.dot_dimension_numbers<[1], [0], [0], [1], [0, 0, 1, 1], [], []>} : vector<128x128xf32>, vector<128x128xf32>, vector<128x128xf32> -> vector<128x128xf32>
      %115 = arith.addf %108, %114 : vector<128x128xf32>
      %c0_119 = arith.constant 0 : index
      %c1_120 = arith.constant 1 : index
      %c1_121 = arith.constant 1 : index
      %c0_122 = arith.constant 0 : index
      %116 = vector.load %arg14[%c0_119, %c1_120, %c1_121, %c0_122] : memref<2x10x10x128xf32, #tpu.memory_space<vmem>>, vector<2x8x8x128xf32>
      %117 = vector.shape_cast %116 : vector<2x8x8x128xf32> to vector<128x128xf32>
      %c4_123 = arith.constant 4 : index
      %c0_124 = arith.constant 0 : index
      %c0_125 = arith.constant 0 : index
      %118 = vector.load %arg4[%c4_123, %c0_124, %c0_125] : memref<9x128x128xbf16, #tpu.memory_space<vmem>>, vector<1x128x128xbf16>
      %119 = vector.shape_cast %118 : vector<1x128x128xbf16> to vector<128x128xbf16>
      %120 = arith.extf %119 : vector<128x128xbf16> to vector<128x128xf32>
      %cst_126 = arith.constant dense<0.000000e+00> : vector<128x128xf32>
      %121 = tpu.matmul %117, %120, %cst_126 {dimension_numbers = #tpu.dot_dimension_numbers<[1], [0], [0], [1], [0, 0, 1, 1], [], []>} : vector<128x128xf32>, vector<128x128xf32>, vector<128x128xf32> -> vector<128x128xf32>
      %122 = arith.addf %115, %121 : vector<128x128xf32>
      %c0_127 = arith.constant 0 : index
      %c1_128 = arith.constant 1 : index
      %c2_129 = arith.constant 2 : index
      %c0_130 = arith.constant 0 : index
      %123 = vector.load %arg14[%c0_127, %c1_128, %c2_129, %c0_130] : memref<2x10x10x128xf32, #tpu.memory_space<vmem>>, vector<2x8x8x128xf32>
      %124 = vector.shape_cast %123 : vector<2x8x8x128xf32> to vector<128x128xf32>
      %c5_131 = arith.constant 5 : index
      %c0_132 = arith.constant 0 : index
      %c0_133 = arith.constant 0 : index
      %125 = vector.load %arg4[%c5_131, %c0_132, %c0_133] : memref<9x128x128xbf16, #tpu.memory_space<vmem>>, vector<1x128x128xbf16>
      %126 = vector.shape_cast %125 : vector<1x128x128xbf16> to vector<128x128xbf16>
      %127 = arith.extf %126 : vector<128x128xbf16> to vector<128x128xf32>
      %cst_134 = arith.constant dense<0.000000e+00> : vector<128x128xf32>
      %128 = tpu.matmul %124, %127, %cst_134 {dimension_numbers = #tpu.dot_dimension_numbers<[1], [0], [0], [1], [0, 0, 1, 1], [], []>} : vector<128x128xf32>, vector<128x128xf32>, vector<128x128xf32> -> vector<128x128xf32>
      %129 = arith.addf %122, %128 : vector<128x128xf32>
      %c0_135 = arith.constant 0 : index
      %c2_136 = arith.constant 2 : index
      %c0_137 = arith.constant 0 : index
      %c0_138 = arith.constant 0 : index
      %130 = vector.load %arg14[%c0_135, %c2_136, %c0_137, %c0_138] : memref<2x10x10x128xf32, #tpu.memory_space<vmem>>, vector<2x8x8x128xf32>
      %131 = vector.shape_cast %130 : vector<2x8x8x128xf32> to vector<128x128xf32>
      %c6_139 = arith.constant 6 : index
      %c0_140 = arith.constant 0 : index
      %c0_141 = arith.constant 0 : index
      %132 = vector.load %arg4[%c6_139, %c0_140, %c0_141] : memref<9x128x128xbf16, #tpu.memory_space<vmem>>, vector<1x128x128xbf16>
      %133 = vector.shape_cast %132 : vector<1x128x128xbf16> to vector<128x128xbf16>
      %134 = arith.extf %133 : vector<128x128xbf16> to vector<128x128xf32>
      %cst_142 = arith.constant dense<0.000000e+00> : vector<128x128xf32>
      %135 = tpu.matmul %131, %134, %cst_142 {dimension_numbers = #tpu.dot_dimension_numbers<[1], [0], [0], [1], [0, 0, 1, 1], [], []>} : vector<128x128xf32>, vector<128x128xf32>, vector<128x128xf32> -> vector<128x128xf32>
      %136 = arith.addf %129, %135 : vector<128x128xf32>
      %c0_143 = arith.constant 0 : index
      %c2_144 = arith.constant 2 : index
      %c1_145 = arith.constant 1 : index
      %c0_146 = arith.constant 0 : index
      %137 = vector.load %arg14[%c0_143, %c2_144, %c1_145, %c0_146] : memref<2x10x10x128xf32, #tpu.memory_space<vmem>>, vector<2x8x8x128xf32>
      %138 = vector.shape_cast %137 : vector<2x8x8x128xf32> to vector<128x128xf32>
      %c7_147 = arith.constant 7 : index
      %c0_148 = arith.constant 0 : index
      %c0_149 = arith.constant 0 : index
      %139 = vector.load %arg4[%c7_147, %c0_148, %c0_149] : memref<9x128x128xbf16, #tpu.memory_space<vmem>>, vector<1x128x128xbf16>
      %140 = vector.shape_cast %139 : vector<1x128x128xbf16> to vector<128x128xbf16>
      %141 = arith.extf %140 : vector<128x128xbf16> to vector<128x128xf32>
      %cst_150 = arith.constant dense<0.000000e+00> : vector<128x128xf32>
      %142 = tpu.matmul %138, %141, %cst_150 {dimension_numbers = #tpu.dot_dimension_numbers<[1], [0], [0], [1], [0, 0, 1, 1], [], []>} : vector<128x128xf32>, vector<128x128xf32>, vector<128x128xf32> -> vector<128x128xf32>
      %143 = arith.addf %136, %142 : vector<128x128xf32>
      %c0_151 = arith.constant 0 : index
      %c2_152 = arith.constant 2 : index
      %c2_153 = arith.constant 2 : index
      %c0_154 = arith.constant 0 : index
      %144 = vector.load %arg14[%c0_151, %c2_152, %c2_153, %c0_154] : memref<2x10x10x128xf32, #tpu.memory_space<vmem>>, vector<2x8x8x128xf32>
      %145 = vector.shape_cast %144 : vector<2x8x8x128xf32> to vector<128x128xf32>
      %c8_155 = arith.constant 8 : index
      %c0_156 = arith.constant 0 : index
      %c0_157 = arith.constant 0 : index
      %146 = vector.load %arg4[%c8_155, %c0_156, %c0_157] : memref<9x128x128xbf16, #tpu.memory_space<vmem>>, vector<1x128x128xbf16>
      %147 = vector.shape_cast %146 : vector<1x128x128xbf16> to vector<128x128xbf16>
      %148 = arith.extf %147 : vector<128x128xbf16> to vector<128x128xf32>
      %cst_158 = arith.constant dense<0.000000e+00> : vector<128x128xf32>
      %149 = tpu.matmul %145, %148, %cst_158 {dimension_numbers = #tpu.dot_dimension_numbers<[1], [0], [0], [1], [0, 0, 1, 1], [], []>} : vector<128x128xf32>, vector<128x128xf32>, vector<128x128xf32> -> vector<128x128xf32>
      %150 = arith.addf %143, %149 : vector<128x128xf32>
      %c0_159 = arith.constant 0 : index
      %c0_160 = arith.constant 0 : index
      %151 = vector.load %arg5[%c0_159, %c0_160] : memref<2x128xf32, #tpu.memory_space<vmem>>, vector<1x128xf32>
      %152 = vector.broadcast %151 : vector<1x128xf32> to vector<128x128xf32>
      %153 = arith.mulf %150, %152 : vector<128x128xf32>
      %c1_161 = arith.constant 1 : index
      %c0_162 = arith.constant 0 : index
      %154 = vector.load %arg5[%c1_161, %c0_162] : memref<2x128xf32, #tpu.memory_space<vmem>>, vector<1x128xf32>
      %155 = vector.broadcast %154 : vector<1x128xf32> to vector<128x128xf32>
      %156 = arith.addf %153, %155 : vector<128x128xf32>
      %cst_163 = arith.constant 0.000000e+00 : f32
      %157 = vector.broadcast %cst_163 : f32 to vector<128x128xf32>
      %158 = arith.maximumf %156, %157 : vector<128x128xf32>
      %159 = vector.shape_cast %158 : vector<128x128xf32> to vector<2x8x8x128xf32>
      %c0_164 = arith.constant 0 : index
      %c1_165 = arith.constant 1 : index
      %c1_166 = arith.constant 1 : index
      %c0_167 = arith.constant 0 : index
      %160 = vector.load %arg14[%c0_164, %c1_165, %c1_166, %c0_167] : memref<2x10x10x128xf32, #tpu.memory_space<vmem>>, vector<2x8x8x128xf32>
      tpu.vector_store %arg14[%c0_164, %c1_165, %c1_166, %c0_167], %159 {strides = array<i32>} : memref<2x10x10x128xf32, #tpu.memory_space<vmem>>, vector<2x8x8x128xf32>,
      %c0_168 = arith.constant 0 : index
      %c0_169 = arith.constant 0 : index
      %c0_170 = arith.constant 0 : index
      %c0_171 = arith.constant 0 : index
      %161 = vector.load %arg14[%c0_168, %c0_169, %c0_170, %c0_171] : memref<2x10x10x128xf32, #tpu.memory_space<vmem>>, vector<2x8x8x128xf32>
      %162 = vector.shape_cast %161 : vector<2x8x8x128xf32> to vector<128x128xf32>
      %c0_172 = arith.constant 0 : index
      %c0_173 = arith.constant 0 : index
      %c0_174 = arith.constant 0 : index
      %163 = vector.load %arg6[%c0_172, %c0_173, %c0_174] : memref<9x128x128xbf16, #tpu.memory_space<vmem>>, vector<1x128x128xbf16>
      %164 = vector.shape_cast %163 : vector<1x128x128xbf16> to vector<128x128xbf16>
      %165 = arith.extf %164 : vector<128x128xbf16> to vector<128x128xf32>
      %cst_175 = arith.constant dense<0.000000e+00> : vector<128x128xf32>
      %166 = tpu.matmul %162, %165, %cst_175 {dimension_numbers = #tpu.dot_dimension_numbers<[1], [0], [0], [1], [0, 0, 1, 1], [], []>} : vector<128x128xf32>, vector<128x128xf32>, vector<128x128xf32> -> vector<128x128xf32>
      %c0_176 = arith.constant 0 : index
      %c0_177 = arith.constant 0 : index
      %c1_178 = arith.constant 1 : index
      %c0_179 = arith.constant 0 : index
      %167 = vector.load %arg14[%c0_176, %c0_177, %c1_178, %c0_179] : memref<2x10x10x128xf32, #tpu.memory_space<vmem>>, vector<2x8x8x128xf32>
      %168 = vector.shape_cast %167 : vector<2x8x8x128xf32> to vector<128x128xf32>
      %c1_180 = arith.constant 1 : index
      %c0_181 = arith.constant 0 : index
      %c0_182 = arith.constant 0 : index
      %169 = vector.load %arg6[%c1_180, %c0_181, %c0_182] : memref<9x128x128xbf16, #tpu.memory_space<vmem>>, vector<1x128x128xbf16>
      %170 = vector.shape_cast %169 : vector<1x128x128xbf16> to vector<128x128xbf16>
      %171 = arith.extf %170 : vector<128x128xbf16> to vector<128x128xf32>
      %cst_183 = arith.constant dense<0.000000e+00> : vector<128x128xf32>
      %172 = tpu.matmul %168, %171, %cst_183 {dimension_numbers = #tpu.dot_dimension_numbers<[1], [0], [0], [1], [0, 0, 1, 1], [], []>} : vector<128x128xf32>, vector<128x128xf32>, vector<128x128xf32> -> vector<128x128xf32>
      %173 = arith.addf %166, %172 : vector<128x128xf32>
      %c0_184 = arith.constant 0 : index
      %c0_185 = arith.constant 0 : index
      %c2_186 = arith.constant 2 : index
      %c0_187 = arith.constant 0 : index
      %174 = vector.load %arg14[%c0_184, %c0_185, %c2_186, %c0_187] : memref<2x10x10x128xf32, #tpu.memory_space<vmem>>, vector<2x8x8x128xf32>
      %175 = vector.shape_cast %174 : vector<2x8x8x128xf32> to vector<128x128xf32>
      %c2_188 = arith.constant 2 : index
      %c0_189 = arith.constant 0 : index
      %c0_190 = arith.constant 0 : index
      %176 = vector.load %arg6[%c2_188, %c0_189, %c0_190] : memref<9x128x128xbf16, #tpu.memory_space<vmem>>, vector<1x128x128xbf16>
      %177 = vector.shape_cast %176 : vector<1x128x128xbf16> to vector<128x128xbf16>
      %178 = arith.extf %177 : vector<128x128xbf16> to vector<128x128xf32>
      %cst_191 = arith.constant dense<0.000000e+00> : vector<128x128xf32>
      %179 = tpu.matmul %175, %178, %cst_191 {dimension_numbers = #tpu.dot_dimension_numbers<[1], [0], [0], [1], [0, 0, 1, 1], [], []>} : vector<128x128xf32>, vector<128x128xf32>, vector<128x128xf32> -> vector<128x128xf32>
      %180 = arith.addf %173, %179 : vector<128x128xf32>
      %c0_192 = arith.constant 0 : index
      %c1_193 = arith.constant 1 : index
      %c0_194 = arith.constant 0 : index
      %c0_195 = arith.constant 0 : index
      %181 = vector.load %arg14[%c0_192, %c1_193, %c0_194, %c0_195] : memref<2x10x10x128xf32, #tpu.memory_space<vmem>>, vector<2x8x8x128xf32>
      %182 = vector.shape_cast %181 : vector<2x8x8x128xf32> to vector<128x128xf32>
      %c3_196 = arith.constant 3 : index
      %c0_197 = arith.constant 0 : index
      %c0_198 = arith.constant 0 : index
      %183 = vector.load %arg6[%c3_196, %c0_197, %c0_198] : memref<9x128x128xbf16, #tpu.memory_space<vmem>>, vector<1x128x128xbf16>
      %184 = vector.shape_cast %183 : vector<1x128x128xbf16> to vector<128x128xbf16>
      %185 = arith.extf %184 : vector<128x128xbf16> to vector<128x128xf32>
      %cst_199 = arith.constant dense<0.000000e+00> : vector<128x128xf32>
      %186 = tpu.matmul %182, %185, %cst_199 {dimension_numbers = #tpu.dot_dimension_numbers<[1], [0], [0], [1], [0, 0, 1, 1], [], []>} : vector<128x128xf32>, vector<128x128xf32>, vector<128x128xf32> -> vector<128x128xf32>
      %187 = arith.addf %180, %186 : vector<128x128xf32>
      %c0_200 = arith.constant 0 : index
      %c1_201 = arith.constant 1 : index
      %c1_202 = arith.constant 1 : index
      %c0_203 = arith.constant 0 : index
      %188 = vector.load %arg14[%c0_200, %c1_201, %c1_202, %c0_203] : memref<2x10x10x128xf32, #tpu.memory_space<vmem>>, vector<2x8x8x128xf32>
      %189 = vector.shape_cast %188 : vector<2x8x8x128xf32> to vector<128x128xf32>
      %c4_204 = arith.constant 4 : index
      %c0_205 = arith.constant 0 : index
      %c0_206 = arith.constant 0 : index
      %190 = vector.load %arg6[%c4_204, %c0_205, %c0_206] : memref<9x128x128xbf16, #tpu.memory_space<vmem>>, vector<1x128x128xbf16>
      %191 = vector.shape_cast %190 : vector<1x128x128xbf16> to vector<128x128xbf16>
      %192 = arith.extf %191 : vector<128x128xbf16> to vector<128x128xf32>
      %cst_207 = arith.constant dense<0.000000e+00> : vector<128x128xf32>
      %193 = tpu.matmul %189, %192, %cst_207 {dimension_numbers = #tpu.dot_dimension_numbers<[1], [0], [0], [1], [0, 0, 1, 1], [], []>} : vector<128x128xf32>, vector<128x128xf32>, vector<128x128xf32> -> vector<128x128xf32>
      %194 = arith.addf %187, %193 : vector<128x128xf32>
      %c0_208 = arith.constant 0 : index
      %c1_209 = arith.constant 1 : index
      %c2_210 = arith.constant 2 : index
      %c0_211 = arith.constant 0 : index
      %195 = vector.load %arg14[%c0_208, %c1_209, %c2_210, %c0_211] : memref<2x10x10x128xf32, #tpu.memory_space<vmem>>, vector<2x8x8x128xf32>
      %196 = vector.shape_cast %195 : vector<2x8x8x128xf32> to vector<128x128xf32>
      %c5_212 = arith.constant 5 : index
      %c0_213 = arith.constant 0 : index
      %c0_214 = arith.constant 0 : index
      %197 = vector.load %arg6[%c5_212, %c0_213, %c0_214] : memref<9x128x128xbf16, #tpu.memory_space<vmem>>, vector<1x128x128xbf16>
      %198 = vector.shape_cast %197 : vector<1x128x128xbf16> to vector<128x128xbf16>
      %199 = arith.extf %198 : vector<128x128xbf16> to vector<128x128xf32>
      %cst_215 = arith.constant dense<0.000000e+00> : vector<128x128xf32>
      %200 = tpu.matmul %196, %199, %cst_215 {dimension_numbers = #tpu.dot_dimension_numbers<[1], [0], [0], [1], [0, 0, 1, 1], [], []>} : vector<128x128xf32>, vector<128x128xf32>, vector<128x128xf32> -> vector<128x128xf32>
      %201 = arith.addf %194, %200 : vector<128x128xf32>
      %c0_216 = arith.constant 0 : index
      %c2_217 = arith.constant 2 : index
      %c0_218 = arith.constant 0 : index
      %c0_219 = arith.constant 0 : index
      %202 = vector.load %arg14[%c0_216, %c2_217, %c0_218, %c0_219] : memref<2x10x10x128xf32, #tpu.memory_space<vmem>>, vector<2x8x8x128xf32>
      %203 = vector.shape_cast %202 : vector<2x8x8x128xf32> to vector<128x128xf32>
      %c6_220 = arith.constant 6 : index
      %c0_221 = arith.constant 0 : index
      %c0_222 = arith.constant 0 : index
      %204 = vector.load %arg6[%c6_220, %c0_221, %c0_222] : memref<9x128x128xbf16, #tpu.memory_space<vmem>>, vector<1x128x128xbf16>
      %205 = vector.shape_cast %204 : vector<1x128x128xbf16> to vector<128x128xbf16>
      %206 = arith.extf %205 : vector<128x128xbf16> to vector<128x128xf32>
      %cst_223 = arith.constant dense<0.000000e+00> : vector<128x128xf32>
      %207 = tpu.matmul %203, %206, %cst_223 {dimension_numbers = #tpu.dot_dimension_numbers<[1], [0], [0], [1], [0, 0, 1, 1], [], []>} : vector<128x128xf32>, vector<128x128xf32>, vector<128x128xf32> -> vector<128x128xf32>
      %208 = arith.addf %201, %207 : vector<128x128xf32>
      %c0_224 = arith.constant 0 : index
      %c2_225 = arith.constant 2 : index
      %c1_226 = arith.constant 1 : index
      %c0_227 = arith.constant 0 : index
      %209 = vector.load %arg14[%c0_224, %c2_225, %c1_226, %c0_227] : memref<2x10x10x128xf32, #tpu.memory_space<vmem>>, vector<2x8x8x128xf32>
      %210 = vector.shape_cast %209 : vector<2x8x8x128xf32> to vector<128x128xf32>
      %c7_228 = arith.constant 7 : index
      %c0_229 = arith.constant 0 : index
      %c0_230 = arith.constant 0 : index
      %211 = vector.load %arg6[%c7_228, %c0_229, %c0_230] : memref<9x128x128xbf16, #tpu.memory_space<vmem>>, vector<1x128x128xbf16>
      %212 = vector.shape_cast %211 : vector<1x128x128xbf16> to vector<128x128xbf16>
      %213 = arith.extf %212 : vector<128x128xbf16> to vector<128x128xf32>
      %cst_231 = arith.constant dense<0.000000e+00> : vector<128x128xf32>
      %214 = tpu.matmul %210, %213, %cst_231 {dimension_numbers = #tpu.dot_dimension_numbers<[1], [0], [0], [1], [0, 0, 1, 1], [], []>} : vector<128x128xf32>, vector<128x128xf32>, vector<128x128xf32> -> vector<128x128xf32>
      %215 = arith.addf %208, %214 : vector<128x128xf32>
      %c0_232 = arith.constant 0 : index
      %c2_233 = arith.constant 2 : index
      %c2_234 = arith.constant 2 : index
      %c0_235 = arith.constant 0 : index
      %216 = vector.load %arg14[%c0_232, %c2_233, %c2_234, %c0_235] : memref<2x10x10x128xf32, #tpu.memory_space<vmem>>, vector<2x8x8x128xf32>
      %217 = vector.shape_cast %216 : vector<2x8x8x128xf32> to vector<128x128xf32>
      %c8_236 = arith.constant 8 : index
      %c0_237 = arith.constant 0 : index
      %c0_238 = arith.constant 0 : index
      %218 = vector.load %arg6[%c8_236, %c0_237, %c0_238] : memref<9x128x128xbf16, #tpu.memory_space<vmem>>, vector<1x128x128xbf16>
      %219 = vector.shape_cast %218 : vector<1x128x128xbf16> to vector<128x128xbf16>
      %220 = arith.extf %219 : vector<128x128xbf16> to vector<128x128xf32>
      %cst_239 = arith.constant dense<0.000000e+00> : vector<128x128xf32>
      %221 = tpu.matmul %217, %220, %cst_239 {dimension_numbers = #tpu.dot_dimension_numbers<[1], [0], [0], [1], [0, 0, 1, 1], [], []>} : vector<128x128xf32>, vector<128x128xf32>, vector<128x128xf32> -> vector<128x128xf32>
      %222 = arith.addf %215, %221 : vector<128x128xf32>
      %c0_240 = arith.constant 0 : index
      %c0_241 = arith.constant 0 : index
      %223 = vector.load %arg7[%c0_240, %c0_241] : memref<2x128xf32, #tpu.memory_space<vmem>>, vector<1x128xf32>
      %224 = vector.broadcast %223 : vector<1x128xf32> to vector<128x128xf32>
      %225 = arith.mulf %222, %224 : vector<128x128xf32>
      %c1_242 = arith.constant 1 : index
      %c0_243 = arith.constant 0 : index
      %226 = vector.load %arg7[%c1_242, %c0_243] : memref<2x128xf32, #tpu.memory_space<vmem>>, vector<1x128xf32>
      %227 = vector.broadcast %226 : vector<1x128xf32> to vector<128x128xf32>
      %228 = arith.addf %225, %227 : vector<128x128xf32>
      %cst_244 = arith.constant 0.000000e+00 : f32
      %229 = vector.broadcast %cst_244 : f32 to vector<128x128xf32>
      %230 = arith.maximumf %228, %229 : vector<128x128xf32>
      %231 = vector.shape_cast %230 : vector<128x128xf32> to vector<2x8x8x128xf32>
      %c0_245 = arith.constant 0 : index
      %c1_246 = arith.constant 1 : index
      %c1_247 = arith.constant 1 : index
      %c0_248 = arith.constant 0 : index
      %232 = vector.load %arg14[%c0_245, %c1_246, %c1_247, %c0_248] : memref<2x10x10x128xf32, #tpu.memory_space<vmem>>, vector<2x8x8x128xf32>
      tpu.vector_store %arg14[%c0_245, %c1_246, %c1_247, %c0_248], %231 {strides = array<i32>} : memref<2x10x10x128xf32, #tpu.memory_space<vmem>>, vector<2x8x8x128xf32>,
      %c0_249 = arith.constant 0 : index
      %c2_250 = arith.constant 2 : index
      %c2_251 = arith.constant 2 : index
      %c0_252 = arith.constant 0 : index
      %233 = vector.load %arg14[%c0_249, %c2_250, %c2_251, %c0_252] : memref<2x10x10x128xf32, #tpu.memory_space<vmem>>, vector<2x1x1x128xf32>
      %234 = vector.shape_cast %233 : vector<2x1x1x128xf32> to vector<2x128xf32>
      %c0_253 = arith.constant 0 : index
      %c0_254 = arith.constant 0 : index
      %c0_255 = arith.constant 0 : index
      %235 = vector.load %arg15[%c0_253, %c0_254, %c0_255] : memref<4x2x1152xf32, #tpu.memory_space<vmem>>, vector<1x2x128xf32>
      %236 = vector.shape_cast %235 : vector<1x2x128xf32> to vector<2x128xf32>
      %237 = vector.shape_cast %234 : vector<2x128xf32> to vector<1x2x128xf32>
      tpu.vector_store %arg15[%c0_253, %c0_254, %c0_255], %237 {strides = array<i32>} : memref<4x2x1152xf32, #tpu.memory_space<vmem>>, vector<1x2x128xf32>,
      %c0_256 = arith.constant 0 : index
      %c2_257 = arith.constant 2 : index
      %c3_258 = arith.constant 3 : index
      %c0_259 = arith.constant 0 : index
      %238 = vector.load %arg14[%c0_256, %c2_257, %c3_258, %c0_259] : memref<2x10x10x128xf32, #tpu.memory_space<vmem>>, vector<2x1x1x128xf32>
      %239 = vector.shape_cast %238 : vector<2x1x1x128xf32> to vector<2x128xf32>
      %c0_260 = arith.constant 0 : index
      %c0_261 = arith.constant 0 : index
      %c128 = arith.constant 128 : index
      %240 = vector.load %arg15[%c0_260, %c0_261, %c128] : memref<4x2x1152xf32, #tpu.memory_space<vmem>>, vector<1x2x128xf32>
      %241 = vector.shape_cast %240 : vector<1x2x128xf32> to vector<2x128xf32>
      %242 = vector.shape_cast %239 : vector<2x128xf32> to vector<1x2x128xf32>
      tpu.vector_store %arg15[%c0_260, %c0_261, %c128], %242 {strides = array<i32>} : memref<4x2x1152xf32, #tpu.memory_space<vmem>>, vector<1x2x128xf32>,
      %c0_262 = arith.constant 0 : index
      %c2_263 = arith.constant 2 : index
      %c4_264 = arith.constant 4 : index
      %c0_265 = arith.constant 0 : index
      %243 = vector.load %arg14[%c0_262, %c2_263, %c4_264, %c0_265] : memref<2x10x10x128xf32, #tpu.memory_space<vmem>>, vector<2x1x1x128xf32>
      %244 = vector.shape_cast %243 : vector<2x1x1x128xf32> to vector<2x128xf32>
      %c0_266 = arith.constant 0 : index
      %c0_267 = arith.constant 0 : index
      %c256 = arith.constant 256 : index
      %245 = vector.load %arg15[%c0_266, %c0_267, %c256] : memref<4x2x1152xf32, #tpu.memory_space<vmem>>, vector<1x2x128xf32>
      %246 = vector.shape_cast %245 : vector<1x2x128xf32> to vector<2x128xf32>
      %247 = vector.shape_cast %244 : vector<2x128xf32> to vector<1x2x128xf32>
      tpu.vector_store %arg15[%c0_266, %c0_267, %c256], %247 {strides = array<i32>} : memref<4x2x1152xf32, #tpu.memory_space<vmem>>, vector<1x2x128xf32>,
      %c0_268 = arith.constant 0 : index
      %c2_269 = arith.constant 2 : index
      %c5_270 = arith.constant 5 : index
      %c0_271 = arith.constant 0 : index
      %248 = vector.load %arg14[%c0_268, %c2_269, %c5_270, %c0_271] : memref<2x10x10x128xf32, #tpu.memory_space<vmem>>, vector<2x1x1x128xf32>
      %249 = vector.shape_cast %248 : vector<2x1x1x128xf32> to vector<2x128xf32>
      %c0_272 = arith.constant 0 : index
      %c0_273 = arith.constant 0 : index
      %c384 = arith.constant 384 : index
      %250 = vector.load %arg15[%c0_272, %c0_273, %c384] : memref<4x2x1152xf32, #tpu.memory_space<vmem>>, vector<1x2x128xf32>
      %251 = vector.shape_cast %250 : vector<1x2x128xf32> to vector<2x128xf32>
      %252 = vector.shape_cast %249 : vector<2x128xf32> to vector<1x2x128xf32>
      tpu.vector_store %arg15[%c0_272, %c0_273, %c384], %252 {strides = array<i32>} : memref<4x2x1152xf32, #tpu.memory_space<vmem>>, vector<1x2x128xf32>,
      %c0_274 = arith.constant 0 : index
      %c2_275 = arith.constant 2 : index
      %c6_276 = arith.constant 6 : index
      %c0_277 = arith.constant 0 : index
      %253 = vector.load %arg14[%c0_274, %c2_275, %c6_276, %c0_277] : memref<2x10x10x128xf32, #tpu.memory_space<vmem>>, vector<2x1x1x128xf32>
      %254 = vector.shape_cast %253 : vector<2x1x1x128xf32> to vector<2x128xf32>
      %c0_278 = arith.constant 0 : index
      %c0_279 = arith.constant 0 : index
      %c512 = arith.constant 512 : index
      %255 = vector.load %arg15[%c0_278, %c0_279, %c512] : memref<4x2x1152xf32, #tpu.memory_space<vmem>>, vector<1x2x128xf32>
      %256 = vector.shape_cast %255 : vector<1x2x128xf32> to vector<2x128xf32>
      %257 = vector.shape_cast %254 : vector<2x128xf32> to vector<1x2x128xf32>
      tpu.vector_store %arg15[%c0_278, %c0_279, %c512], %257 {strides = array<i32>} : memref<4x2x1152xf32, #tpu.memory_space<vmem>>, vector<1x2x128xf32>,
      %c0_280 = arith.constant 0 : index
      %c2_281 = arith.constant 2 : index
      %c7_282 = arith.constant 7 : index
      %c0_283 = arith.constant 0 : index
      %258 = vector.load %arg14[%c0_280, %c2_281, %c7_282, %c0_283] : memref<2x10x10x128xf32, #tpu.memory_space<vmem>>, vector<2x1x1x128xf32>
      %259 = vector.shape_cast %258 : vector<2x1x1x128xf32> to vector<2x128xf32>
      %c0_284 = arith.constant 0 : index
      %c0_285 = arith.constant 0 : index
      %c640 = arith.constant 640 : index
      %260 = vector.load %arg15[%c0_284, %c0_285, %c640] : memref<4x2x1152xf32, #tpu.memory_space<vmem>>, vector<1x2x128xf32>
      %261 = vector.shape_cast %260 : vector<1x2x128xf32> to vector<2x128xf32>
      %262 = vector.shape_cast %259 : vector<2x128xf32> to vector<1x2x128xf32>
      tpu.vector_store %arg15[%c0_284, %c0_285, %c640], %262 {strides = array<i32>} : memref<4x2x1152xf32, #tpu.memory_space<vmem>>, vector<1x2x128xf32>,
      %c0_286 = arith.constant 0 : index
      %c3_287 = arith.constant 3 : index
      %c2_288 = arith.constant 2 : index
      %c0_289 = arith.constant 0 : index
      %263 = vector.load %arg14[%c0_286, %c3_287, %c2_288, %c0_289] : memref<2x10x10x128xf32, #tpu.memory_space<vmem>>, vector<2x1x1x128xf32>
      %264 = vector.shape_cast %263 : vector<2x1x1x128xf32> to vector<2x128xf32>
      %c0_290 = arith.constant 0 : index
      %c0_291 = arith.constant 0 : index
      %c768 = arith.constant 768 : index
      %265 = vector.load %arg15[%c0_290, %c0_291, %c768] : memref<4x2x1152xf32, #tpu.memory_space<vmem>>, vector<1x2x128xf32>
      %266 = vector.shape_cast %265 : vector<1x2x128xf32> to vector<2x128xf32>
      %267 = vector.shape_cast %264 : vector<2x128xf32> to vector<1x2x128xf32>
      tpu.vector_store %arg15[%c0_290, %c0_291, %c768], %267 {strides = array<i32>} : memref<4x2x1152xf32, #tpu.memory_space<vmem>>, vector<1x2x128xf32>,
      %c0_292 = arith.constant 0 : index
      %c3_293 = arith.constant 3 : index
      %c3_294 = arith.constant 3 : index
      %c0_295 = arith.constant 0 : index
      %268 = vector.load %arg14[%c0_292, %c3_293, %c3_294, %c0_295] : memref<2x10x10x128xf32, #tpu.memory_space<vmem>>, vector<2x1x1x128xf32>
      %269 = vector.shape_cast %268 : vector<2x1x1x128xf32> to vector<2x128xf32>
      %c0_296 = arith.constant 0 : index
      %c0_297 = arith.constant 0 : index
      %c896 = arith.constant 896 : index
      %270 = vector.load %arg15[%c0_296, %c0_297, %c896] : memref<4x2x1152xf32, #tpu.memory_space<vmem>>, vector<1x2x128xf32>
      %271 = vector.shape_cast %270 : vector<1x2x128xf32> to vector<2x128xf32>
      %272 = vector.shape_cast %269 : vector<2x128xf32> to vector<1x2x128xf32>
      tpu.vector_store %arg15[%c0_296, %c0_297, %c896], %272 {strides = array<i32>} : memref<4x2x1152xf32, #tpu.memory_space<vmem>>, vector<1x2x128xf32>,
      %c0_298 = arith.constant 0 : index
      %c3_299 = arith.constant 3 : index
      %c4_300 = arith.constant 4 : index
      %c0_301 = arith.constant 0 : index
      %273 = vector.load %arg14[%c0_298, %c3_299, %c4_300, %c0_301] : memref<2x10x10x128xf32, #tpu.memory_space<vmem>>, vector<2x1x1x128xf32>
      %274 = vector.shape_cast %273 : vector<2x1x1x128xf32> to vector<2x128xf32>
      %c0_302 = arith.constant 0 : index
      %c0_303 = arith.constant 0 : index
      %c1024 = arith.constant 1024 : index
      %275 = vector.load %arg15[%c0_302, %c0_303, %c1024] : memref<4x2x1152xf32, #tpu.memory_space<vmem>>, vector<1x2x128xf32>
      %276 = vector.shape_cast %275 : vector<1x2x128xf32> to vector<2x128xf32>
      %277 = vector.shape_cast %274 : vector<2x128xf32> to vector<1x2x128xf32>
      tpu.vector_store %arg15[%c0_302, %c0_303, %c1024], %277 {strides = array<i32>} : memref<4x2x1152xf32, #tpu.memory_space<vmem>>, vector<1x2x128xf32>,
      %c0_304 = arith.constant 0 : index
      %c3_305 = arith.constant 3 : index
      %c5_306 = arith.constant 5 : index
      %c0_307 = arith.constant 0 : index
      %278 = vector.load %arg14[%c0_304, %c3_305, %c5_306, %c0_307] : memref<2x10x10x128xf32, #tpu.memory_space<vmem>>, vector<2x1x1x128xf32>
      %279 = vector.shape_cast %278 : vector<2x1x1x128xf32> to vector<2x128xf32>
      %c1_308 = arith.constant 1 : index
      %c0_309 = arith.constant 0 : index
      %c0_310 = arith.constant 0 : index
      %280 = vector.load %arg15[%c1_308, %c0_309, %c0_310] : memref<4x2x1152xf32, #tpu.memory_space<vmem>>, vector<1x2x128xf32>
      %281 = vector.shape_cast %280 : vector<1x2x128xf32> to vector<2x128xf32>
      %282 = vector.shape_cast %279 : vector<2x128xf32> to vector<1x2x128xf32>
      tpu.vector_store %arg15[%c1_308, %c0_309, %c0_310], %282 {strides = array<i32>} : memref<4x2x1152xf32, #tpu.memory_space<vmem>>, vector<1x2x128xf32>,
      %c0_311 = arith.constant 0 : index
      %c3_312 = arith.constant 3 : index
      %c6_313 = arith.constant 6 : index
      %c0_314 = arith.constant 0 : index
      %283 = vector.load %arg14[%c0_311, %c3_312, %c6_313, %c0_314] : memref<2x10x10x128xf32, #tpu.memory_space<vmem>>, vector<2x1x1x128xf32>
      %284 = vector.shape_cast %283 : vector<2x1x1x128xf32> to vector<2x128xf32>
      %c1_315 = arith.constant 1 : index
      %c0_316 = arith.constant 0 : index
      %c128_317 = arith.constant 128 : index
      %285 = vector.load %arg15[%c1_315, %c0_316, %c128_317] : memref<4x2x1152xf32, #tpu.memory_space<vmem>>, vector<1x2x128xf32>
      %286 = vector.shape_cast %285 : vector<1x2x128xf32> to vector<2x128xf32>
      %287 = vector.shape_cast %284 : vector<2x128xf32> to vector<1x2x128xf32>
      tpu.vector_store %arg15[%c1_315, %c0_316, %c128_317], %287 {strides = array<i32>} : memref<4x2x1152xf32, #tpu.memory_space<vmem>>, vector<1x2x128xf32>,
      %c0_318 = arith.constant 0 : index
      %c3_319 = arith.constant 3 : index
      %c7_320 = arith.constant 7 : index
      %c0_321 = arith.constant 0 : index
      %288 = vector.load %arg14[%c0_318, %c3_319, %c7_320, %c0_321] : memref<2x10x10x128xf32, #tpu.memory_space<vmem>>, vector<2x1x1x128xf32>
      %289 = vector.shape_cast %288 : vector<2x1x1x128xf32> to vector<2x128xf32>
      %c1_322 = arith.constant 1 : index
      %c0_323 = arith.constant 0 : index
      %c256_324 = arith.constant 256 : index
      %290 = vector.load %arg15[%c1_322, %c0_323, %c256_324] : memref<4x2x1152xf32, #tpu.memory_space<vmem>>, vector<1x2x128xf32>
      %291 = vector.shape_cast %290 : vector<1x2x128xf32> to vector<2x128xf32>
      %292 = vector.shape_cast %289 : vector<2x128xf32> to vector<1x2x128xf32>
      tpu.vector_store %arg15[%c1_322, %c0_323, %c256_324], %292 {strides = array<i32>} : memref<4x2x1152xf32, #tpu.memory_space<vmem>>, vector<1x2x128xf32>,
      %c0_325 = arith.constant 0 : index
      %c4_326 = arith.constant 4 : index
      %c2_327 = arith.constant 2 : index
      %c0_328 = arith.constant 0 : index
      %293 = vector.load %arg14[%c0_325, %c4_326, %c2_327, %c0_328] : memref<2x10x10x128xf32, #tpu.memory_space<vmem>>, vector<2x1x1x128xf32>
      %294 = vector.shape_cast %293 : vector<2x1x1x128xf32> to vector<2x128xf32>
      %c1_329 = arith.constant 1 : index
      %c0_330 = arith.constant 0 : index
      %c384_331 = arith.constant 384 : index
      %295 = vector.load %arg15[%c1_329, %c0_330, %c384_331] : memref<4x2x1152xf32, #tpu.memory_space<vmem>>, vector<1x2x128xf32>
      %296 = vector.shape_cast %295 : vector<1x2x128xf32> to vector<2x128xf32>
      %297 = vector.shape_cast %294 : vector<2x128xf32> to vector<1x2x128xf32>
      tpu.vector_store %arg15[%c1_329, %c0_330, %c384_331], %297 {strides = array<i32>} : memref<4x2x1152xf32, #tpu.memory_space<vmem>>, vector<1x2x128xf32>,
      %c0_332 = arith.constant 0 : index
      %c4_333 = arith.constant 4 : index
      %c3_334 = arith.constant 3 : index
      %c0_335 = arith.constant 0 : index
      %298 = vector.load %arg14[%c0_332, %c4_333, %c3_334, %c0_335] : memref<2x10x10x128xf32, #tpu.memory_space<vmem>>, vector<2x1x1x128xf32>
      %299 = vector.shape_cast %298 : vector<2x1x1x128xf32> to vector<2x128xf32>
      %c1_336 = arith.constant 1 : index
      %c0_337 = arith.constant 0 : index
      %c512_338 = arith.constant 512 : index
      %300 = vector.load %arg15[%c1_336, %c0_337, %c512_338] : memref<4x2x1152xf32, #tpu.memory_space<vmem>>, vector<1x2x128xf32>
      %301 = vector.shape_cast %300 : vector<1x2x128xf32> to vector<2x128xf32>
      %302 = vector.shape_cast %299 : vector<2x128xf32> to vector<1x2x128xf32>
      tpu.vector_store %arg15[%c1_336, %c0_337, %c512_338], %302 {strides = array<i32>} : memref<4x2x1152xf32, #tpu.memory_space<vmem>>, vector<1x2x128xf32>,
      %c0_339 = arith.constant 0 : index
      %c4_340 = arith.constant 4 : index
      %c4_341 = arith.constant 4 : index
      %c0_342 = arith.constant 0 : index
      %303 = vector.load %arg14[%c0_339, %c4_340, %c4_341, %c0_342] : memref<2x10x10x128xf32, #tpu.memory_space<vmem>>, vector<2x1x1x128xf32>
      %304 = vector.shape_cast %303 : vector<2x1x1x128xf32> to vector<2x128xf32>
      %c1_343 = arith.constant 1 : index
      %c0_344 = arith.constant 0 : index
      %c640_345 = arith.constant 640 : index
      %305 = vector.load %arg15[%c1_343, %c0_344, %c640_345] : memref<4x2x1152xf32, #tpu.memory_space<vmem>>, vector<1x2x128xf32>
      %306 = vector.shape_cast %305 : vector<1x2x128xf32> to vector<2x128xf32>
      %307 = vector.shape_cast %304 : vector<2x128xf32> to vector<1x2x128xf32>
      tpu.vector_store %arg15[%c1_343, %c0_344, %c640_345], %307 {strides = array<i32>} : memref<4x2x1152xf32, #tpu.memory_space<vmem>>, vector<1x2x128xf32>,
      %c0_346 = arith.constant 0 : index
      %c4_347 = arith.constant 4 : index
      %c5_348 = arith.constant 5 : index
      %c0_349 = arith.constant 0 : index
      %308 = vector.load %arg14[%c0_346, %c4_347, %c5_348, %c0_349] : memref<2x10x10x128xf32, #tpu.memory_space<vmem>>, vector<2x1x1x128xf32>
      %309 = vector.shape_cast %308 : vector<2x1x1x128xf32> to vector<2x128xf32>
      %c1_350 = arith.constant 1 : index
      %c0_351 = arith.constant 0 : index
      %c768_352 = arith.constant 768 : index
      %310 = vector.load %arg15[%c1_350, %c0_351, %c768_352] : memref<4x2x1152xf32, #tpu.memory_space<vmem>>, vector<1x2x128xf32>
      %311 = vector.shape_cast %310 : vector<1x2x128xf32> to vector<2x128xf32>
      %312 = vector.shape_cast %309 : vector<2x128xf32> to vector<1x2x128xf32>
      tpu.vector_store %arg15[%c1_350, %c0_351, %c768_352], %312 {strides = array<i32>} : memref<4x2x1152xf32, #tpu.memory_space<vmem>>, vector<1x2x128xf32>,
      %c0_353 = arith.constant 0 : index
      %c4_354 = arith.constant 4 : index
      %c6_355 = arith.constant 6 : index
      %c0_356 = arith.constant 0 : index
      %313 = vector.load %arg14[%c0_353, %c4_354, %c6_355, %c0_356] : memref<2x10x10x128xf32, #tpu.memory_space<vmem>>, vector<2x1x1x128xf32>
      %314 = vector.shape_cast %313 : vector<2x1x1x128xf32> to vector<2x128xf32>
      %c1_357 = arith.constant 1 : index
      %c0_358 = arith.constant 0 : index
      %c896_359 = arith.constant 896 : index
      %315 = vector.load %arg15[%c1_357, %c0_358, %c896_359] : memref<4x2x1152xf32, #tpu.memory_space<vmem>>, vector<1x2x128xf32>
      %316 = vector.shape_cast %315 : vector<1x2x128xf32> to vector<2x128xf32>
      %317 = vector.shape_cast %314 : vector<2x128xf32> to vector<1x2x128xf32>
      tpu.vector_store %arg15[%c1_357, %c0_358, %c896_359], %317 {strides = array<i32>} : memref<4x2x1152xf32, #tpu.memory_space<vmem>>, vector<1x2x128xf32>,
      %c0_360 = arith.constant 0 : index
      %c4_361 = arith.constant 4 : index
      %c7_362 = arith.constant 7 : index
      %c0_363 = arith.constant 0 : index
      %318 = vector.load %arg14[%c0_360, %c4_361, %c7_362, %c0_363] : memref<2x10x10x128xf32, #tpu.memory_space<vmem>>, vector<2x1x1x128xf32>
      %319 = vector.shape_cast %318 : vector<2x1x1x128xf32> to vector<2x128xf32>
      %c1_364 = arith.constant 1 : index
      %c0_365 = arith.constant 0 : index
      %c1024_366 = arith.constant 1024 : index
      %320 = vector.load %arg15[%c1_364, %c0_365, %c1024_366] : memref<4x2x1152xf32, #tpu.memory_space<vmem>>, vector<1x2x128xf32>
      %321 = vector.shape_cast %320 : vector<1x2x128xf32> to vector<2x128xf32>
      %322 = vector.shape_cast %319 : vector<2x128xf32> to vector<1x2x128xf32>
      tpu.vector_store %arg15[%c1_364, %c0_365, %c1024_366], %322 {strides = array<i32>} : memref<4x2x1152xf32, #tpu.memory_space<vmem>>, vector<1x2x128xf32>,
      %c0_367 = arith.constant 0 : index
      %c5_368 = arith.constant 5 : index
      %c2_369 = arith.constant 2 : index
      %c0_370 = arith.constant 0 : index
      %323 = vector.load %arg14[%c0_367, %c5_368, %c2_369, %c0_370] : memref<2x10x10x128xf32, #tpu.memory_space<vmem>>, vector<2x1x1x128xf32>
      %324 = vector.shape_cast %323 : vector<2x1x1x128xf32> to vector<2x128xf32>
      %c2_371 = arith.constant 2 : index
      %c0_372 = arith.constant 0 : index
      %c0_373 = arith.constant 0 : index
      %325 = vector.load %arg15[%c2_371, %c0_372, %c0_373] : memref<4x2x1152xf32, #tpu.memory_space<vmem>>, vector<1x2x128xf32>
      %326 = vector.shape_cast %325 : vector<1x2x128xf32> to vector<2x128xf32>
      %327 = vector.shape_cast %324 : vector<2x128xf32> to vector<1x2x128xf32>
      tpu.vector_store %arg15[%c2_371, %c0_372, %c0_373], %327 {strides = array<i32>} : memref<4x2x1152xf32, #tpu.memory_space<vmem>>, vector<1x2x128xf32>,
      %c0_374 = arith.constant 0 : index
      %c5_375 = arith.constant 5 : index
      %c3_376 = arith.constant 3 : index
      %c0_377 = arith.constant 0 : index
      %328 = vector.load %arg14[%c0_374, %c5_375, %c3_376, %c0_377] : memref<2x10x10x128xf32, #tpu.memory_space<vmem>>, vector<2x1x1x128xf32>
      %329 = vector.shape_cast %328 : vector<2x1x1x128xf32> to vector<2x128xf32>
      %c2_378 = arith.constant 2 : index
      %c0_379 = arith.constant 0 : index
      %c128_380 = arith.constant 128 : index
      %330 = vector.load %arg15[%c2_378, %c0_379, %c128_380] : memref<4x2x1152xf32, #tpu.memory_space<vmem>>, vector<1x2x128xf32>
      %331 = vector.shape_cast %330 : vector<1x2x128xf32> to vector<2x128xf32>
      %332 = vector.shape_cast %329 : vector<2x128xf32> to vector<1x2x128xf32>
      tpu.vector_store %arg15[%c2_378, %c0_379, %c128_380], %332 {strides = array<i32>} : memref<4x2x1152xf32, #tpu.memory_space<vmem>>, vector<1x2x128xf32>,
      %c0_381 = arith.constant 0 : index
      %c5_382 = arith.constant 5 : index
      %c4_383 = arith.constant 4 : index
      %c0_384 = arith.constant 0 : index
      %333 = vector.load %arg14[%c0_381, %c5_382, %c4_383, %c0_384] : memref<2x10x10x128xf32, #tpu.memory_space<vmem>>, vector<2x1x1x128xf32>
      %334 = vector.shape_cast %333 : vector<2x1x1x128xf32> to vector<2x128xf32>
      %c2_385 = arith.constant 2 : index
      %c0_386 = arith.constant 0 : index
      %c256_387 = arith.constant 256 : index
      %335 = vector.load %arg15[%c2_385, %c0_386, %c256_387] : memref<4x2x1152xf32, #tpu.memory_space<vmem>>, vector<1x2x128xf32>
      %336 = vector.shape_cast %335 : vector<1x2x128xf32> to vector<2x128xf32>
      %337 = vector.shape_cast %334 : vector<2x128xf32> to vector<1x2x128xf32>
      tpu.vector_store %arg15[%c2_385, %c0_386, %c256_387], %337 {strides = array<i32>} : memref<4x2x1152xf32, #tpu.memory_space<vmem>>, vector<1x2x128xf32>,
      %c0_388 = arith.constant 0 : index
      %c5_389 = arith.constant 5 : index
      %c5_390 = arith.constant 5 : index
      %c0_391 = arith.constant 0 : index
      %338 = vector.load %arg14[%c0_388, %c5_389, %c5_390, %c0_391] : memref<2x10x10x128xf32, #tpu.memory_space<vmem>>, vector<2x1x1x128xf32>
      %339 = vector.shape_cast %338 : vector<2x1x1x128xf32> to vector<2x128xf32>
      %c2_392 = arith.constant 2 : index
      %c0_393 = arith.constant 0 : index
      %c384_394 = arith.constant 384 : index
      %340 = vector.load %arg15[%c2_392, %c0_393, %c384_394] : memref<4x2x1152xf32, #tpu.memory_space<vmem>>, vector<1x2x128xf32>
      %341 = vector.shape_cast %340 : vector<1x2x128xf32> to vector<2x128xf32>
      %342 = vector.shape_cast %339 : vector<2x128xf32> to vector<1x2x128xf32>
      tpu.vector_store %arg15[%c2_392, %c0_393, %c384_394], %342 {strides = array<i32>} : memref<4x2x1152xf32, #tpu.memory_space<vmem>>, vector<1x2x128xf32>,
      %c0_395 = arith.constant 0 : index
      %c5_396 = arith.constant 5 : index
      %c6_397 = arith.constant 6 : index
      %c0_398 = arith.constant 0 : index
      %343 = vector.load %arg14[%c0_395, %c5_396, %c6_397, %c0_398] : memref<2x10x10x128xf32, #tpu.memory_space<vmem>>, vector<2x1x1x128xf32>
      %344 = vector.shape_cast %343 : vector<2x1x1x128xf32> to vector<2x128xf32>
      %c2_399 = arith.constant 2 : index
      %c0_400 = arith.constant 0 : index
      %c512_401 = arith.constant 512 : index
      %345 = vector.load %arg15[%c2_399, %c0_400, %c512_401] : memref<4x2x1152xf32, #tpu.memory_space<vmem>>, vector<1x2x128xf32>
      %346 = vector.shape_cast %345 : vector<1x2x128xf32> to vector<2x128xf32>
      %347 = vector.shape_cast %344 : vector<2x128xf32> to vector<1x2x128xf32>
      tpu.vector_store %arg15[%c2_399, %c0_400, %c512_401], %347 {strides = array<i32>} : memref<4x2x1152xf32, #tpu.memory_space<vmem>>, vector<1x2x128xf32>,
      %c0_402 = arith.constant 0 : index
      %c5_403 = arith.constant 5 : index
      %c7_404 = arith.constant 7 : index
      %c0_405 = arith.constant 0 : index
      %348 = vector.load %arg14[%c0_402, %c5_403, %c7_404, %c0_405] : memref<2x10x10x128xf32, #tpu.memory_space<vmem>>, vector<2x1x1x128xf32>
      %349 = vector.shape_cast %348 : vector<2x1x1x128xf32> to vector<2x128xf32>
      %c2_406 = arith.constant 2 : index
      %c0_407 = arith.constant 0 : index
      %c640_408 = arith.constant 640 : index
      %350 = vector.load %arg15[%c2_406, %c0_407, %c640_408] : memref<4x2x1152xf32, #tpu.memory_space<vmem>>, vector<1x2x128xf32>
      %351 = vector.shape_cast %350 : vector<1x2x128xf32> to vector<2x128xf32>
      %352 = vector.shape_cast %349 : vector<2x128xf32> to vector<1x2x128xf32>
      tpu.vector_store %arg15[%c2_406, %c0_407, %c640_408], %352 {strides = array<i32>} : memref<4x2x1152xf32, #tpu.memory_space<vmem>>, vector<1x2x128xf32>,
      %c0_409 = arith.constant 0 : index
      %c6_410 = arith.constant 6 : index
      %c2_411 = arith.constant 2 : index
      %c0_412 = arith.constant 0 : index
      %353 = vector.load %arg14[%c0_409, %c6_410, %c2_411, %c0_412] : memref<2x10x10x128xf32, #tpu.memory_space<vmem>>, vector<2x1x1x128xf32>
      %354 = vector.shape_cast %353 : vector<2x1x1x128xf32> to vector<2x128xf32>
      %c2_413 = arith.constant 2 : index
      %c0_414 = arith.constant 0 : index
      %c768_415 = arith.constant 768 : index
      %355 = vector.load %arg15[%c2_413, %c0_414, %c768_415] : memref<4x2x1152xf32, #tpu.memory_space<vmem>>, vector<1x2x128xf32>
      %356 = vector.shape_cast %355 : vector<1x2x128xf32> to vector<2x128xf32>
      %357 = vector.shape_cast %354 : vector<2x128xf32> to vector<1x2x128xf32>
      tpu.vector_store %arg15[%c2_413, %c0_414, %c768_415], %357 {strides = array<i32>} : memref<4x2x1152xf32, #tpu.memory_space<vmem>>, vector<1x2x128xf32>,
      %c0_416 = arith.constant 0 : index
      %c6_417 = arith.constant 6 : index
      %c3_418 = arith.constant 3 : index
      %c0_419 = arith.constant 0 : index
      %358 = vector.load %arg14[%c0_416, %c6_417, %c3_418, %c0_419] : memref<2x10x10x128xf32, #tpu.memory_space<vmem>>, vector<2x1x1x128xf32>
      %359 = vector.shape_cast %358 : vector<2x1x1x128xf32> to vector<2x128xf32>
      %c2_420 = arith.constant 2 : index
      %c0_421 = arith.constant 0 : index
      %c896_422 = arith.constant 896 : index
      %360 = vector.load %arg15[%c2_420, %c0_421, %c896_422] : memref<4x2x1152xf32, #tpu.memory_space<vmem>>, vector<1x2x128xf32>
      %361 = vector.shape_cast %360 : vector<1x2x128xf32> to vector<2x128xf32>
      %362 = vector.shape_cast %359 : vector<2x128xf32> to vector<1x2x128xf32>
      tpu.vector_store %arg15[%c2_420, %c0_421, %c896_422], %362 {strides = array<i32>} : memref<4x2x1152xf32, #tpu.memory_space<vmem>>, vector<1x2x128xf32>,
      %c0_423 = arith.constant 0 : index
      %c6_424 = arith.constant 6 : index
      %c4_425 = arith.constant 4 : index
      %c0_426 = arith.constant 0 : index
      %363 = vector.load %arg14[%c0_423, %c6_424, %c4_425, %c0_426] : memref<2x10x10x128xf32, #tpu.memory_space<vmem>>, vector<2x1x1x128xf32>
      %364 = vector.shape_cast %363 : vector<2x1x1x128xf32> to vector<2x128xf32>
      %c2_427 = arith.constant 2 : index
      %c0_428 = arith.constant 0 : index
      %c1024_429 = arith.constant 1024 : index
      %365 = vector.load %arg15[%c2_427, %c0_428, %c1024_429] : memref<4x2x1152xf32, #tpu.memory_space<vmem>>, vector<1x2x128xf32>
      %366 = vector.shape_cast %365 : vector<1x2x128xf32> to vector<2x128xf32>
      %367 = vector.shape_cast %364 : vector<2x128xf32> to vector<1x2x128xf32>
      tpu.vector_store %arg15[%c2_427, %c0_428, %c1024_429], %367 {strides = array<i32>} : memref<4x2x1152xf32, #tpu.memory_space<vmem>>, vector<1x2x128xf32>,
      %c0_430 = arith.constant 0 : index
      %c6_431 = arith.constant 6 : index
      %c5_432 = arith.constant 5 : index
      %c0_433 = arith.constant 0 : index
      %368 = vector.load %arg14[%c0_430, %c6_431, %c5_432, %c0_433] : memref<2x10x10x128xf32, #tpu.memory_space<vmem>>, vector<2x1x1x128xf32>
      %369 = vector.shape_cast %368 : vector<2x1x1x128xf32> to vector<2x128xf32>
      %c3_434 = arith.constant 3 : index
      %c0_435 = arith.constant 0 : index
      %c0_436 = arith.constant 0 : index
      %370 = vector.load %arg15[%c3_434, %c0_435, %c0_436] : memref<4x2x1152xf32, #tpu.memory_space<vmem>>, vector<1x2x128xf32>
      %371 = vector.shape_cast %370 : vector<1x2x128xf32> to vector<2x128xf32>
      %372 = vector.shape_cast %369 : vector<2x128xf32> to vector<1x2x128xf32>
      tpu.vector_store %arg15[%c3_434, %c0_435, %c0_436], %372 {strides = array<i32>} : memref<4x2x1152xf32, #tpu.memory_space<vmem>>, vector<1x2x128xf32>,
      %c0_437 = arith.constant 0 : index
      %c6_438 = arith.constant 6 : index
      %c6_439 = arith.constant 6 : index
      %c0_440 = arith.constant 0 : index
      %373 = vector.load %arg14[%c0_437, %c6_438, %c6_439, %c0_440] : memref<2x10x10x128xf32, #tpu.memory_space<vmem>>, vector<2x1x1x128xf32>
      %374 = vector.shape_cast %373 : vector<2x1x1x128xf32> to vector<2x128xf32>
      %c3_441 = arith.constant 3 : index
      %c0_442 = arith.constant 0 : index
      %c128_443 = arith.constant 128 : index
      %375 = vector.load %arg15[%c3_441, %c0_442, %c128_443] : memref<4x2x1152xf32, #tpu.memory_space<vmem>>, vector<1x2x128xf32>
      %376 = vector.shape_cast %375 : vector<1x2x128xf32> to vector<2x128xf32>
      %377 = vector.shape_cast %374 : vector<2x128xf32> to vector<1x2x128xf32>
      tpu.vector_store %arg15[%c3_441, %c0_442, %c128_443], %377 {strides = array<i32>} : memref<4x2x1152xf32, #tpu.memory_space<vmem>>, vector<1x2x128xf32>,
      %c0_444 = arith.constant 0 : index
      %c6_445 = arith.constant 6 : index
      %c7_446 = arith.constant 7 : index
      %c0_447 = arith.constant 0 : index
      %378 = vector.load %arg14[%c0_444, %c6_445, %c7_446, %c0_447] : memref<2x10x10x128xf32, #tpu.memory_space<vmem>>, vector<2x1x1x128xf32>
      %379 = vector.shape_cast %378 : vector<2x1x1x128xf32> to vector<2x128xf32>
      %c3_448 = arith.constant 3 : index
      %c0_449 = arith.constant 0 : index
      %c256_450 = arith.constant 256 : index
      %380 = vector.load %arg15[%c3_448, %c0_449, %c256_450] : memref<4x2x1152xf32, #tpu.memory_space<vmem>>, vector<1x2x128xf32>
      %381 = vector.shape_cast %380 : vector<1x2x128xf32> to vector<2x128xf32>
      %382 = vector.shape_cast %379 : vector<2x128xf32> to vector<1x2x128xf32>
      tpu.vector_store %arg15[%c3_448, %c0_449, %c256_450], %382 {strides = array<i32>} : memref<4x2x1152xf32, #tpu.memory_space<vmem>>, vector<1x2x128xf32>,
      %c0_451 = arith.constant 0 : index
      %c7_452 = arith.constant 7 : index
      %c2_453 = arith.constant 2 : index
      %c0_454 = arith.constant 0 : index
      %383 = vector.load %arg14[%c0_451, %c7_452, %c2_453, %c0_454] : memref<2x10x10x128xf32, #tpu.memory_space<vmem>>, vector<2x1x1x128xf32>
      %384 = vector.shape_cast %383 : vector<2x1x1x128xf32> to vector<2x128xf32>
      %c3_455 = arith.constant 3 : index
      %c0_456 = arith.constant 0 : index
      %c384_457 = arith.constant 384 : index
      %385 = vector.load %arg15[%c3_455, %c0_456, %c384_457] : memref<4x2x1152xf32, #tpu.memory_space<vmem>>, vector<1x2x128xf32>
      %386 = vector.shape_cast %385 : vector<1x2x128xf32> to vector<2x128xf32>
      %387 = vector.shape_cast %384 : vector<2x128xf32> to vector<1x2x128xf32>
      tpu.vector_store %arg15[%c3_455, %c0_456, %c384_457], %387 {strides = array<i32>} : memref<4x2x1152xf32, #tpu.memory_space<vmem>>, vector<1x2x128xf32>,
      %c0_458 = arith.constant 0 : index
      %c7_459 = arith.constant 7 : index
      %c3_460 = arith.constant 3 : index
      %c0_461 = arith.constant 0 : index
      %388 = vector.load %arg14[%c0_458, %c7_459, %c3_460, %c0_461] : memref<2x10x10x128xf32, #tpu.memory_space<vmem>>, vector<2x1x1x128xf32>
      %389 = vector.shape_cast %388 : vector<2x1x1x128xf32> to vector<2x128xf32>
      %c3_462 = arith.constant 3 : index
      %c0_463 = arith.constant 0 : index
      %c512_464 = arith.constant 512 : index
      %390 = vector.load %arg15[%c3_462, %c0_463, %c512_464] : memref<4x2x1152xf32, #tpu.memory_space<vmem>>, vector<1x2x128xf32>
      %391 = vector.shape_cast %390 : vector<1x2x128xf32> to vector<2x128xf32>
      %392 = vector.shape_cast %389 : vector<2x128xf32> to vector<1x2x128xf32>
      tpu.vector_store %arg15[%c3_462, %c0_463, %c512_464], %392 {strides = array<i32>} : memref<4x2x1152xf32, #tpu.memory_space<vmem>>, vector<1x2x128xf32>,
      %c0_465 = arith.constant 0 : index
      %c7_466 = arith.constant 7 : index
      %c4_467 = arith.constant 4 : index
      %c0_468 = arith.constant 0 : index
      %393 = vector.load %arg14[%c0_465, %c7_466, %c4_467, %c0_468] : memref<2x10x10x128xf32, #tpu.memory_space<vmem>>, vector<2x1x1x128xf32>
      %394 = vector.shape_cast %393 : vector<2x1x1x128xf32> to vector<2x128xf32>
      %c3_469 = arith.constant 3 : index
      %c0_470 = arith.constant 0 : index
      %c640_471 = arith.constant 640 : index
      %395 = vector.load %arg15[%c3_469, %c0_470, %c640_471] : memref<4x2x1152xf32, #tpu.memory_space<vmem>>, vector<1x2x128xf32>
      %396 = vector.shape_cast %395 : vector<1x2x128xf32> to vector<2x128xf32>
      %397 = vector.shape_cast %394 : vector<2x128xf32> to vector<1x2x128xf32>
      tpu.vector_store %arg15[%c3_469, %c0_470, %c640_471], %397 {strides = array<i32>} : memref<4x2x1152xf32, #tpu.memory_space<vmem>>, vector<1x2x128xf32>,
      %c0_472 = arith.constant 0 : index
      %c7_473 = arith.constant 7 : index
      %c5_474 = arith.constant 5 : index
      %c0_475 = arith.constant 0 : index
      %398 = vector.load %arg14[%c0_472, %c7_473, %c5_474, %c0_475] : memref<2x10x10x128xf32, #tpu.memory_space<vmem>>, vector<2x1x1x128xf32>
      %399 = vector.shape_cast %398 : vector<2x1x1x128xf32> to vector<2x128xf32>
      %c3_476 = arith.constant 3 : index
      %c0_477 = arith.constant 0 : index
      %c768_478 = arith.constant 768 : index
      %400 = vector.load %arg15[%c3_476, %c0_477, %c768_478] : memref<4x2x1152xf32, #tpu.memory_space<vmem>>, vector<1x2x128xf32>
      %401 = vector.shape_cast %400 : vector<1x2x128xf32> to vector<2x128xf32>
      %402 = vector.shape_cast %399 : vector<2x128xf32> to vector<1x2x128xf32>
      tpu.vector_store %arg15[%c3_476, %c0_477, %c768_478], %402 {strides = array<i32>} : memref<4x2x1152xf32, #tpu.memory_space<vmem>>, vector<1x2x128xf32>,
      %c0_479 = arith.constant 0 : index
      %c7_480 = arith.constant 7 : index
      %c6_481 = arith.constant 6 : index
      %c0_482 = arith.constant 0 : index
      %403 = vector.load %arg14[%c0_479, %c7_480, %c6_481, %c0_482] : memref<2x10x10x128xf32, #tpu.memory_space<vmem>>, vector<2x1x1x128xf32>
      %404 = vector.shape_cast %403 : vector<2x1x1x128xf32> to vector<2x128xf32>
      %c3_483 = arith.constant 3 : index
      %c0_484 = arith.constant 0 : index
      %c896_485 = arith.constant 896 : index
      %405 = vector.load %arg15[%c3_483, %c0_484, %c896_485] : memref<4x2x1152xf32, #tpu.memory_space<vmem>>, vector<1x2x128xf32>
      %406 = vector.shape_cast %405 : vector<1x2x128xf32> to vector<2x128xf32>
      %407 = vector.shape_cast %404 : vector<2x128xf32> to vector<1x2x128xf32>
      tpu.vector_store %arg15[%c3_483, %c0_484, %c896_485], %407 {strides = array<i32>} : memref<4x2x1152xf32, #tpu.memory_space<vmem>>, vector<1x2x128xf32>,
      %c0_486 = arith.constant 0 : index
      %c7_487 = arith.constant 7 : index
      %c7_488 = arith.constant 7 : index
      %c0_489 = arith.constant 0 : index
      %408 = vector.load %arg14[%c0_486, %c7_487, %c7_488, %c0_489] : memref<2x10x10x128xf32, #tpu.memory_space<vmem>>, vector<2x1x1x128xf32>
      %409 = vector.shape_cast %408 : vector<2x1x1x128xf32> to vector<2x128xf32>
      %c3_490 = arith.constant 3 : index
      %c0_491 = arith.constant 0 : index
      %c1024_492 = arith.constant 1024 : index
      %410 = vector.load %arg15[%c3_490, %c0_491, %c1024_492] : memref<4x2x1152xf32, #tpu.memory_space<vmem>>, vector<1x2x128xf32>
      %411 = vector.shape_cast %410 : vector<1x2x128xf32> to vector<2x128xf32>
      %412 = vector.shape_cast %409 : vector<2x128xf32> to vector<1x2x128xf32>
      tpu.vector_store %arg15[%c3_490, %c0_491, %c1024_492], %412 {strides = array<i32>} : memref<4x2x1152xf32, #tpu.memory_space<vmem>>, vector<1x2x128xf32>,
      %cst_493 = arith.constant 0.000000e+00 : f32
      %413 = vector.broadcast %cst_493 : f32 to vector<2x512xf32>
      %c0_494 = arith.constant 0 : index
      %c0_495 = arith.constant 0 : index
      %414 = vector.load %arg16[%c0_494, %c0_495] : memref<2x512xf32, #tpu.memory_space<vmem>>, vector<2x512xf32>
      tpu.vector_store %arg16[%c0_494, %c0_495], %413 {strides = array<i32>} : memref<2x512xf32, #tpu.memory_space<vmem>>, vector<2x512xf32>,
    } else {
    }
    %c0 = arith.constant 0 : index
    %c0_1 = arith.constant 0 : index
    %3 = vector.load %arg16[%c0, %c0_1] : memref<2x512xf32, #tpu.memory_space<vmem>>, vector<2x512xf32>
    %4 = arith.index_cast %arg0 : i32 to index
    %c0_2 = arith.constant 0 : index
    %c0_3 = arith.constant 0 : index
    %5 = vector.load %arg15[%4, %c0_2, %c0_3] : memref<4x2x1152xf32, #tpu.memory_space<vmem>>, vector<1x2x1152xf32>
    %6 = vector.shape_cast %5 : vector<1x2x1152xf32> to vector<2x1152xf32>
    %7 = arith.truncf %6 : vector<2x1152xf32> to vector<2x1152xbf16>
    %c0_4 = arith.constant 0 : index
    %c0_5 = arith.constant 0 : index
    %8 = vector.load %arg8[%c0_4, %c0_5] : memref<1152x512xbf16, #tpu.memory_space<vmem>>, vector<1152x512xbf16>
    %cst = arith.constant dense<0.000000e+00> : vector<2x512xf32>
    %9 = tpu.matmul %7, %8, %cst {dimension_numbers = #tpu.dot_dimension_numbers<[1], [0], [0], [1], [0, 0, 1, 1], [], []>} : vector<2x1152xbf16>, vector<1152x512xbf16>, vector<2x512xf32> -> vector<2x512xf32>
    %10 = arith.addf %3, %9 : vector<2x512xf32>
    %c0_6 = arith.constant 0 : index
    %c0_7 = arith.constant 0 : index
    %11 = vector.load %arg16[%c0_6, %c0_7] : memref<2x512xf32, #tpu.memory_space<vmem>>, vector<2x512xf32>
    tpu.vector_store %arg16[%c0_6, %c0_7], %10 {strides = array<i32>} : memref<2x512xf32, #tpu.memory_space<vmem>>, vector<2x512xf32>,
    %c3_i32 = arith.constant 3 : i32
    %12 = arith.cmpi eq, %arg0, %c3_i32 : i32
    %13 = arith.extui %12 : i1 to i32
    %c0_i32_8 = arith.constant 0 : i32
    %14 = arith.cmpi ne, %13, %c0_i32_8 : i32
    scf.if %14 {
      %c0_9 = arith.constant 0 : index
      %c0_10 = arith.constant 0 : index
      %15 = vector.load %arg16[%c0_9, %c0_10] : memref<2x512xf32, #tpu.memory_space<vmem>>, vector<2x512xf32>
      %c0_11 = arith.constant 0 : index
      %c0_12 = arith.constant 0 : index
      %16 = vector.load %arg9[%c0_11, %c0_12] : memref<2x512xf32, #tpu.memory_space<vmem>>, vector<1x512xf32>
      %17 = vector.broadcast %16 : vector<1x512xf32> to vector<2x512xf32>
      %18 = arith.mulf %15, %17 : vector<2x512xf32>
      %c1 = arith.constant 1 : index
      %c0_13 = arith.constant 0 : index
      %19 = vector.load %arg9[%c1, %c0_13] : memref<2x512xf32, #tpu.memory_space<vmem>>, vector<1x512xf32>
      %20 = vector.broadcast %19 : vector<1x512xf32> to vector<2x512xf32>
      %21 = arith.addf %18, %20 : vector<2x512xf32>
      %c0_14 = arith.constant 0 : index
      %c0_15 = arith.constant 0 : index
      %22 = vector.load %arg10[%c0_14, %c0_15] : memref<512x256xbf16, #tpu.memory_space<vmem>>, vector<512x256xbf16>
      %23 = arith.extf %22 : vector<512x256xbf16> to vector<512x256xf32>
      %cst_16 = arith.constant dense<0.000000e+00> : vector<2x256xf32>
      %24 = tpu.matmul %21, %23, %cst_16 {dimension_numbers = #tpu.dot_dimension_numbers<[1], [0], [0], [1], [0, 0, 1, 1], [], []>} : vector<2x512xf32>, vector<512x256xf32>, vector<2x256xf32> -> vector<2x256xf32>
      %c0_17 = arith.constant 0 : index
      %c0_18 = arith.constant 0 : index
      %25 = vector.load %arg11[%c0_17, %c0_18] : memref<1x256xf32, #tpu.memory_space<vmem>>, vector<1x256xf32>
      %26 = vector.broadcast %25 : vector<1x256xf32> to vector<2x256xf32>
      %27 = arith.addf %24, %26 : vector<2x256xf32>
      %28 = vector.extract_strided_slice %27 {offsets = [0, 0], sizes = [2, 128], strides = [1, 1]} : vector<2x256xf32> to vector<2x128xf32>
      %cst_19 = arith.constant dense<0xFF800000> : vector<2xf32>
      %29 = vector.multi_reduction <maximumf>, %28, %cst_19 [1] : vector<2x128xf32> to vector<2xf32>
      %30 = vector.shape_cast %29 : vector<2xf32> to vector<2x1xf32>
      %31 = vector.broadcast %30 : vector<2x1xf32> to vector<2x128xf32>
      %32 = arith.subf %28, %31 : vector<2x128xf32>
      %33 = math.exp %32 : vector<2x128xf32>
      %cst_20 = arith.constant dense<0.000000e+00> : vector<2xf32>
      %34 = vector.multi_reduction <add>, %33, %cst_20 [1] : vector<2x128xf32> to vector<2xf32>
      %35 = vector.shape_cast %34 : vector<2xf32> to vector<2x1xf32>
      %36 = math.log %35 : vector<2x1xf32>
      %37 = vector.broadcast %36 : vector<2x1xf32> to vector<2x128xf32>
      %38 = arith.subf %32, %37 : vector<2x128xf32>
      %c0_21 = arith.constant 0 : index
      %c0_22 = arith.constant 0 : index
      %39 = vector.load %arg12[%c0_21, %c0_22] : memref<2x128xf32, #tpu.memory_space<vmem>>, vector<2x128xf32>
      tpu.vector_store %arg12[%c0_21, %c0_22], %38 {strides = array<i32>} : memref<2x128xf32, #tpu.memory_space<vmem>>, vector<2x128xf32>,
      %40 = vector.extract_strided_slice %27 {offsets = [0, 128], sizes = [2, 128], strides = [1, 1]} : vector<2x256xf32> to vector<2x128xf32>
      %41 = math.tanh %40 : vector<2x128xf32>
      %c0_23 = arith.constant 0 : index
      %c0_24 = arith.constant 0 : index
      %42 = vector.load %arg13[%c0_23, %c0_24] : memref<2x128xf32, #tpu.memory_space<vmem>>, vector<2x128xf32>
      tpu.vector_store %arg13[%c0_23, %c0_24], %41 {strides = array<i32>} : memref<2x128xf32, #tpu.memory_space<vmem>>, vector<2x128xf32>,
    } else {
    }
    return
  }
  func.func @transform_0(%arg0: i32) -> (i32, i32, i32, i32) {
    %c0_i32 = arith.constant 0 : i32
    %c0_i32_0 = arith.constant 0 : i32
    %c0_i32_1 = arith.constant 0 : i32
    %c0_i32_2 = arith.constant 0 : i32
    %c0_i32_3 = arith.constant 0 : i32
    return %c0_i32, %c0_i32_0, %c0_i32_1, %c0_i32_2 : i32, i32, i32, i32
  }
  func.func @transform_1(%arg0: i32) -> (i32, i32, i32) {
    %c0_i32 = arith.constant 0 : i32
    %c0_i32_0 = arith.constant 0 : i32
    %c0_i32_1 = arith.constant 0 : i32
    %c0_i32_2 = arith.constant 0 : i32
    return %c0_i32, %c0_i32_0, %c0_i32_1 : i32, i32, i32
  }
  func.func @transform_2(%arg0: i32) -> (i32, i32) {
    %c0_i32 = arith.constant 0 : i32
    %c0_i32_0 = arith.constant 0 : i32
    %c0_i32_1 = arith.constant 0 : i32
    return %c0_i32, %c0_i32_0 : i32, i32
  }
  func.func @transform_3(%arg0: i32) -> (i32, i32, i32) {
    %c0_i32 = arith.constant 0 : i32
    %c0_i32_0 = arith.constant 0 : i32
    %c0_i32_1 = arith.constant 0 : i32
    %c0_i32_2 = arith.constant 0 : i32
    return %c0_i32, %c0_i32_0, %c0_i32_1 : i32, i32, i32
  }
  func.func @transform_4(%arg0: i32) -> (i32, i32) {
    %c0_i32 = arith.constant 0 : i32
    %c0_i32_0 = arith.constant 0 : i32
    %c0_i32_1 = arith.constant 0 : i32
    return %c0_i32, %c0_i32_0 : i32, i32
  }
  func.func @transform_5(%arg0: i32) -> (i32, i32, i32) {
    %c0_i32 = arith.constant 0 : i32
    %c0_i32_0 = arith.constant 0 : i32
    %c0_i32_1 = arith.constant 0 : i32
    %c0_i32_2 = arith.constant 0 : i32
    return %c0_i32, %c0_i32_0, %c0_i32_1 : i32, i32, i32
  }
  func.func @transform_6(%arg0: i32) -> (i32, i32) {
    %c0_i32 = arith.constant 0 : i32
    %c0_i32_0 = arith.constant 0 : i32
    %c0_i32_1 = arith.constant 0 : i32
    return %c0_i32, %c0_i32_0 : i32, i32
  }
  func.func @transform_7(%arg0: i32) -> (i32, i32) {
    %c0_i32 = arith.constant 0 : i32
    %c0_i32_0 = arith.constant 0 : i32
    return %arg0, %c0_i32 : i32, i32
  }
  func.func @transform_8(%arg0: i32) -> (i32, i32) {
    %c0_i32 = arith.constant 0 : i32
    %c0_i32_0 = arith.constant 0 : i32
    %c0_i32_1 = arith.constant 0 : i32
    return %c0_i32, %c0_i32_0 : i32, i32
  }
  func.func @transform_9(%arg0: i32) -> (i32, i32) {
    %c0_i32 = arith.constant 0 : i32
    %c0_i32_0 = arith.constant 0 : i32
    %c0_i32_1 = arith.constant 0 : i32
    return %c0_i32, %c0_i32_0 : i32, i32
  }
  func.func @transform_10(%arg0: i32) -> (i32, i32) {
    %c0_i32 = arith.constant 0 : i32
    %c0_i32_0 = arith.constant 0 : i32
    %c0_i32_1 = arith.constant 0 : i32
    return %c0_i32, %c0_i32_0 : i32, i32
  }
  func.func @transform_11(%arg0: i32) -> (i32, i32) {
    %c0_i32 = arith.constant 0 : i32
    %c0_i32_0 = arith.constant 0 : i32
    %c0_i32_1 = arith.constant 0 : i32
    return %c0_i32, %c0_i32_0 : i32, i32
  }
  func.func @transform_12(%arg0: i32) -> (i32, i32) {
    %c0_i32 = arith.constant 0 : i32
    %c0_i32_0 = arith.constant 0 : i32
    %c0_i32_1 = arith.constant 0 : i32
    return %c0_i32, %c0_i32_0 : i32, i32
  }
}

</mosaic_0001>

<bundles_post_ra>
// kernel: nnet2_forward_pallas.1
= control target key start
LH: loop header
LB: loop body
LE: loop exit
PB: predicated region body
PF: predicated region fallthrough
CT: control target
= control target key end

     0   :  { %s18973_s0 = inlined_call_operand.vmem [shape: f32[2,10,10,128], index: 0, kind: input, shape index: {}]   ;;  %s18974_s1 = inlined_call_operand.hbm [shape: bf16[9,128,128], index: 1, kind: input, shape index: {}]   ;;  %s18975_s2 = inlined_call_operand.hbm [shape: f32[2,128], index: 2, kind: input, shape index: {}]   ;;  %s18976_s3 = inlined_call_operand.hbm [shape: bf16[9,128,128], index: 3, kind: input, shape index: {}]   ;;  %s18977_s4 = inlined_call_operand.hbm [shape: f32[2,128], index: 4, kind: input, shape index: {}]   ;;  %s18978_s5 = inlined_call_operand.hbm [shape: bf16[9,128,128], index: 5, kind: input, shape index: {}]   ;;  %s18979_s6 = inlined_call_operand.hbm [shape: f32[2,128], index: 6, kind: input, shape index: {}]   ;;  %s18980_s7 = inlined_call_operand.hbm [shape: bf16[4608,512], index: 7, kind: input, shape index: {}]   ;;  %s18981_s8 = inlined_call_operand.hbm [shape: f32[2,512], index: 8, kind: input, shape index: {}]   ;;  %s18982_s9 = inlined_call_operand.hbm [shape: bf16[512,256], index: 9, kind: input, shape index: {}]   ;;  %s18983_s10 = inlined_call_operand.hbm [shape: f32[1,256], index: 10, kind: input, shape index: {}]   ;;  %s18984_s11 = inlined_call_operand.hbm [shape: f32[2,128], index: 11, kind: output, shape index: {0}]   ;;  %s18985_s12 = inlined_call_operand.vmem [shape: f32[2,128], index: 12, kind: output, shape index: {1}]  }
   0x1   :  { %18991 = sst [smem:[#allocation31_spill]] %s18973_s0 }
   0x2   :  { %18992 = sst [smem:[#allocation32_spill]] %s18975_s2 }
   0x3   :  { %18993 = sst [smem:[#allocation33_spill]] %s18977_s4 }
   0x4   :  { %18994 = sst [smem:[#allocation34_spill]] %s18984_s11 }
   0x5   :  { %18995 = sst [smem:[#allocation35_spill]] %s18985_s12 }
   0x6   :  { %18 = vsyncpa [#allocation6], 0 }
   0x7   :  { %19 = vsyncpa [#allocation9], 0 }
   0x8   :  { %20 = vsyncpa [#allocation12], 0 }
   0x9   :  { %21 = vsyncpa [#allocation15], 0 }
   0xa   :  { %22 = vsyncpa [#allocation7], 0  ;;  %s16775_s21 = smov 0   ;;  %s16777_s22 = smov 0  }
   0xb   :  { %s16779_s23 = smov 0   ;;  %s16781_s24 = smov 0  }
   0xc LB: > { %s16690_s25 = smov [#allocation8]   ;;  %s16796_s27 = sadd.s32 4294967295, %s16688_s24   ;;  %s16688_s24 = sphi %s16781_s24, %s19029_s24   ;;  %s16684_s23 = sphi %s16779_s23, %s19028_s23   ;;  %s16680_s22 = sphi %s16777_s22, %s19027_s22   ;;  %s16676_s21 = sphi %s16775_s21, %s19026_s21  }
   0xd   : > { %s340_s26 = sshll.u32 %s16690_s25, 4  ;;  %p10211_p0 = scmp.ge.s32.totalorder %s16688_s24, 1  ;;  %s341_s26 = int_to_ptr.vmem [resolvable:$true] %s340_s26 }
   0xe   : > { %p18986_p1 = scmp.eq.s32.totalorder %s16796_s27, 0  ;;  %p311_p2 = scmp.lt.s32.totalorder %s16688_s24, 5 }
   0xf   : > { %s16691_s29 = smov [#allocation11]   ;;  %s16692_s13 = smov [#allocation5]  }
  0x10   : > { %p16802_p4 = pnand %p10211_p0, %p311_p2  ;;  %s364_s30 = sshll.u32 %s16691_s29, 4  ;;  %s16808_s30 = int_to_ptr.vmem [resolvable:$true] %s364_s30 }
  0x11   : > { %s326_s14 = sshll.u32 %s16692_s13, 4  ;;  %s18999_s2 = sld [smem:[#allocation32_spill]]  ;;  %s16816_s14 = int_to_ptr.vmem [resolvable:$true] %s326_s14 }
  0x12   : > { %s18996_s28 = scalar_select %p16802_p4, 1, 0 }
  0x13   : > { %p15673_p5 = pneg %p16802_p4 }
  0x14   : > { %18997 = sst [smem:[#allocation30_spill]] %s18996_s28 }
  0x15   : > { %p16812_p6 = pnand %p15673_p5, %p18986_p1 }
  0x17   : > { %s16314_s18 = scalar_lea.hbm %s18999_s2, 32  ;;  %p16826_p8 = pneg %p16812_p6 }
  0x18   : > { %p16315_p7 = scmp.ne.s32.totalorder %s18999_s2, %s16314_s18  ;;  %p16321_p11 = scmp.lt.u32.totalorder %s16314_s18, %s18999_s2 }
  0x1a   : > { %p16317_p9 = pnand %p16826_p8, %p16315_p7 }
  0x1c   : > { %p16318_p10 = pneg %p16317_p9 }
  0x1e   : > { %p16323_p12 = pnand %p16321_p11, %p16318_p10 }
  0x20   : > { %16326 = shalt.err (!%p16323_p12)
}
  0x21   : > { %s16327_s16 = scalar_lea.vmem %s341_s26, 32  ;;  %p16335_p5 = scmp.lt.s32.totalorder %s341_s26, %s341_s26 }
  0x22   : > { %p16328_p13 = scmp.ne.s32.totalorder %s341_s26, %s16327_s16  ;;  %p16336_p3 = scmp.lt.s32.totalorder %s16327_s16, %s16327_s16 }
  0x24   : > { %p16330_p0 = pnand %p16328_p13, %p16826_p8  ;;  %p16337_p1 = por %p16336_p3, %p16335_p5 }
  0x26   : > { %p16331_p2 = pneg %p16330_p0 }
  0x28   : > { %p16338_p4 = pnand %p16337_p1, %p16331_p2 }
  0x2a   : > { %16341 = shalt.err (!%p16338_p4)
}
  0x2b   : > { %15679 = dma.hbm_to_vmem [thread:$0]  (!%p16812_p6), %s18999_s2, 32, %s341_s26, [#allocation9]  }
  0x2c   : > { %s19001_s4 = sld [smem:[#allocation33_spill]] }
  0x32   : > { %s16342_s29 = scalar_lea.hbm %s19001_s4, 32 }
  0x33   : > { %p16343_p7 = scmp.ne.s32.totalorder %s19001_s4, %s16342_s29  ;;  %p16349_p1 = scmp.lt.u32.totalorder %s16342_s29, %s19001_s4 }
  0x35   : > { %p16345_p9 = pnand %p16343_p7, %p16826_p8 }
  0x37   : > { %p16346_p3 = pneg %p16345_p9 }
  0x39   : > { %p16351_p4 = pnand %p16349_p1, %p16346_p3 }
  0x3b   : > { %16354 = shalt.err (!%p16351_p4)
}
  0x3c   : > { %s16355_s26 = scalar_lea.vmem %s16808_s30, 32  ;;  %p16363_p13 = scmp.lt.s32.totalorder %s16808_s30, %s16808_s30 }
  0x3d   : > { %p16356_p10 = scmp.ne.s32.totalorder %s16808_s30, %s16355_s26  ;;  %p16364_p0 = scmp.lt.s32.totalorder %s16355_s26, %s16355_s26 }
  0x3f   : > { %p16358_p11 = pnand %p16356_p10, %p16826_p8  ;;  %p16365_p2 = por %p16364_p0, %p16363_p13 }
  0x41   : > { %p16359_p12 = pneg %p16358_p11 }
  0x43   : > { %p16366_p5 = pnand %p16365_p2, %p16359_p12 }
  0x45   : > { %16369 = shalt.err (!%p16366_p5)
}
  0x46   : > { %15685 = dma.hbm_to_vmem [thread:$0]  (!%p16812_p6), %s19001_s4, 32, %s16808_s30, [#allocation12]  }
  0x47   : > { %s16370_s18 = scalar_lea.hbm %s18974_s1, 9216 }
  0x48   : > { %p16371_p7 = scmp.ne.s32.totalorder %s18974_s1, %s16370_s18  ;;  %p16377_p1 = scmp.lt.u32.totalorder %s16370_s18, %s18974_s1 }
  0x4a   : > { %p16373_p9 = pnand %p16371_p7, %p16826_p8 }
  0x4c   : > { %p16374_p3 = pneg %p16373_p9 }
  0x4e   : > { %p16379_p4 = pnand %p16377_p1, %p16374_p3 }
  0x50   : > { %16382 = shalt.err (!%p16379_p4)
}
  0x51   : > { %s16383_s30 = scalar_lea.vmem %s16816_s14, 9216  ;;  %p16391_p13 = scmp.lt.s32.totalorder %s16816_s14, %s16816_s14 }
  0x52   : > { %p16384_p10 = scmp.ne.s32.totalorder %s16816_s14, %s16383_s30  ;;  %p16392_p0 = scmp.lt.s32.totalorder %s16383_s30, %s16383_s30 }
  0x54   : > { %p16386_p11 = pnand %p16384_p10, %p16826_p8  ;;  %p16393_p2 = por %p16392_p0, %p16391_p13 }
  0x56   : > { %p16387_p12 = pneg %p16386_p11 }
  0x58   : > { %p16394_p5 = pnand %p16393_p2, %p16387_p12 }
  0x5a   : > { %16397 = shalt.err (!%p16394_p5)
}
  0x5b   : > { %s16693_s26 = smov 64   ;;  %s16694_s11 = smov 4  }
  0x5c   : > { %15676 = dma.hbm_to_vmem [thread:$0]  (!%p16812_p6), %s18974_s1, 9216, %s16816_s14, [#allocation6], %s16693_s26, %s16693_s26, %s16694_s11  }
  0x5d   : > { %s16695_s19 = smov [#allocation10]   ;;  %s16696_s20 = smov [#allocation13]  }
  0x5e   : > { %s350_s18 = sshll.u32 %s16695_s19, 4  ;;  %s374_s29 = sshll.u32 %s16696_s20, 4  ;;  %s351_s18 = int_to_ptr.vmem [resolvable:$true] %s350_s18  ;;  %s375_s29 = int_to_ptr.vmem [resolvable:$true] %s374_s29 }
  0x5f   : > { %s16398_s30 = scalar_lea.hbm %s18976_s3, 9216 }
  0x60   : > { %p16399_p7 = scmp.ne.s32.totalorder %s18976_s3, %s16398_s30  ;;  %p16405_p1 = scmp.lt.u32.totalorder %s16398_s30, %s18976_s3 }
  0x62   : > { %p16401_p9 = pnand %p16399_p7, %p16826_p8 }
  0x64   : > { %p16402_p3 = pneg %p16401_p9 }
  0x66   : > { %p16407_p4 = pnand %p16405_p1, %p16402_p3 }
  0x68   : > { %16410 = shalt.err (!%p16407_p4)
}
  0x69   : > { %s16411_s14 = scalar_lea.vmem %s351_s18, 9216  ;;  %p16419_p13 = scmp.lt.s32.totalorder %s351_s18, %s351_s18 }
  0x6a   : > { %p16412_p10 = scmp.ne.s32.totalorder %s351_s18, %s16411_s14  ;;  %p16420_p0 = scmp.lt.s32.totalorder %s16411_s14, %s16411_s14 }
  0x6c   : > { %p16414_p11 = pnand %p16412_p10, %p16826_p8  ;;  %p16421_p2 = por %p16420_p0, %p16419_p13 }
  0x6e   : > { %p16415_p12 = pneg %p16414_p11 }
  0x70   : > { %p16422_p5 = pnand %p16421_p2, %p16415_p12 }
  0x72   : > { %16425 = shalt.err (!%p16422_p5)
}
  0x73   : > { %15682 = dma.hbm_to_vmem [thread:$0]  (!%p16812_p6), %s18976_s3, 9216, %s351_s18, [#allocation9], %s16693_s26, %s16693_s26, %s16694_s11  }
  0x74   : > { %s16426_s12 = scalar_lea.hbm %s18978_s5, 9216 }
  0x75   : > { %p16427_p7 = scmp.ne.s32.totalorder %s18978_s5, %s16426_s12  ;;  %p16433_p1 = scmp.lt.u32.totalorder %s16426_s12, %s18978_s5 }
  0x77   : > { %p16429_p9 = pnand %p16427_p7, %p16826_p8 }
  0x79   : > { %p16430_p3 = pneg %p16429_p9 }
  0x7b   : > { %p16435_p4 = pnand %p16433_p1, %p16430_p3 }
  0x7d   : > { %16438 = shalt.err (!%p16435_p4)
}
  0x7e   : > { %s16439_s16 = scalar_lea.vmem %s375_s29, 9216  ;;  %p16447_p13 = scmp.lt.s32.totalorder %s375_s29, %s375_s29 }
  0x7f   : > { %p16440_p10 = scmp.ne.s32.totalorder %s375_s29, %s16439_s16  ;;  %p16448_p0 = scmp.lt.s32.totalorder %s16439_s16, %s16439_s16 }
  0x81   : > { %p16442_p11 = pnand %p16440_p10, %p16826_p8  ;;  %p16449_p2 = por %p16448_p0, %p16447_p13 }
  0x83   : > { %p16443_p12 = pneg %p16442_p11 }
  0x85   : > { %p16450_p5 = pnand %p16449_p2, %p16443_p12 }
  0x87   : > { %16453 = shalt.err (!%p16450_p5)
}
  0x88   : > { %15688 = dma.hbm_to_vmem [thread:$0]  (!%p16812_p6), %s18978_s5, 9216, %s375_s29, [#allocation12], %s16693_s26, %s16693_s26, %s16694_s11  }
  0x89   : > { %s16697_s14 = smov [#allocation14]   ;;  %s16698_s2 = smov [#allocation17]  }
  0x8a   : > { %s388_s0 = sshll.u32 %s16697_s14, 4  ;;  %s399_s4 = sshll.u32 %s16698_s2, 4  ;;  %s389_s0 = int_to_ptr.vmem [resolvable:$true] %s388_s0  ;;  %s400_s4 = int_to_ptr.vmem [resolvable:$true] %s399_s4 }
  0x8b   : > { %s16454_s17 = scalar_lea.hbm %s18979_s6, 32 }
  0x8c   : > { %p16455_p7 = scmp.ne.s32.totalorder %s18979_s6, %s16454_s17  ;;  %p16461_p1 = scmp.lt.u32.totalorder %s16454_s17, %s18979_s6 }
  0x8e   : > { %p16457_p9 = pnand %p16455_p7, %p16826_p8 }
  0x90   : > { %p16458_p3 = pneg %p16457_p9 }
  0x92   : > { %p16463_p4 = pnand %p16461_p1, %p16458_p3 }
  0x94   : > { %16466 = shalt.err (!%p16463_p4)
}
  0x95   : > { %s16467_s26 = scalar_lea.vmem %s389_s0, 32  ;;  %p16475_p13 = scmp.lt.s32.totalorder %s389_s0, %s389_s0 }
  0x96   : > { %p16468_p10 = scmp.ne.s32.totalorder %s389_s0, %s16467_s26  ;;  %p16476_p0 = scmp.lt.s32.totalorder %s16467_s26, %s16467_s26 }
  0x98   : > { %p16470_p11 = pnand %p16468_p10, %p16826_p8  ;;  %p16477_p2 = por %p16476_p0, %p16475_p13 }
  0x9a   : > { %p16471_p12 = pneg %p16470_p11 }
  0x9c   : > { %p16478_p5 = pnand %p16477_p2, %p16471_p12 }
  0x9e   : > { %16481 = shalt.err (!%p16478_p5)
}
  0x9f   : > { %15691 = dma.hbm_to_vmem [thread:$0]  (!%p16812_p6), %s18979_s6, 32, %s389_s0, [#allocation15]  }
  0xa0   : > { %s16482_s14 = scalar_lea.hbm %s18981_s8, 128 }
  0xa1   : > { %p16483_p7 = scmp.ne.s32.totalorder %s18981_s8, %s16482_s14  ;;  %p16489_p1 = scmp.lt.u32.totalorder %s16482_s14, %s18981_s8 }
  0xa3   : > { %p16485_p9 = pnand %p16483_p7, %p16826_p8 }
  0xa5   : > { %p16486_p3 = pneg %p16485_p9 }
  0xa7   : > { %p16491_p4 = pnand %p16489_p1, %p16486_p3 }
  0xa9   : > { %16494 = shalt.err (!%p16491_p4)
}
  0xaa   : > { %s16495_s19 = scalar_lea.vmem %s400_s4, 128  ;;  %p16503_p13 = scmp.lt.s32.totalorder %s400_s4, %s400_s4 }
  0xab   : > { %p16496_p10 = scmp.ne.s32.totalorder %s400_s4, %s16495_s19  ;;  %p16504_p0 = scmp.lt.s32.totalorder %s16495_s19, %s16495_s19 }
  0xad   : > { %p16498_p11 = pnand %p16496_p10, %p16826_p8  ;;  %p16505_p2 = por %p16504_p0, %p16503_p13 }
  0xaf   : > { %p16499_p12 = pneg %p16498_p11 }
  0xb1   : > { %p16506_p5 = pnand %p16505_p2, %p16499_p12 }
  0xb3   : > { %16509 = shalt.err (!%p16506_p5)
}
  0xb4   : > { %15694 = dma.hbm_to_vmem [thread:$0]  (!%p16812_p6), %s18981_s8, 128, %s400_s4, [#allocation9]  }
  0xb5   : > { %s16699_s13 = smov [#allocation18]   ;;  %s16510_s29 = scalar_lea.hbm %s18982_s9, 8192 }
  0xb6   : > { %s409_s16 = sshll.u32 %s16699_s13, 4  ;;  %p16511_p7 = scmp.ne.s32.totalorder %s18982_s9, %s16510_s29  ;;  %s410_s16 = int_to_ptr.vmem [resolvable:$true] %s409_s16 }
  0xb7   : > { %p16517_p1 = scmp.lt.u32.totalorder %s16510_s29, %s18982_s9 }
  0xb8   : > { %p16513_p9 = pnand %p16511_p7, %p16826_p8 }
  0xba   : > { %p16514_p3 = pneg %p16513_p9 }
  0xbc   : > { %p16519_p4 = pnand %p16517_p1, %p16514_p3 }
  0xbe   : > { %16522 = shalt.err (!%p16519_p4)
}
  0xbf   : > { %s16523_s4 = scalar_lea.vmem %s410_s16, 8192  ;;  %p16531_p13 = scmp.lt.s32.totalorder %s410_s16, %s410_s16 }
  0xc0   : > { %p16524_p10 = scmp.ne.s32.totalorder %s410_s16, %s16523_s4  ;;  %p16532_p0 = scmp.lt.s32.totalorder %s16523_s4, %s16523_s4 }
  0xc2   : > { %p16526_p11 = pnand %p16524_p10, %p16826_p8  ;;  %p16533_p2 = por %p16532_p0, %p16531_p13 }
  0xc4   : > { %p16527_p12 = pneg %p16526_p11 }
  0xc6   : > { %p16534_p5 = pnand %p16533_p2, %p16527_p12 }
  0xc8   : > { %16537 = shalt.err (!%p16534_p5)
}
  0xc9   : > { %s16700_s28 = smov 128   ;;  %s16701_s12 = smov 8  }
  0xca   : > { %15697 = dma.hbm_to_vmem [thread:$0]  (!%p16812_p6), %s18982_s9, 8192, %s410_s16, [#allocation12], %s16700_s28, %s16700_s28, %s16701_s12  }
  0xcb   : > { %s16702_s0 = smov [#allocation19]   ;;  %s16538_s11 = scalar_lea.hbm %s18983_s10, 32 }
  0xcc   : > { %s423_s20 = sshll.u32 %s16702_s0, 4  ;;  %p16539_p7 = scmp.ne.s32.totalorder %s18983_s10, %s16538_s11  ;;  %s424_s20 = int_to_ptr.vmem [resolvable:$true] %s423_s20 }
  0xcd   : > { %p16545_p1 = scmp.lt.u32.totalorder %s16538_s11, %s18983_s10 }
  0xce   : > { %p16541_p9 = pnand %p16539_p7, %p16826_p8 }
  0xd0   : > { %p16542_p3 = pneg %p16541_p9 }
  0xd2   : > { %p16547_p4 = pnand %p16545_p1, %p16542_p3 }
  0xd4   : > { %16550 = shalt.err (!%p16547_p4)
}
  0xd5   : > { %s16551_s16 = scalar_lea.vmem %s424_s20, 32  ;;  %p16559_p13 = scmp.lt.s32.totalorder %s424_s20, %s424_s20 }
  0xd6   : > { %p16552_p10 = scmp.ne.s32.totalorder %s424_s20, %s16551_s16  ;;  %p16560_p0 = scmp.lt.s32.totalorder %s16551_s16, %s16551_s16 }
  0xd8   : > { %p16554_p11 = pnand %p16552_p10, %p16826_p8  ;;  %p16561_p2 = por %p16560_p0, %p16559_p13 }
  0xda   : > { %p16555_p12 = pneg %p16554_p11 }
  0xdc   : > { %p16562_p5 = pnand %p16561_p2, %p16555_p12 }
  0xde   : > { %16565 = shalt.err (!%p16562_p5)
}
  0xdf   : > { %15700 = dma.hbm_to_vmem [thread:$0]  (!%p16812_p6), %s18983_s10, 32, %s424_s20, [#allocation15]  }
  0xe0   : > { %s17006_s25 = sadd.s32 1, %s16688_s24   ;;  %s182_s28 = sadd.s32 1, %s16684_s23 }
  0xe1   : > { %s179_s15 = ssub.s32 %s16688_s24, %s17006_s25  ;;  %p189_p7 = scmp.ne.s32.totalorder %s16684_s23, %s16680_s22 }
  0xe2   : > { %p180_p8 = scmp.eq.s32.totalorder %s179_s15, 0  ;;  %p190_p9 = scmp.eq.s32.totalorder %s16688_s24, 0 }
  0xe3   : > { %p195_p3 = scmp.ne.s32.totalorder %s16680_s22, %s16676_s21  ;;  %p19002_p4 = scmp.eq.s32.totalorder %s16796_s27, 0 }
  0xe4   : > { %s17017_s12 = scalar_select %p180_p8, %s16684_s23, %s182_s28  }
  0xe5   : > { %p191_p1 = por %p190_p9, %p189_p7  ;;  %p17021_p10 = por %p19002_p4, %p195_p3 }
  0xe6   : > { %p15714_p11 = scmp.lt.s32.totalorder %s16688_s24, 4  ;;  %s434_s19 = sand.u32 1, %s16688_s24  }
  0xe7   : > { %s436_s0 = sand.u32 1, %s16684_s23   ;;  %s11571_s26 = smul.u32 36864, %s16688_s24 }
  0xe8   : > { %s15629_s20 = smul.u32 2304, %s436_s0  ;;  %p17028_p6 = pnand %p15714_p11, %p191_p1 }
  0xe9   : > { %s17036_s29 = scalar_lea.hbm %s18980_s7, %s11571_s26  ;;  %s17040_s14 = scalar_lea.sflag [#allocation6], %s434_s19 }
  0xea   : > { %s438_s18 = scalar_lea.vmem [#allocation16], %s15629_s20  ;;  %s16566_s16 = scalar_lea.hbm %s17036_s29, 36864 }
  0xeb   : > { %s446_s30 = sshll.u32 %s438_s18, 4  ;;  %p16567_p12 = scmp.ne.s32.totalorder %s17036_s29, %s16566_s16  ;;  %s17038_s30 = int_to_ptr.vmem [resolvable:$true] %s446_s30 }
  0xec   : > { %p16568_p13 = pneg %p17028_p6  ;;  %s16571_s4 = scalar_lea.hbm %s18980_s7, 147456 }
  0xed   : > { %p16572_p5 = scmp.lt.u32.totalorder %s17036_s29, %s18980_s7  ;;  %p16573_p8 = scmp.lt.u32.totalorder %s16571_s4, %s16566_s16 }
  0xee   : > { %p16569_p0 = pnand %p16568_p13, %p16567_p12  ;;  %p16575_p9 = scmp.lt.u32.totalorder %s16566_s16, %s17036_s29 }
  0xef   : > { %p16574_p7 = por %p16573_p8, %p16572_p5 }
  0xf0   : > { %p16570_p2 = pneg %p16569_p0 }
  0xf1   : > { %p16576_p3 = por %p16575_p9, %p16574_p7 }
  0xf3   : > { %p16577_p1 = pnand %p16576_p3, %p16570_p2 }
  0xf5   : > { %16580 = shalt.err (!%p16577_p1)
}
  0xf6   : > { %s16581_s19 = scalar_lea.vmem %s17038_s30, 36864  ;;  %s16703_s0 = smov [#allocation16]  }
  0xf7   : > { %p16582_p4 = scmp.ne.s32.totalorder %s17038_s30, %s16581_s19  ;;  %s16586_s20 = sshll.u32 %s16703_s0, 4  ;;  %s16587_s20 = int_to_ptr.vmem [resolvable:$false] %s16586_s20 }
  0xf8   : > { %s16588_s26 = scalar_lea.vmem %s16587_s20, 73728  ;;  %p16589_p0 = scmp.lt.s32.totalorder %s17038_s30, %s16587_s20 }
  0xf9   : > { %p16584_p11 = pnand %p16582_p4, %p16568_p13  ;;  %p16590_p5 = scmp.lt.s32.totalorder %s16588_s26, %s16581_s19 }
  0xfb   : > { %p16585_p12 = pneg %p16584_p11  ;;  %p16591_p8 = por %p16590_p5, %p16589_p0 }
  0xfd   : > { %p16592_p7 = pnand %p16591_p8, %p16585_p12 }
  0xff   : > { %16595 = shalt.err (!%p16592_p7)
}
 0x100   : > { %s16704_s21 = smov 256   ;;  %s16705_s11 = smov 16  }
 0x101   : > { %15704 = dma.hbm_to_vmem [thread:$0]  (!%p17028_p6), %s17036_s29, 36864, %s17038_s30, %s17040_s14, %s16704_s21, %s16704_s21, %s16705_s11  }
 0x102   : > { %s19005_s18 = sld [smem:[#allocation30_spill]] }
 0x108   : > { %p19006_p13 = scmp.ne.s32.totalorder %s19005_s18, 0 }
 0x109   : > { %p19007_p2 = scmp.eq.s32.totalorder (!%p19006_p13), %s16796_s27, 0 }
 0x10a   : > { %458 = sbr.rel (%p19006_p13) target bundleno = 2794 (0xaea), region = 64 }
 0x111   : > { %16639 = dma.done.wait (%p19007_p2), [#allocation6], 9216   ;;  %p19008_p9 = pmov %p19007_p2 }
 0x112   : > { %p19009_p3 = pmov %p19007_p2 }
 0x113   : > { %16641 = vsyncadd (%p19008_p9), [#allocation6], 4294958080 }
 0x114   : > { %16643 = dma.done.wait (%p19009_p3), [#allocation9], 9248   ;;  %p19010_p1 = pmov %p19007_p2 }
 0x116   : > { %16645 = vsyncadd (%p19010_p1), [#allocation9], 4294958048  ;;  %p19011_p4 = pmov %p19010_p1 }
 0x117   : > { %p19012_p6 = pmov %p19010_p1 }
 0x118   : > { %16647 = dma.done.wait (%p19011_p4), [#allocation12], 9248  }
 0x119   : > { %16649 = vsyncadd (%p19012_p6), [#allocation12], 4294958048  ;;  %p19013_p11 = pmov %p19010_p1 }
 0x11a   : > { %p19014_p12 = pmov %p19010_p1 }
 0x11b   : > { %16651 = dma.done.wait (%p19013_p11), [#allocation15], 32  }
 0x11c   : > { %16653 = vsyncadd (%p19014_p12), [#allocation15], 4294967264  ;;  %s484_s13 = sand.u32 1, %s16796_s27   ;;  %s486_s29 = sand.u32 1, %s16680_s22  }
 0x11d   : > { %s15630_s30 = smul.u32 2304, %s486_s29  ;;  %s485_s14 = scalar_lea.sflag [#allocation6], %s484_s13 }
 0x11f   : > { %s17088_s16 = scalar_lea.vmem [#allocation16], %s15630_s30 }
 0x120   : > { %16655 = dma.done.wait (%p17021_p10), %s485_s14, 36864  }
 0x121   : > { %16657 = vsyncadd (%p17021_p10), %s485_s14, 4294930432  ;;  %p19015_p0 = pmov %p19010_p1 }
 0x123   : > { %16659 = dma.done.wait (%p19015_p0), [#allocation9], 128   ;;  %p19016_p5 = pmov %p19015_p0 }
 0x124   : > { %p19017_p8 = pmov %p19015_p0 }
 0x125   : > { %16661 = vsyncadd (%p19016_p5), [#allocation9], 4294967168 }
 0x126   : > { %16663 = dma.done.wait (%p19017_p8), [#allocation12], 8192   ;;  %p19018_p7 = pmov %p19015_p0 }
 0x127   : > { %p19019_p13 = pmov %p19015_p0 }
 0x128   : > { %16665 = vsyncadd (%p19018_p7), [#allocation12], 4294959104 }
 0x129   : > { %16667 = dma.done.wait (%p19019_p13), [#allocation15], 32   ;;  %p19020_p2 = pmov %p19015_p0 }
 0x12a   : > { %p19021_p10 = scmp.ne.s32.totalorder %s16796_s27, 0 }
 0x12b   : > { %16669 = vsyncadd (%p19020_p2), [#allocation15], 4294967264  ;;  %v10740_v0 = vld [vmem:[#allocation5 + $0x40] sm:$0xff] (!%p19021_p10)   ;;  %v11579_v2 = vld [vmem:[#allocation5 + $0x48] sm:$0xff] (!%p19021_p10)   ;;  %s19022_s2 = sld [smem:[#allocation31_spill]] (!%p19021_p10)  ;;  %vm6402_vm0 = vcmask (!%p19021_p10), 1041409  }
 0x12c   : > { %541 = sbr.rel (%p19021_p10) target bundleno = 1703 (0x6a7), region = 108  ;;  %v10836_v1 = vld [vmem:[#allocation5 + $0x100] sm:$0xff] (!%p19021_p10)   ;;  %14138 = vmatprep.subr.bf16.mxu1 (!%p19021_p10), %v10740_v0  ;;  %v11600_v3 = vld [vmem:[#allocation5 + $0x108] sm:$0xff] (!%p19021_p10)   ;;  %v11580_v4 = vld [vmem:[#allocation5 + $0x50] sm:$0xff] (!%p19021_p10)   ;;  %vm6404_vm1 = vcmask (!%p19021_p10), 1043459   ;;  %vm6406_vm2 = vcmask (!%p19021_p10), 1045509  }
 0x12d   : > { %14266 = vmatprep.subr.bf16.mxu0 (!%p19021_p10), %v10836_v1  ;;  %14140 = vmatpush3.bf16.msra.mxu1 (!%p19021_p10), %v10740_v0  ;;  %v11601_v5 = vld [vmem:[#allocation5 + $0x110] sm:$0xff] (!%p19021_p10)   ;;  %v11581_v8 = vld [vmem:[#allocation5 + $0x58] sm:$0xff] (!%p19021_p10)   ;;  %v11582_v10 = vld [vmem:[#allocation5 + $0x60] sm:$0xff] (!%p19021_p10)   ;;  %vm6408_vm3 = vcmask (!%p19021_p10), 1047559  }
 0x12e   : > { %14268 = vmatpush3.bf16.msra.mxu0 (!%p19021_p10), %v10836_v1  ;;  %14142 = vmatprep.subr.bf16.mxu1 (!%p19021_p10), %v11579_v2  ;;  %v11602_v9 = vld [vmem:[#allocation5 + $0x118] sm:$0xff] (!%p19021_p10)   ;;  %v11603_v11 = vld [vmem:[#allocation5 + $0x120] sm:$0xff] (!%p19021_p10)   ;;  %v11583_v12 = vld [vmem:[#allocation5 + $0x68] sm:$0xff] (!%p19021_p10)  }
 0x12f   : > { %14270 = vmatprep.subr.bf16.mxu0 (!%p19021_p10), %v11600_v3  ;;  %v11604_v13 = vld [vmem:[#allocation5 + $0x128] sm:$0xff] (!%p19021_p10)   ;;  %v11584_v14 = vld [vmem:[#allocation5 + $0x70] sm:$0xff] (!%p19021_p10)   ;;  %v11585_v16 = vld [vmem:[#allocation5 + $0x78] sm:$0xff] (!%p19021_p10)  }
 0x130   : > { %v11605_v15 = vld [vmem:[#allocation5 + $0x130] sm:$0xff] (!%p19021_p10)   ;;  %v11606_v17 = vld [vmem:[#allocation5 + $0x138] sm:$0xff] (!%p19021_p10)   ;;  %v10708_v18 = vld [vmem:[#allocation5] sm:$0xff] (!%p19021_p10)  }
 0x131   : > { %v630_v6 = vld [vmem:[%s19022_s2 + $0x1] sm:$0xff] (!%p19021_p10)  ;;  %v10251_v7 = vld [vmem:[%s19022_s2 + $0x11] sm:$0xff] (!%p19021_p10)  ;;  %14144 = vmatpush3.bf16.msra.mxu1 (!%p19021_p10), %v11579_v2 }
 0x132   : > { %14272 = vmatpush3.bf16.msra.mxu0 (!%p19021_p10), %v11600_v3  ;;  %14146 = vmatprep.subr.bf16.mxu1 (!%p19021_p10), %v11580_v4  ;;  %v10868_v19 = vld [vmem:[#allocation5 + $0x140] sm:$0xff] (!%p19021_p10)   ;;  %v17117_v20 = vld [vmem:[%s19022_s2 + $0x21] sm:$0xff] (!%p19021_p10)  ;;  %v11572_v22 = vld [vmem:[#allocation5 + $0x8] sm:$0xff] (!%p19021_p10)  }
 0x133   : > { %14274 = vmatprep.subr.bf16.mxu0 %v11601_v5  ;;  %12657 = vmatprep.mubr.f32.mxu1 %v630_v6  ;;  %v17122_v21 = vld [vmem:[%s19022_s2 + $0x31] sm:$0xff]  ;;  %v17128_v24 = vld [vmem:[%s19022_s2 + $0x41] sm:$0xff] }
 0x134   : > { %12881 = vmatprep.mubr.f32.mxu0 %v10251_v7  ;;  %v11607_v23 = vld [vmem:[#allocation5 + $0x148] sm:$0xff]   ;;  %v11573_v26 = vld [vmem:[#allocation5 + $0x10] sm:$0xff]   ;;  %v11574_v30 = vld [vmem:[#allocation5 + $0x18] sm:$0xff]  }
 0x135   : > { %14148 = vmatpush3.bf16.msra.mxu1 %v11580_v4  ;;  %v17135_v25 = vld [vmem:[%s19022_s2 + $0x51] sm:$0xff]  ;;  %v11608_v27 = vld [vmem:[#allocation5 + $0x150] sm:$0xff]   ;;  %v11609_v31 = vld [vmem:[#allocation5 + $0x158] sm:$0xff]  }
 0x136   : > { %14276 = vmatpush3.bf16.msra.mxu0 %v11601_v5  ;;  %14150 = vmatprep.subr.bf16.mxu1 %v11581_v8  ;;  %v17142_v28 = vld [vmem:[%s19022_s2 + $0x61] sm:$0xff]  ;;  %v17149_v29 = vld [vmem:[%s19022_s2 + $0x71] sm:$0xff] }
 0x137   : > { %14278 = vmatprep.subr.bf16.mxu0 %v11602_v9  ;;  %v17156_v32 = vld [vmem:[%s19022_s2 + $0x81] sm:$0xff]  ;;  %v10259_v34 = vld [vmem:[%s19022_s2 + $0xb1] sm:$0xff] }
 0x138   : > { %v638_v33 = vld [vmem:[%s19022_s2 + $0xa1] sm:$0xff]  ;;  %v11575_v35 = vld [vmem:[#allocation5 + $0x20] sm:$0xff]   ;;  %v11576_v39 = vld [vmem:[#allocation5 + $0x28] sm:$0xff]  }
 0x139   : > { %14152 = vmatpush3.bf16.msra.mxu1 %v11581_v8  ;;  %v11610_v36 = vld [vmem:[#allocation5 + $0x160] sm:$0xff]   ;;  %v17171_v37 = vld [vmem:[%s19022_s2 + $0xc1] sm:$0xff]  ;;  %v11611_v40 = vld [vmem:[#allocation5 + $0x168] sm:$0xff]  }
 0x13a   : > { %14280 = vmatpush3.bf16.msra.mxu0 %v11602_v9  ;;  %14154 = vmatprep.subr.bf16.mxu1 %v11582_v10  ;;  %v17176_v38 = vld [vmem:[%s19022_s2 + $0xd1] sm:$0xff]  ;;  %v17182_v41 = vld [vmem:[%s19022_s2 + $0xe1] sm:$0xff] }
 0x13b   : > { %14282 = vmatprep.subr.bf16.mxu0 %v11603_v11  ;;  %v17189_v42 = vld [vmem:[%s19022_s2 + $0xf1] sm:$0xff]  ;;  %v11577_v43 = vld [vmem:[#allocation5 + $0x30] sm:$0xff]   ;;  %v11578_v47 = vld [vmem:[#allocation5 + $0x38] sm:$0xff]  }
 0x13c   : > { %v11612_v44 = vld [vmem:[#allocation5 + $0x170] sm:$0xff]   ;;  %v17203_v46 = vld [vmem:[%s19022_s2 + $0x111] sm:$0xff]  ;;  %v11613_v48 = vld [vmem:[#allocation5 + $0x178] sm:$0xff]  }
 0x13d   : > { %14156 = vmatpush3.bf16.msra.mxu1 %v11582_v10  ;;  %v17196_v45 = vld [vmem:[%s19022_s2 + $0x101] sm:$0xff]  ;;  %v17220_v51 = vld [vmem:[%s19022_s2 + $0x12] sm:$0xff] }
 0x13e   : > { %14284 = vmatpush3.bf16.msra.mxu0 %v11603_v11  ;;  %14158 = vmatprep.subr.bf16.mxu1 %v11583_v12  ;;  %v17210_v49 = vld [vmem:[%s19022_s2 + $0x121] sm:$0xff]  ;;  %v10772_v52 = vld [vmem:[#allocation5 + $0x80] sm:$0xff]   ;;  %v11586_v58 = vld [vmem:[#allocation5 + $0x88] sm:$0xff]  }
 0x13f   : > { %14286 = vmatprep.subr.bf16.mxu0 %v11604_v13  ;;  %v582_v50 = vld [vmem:[%s19022_s2] sm:$0xff]  ;;  %v10900_v53 = vld [vmem:[#allocation5 + $0x180] sm:$0xff]   ;;  %v11614_v59 = vld [vmem:[#allocation5 + $0x188] sm:$0xff]  }
 0x140   : > { %v17227_v54 = vld [vmem:[%s19022_s2 + $0x10] sm:$0xff]  ;;  %v17232_v55 = vld [vmem:[%s19022_s2 + $0x22] sm:$0xff] }
 0x141   : > { %14160 = vmatpush3.bf16.msra.mxu1 %v11583_v12  ;;  %v17238_v56 = vld [vmem:[%s19022_s2 + $0x20] sm:$0xff]  ;;  %v17243_v57 = vld [vmem:[%s19022_s2 + $0x32] sm:$0xff]  ;;  %v11588_v6 = vld [vmem:[#allocation5 + $0x98] sm:$0xff]  }
 0x142   : > { %14288 = vmatpush3.bf16.msra.mxu0 %v11604_v13  ;;  %14162 = vmatprep.subr.bf16.mxu1 %v11584_v14  ;;  %v17250_v60 = vld [vmem:[%s19022_s2 + $0x30] sm:$0xff]  ;;  %v17255_v61 = vld [vmem:[%s19022_s2 + $0x42] sm:$0xff] }
 0x143   : > { %14290 = vmatprep.subr.bf16.mxu0 %v11605_v15  ;;  %v17262_v62 = vld [vmem:[%s19022_s2 + $0x40] sm:$0xff]  ;;  %v17267_v63 = vld [vmem:[%s19022_s2 + $0x52] sm:$0xff] }
 0x144   : > { %v11587_v0 = vld [vmem:[#allocation5 + $0x90] sm:$0xff]   ;;  %v17274_v2 = vld [vmem:[%s19022_s2 + $0x50] sm:$0xff] }
 0x145   : > { %14164 = vmatpush3.bf16.msra.mxu1 %v11584_v14  ;;  %v11615_v1 = vld [vmem:[#allocation5 + $0x190] sm:$0xff]   ;;  %v17291_v5 = vld [vmem:[%s19022_s2 + $0x72] sm:$0xff] }
 0x146   : > { %14292 = vmatpush3.bf16.msra.mxu0 %v11605_v15  ;;  %14166 = vmatprep.subr.bf16.mxu1 %v11585_v16  ;;  %v17279_v3 = vld [vmem:[%s19022_s2 + $0x62] sm:$0xff]  ;;  %v17298_v8 = vld [vmem:[%s19022_s2 + $0x70] sm:$0xff] }
 0x147   : > { %14294 = vmatprep.subr.bf16.mxu0 %v11606_v17  ;;  %v17286_v4 = vld [vmem:[%s19022_s2 + $0x60] sm:$0xff]  ;;  %v17313_v11 = vld [vmem:[%s19022_s2 + $0xb2] sm:$0xff] }
 0x148   : > { %v17303_v9 = vld [vmem:[%s19022_s2 + $0x82] sm:$0xff]  ;;  %v11589_v12 = vld [vmem:[#allocation5 + $0xa0] sm:$0xff]  }
 0x149   : > { %14168 = vmatpush3.bf16.msra.mxu1 %v11585_v16  ;;  %v590_v10 = vld [vmem:[%s19022_s2 + $0xa0] sm:$0xff]  ;;  %v11617_v13 = vld [vmem:[#allocation5 + $0x1a0] sm:$0xff]  }
 0x14a   : > { %14296 = vmatpush3.bf16.msra.mxu0 %v11606_v17  ;;  %14170 = vmatprep.subr.bf16.mxu1 %v10708_v18  ;;  %v17320_v14 = vld [vmem:[%s19022_s2 + $0xb0] sm:$0xff]  ;;  %v17325_v15 = vld [vmem:[%s19022_s2 + $0xc2] sm:$0xff] }
 0x14b   : > { %14298 = vmatprep.subr.bf16.mxu0 %v10868_v19  ;;  %v17331_v16 = vld [vmem:[%s19022_s2 + $0xc0] sm:$0xff]  ;;  %v17336_v17 = vld [vmem:[%s19022_s2 + $0xd2] sm:$0xff] }
 0x14c   : > { %12658 = vmatmul.mubr.f32.vlgmr.msra.gmra.mrb[0].mxu1 %v10251_v7  ;;  %v11616_v7 = vld [vmem:[#allocation5 + $0x198] sm:$0xff]  }
 0x14d   : > { %12882 = vmatmul.mubr.f32.vlgmr.msra.gmra.mrb[0].mxu0 %v17117_v20  ;;  %14172 = vmatpush3.bf16.msra.mxu1 %v10708_v18  ;;  %v11590_v18 = vld [vmem:[#allocation5 + $0xa8] sm:$0xff]  }
 0x14e   : > { %14300 = vmatpush3.bf16.msra.mxu0 %v10868_v19  ;;  %12660 = vmatprep.mubr.f32.mxu1 %v17117_v20  ;;  %v11618_v19 = vld [vmem:[#allocation5 + $0x1a8] sm:$0xff]  }
 0x14f   : > { %12884 = vmatprep.mubr.f32.mxu0 %v17122_v21  ;;  %14174 = vmatprep.subr.bf16.mxu1 %v11572_v22 }
 0x150   : > { %14302 = vmatprep.subr.bf16.mxu0 %v11607_v23  ;;  %12661 = vmatmul.mubr.f32.gmra.mrb[2].mxu1 %v17122_v21 }
 0x151   : > { %12885 = vmatmul.mubr.f32.gmra.mrb[2].mxu0 %v17128_v24  ;;  %14176 = vmatpush3.bf16.msra.mxu1 %v11572_v22  ;;  %v17343_v22 = vld [vmem:[%s19022_s2 + $0xd0] sm:$0xff] }
 0x152   : > { %14304 = vmatpush3.bf16.msra.mxu0 %v11607_v23  ;;  %12663 = vmatprep.mubr.f32.mxu1 %v17128_v24  ;;  %v17348_v23 = vld [vmem:[%s19022_s2 + $0xe2] sm:$0xff] }
 0x153   : > { %12887 = vmatprep.mubr.f32.mxu0 %v17135_v25  ;;  %14178 = vmatprep.subr.bf16.mxu1 %v11573_v26 }
 0x154   : > { %14306 = vmatprep.subr.bf16.mxu0 %v11608_v27  ;;  %12664 = vmatmul.mubr.f32.gmra.mrb[4].mxu1 %v17135_v25 }
 0x155   : > { %12888 = vmatmul.mubr.f32.gmra.mrb[4].mxu0 %v17142_v28  ;;  %14180 = vmatpush3.bf16.msra.mxu1 %v11573_v26  ;;  %v17355_v26 = vld [vmem:[%s19022_s2 + $0xe0] sm:$0xff] }
 0x156   : > { %14308 = vmatpush3.bf16.msra.mxu0 %v11608_v27  ;;  %12666 = vmatprep.mubr.f32.mxu1 %v17142_v28  ;;  %v17360_v27 = vld [vmem:[%s19022_s2 + $0xf2] sm:$0xff] }
 0x157   : > { %12890 = vmatprep.mubr.f32.mxu0 %v17149_v29  ;;  %14182 = vmatprep.subr.bf16.mxu1 %v11574_v30 }
 0x158   : > { %14310 = vmatprep.subr.bf16.mxu0 %v11609_v31  ;;  %12667 = vmatmul.mubr.f32.gmra.mrb[6].mxu1 %v17149_v29 }
 0x159   : > { %12891 = vmatmul.mubr.f32.gmra.mrb[6].mxu0 %v17156_v32  ;;  %14184 = vmatpush3.bf16.msra.mxu1 %v11574_v30  ;;  %v11591_v30 = vld [vmem:[#allocation5 + $0xb0] sm:$0xff]  }
 0x15a   : > { %14312 = vmatpush3.bf16.msra.mxu0 %v11609_v31  ;;  %12669 = vmatprep.mubr.f32.mxu1 %v638_v33  ;;  %v11619_v31 = vld [vmem:[#allocation5 + $0x1b0] sm:$0xff]   ;;  %v17367_v33 = vld [vmem:[%s19022_s2 + $0xf0] sm:$0xff] }
 0x15b   : > { %12893 = vmatprep.mubr.f32.mxu0 %v10259_v34  ;;  %14186 = vmatprep.subr.bf16.mxu1 %v11575_v35 }
 0x15c   : > { %14314 = vmatprep.subr.bf16.mxu0 %v11610_v36  ;;  %12670 = vmatmul.mubr.f32.gmra.mrb[8].mxu1 %v10259_v34  ;;  %v17372_v34 = vld [vmem:[%s19022_s2 + $0x102] sm:$0xff] }
 0x15d   : > { %12894 = vmatmul.mubr.f32.gmra.mrb[8].mxu0 %v17171_v37  ;;  %14188 = vmatpush3.bf16.msra.mxu1 %v11575_v35  ;;  %v17379_v35 = vld [vmem:[%s19022_s2 + $0x100] sm:$0xff] }
 0x15e   : > { %14316 = vmatpush3.bf16.msra.mxu0 %v11610_v36  ;;  %12672 = vmatprep.mubr.f32.mxu1 %v17171_v37  ;;  %v17384_v36 = vld [vmem:[%s19022_s2 + $0x112] sm:$0xff] }
 0x15f   : > { %12896 = vmatprep.mubr.f32.mxu0 %v17176_v38  ;;  %14190 = vmatprep.subr.bf16.mxu1 %v11576_v39 }
 0x160   : > { %14318 = vmatprep.subr.bf16.mxu0 %v11611_v40  ;;  %12673 = vmatmul.mubr.f32.gmra.mrb[10].mxu1 %v17176_v38 }
 0x161   : > { %12897 = vmatmul.mubr.f32.gmra.mrb[10].mxu0 %v17182_v41  ;;  %14192 = vmatpush3.bf16.msra.mxu1 %v11576_v39  ;;  %v11592_v39 = vld [vmem:[#allocation5 + $0xb8] sm:$0xff]  }
 0x162   : > { %14320 = vmatpush3.bf16.msra.mxu0 %v11611_v40  ;;  %12675 = vmatprep.mubr.f32.mxu1 %v17182_v41  ;;  %v11620_v40 = vld [vmem:[#allocation5 + $0x1b8] sm:$0xff]  }
 0x163   : > { %12899 = vmatprep.mubr.f32.mxu0 %v17189_v42  ;;  %14194 = vmatprep.subr.bf16.mxu1 %v11577_v43 }
 0x164   : > { %14322 = vmatprep.subr.bf16.mxu0 %v11612_v44  ;;  %12676 = vmatmul.mubr.f32.gmra.mrb[12].mxu1 %v17189_v42 }
 0x165   : > { %12900 = vmatmul.mubr.f32.gmra.mrb[12].mxu0 %v17196_v45  ;;  %14196 = vmatpush3.bf16.msra.mxu1 %v11577_v43  ;;  %v17391_v43 = vld [vmem:[%s19022_s2 + $0x110] sm:$0xff] }
 0x166   : > { %14324 = vmatpush3.bf16.msra.mxu0 %v11612_v44  ;;  %12678 = vmatprep.mubr.f32.mxu1 %v17196_v45  ;;  %v17396_v44 = vld [vmem:[%s19022_s2 + $0x122] sm:$0xff] }
 0x167   : > { %12902 = vmatprep.mubr.f32.mxu0 %v17203_v46  ;;  %14198 = vmatprep.subr.bf16.mxu1 %v11578_v47 }
 0x168   : > { %14326 = vmatprep.subr.bf16.mxu0 %v11613_v48  ;;  %12679 = vmatmul.mubr.f32.gmra.mrb[14].mxu1 %v17203_v46 }
 0x169   : > { %12903 = vmatmul.mubr.f32.gmra.mrb[14].mxu0 %v17210_v49  ;;  %14200 = vmatpush3.bf16.msra.mxu1 %v11578_v47  ;;  %v969_v47 = vld [vmem:[%s19022_s2 + $0x2] sm:$0xff] }
 0x16a   : > { %14328 = vmatpush3.bf16.msra.mxu0 %v11613_v48  ;;  %12713 = vmatprep.mubr.f32.mxu1 %v582_v50  ;;  %v10804_v48 = vld [vmem:[#allocation5 + $0xc0] sm:$0xff]  }
 0x16b   : > { %12937 = vmatprep.mubr.f32.mxu0 %v17220_v51  ;;  %14202 = vmatprep.subr.bf16.mxu1 %v10772_v52  ;;  %v10932_v50 = vld [vmem:[#allocation5 + $0x1c0] sm:$0xff]  }
 0x16c   : > { %14330 = vmatprep.subr.bf16.mxu0 %v10900_v53  ;;  %12714 = vmatmul.mubr.f32.vlgmr.msra.gmra.mrb[0].mxu1 %v17227_v54 }
 0x16d   : > { %12938 = vmatmul.mubr.f32.vlgmr.msra.gmra.mrb[0].mxu0 %v17232_v55  ;;  %14204 = vmatpush3.bf16.msra.mxu1 %v10772_v52  ;;  %v11593_v52 = vld [vmem:[#allocation5 + $0xc8] sm:$0xff]  }
 0x16e   : > { %14332 = vmatpush3.bf16.msra.mxu0 %v10900_v53  ;;  %12716 = vmatprep.mubr.f32.mxu1 %v17238_v56  ;;  %v11621_v53 = vld [vmem:[#allocation5 + $0x1c8] sm:$0xff]  }
 0x16f   : > { %12940 = vmatprep.mubr.f32.mxu0 %v17243_v57  ;;  %14206 = vmatprep.subr.bf16.mxu1 %v11586_v58 }
 0x170   : > { %14334 = vmatprep.subr.bf16.mxu0 %v11614_v59  ;;  %12717 = vmatmul.mubr.f32.gmra.mrb[2].mxu1 %v17250_v60 }
 0x171   : > { %12941 = vmatmul.mubr.f32.gmra.mrb[2].mxu0 %v17255_v61  ;;  %14208 = vmatpush3.bf16.msra.mxu1 %v11586_v58  ;;  %v11594_v58 = vld [vmem:[#allocation5 + $0xd0] sm:$0xff]  }
 0x172   : > { %14336 = vmatpush3.bf16.msra.mxu0 %v11614_v59  ;;  %12719 = vmatprep.mubr.f32.mxu1 %v17262_v62  ;;  %v11622_v59 = vld [vmem:[#allocation5 + $0x1d0] sm:$0xff]  }
 0x173   : > { %12943 = vmatprep.mubr.f32.mxu0 %v17267_v63  ;;  %14210 = vmatprep.subr.bf16.mxu1 %v11587_v0 }
 0x174   : > { %14338 = vmatprep.subr.bf16.mxu0 %v11615_v1  ;;  %12720 = vmatmul.mubr.f32.gmra.mrb[4].mxu1 %v17274_v2 }
 0x175   : > { %12944 = vmatmul.mubr.f32.gmra.mrb[4].mxu0 %v17279_v3  ;;  %14212 = vmatpush3.bf16.msra.mxu1 %v11587_v0  ;;  %v11595_v0 = vld [vmem:[#allocation5 + $0xd8] sm:$0xff]  }
 0x176   : > { %14340 = vmatpush3.bf16.msra.mxu0 %v11615_v1  ;;  %12722 = vmatprep.mubr.f32.mxu1 %v17286_v4  ;;  %v11623_v1 = vld [vmem:[#allocation5 + $0x1d8] sm:$0xff]  }
 0x177   : > { %12946 = vmatprep.mubr.f32.mxu0 %v17291_v5  ;;  %14214 = vmatprep.subr.bf16.mxu1 %v11588_v6 }
 0x178   : > { %14342 = vmatprep.subr.bf16.mxu0 %v11616_v7  ;;  %12723 = vmatmul.mubr.f32.gmra.mrb[6].mxu1 %v17298_v8 }
 0x179   : > { %12947 = vmatmul.mubr.f32.gmra.mrb[6].mxu0 %v17303_v9  ;;  %14216 = vmatpush3.bf16.msra.mxu1 %v11588_v6  ;;  %v10290_v6 = vld [vmem:[%s19022_s2 + $0x90] sm:$0xff] }
 0x17a   : > { %14344 = vmatpush3.bf16.msra.mxu0 %v11616_v7  ;;  %12725 = vmatprep.mubr.f32.mxu1 %v590_v10  ;;  %v977_v7 = vld [vmem:[%s19022_s2 + $0xa2] sm:$0xff]  ;;  %v11596_v10 = vld [vmem:[#allocation5 + $0xe0] sm:$0xff]  }
 0x17b   : > { %12949 = vmatprep.mubr.f32.mxu0 %v17313_v11  ;;  %14218 = vmatprep.subr.bf16.mxu1 %v11589_v12 }
 0x17c   : > { %14346 = vmatprep.subr.bf16.mxu0 %v11617_v13  ;;  %12726 = vmatmul.mubr.f32.gmra.mrb[8].mxu1 %v17320_v14 }
 0x17d   : > { %12950 = vmatmul.mubr.f32.gmra.mrb[8].mxu0 %v17325_v15  ;;  %14220 = vmatpush3.bf16.msra.mxu1 %v11589_v12  ;;  %v11624_v12 = vld [vmem:[#allocation5 + $0x1e0] sm:$0xff]  }
 0x17e   : > { %14348 = vmatpush3.bf16.msra.mxu0 %v11617_v13  ;;  %12728 = vmatprep.mubr.f32.mxu1 %v17331_v16  ;;  %v11597_v13 = vld [vmem:[#allocation5 + $0xe8] sm:$0xff]  }
 0x17f   : > { %12952 = vmatprep.mubr.f32.mxu0 %v17336_v17  ;;  %14222 = vmatprep.subr.bf16.mxu1 %v11590_v18 }
 0x180   : > { %14350 = vmatprep.subr.bf16.mxu0 %v11618_v19  ;;  %12729 = vmatmul.mubr.f32.gmra.mrb[10].mxu1 %v17343_v22 }
 0x181   : > { %12953 = vmatmul.mubr.f32.gmra.mrb[10].mxu0 %v17348_v23  ;;  %14224 = vmatpush3.bf16.msra.mxu1 %v11590_v18  ;;  %v11625_v18 = vld [vmem:[#allocation5 + $0x1e8] sm:$0xff]  }
 0x182   : > { %14352 = vmatpush3.bf16.msra.mxu0 %v11618_v19  ;;  %12731 = vmatprep.mubr.f32.mxu1 %v17355_v26  ;;  %v11598_v19 = vld [vmem:[#allocation5 + $0xf0] sm:$0xff]  }
 0x183   : > { %12955 = vmatprep.mubr.f32.mxu0 %v17360_v27  ;;  %14226 = vmatprep.subr.bf16.mxu1 %v11591_v30 }
 0x184   : > { %14354 = vmatprep.subr.bf16.mxu0 %v11619_v31  ;;  %12732 = vmatmul.mubr.f32.gmra.mrb[12].mxu1 %v17367_v33 }
 0x185   : > { %12956 = vmatmul.mubr.f32.gmra.mrb[12].mxu0 %v17372_v34  ;;  %14228 = vmatpush3.bf16.msra.mxu1 %v11591_v30  ;;  %v11626_v30 = vld [vmem:[#allocation5 + $0x1f0] sm:$0xff]  }
 0x186   : > { %14356 = vmatpush3.bf16.msra.mxu0 %v11619_v31  ;;  %12734 = vmatprep.mubr.f32.mxu1 %v17379_v35  ;;  %v11599_v31 = vld [vmem:[#allocation5 + $0xf8] sm:$0xff]  }
 0x187   : > { %12958 = vmatprep.mubr.f32.mxu0 %v17384_v36  ;;  %14230 = vmatprep.subr.bf16.mxu1 %v11592_v39 }
 0x188   : > { %14358 = vmatprep.subr.bf16.mxu0 %v11620_v40  ;;  %12735 = vmatmul.mubr.f32.gmra.mrb[14].mxu1 %v17391_v43 }
 0x189   : > { %12959 = vmatmul.mubr.f32.gmra.mrb[14].mxu0 %v17396_v44  ;;  %14232 = vmatpush3.bf16.msra.mxu1 %v11592_v39  ;;  %v11627_v39 = vld [vmem:[#allocation5 + $0x1f8] sm:$0xff]  }
 0x18a   : > { %14360 = vmatpush3.bf16.msra.mxu0 %v11620_v40  ;;  %12769 = vmatprep.mubr.f32.mxu1 %v969_v47  ;;  %v10298_v40 = vld [vmem:[%s19022_s2 + $0x130] sm:$0xff] }
 0x18b   : > { %12993 = vmatprep.mubr.f32.mxu0 %v17238_v56  ;;  %14234 = vmatprep.subr.bf16.mxu1 %v10804_v48  ;;  %v10964_v47 = vld [vmem:[#allocation5 + $0x200] sm:$0xff]  }
 0x18c   : > { %14362 = vmatprep.subr.bf16.mxu0 %v10932_v50  ;;  %12770 = vmatmul.mubr.f32.vlgmr.msra.gmra.mrb[0].mxu1 %v17220_v51  ;;  %v17417_v51 = vld [vmem:[%s19022_s2 + $0x80] sm:$0xff] }
 0x18d   : > { %12994 = vmatmul.mubr.f32.vlgmr.msra.gmra.mrb[0].mxu0 %v17250_v60  ;;  %14236 = vmatpush3.bf16.msra.mxu1 %v10804_v48  ;;  %v11628_v48 = vld [vmem:[#allocation5 + $0x208] sm:$0xff]  }
 0x18e   : > { %14364 = vmatpush3.bf16.msra.mxu0 %v10932_v50  ;;  %12772 = vmatprep.mubr.f32.mxu1 %v17232_v55  ;;  %v11629_v50 = vld [vmem:[#allocation5 + $0x210] sm:$0xff]  }
 0x18f   : > { %12996 = vmatprep.mubr.f32.mxu0 %v17262_v62  ;;  %14238 = vmatprep.subr.bf16.mxu1 %v11593_v52 }
 0x190   : > { %14366 = vmatprep.subr.bf16.mxu0 %v11621_v53  ;;  %12773 = vmatmul.mubr.f32.gmra.mrb[2].mxu1 %v17243_v57 }
 0x191   : > { %12997 = vmatmul.mubr.f32.gmra.mrb[2].mxu0 %v17274_v2  ;;  %14240 = vmatpush3.bf16.msra.mxu1 %v11593_v52 }
 0x192   : > { %14368 = vmatpush3.bf16.msra.mxu0 %v11621_v53  ;;  %12775 = vmatprep.mubr.f32.mxu1 %v17255_v61 }
 0x193   : > { %12999 = vmatprep.mubr.f32.mxu0 %v17286_v4  ;;  %14242 = vmatprep.subr.bf16.mxu1 %v11594_v58 }
 0x194   : > { %14370 = vmatprep.subr.bf16.mxu0 %v11622_v59  ;;  %12776 = vmatmul.mubr.f32.gmra.mrb[4].mxu1 %v17267_v63 }
 0x195   : > { %13000 = vmatmul.mubr.f32.gmra.mrb[4].mxu0 %v17298_v8  ;;  %14244 = vmatpush3.bf16.msra.mxu1 %v11594_v58 }
 0x196   : > { %14372 = vmatpush3.bf16.msra.mxu0 %v11622_v59  ;;  %12778 = vmatprep.mubr.f32.mxu1 %v17279_v3 }
 0x197   : > { %13002 = vmatprep.mubr.f32.mxu0 %v17417_v51  ;;  %14246 = vmatprep.subr.bf16.mxu1 %v11595_v0 }
 0x198   : > { %14374 = vmatprep.subr.bf16.mxu0 %v11623_v1  ;;  %12779 = vmatmul.mubr.f32.gmra.mrb[6].mxu1 %v17291_v5 }
 0x199   : > { %13003 = vmatmul.mubr.f32.gmra.mrb[6].mxu0 %v10290_v6  ;;  %14248 = vmatpush3.bf16.msra.mxu1 %v11595_v0 }
 0x19a   : > { %14376 = vmatpush3.bf16.msra.mxu0 %v11623_v1  ;;  %12781 = vmatprep.mubr.f32.mxu1 %v977_v7 }
 0x19b   : > { %13005 = vmatprep.mubr.f32.mxu0 %v17331_v16  ;;  %14250 = vmatprep.subr.bf16.mxu1 %v11596_v10 }
 0x19c   : > { %14378 = vmatprep.subr.bf16.mxu0 %v11624_v12  ;;  %12782 = vmatmul.mubr.f32.gmra.mrb[8].mxu1 %v17313_v11  ;;  %v17442_v11 = vld [vmem:[%s19022_s2 + $0x120] sm:$0xff] }
 0x19d   : > { %13006 = vmatmul.mubr.f32.gmra.mrb[8].mxu0 %v17343_v22  ;;  %14252 = vmatpush3.bf16.msra.mxu1 %v11596_v10 }
 0x19e   : > { %14380 = vmatpush3.bf16.msra.mxu0 %v11624_v12  ;;  %12784 = vmatprep.mubr.f32.mxu1 %v17325_v15 }
 0x19f   : > { %13008 = vmatprep.mubr.f32.mxu0 %v17355_v26  ;;  %14254 = vmatprep.subr.bf16.mxu1 %v11597_v13 }
 0x1a0   : > { %14382 = vmatprep.subr.bf16.mxu0 %v11625_v18  ;;  %12785 = vmatmul.mubr.f32.gmra.mrb[10].mxu1 %v17336_v17 }
 0x1a1   : > { %13009 = vmatmul.mubr.f32.gmra.mrb[10].mxu0 %v17367_v33  ;;  %14256 = vmatpush3.bf16.msra.mxu1 %v11597_v13 }
 0x1a2   : > { %14384 = vmatpush3.bf16.msra.mxu0 %v11625_v18  ;;  %12787 = vmatprep.mubr.f32.mxu1 %v17348_v23 }
 0x1a3   : > { %13011 = vmatprep.mubr.f32.mxu0 %v17379_v35  ;;  %14258 = vmatprep.subr.bf16.mxu1 %v11598_v19 }
 0x1a4   : > { %14386 = vmatprep.subr.bf16.mxu0 %v11626_v30  ;;  %12788 = vmatmul.mubr.f32.gmra.mrb[12].mxu1 %v17360_v27 }
 0x1a5   : > { %13012 = vmatmul.mubr.f32.gmra.mrb[12].mxu0 %v17391_v43  ;;  %14260 = vmatpush3.bf16.msra.mxu1 %v11598_v19 }
 0x1a6   : > { %14388 = vmatpush3.bf16.msra.mxu0 %v11626_v30  ;;  %12790 = vmatprep.mubr.f32.mxu1 %v17372_v34 }
 0x1a7   : > { %13014 = vmatprep.mubr.f32.mxu0 %v17442_v11  ;;  %14262 = vmatprep.subr.bf16.mxu1 %v11599_v31 }
 0x1a8   : > { %14390 = vmatprep.subr.bf16.mxu0 %v11627_v39  ;;  %12791 = vmatmul.mubr.f32.gmra.mrb[14].mxu1 %v17384_v36 }
 0x1a9   : > { %13015 = vmatmul.mubr.f32.gmra.mrb[14].mxu0 %v10298_v40  ;;  %14264 = vmatpush3.bf16.msra.mxu1 %v11599_v31  ;;  %v11635_v31 = vld [vmem:[#allocation10 + $0x8] sm:$0xff]  }
 0x1aa   : > { %14392 = vmatpush3.bf16.msra.mxu0 %v11627_v39  ;;  %12825 = vmatprep.mubr.f32.mxu1 %v17227_v54  ;;  %v11646_v54 = vld [vmem:[#allocation10 + $0x68] sm:$0xff]  }
 0x1ab   : > { %13049 = vmatprep.mubr.f32.mxu0 %v17117_v20  ;;  %14394 = vmatprep.subr.bf16.mxu0 %v10964_v47  ;;  %v11630_v20 = vld [vmem:[#allocation5 + $0x218] sm:$0xff]  }
 0x1ac   : > { %12826 = vmatmul.mubr.f32.vlgmr.msra.gmra.mrb[0].mxu1 %v17238_v56  ;;  %v11647_v56 = vld [vmem:[#allocation10 + $0x70] sm:$0xff]  }
 0x1ad   : > { %13050 = vmatmul.mubr.f32.vlgmr.msra.gmra.mrb[0].mxu0 %v17122_v21  ;;  %12828 = vmatprep.mubr.f32.mxu1 %v17250_v60  ;;  %v10306_v21 = vld [vmem:[%s19022_s2 + $0x91] sm:$0xff] }
 0x1ae   : > { %14396 = vmatpush3.bf16.msra.mxu0 %v10964_v47  ;;  %13052 = vmatprep.mubr.f32.mxu0 %v17128_v24  ;;  %v11631_v24 = vld [vmem:[#allocation5 + $0x220] sm:$0xff]  }
 0x1af   : > { %14398 = vmatprep.subr.bf16.mxu0 %v11628_v48 }
 0x1b0   : > { %12829 = vmatmul.mubr.f32.gmra.mrb[2].mxu1 %v17262_v62 }
 0x1b1   : > { %13053 = vmatmul.mubr.f32.gmra.mrb[2].mxu0 %v17135_v25  ;;  %12831 = vmatprep.mubr.f32.mxu1 %v17274_v2  ;;  %v11632_v25 = vld [vmem:[#allocation5 + $0x228] sm:$0xff]  }
 0x1b2   : > { %14400 = vmatpush3.bf16.msra.mxu0 %v11628_v48  ;;  %13055 = vmatprep.mubr.f32.mxu0 %v17142_v28  ;;  %v11633_v28 = vld [vmem:[#allocation5 + $0x230] sm:$0xff]  }
 0x1b3   : > { %14402 = vmatprep.subr.bf16.mxu0 %v11629_v50 }
 0x1b4   : > { %12832 = vmatmul.mubr.f32.gmra.mrb[4].mxu1 %v17286_v4 }
 0x1b5   : > { %13056 = vmatmul.mubr.f32.gmra.mrb[4].mxu0 %v17149_v29  ;;  %12834 = vmatprep.mubr.f32.mxu1 %v17298_v8  ;;  %v11634_v29 = vld [vmem:[#allocation5 + $0x238] sm:$0xff]  }
 0x1b6   : > { %14404 = vmatpush3.bf16.msra.mxu0 %v11629_v50  ;;  %13058 = vmatprep.mubr.f32.mxu0 %v17156_v32  ;;  %v10314_v32 = vld [vmem:[%s19022_s2 + $0x131] sm:$0xff] }
 0x1b7   : > { %14406 = vmatprep.subr.bf16.mxu0 %v11630_v20 }
 0x1b8   : > { %12835 = vmatmul.mubr.f32.gmra.mrb[6].mxu1 %v17417_v51 }
 0x1b9   : > { %13059 = vmatmul.mubr.f32.gmra.mrb[6].mxu0 %v10306_v21  ;;  %12837 = vmatprep.mubr.f32.mxu1 %v17320_v14 }
 0x1ba   : > { %14408 = vmatpush3.bf16.msra.mxu0 %v11630_v20  ;;  %13061 = vmatprep.mubr.f32.mxu0 %v17171_v37  ;;  %v10322_v37 = vld [vmem:[%s19022_s2 + $0x92] sm:$0xff] }
 0x1bb   : > { %14410 = vmatprep.subr.bf16.mxu0 %v11631_v24 }
 0x1bc   : > { %12838 = vmatmul.mubr.f32.gmra.mrb[8].mxu1 %v17331_v16 }
 0x1bd   : > { %13062 = vmatmul.mubr.f32.gmra.mrb[8].mxu0 %v17176_v38  ;;  %12840 = vmatprep.mubr.f32.mxu1 %v17343_v22  ;;  %v10330_v38 = vld [vmem:[%s19022_s2 + $0x132] sm:$0xff] }
 0x1be   : > { %14412 = vmatpush3.bf16.msra.mxu0 %v11631_v24  ;;  %13064 = vmatprep.mubr.f32.mxu0 %v17182_v41  ;;  %v11028_v41 = vld [vmem:[#allocation10 + $0x40] sm:$0xff]  }
 0x1bf   : > { %14414 = vmatprep.subr.bf16.mxu0 %v11632_v25  ;;  %14426 = vmatprep.subr.bf16.mxu1 %v11028_v41 }
 0x1c0   : > { %12841 = vmatmul.mubr.f32.gmra.mrb[10].mxu1 %v17355_v26 }
 0x1c1   : > { %13065 = vmatmul.mubr.f32.gmra.mrb[10].mxu0 %v17189_v42  ;;  %12843 = vmatprep.mubr.f32.mxu1 %v17367_v33  ;;  %v11642_v42 = vld [vmem:[#allocation10 + $0x48] sm:$0xff]  }
 0x1c2   : > { %14416 = vmatpush3.bf16.msra.mxu0 %v11632_v25  ;;  %13067 = vmatprep.mubr.f32.mxu0 %v17196_v45  ;;  %v11643_v45 = vld [vmem:[#allocation10 + $0x50] sm:$0xff]  }
 0x1c3   : > { %14418 = vmatprep.subr.bf16.mxu0 %v11633_v28  ;;  %14428 = vmatpush3.bf16.msra.mxu1 %v11028_v41 }
 0x1c4   : > { %12844 = vmatmul.mubr.f32.gmra.mrb[12].mxu1 %v17379_v35  ;;  %14430 = vmatprep.subr.bf16.mxu1 %v11642_v42 }
 0x1c5   : > { %13068 = vmatmul.mubr.f32.gmra.mrb[12].mxu0 %v17203_v46  ;;  %12846 = vmatprep.mubr.f32.mxu1 %v17391_v43  ;;  %v11644_v46 = vld [vmem:[#allocation10 + $0x58] sm:$0xff]  }
 0x1c6   : > { %14420 = vmatpush3.bf16.msra.mxu0 %v11633_v28  ;;  %13070 = vmatprep.mubr.f32.mxu0 %v17210_v49  ;;  %v11645_v49 = vld [vmem:[#allocation10 + $0x60] sm:$0xff]   ;;  %v17567_v43 = vld [vmem:[#allocation8 + $0x1] ss:$0 sm:$0xff] }
 0x1c7   : > { %14422 = vmatprep.subr.bf16.mxu0 %v11634_v29  ;;  %14432 = vmatpush3.bf16.msra.mxu1 %v11642_v42 }
 0x1c8   : > { %12847 = vmatmul.mubr.f32.gmra.mrb[14].mxu1 %v17442_v11  ;;  %14434 = vmatprep.subr.bf16.mxu1 %v11643_v45 }
 0x1c9   : > { %13071 = vmatmul.mubr.f32.gmra.mrb[14].mxu0 %v10314_v32 }
 0x1ca   : > { %14424 = vmatpush3.bf16.msra.mxu0 %v11634_v29  ;;  %13105 = vmatprep.mubr.f32.mxu0 %v17232_v55  ;;  %v16706_v55 = vmov 0.0   ;;  %v11636_v29 = vld [vmem:[#allocation10 + $0x10] sm:$0xff]  }
 0x1cb   : > { %14436 = vmatpush3.bf16.msra.mxu1 %v11643_v45  ;;  %546 = vst [vmem:[#allocation2 + $0x20] sm:$0xff] %v16706_v55  ;;  %547 = vst [vmem:[#allocation2 + $0x28] sm:$0x3] %v16706_v55 }
 0x1cc   : > { %14438 = vmatprep.subr.bf16.mxu1 %v11644_v46  ;;  %542 = vst [vmem:[#allocation2] sm:$0xff] %v16706_v55  ;;  %543 = vst [vmem:[#allocation2 + $0x8] sm:$0x3] %v16706_v55 }
 0x1cd   : > { %13106 = vmatmul.mubr.f32.vlgmr.msra.gmra.mrb[0].mxu0 %v17243_v57  ;;  %544 = vst [vmem:[#allocation2 + $0x10] sm:$0xff] %v16706_v55  ;;  %545 = vst [vmem:[#allocation2 + $0x18] sm:$0x3] %v16706_v55  ;;  %v11648_v57 = vld [vmem:[#allocation10 + $0x78] sm:$0xff]  }
 0x1ce   : > { %13108 = vmatprep.mubr.f32.mxu0 %v17255_v61  ;;  %548 = vst [vmem:[#allocation2 + $0x30] sm:$0xff] %v16706_v55  ;;  %549 = vst [vmem:[#allocation2 + $0x38] sm:$0x3] %v16706_v55  ;;  %v10996_v61 = vld [vmem:[#allocation10] sm:$0xff]  }
 0x1cf   : > { %14440 = vmatpush3.bf16.msra.mxu1 %v11644_v46  ;;  %550 = vst [vmem:[#allocation2 + $0x40] sm:$0xff] %v16706_v55  ;;  %551 = vst [vmem:[#allocation2 + $0x48] sm:$0x3] %v16706_v55 }
 0x1d0   : > { %14442 = vmatprep.subr.bf16.mxu1 %v11645_v49  ;;  %552 = vst [vmem:[#allocation2 + $0x50] sm:$0xff] %v16706_v55  ;;  %553 = vst [vmem:[#allocation2 + $0x58] sm:$0x3] %v16706_v55 }
 0x1d1   : > { %13109 = vmatmul.mubr.f32.gmra.mrb[2].mxu0 %v17267_v63  ;;  %554 = vst [vmem:[#allocation2 + $0x60] sm:$0xff] %v16706_v55  ;;  %555 = vst [vmem:[#allocation2 + $0x68] sm:$0x3] %v16706_v55 }
 0x1d2   : > { %13111 = vmatprep.mubr.f32.mxu0 %v17279_v3  ;;  %556 = vst [vmem:[#allocation2 + $0x70] sm:$0xff] %v16706_v55  ;;  %557 = vst [vmem:[#allocation2 + $0x78] sm:$0x3] %v16706_v55 }
 0x1d3   : > { %14444 = vmatpush3.bf16.msra.mxu1 %v11645_v49  ;;  %558 = vst [vmem:[#allocation2 + $0x80] sm:$0xff] %v16706_v55  ;;  %559 = vst [vmem:[#allocation2 + $0x88] sm:$0x3] %v16706_v55  ;;  %v2564_v60 = vld [vmem:[#allocation2 + $0x1] sm:$0xff] }
 0x1d4   : > { %560 = vst [vmem:[#allocation2 + $0x90] sm:$0xff] %v16706_v55  ;;  %561 = vst [vmem:[#allocation2 + $0x98] sm:$0x3] %v16706_v55  ;;  %14446 = vmatprep.subr.bf16.mxu1 %v11646_v54  ;;  %13161 = vmatprep.mubr.f32.mxu1 %v2564_v60 }
 0x1d5   : > { %13112 = vmatmul.mubr.f32.gmra.mrb[4].mxu0 %v17291_v5  ;;  %562 = vst [vmem:[#allocation2 + $0xa0] sm:$0xff] %v16706_v55  ;;  %563 = vst [vmem:[#allocation2 + $0xa8] sm:$0x3] %v16706_v55 }
 0x1d6   : > { %13114 = vmatprep.mubr.f32.mxu0 %v17303_v9  ;;  %564 = vst [vmem:[#allocation2 + $0xb0] sm:$0xff] %v16706_v55  ;;  %565 = vst [vmem:[#allocation2 + $0xb8] sm:$0x3] %v16706_v55 }
 0x1d7   : > { %566 = vst [vmem:[#allocation2 + $0xc0] sm:$0xff] %v16706_v55  ;;  %567 = vst [vmem:[#allocation2 + $0xc8] sm:$0x3] %v16706_v55  ;;  %14448 = vmatpush3.bf16.msra.mxu1 %v11646_v54 }
 0x1d8   : > { %568 = vst [vmem:[#allocation2 + $0xd0] sm:$0xff] %v16706_v55  ;;  %569 = vst [vmem:[#allocation2 + $0xd8] sm:$0x3] %v16706_v55  ;;  %14450 = vmatprep.subr.bf16.mxu1 %v11647_v56 }
 0x1d9   : > { %13115 = vmatmul.mubr.f32.gmra.mrb[6].mxu0 %v10322_v37  ;;  %570 = vst [vmem:[#allocation2 + $0xe0] sm:$0xff] %v16706_v55  ;;  %571 = vst [vmem:[#allocation2 + $0xe8] sm:$0x3] %v16706_v55 }
 0x1da   : > { %13117 = vmatprep.mubr.f32.mxu0 %v17325_v15  ;;  %572 = vst [vmem:[#allocation2 + $0xf0] sm:$0xff] %v16706_v55  ;;  %573 = vst [vmem:[#allocation2 + $0xf8] sm:$0x3] %v16706_v55 }
 0x1db   : > { %574 = vst [vmem:[#allocation2 + $0x100] sm:$0xff] %v16706_v55  ;;  %575 = vst [vmem:[#allocation2 + $0x108] sm:$0x3] %v16706_v55  ;;  %14452 = vmatpush3.bf16.msra.mxu1 %v11647_v56 }
 0x1dc   : > { %576 = vst [vmem:[#allocation2 + $0x110] sm:$0xff] %v16706_v55  ;;  %577 = vst [vmem:[#allocation2 + $0x118] sm:$0x3] %v16706_v55  ;;  %14454 = vmatprep.subr.bf16.mxu1 %v11648_v57 }
 0x1dd   : > { %13118 = vmatmul.mubr.f32.gmra.mrb[8].mxu0 %v17336_v17  ;;  %578 = vst [vmem:[#allocation2 + $0x120] sm:$0xff] %v16706_v55  ;;  %579 = vst [vmem:[#allocation2 + $0x128] sm:$0x3] %v16706_v55 }
 0x1de   : > { %13120 = vmatprep.mubr.f32.mxu0 %v17348_v23  ;;  %580 = vst [vmem:[#allocation2 + $0x130] sm:$0xff] %v16706_v55  ;;  %581 = vst [vmem:[#allocation2 + $0x138] sm:$0x3] %v16706_v55 }
 0x1df   : > { %7365 = vst [vmem:[#allocation4] sm:$0xff] %v16706_v55  ;;  %14456 = vmatpush3.bf16.msra.mxu1 %v11648_v57  ;;  %v11637_v57 = vld [vmem:[#allocation10 + $0x18] sm:$0xff]  }
 0x1e0   : > { %14458 = vmatprep.subr.bf16.mxu1 %v10996_v61 }
 0x1e1   : > { %13121 = vmatmul.mubr.f32.gmra.mrb[10].mxu0 %v17360_v27 }
 0x1e2   : > { %13123 = vmatprep.mubr.f32.mxu0 %v17372_v34  ;;  %v17565_v34 = vld [vmem:[#allocation8] ss:$0 sm:$0xff] }
 0x1e5   : > { %13124 = vmatmul.mubr.f32.gmra.mrb[12].mxu0 %v17384_v36 }
 0x1e6   : > { %13126 = vmatprep.mubr.f32.mxu0 %v17396_v44 }
 0x1e9   : > { %13127 = vmatmul.mubr.f32.gmra.mrb[14].mxu0 %v10330_v38 }
 0x27f   : > { %v12827_v62 = vpop.f32.mrb[0].mxu1 }
 0x280   : > { %v1295_v63 = vpop.f32.mrb[1].mxu1 }
 0x283   : > { %v12830_v2 = vpop.f32.mrb[2].mxu1 }
 0x284   : > { %v1305_v3 = vpop.f32.mrb[3].mxu1 }
 0x287   : > { %v12833_v4 = vpop.f32.mrb[4].mxu1 }
 0x288   : > { %v1315_v5 = vpop.f32.mrb[5].mxu1 }
 0x28b   : > { %v12836_v8 = vpop.f32.mrb[6].mxu1 }
 0x28c   : > { %v1325_v9 = vpop.f32.mrb[7].mxu1 }
 0x28f   : > { %v17549_v14 = vpop.f32.mrb[8].mxu1 }
 0x290   : > { %v17551_v15 = vpop.f32.mrb[9].mxu1 }
 0x293   : > { %v17553_v16 = vpop.f32.mrb[10].mxu1 }
 0x294   : > { %v17555_v17 = vpop.f32.mrb[11].mxu1 }
 0x297   : > { %v17557_v22 = vpop.f32.mrb[12].mxu1 }
 0x298   : > { %v17559_v23 = vpop.f32.mrb[13].mxu1 }
 0x29b   : > { %v17561_v26 = vpop.f32.mrb[14].mxu1 }
 0x29c   : > { %v17563_v27 = vpop.f32.mrb[15].mxu1 }
 0x2a0   : > { %v13107_v33 = vpop.f32.mrb[0].mxu0 }
 0x2a1   : > { %v15145_v35 = vadd.f32 %v13107_v33, %v12827_v62  ;;  %v2346_v36 = vpop.f32.mrb[1].mxu0 }
 0x2a2   : > { %v15146_v44 = vadd.f32 %v2346_v36, %v1295_v63 }
 0x2a3   : > { %v2447_v52 = vmul.f32 %v15145_v35, %v17565_v34 }
 0x2a4   : > { %v2446_v53 = vmul.f32 %v15146_v44, %v17565_v34  ;;  %v13110_v58 = vpop.f32.mrb[2].mxu0 }
 0x2a5   : > { %v2468_v59 = vadd.f32 %v17567_v43, %v2447_v52  ;;  %v15147_v51 = vadd.f32 %v13110_v58, %v12830_v2  ;;  %v2356_v0 = vpop.f32.mrb[3].mxu0 }
 0x2a6   : > { %v2467_v1 = vadd.f32 %v17567_v43, %v2446_v53  ;;  %v15148_v6 = vadd.f32 %v2356_v0, %v1305_v3 }
 0x2a7   : > { %v17573_v7 = vmax.f32 %v2468_v59, 0.0  ;;  %v2449_v10 = vmul.f32 %v15147_v51, %v17565_v34  ;;  %v11639_v51 = vld [vmem:[#allocation10 + $0x28] sm:$0xff]  }
 0x2a8   : > { %v17576_v12 = vmax.f32 %v2467_v1, 0.0  ;;  %v2448_v13 = vmul.f32 %v15148_v6, %v17565_v34  ;;  %v13113_v18 = vpop.f32.mrb[4].mxu0 }
 0x2a9   : > { %2501 = vst [vmem:[#allocation2 + $0x21] sm:$0xff] %v17573_v7  ;;  %v2470_v19 = vadd.f32 %v17567_v43, %v2449_v10  ;;  %v15149_v30 = vadd.f32 %v13113_v18, %v12833_v4  ;;  %v2366_v11 = vpop.f32.mrb[5].mxu0 }
 0x2aa   : > { %2500 = vst [vmem:[#allocation2 + $0x11] sm:$0xff] %v17576_v12  ;;  %v2469_v39 = vadd.f32 %v17567_v43, %v2448_v13  ;;  %v15150_v40 = vadd.f32 %v2366_v11, %v1315_v5  ;;  %13162 = vmatmul.mubr.f32.vlgmr.msra.gmra.mrb[16].mxu1 %v17576_v12  ;;  %v2572_v5 = vld [vmem:[#allocation2 + $0xa1] sm:$0xff] }
 0x2ab   : > { %v17584_v47 = vmax.f32 %v2470_v19, 0.0  ;;  %v2451_v48 = vmul.f32 %v15149_v30, %v17565_v34  ;;  %13164 = vmatprep.mubr.f32.mxu1 %v17573_v7  ;;  %14460 = vmatpush3.bf16.msra.mxu1 %v10996_v61  ;;  %v11640_v11 = vld [vmem:[#allocation10 + $0x30] sm:$0xff]  }
 0x2ac   : > { %v17588_v50 = vmax.f32 %v2469_v39, 0.0  ;;  %v2450_v20 = vmul.f32 %v15150_v40, %v17565_v34  ;;  %v13116_v21 = vpop.f32.mrb[6].mxu0  ;;  %14462 = vmatprep.subr.bf16.mxu1 %v11635_v31 }
 0x2ad   : > { %2503 = vst [vmem:[#allocation2 + $0x41] sm:$0xff] %v17584_v47  ;;  %v2472_v24 = vadd.f32 %v17567_v43, %v2451_v48  ;;  %v15151_v25 = vadd.f32 %v13116_v21, %v12836_v8  ;;  %v2376_v28 = vpop.f32.mrb[7].mxu0 }
 0x2ae   : > { %2502 = vst [vmem:[#allocation2 + $0x31] sm:$0xff] %v17588_v50  ;;  %v2471_v32 = vadd.f32 %v17567_v43, %v2450_v20  ;;  %v15152_v37 = vadd.f32 %v2376_v28, %v1325_v9  ;;  %13165 = vmatmul.mubr.f32.gmra.mrb[18].mxu1 %v17588_v50 }
 0x2af   : > { %v17596_v38 = vmax.f32 %v2472_v24, 0.0  ;;  %v2453_v41 = vmul.f32 %v15151_v25, %v17565_v34  ;;  %13167 = vmatprep.mubr.f32.mxu1 %v17584_v47  ;;  %14464 = vmatpush3.bf16.msra.mxu1 %v11635_v31  ;;  %v11641_v24 = vld [vmem:[#allocation10 + $0x38] sm:$0xff]  }
 0x2b0   : > { %v17600_v42 = vmax.f32 %v2471_v32, 0.0  ;;  %v2452_v45 = vmul.f32 %v15152_v37, %v17565_v34  ;;  %v13119_v46 = vpop.f32.mrb[8].mxu0  ;;  %14466 = vmatprep.subr.bf16.mxu1 %v11636_v29  ;;  %v17675_v32 = vld [vmem:[#allocation2 + $0x20] sm:$0xff] }
 0x2b1   : > { %2505 = vst [vmem:[#allocation2 + $0x61] sm:$0xff] %v17596_v38  ;;  %v2474_v49 = vadd.f32 %v17567_v43, %v2453_v41  ;;  %v15153_v54 = vadd.f32 %v13119_v46, %v17549_v14  ;;  %v2386_v56 = vpop.f32.mrb[9].mxu0  ;;  %v11650_v41 = vld [vmem:[#allocation10 + $0x90] sm:$0xff]  }
 0x2b2   : > { %2504 = vst [vmem:[#allocation2 + $0x51] sm:$0xff] %v17600_v42  ;;  %v2473_v60 = vadd.f32 %v17567_v43, %v2452_v45  ;;  %v15154_v61 = vadd.f32 %v2386_v56, %v17551_v15  ;;  %13168 = vmatmul.mubr.f32.gmra.mrb[20].mxu1 %v17600_v42  ;;  %v11638_v15 = vld [vmem:[#allocation10 + $0x20] sm:$0xff]  }
 0x2b3   : > { %v17610_v62 = vmax.f32 %v2474_v49, 0.0  ;;  %v2455_v63 = vmul.f32 %v15153_v54, %v17565_v34  ;;  %13170 = vmatprep.mubr.f32.mxu1 %v17596_v38  ;;  %14468 = vmatpush3.bf16.msra.mxu1 %v11636_v29  ;;  %v11649_v29 = vld [vmem:[#allocation10 + $0x88] sm:$0xff]   ;;  %v11651_v49 = vld [vmem:[#allocation10 + $0x98] sm:$0xff]  }
 0x2b4   : > { %v17614_v2 = vmax.f32 %v2473_v60, 0.0  ;;  %v2454_v3 = vmul.f32 %v15154_v61, %v17565_v34  ;;  %v13122_v4 = vpop.f32.mrb[10].mxu0  ;;  %14470 = vmatprep.subr.bf16.mxu1 %v11637_v57  ;;  %v17681_v45 = vld [vmem:[#allocation2 + $0x40] sm:$0xff] }
 0x2b5   : > { %2507 = vst [vmem:[#allocation2 + $0x81] sm:$0xff] %v17610_v62  ;;  %v2476_v8 = vadd.f32 %v17567_v43, %v2455_v63  ;;  %v15155_v9 = vadd.f32 %v13122_v4, %v17553_v16  ;;  %v2396_v14 = vpop.f32.mrb[11].mxu0  ;;  %v17678_v37 = vld [vmem:[#allocation2 + $0x30] sm:$0xff]  ;;  %v11653_v61 = vld [vmem:[#allocation10 + $0xa8] sm:$0xff]   ;;  %v11654_v4 = vld [vmem:[#allocation10 + $0xb0] sm:$0xff]  }
 0x2b6   : > { %2506 = vst [vmem:[#allocation2 + $0x71] sm:$0xff] %v17614_v2  ;;  %v2475_v33 = vadd.f32 %v17567_v43, %v2454_v3  ;;  %v15156_v35 = vadd.f32 %v2396_v14, %v17555_v17  ;;  %13171 = vmatmul.mubr.f32.gmra.mrb[22].mxu1 %v17614_v2 }
 0x2b7   : > { %v17624_v36 = vmax.f32 %v2476_v8, 0.0  ;;  %v2457_v44 = vmul.f32 %v15155_v9, %v17565_v34  ;;  %14472 = vmatpush3.bf16.msra.mxu1 %v11637_v57  ;;  %13173 = vmatprep.mubr.f32.mxu1 %v2572_v5  ;;  %v11652_v57 = vld [vmem:[#allocation10 + $0xa0] sm:$0xff]   ;;  %v11655_v9 = vld [vmem:[#allocation10 + $0xb8] sm:$0xff]  }
 0x2b8   : > { %v17627_v52 = vmax.f32 %v2475_v33, 0.0  ;;  %v2456_v16 = vmul.f32 %v15156_v35, %v17565_v34  ;;  %v13125_v53 = vpop.f32.mrb[12].mxu0  ;;  %14474 = vmatprep.subr.bf16.mxu1 %v11638_v15  ;;  %v17687_v54 = vld [vmem:[#allocation2 + $0x60] sm:$0xff]  ;;  %v11092_v35 = vld [vmem:[#allocation10 + $0xc0] sm:$0xff]  }
 0x2b9   : > { %2509 = vst [vmem:[#allocation2 + $0xc1] sm:$0xff] %v17624_v36  ;;  %v2478_v58 = vadd.f32 %v17567_v43, %v2457_v44  ;;  %v15157_v17 = vadd.f32 %v13125_v53, %v17557_v22  ;;  %v2406_v59 = vpop.f32.mrb[13].mxu0  ;;  %v17684_v46 = vld [vmem:[#allocation2 + $0x50] sm:$0xff]  ;;  %v17718_v53 = vld [vmem:[#allocation2 + $0x22] sm:$0xff] }
 0x2ba   : > { %2508 = vst [vmem:[#allocation2 + $0xb1] sm:$0xff] %v17627_v52  ;;  %v2477_v0 = vadd.f32 %v17567_v43, %v2456_v16  ;;  %v15158_v1 = vadd.f32 %v2406_v59, %v17559_v23  ;;  %13174 = vmatmul.mubr.f32.gmra.mrb[24].mxu1 %v17627_v52  ;;  %v17715_v44 = vld [vmem:[#allocation2 + $0x12] sm:$0xff]  ;;  %v11656_v16 = vld [vmem:[#allocation10 + $0xc8] sm:$0xff]   ;;  %v17724_v59 = vld [vmem:[#allocation2 + $0x42] sm:$0xff] }
 0x2bb   : > { %v17637_v6 = vmax.f32 %v2478_v58, 0.0  ;;  %v2459_v10 = vmul.f32 %v15157_v17, %v17565_v34  ;;  %13176 = vmatprep.mubr.f32.mxu1 %v17624_v36  ;;  %14476 = vmatpush3.bf16.msra.mxu1 %v11638_v15  ;;  %v2903_v15 = vld [vmem:[#allocation2 + $0x2] sm:$0xff]  ;;  %v17721_v58 = vld [vmem:[#allocation2 + $0x32] sm:$0xff] }
 0x2bc   : > { %v17641_v13 = vmax.f32 %v2477_v0, 0.0  ;;  %v2458_v22 = vmul.f32 %v15158_v1, %v17565_v34  ;;  %v13128_v18 = vpop.f32.mrb[14].mxu0  ;;  %14478 = vmatprep.subr.bf16.mxu1 %v11639_v51  ;;  %v11657_v17 = vld [vmem:[#allocation10 + $0xd0] sm:$0xff]   ;;  %v11658_v0 = vld [vmem:[#allocation10 + $0xd8] sm:$0xff]  }
 0x2bd   : > { %2511 = vst [vmem:[#allocation2 + $0xe1] sm:$0xff] %v17637_v6  ;;  %v2480_v19 = vadd.f32 %v17567_v43, %v2459_v10  ;;  %v15159_v23 = vadd.f32 %v13128_v18, %v17561_v26  ;;  %v2416_v30 = vpop.f32.mrb[15].mxu0  ;;  %v17690_v56 = vld [vmem:[#allocation2 + $0x70] sm:$0xff]  ;;  %v17730_v1 = vld [vmem:[#allocation2 + $0x62] sm:$0xff] }
 0x2be   : > { %2510 = vst [vmem:[#allocation2 + $0xd1] sm:$0xff] %v17641_v13  ;;  %v2479_v31 = vadd.f32 %v17567_v43, %v2458_v22  ;;  %v15160_v39 = vadd.f32 %v2416_v30, %v17563_v27  ;;  %13177 = vmatmul.mubr.f32.gmra.mrb[26].mxu1 %v17641_v13  ;;  %v2911_v10 = vld [vmem:[#allocation2 + $0xa2] sm:$0xff]  ;;  %v17733_v22 = vld [vmem:[#allocation2 + $0x72] sm:$0xff] }
 0x2bf   : > { %v17651_v40 = vmax.f32 %v2480_v19, 0.0  ;;  %v2461_v48 = vmul.f32 %v15159_v23, %v17565_v34  ;;  %13179 = vmatprep.mubr.f32.mxu1 %v17637_v6  ;;  %14480 = vmatpush3.bf16.msra.mxu1 %v11639_v51  ;;  %v17727_v51 = vld [vmem:[#allocation2 + $0x52] sm:$0xff]  ;;  %v11660_v23 = vld [vmem:[#allocation10 + $0xe8] sm:$0xff]  }
 0x2c0   : > { %v17655_v20 = vmax.f32 %v2479_v31, 0.0  ;;  %v2460_v26 = vmul.f32 %v15160_v39, %v17565_v34  ;;  %14482 = vmatprep.subr.bf16.mxu1 %v11640_v11  ;;  %v11060_v34 = vld [vmem:[#allocation10 + $0x80] sm:$0xff]   ;;  %v17697_v63 = vld [vmem:[#allocation2 + $0xc0] sm:$0xff] }
 0x2c1   : > { %2513 = vst [vmem:[#allocation2 + $0x101] sm:$0xff] %v17651_v40  ;;  %v2482_v21 = vadd.f32 %v17567_v43, %v2461_v48  ;;  %v17694_v60 = vld [vmem:[#allocation2 + $0xb0] sm:$0xff]  ;;  %v17739_v30 = vld [vmem:[#allocation2 + $0xc2] sm:$0xff] }
 0x2c2   : > { %2512 = vst [vmem:[#allocation2 + $0xf1] sm:$0xff] %v17655_v20  ;;  %v2481_v27 = vadd.f32 %v17567_v43, %v2460_v26  ;;  %13180 = vmatmul.mubr.f32.gmra.mrb[28].mxu1 %v17655_v20  ;;  %v17672_v43 = vld [vmem:[#allocation2 + $0x10] sm:$0xff]  ;;  %v11661_v31 = vld [vmem:[#allocation10 + $0xf0] sm:$0xff]  }
 0x2c3   : > { %v17663_v25 = vmax.f32 %v2482_v21, 0.0  ;;  %13182 = vmatprep.mubr.f32.mxu1 %v17651_v40  ;;  %14484 = vmatpush3.bf16.msra.mxu1 %v11640_v11  ;;  %v11659_v18 = vld [vmem:[#allocation10 + $0xe0] sm:$0xff]   ;;  %v11662_v26 = vld [vmem:[#allocation10 + $0xf8] sm:$0xff]  }
 0x2c4   : > { %v17666_v28 = vmax.f32 %v2481_v27, 0.0  ;;  %14486 = vmatprep.subr.bf16.mxu1 %v11641_v24  ;;  %v17703_v5 = vld [vmem:[#allocation2 + $0xe0] sm:$0xff]  ;;  %v17736_v19 = vld [vmem:[#allocation2 + $0xb2] sm:$0xff] }
 0x2c5   : > { %2515 = vst [vmem:[#allocation2 + $0x121] sm:$0xff] %v17663_v25  ;;  %v17700_v3 = vld [vmem:[#allocation2 + $0xd0] sm:$0xff]  ;;  %v17745_v39 = vld [vmem:[#allocation2 + $0xe2] sm:$0xff] }
 0x2c6   : > { %2514 = vst [vmem:[#allocation2 + $0x111] sm:$0xff] %v17666_v28  ;;  %13183 = vmatmul.mubr.f32.gmra.mrb[30].mxu1 %v17666_v28  ;;  %v17742_v11 = vld [vmem:[#allocation2 + $0xd2] sm:$0xff] }
 0x2c7   : > { %14488 = vmatpush3.bf16.msra.mxu1 %v11641_v24  ;;  %13217 = vmatprep.mubr.f32.mxu1 %v16706_v55  ;;  %v11124_v27 = vld [vmem:[#allocation10 + $0x100] sm:$0xff]  }
 0x2c8   : > { %14490 = vmatprep.subr.bf16.mxu1 %v11060_v34  ;;  %v17709_v14 = vld [vmem:[#allocation2 + $0x100] sm:$0xff] }
 0x2c9   : > { %v17706_v8 = vld [vmem:[#allocation2 + $0xf0] sm:$0xff]  ;;  %v17751_v21 = vld [vmem:[#allocation2 + $0x102] sm:$0xff] }
 0x2ca   : > { %13218 = vmatmul.mubr.f32.vlgmr.msra.gmra.mrb[16].mxu1 %v17672_v43  ;;  %v17748_v48 = vld [vmem:[#allocation2 + $0xf2] sm:$0xff] }
 0x2cb   : > { %13220 = vmatprep.mubr.f32.mxu1 %v17675_v32  ;;  %14492 = vmatpush3.bf16.msra.mxu1 %v11060_v34  ;;  %v11663_v34 = vld [vmem:[#allocation10 + $0x108] sm:$0xff]  }
 0x2cc   : > { %14494 = vmatprep.subr.bf16.mxu1 %v11649_v29 }
 0x2cd   : > { %v17712_v33 = vld [vmem:[#allocation2 + $0x110] sm:$0xff] }
 0x2ce   : > { %13221 = vmatmul.mubr.f32.gmra.mrb[18].mxu1 %v17678_v37  ;;  %v17754_v24 = vld [vmem:[#allocation2 + $0x112] sm:$0xff] }
 0x2cf   : > { %13223 = vmatprep.mubr.f32.mxu1 %v17681_v45  ;;  %14496 = vmatpush3.bf16.msra.mxu1 %v11649_v29  ;;  %v11664_v29 = vld [vmem:[#allocation10 + $0x110] sm:$0xff]  }
 0x2d0   : > { %14498 = vmatprep.subr.bf16.mxu1 %v11650_v41 }
 0x2d2   : > { %13224 = vmatmul.mubr.f32.gmra.mrb[20].mxu1 %v17684_v46 }
 0x2d3   : > { %13226 = vmatprep.mubr.f32.mxu1 %v17687_v54  ;;  %14500 = vmatpush3.bf16.msra.mxu1 %v11650_v41  ;;  %v11665_v41 = vld [vmem:[#allocation10 + $0x118] sm:$0xff]  }
 0x2d4   : > { %14502 = vmatprep.subr.bf16.mxu1 %v11651_v49 }
 0x2d6   : > { %13227 = vmatmul.mubr.f32.gmra.mrb[22].mxu1 %v17690_v56 }
 0x2d7   : > { %14504 = vmatpush3.bf16.msra.mxu1 %v11651_v49  ;;  %13229 = vmatprep.mubr.f32.mxu1 %v16706_v55  ;;  %v11666_v49 = vld [vmem:[#allocation10 + $0x120] sm:$0xff]  }
 0x2d8   : > { %14506 = vmatprep.subr.bf16.mxu1 %v11652_v57 }
 0x2da   : > { %13230 = vmatmul.mubr.f32.gmra.mrb[24].mxu1 %v17694_v60 }
 0x2db   : > { %13232 = vmatprep.mubr.f32.mxu1 %v17697_v63  ;;  %14508 = vmatpush3.bf16.msra.mxu1 %v11652_v57  ;;  %v11667_v57 = vld [vmem:[#allocation10 + $0x128] sm:$0xff]  }
 0x2dc   : > { %14510 = vmatprep.subr.bf16.mxu1 %v11653_v61 }
 0x2de   : > { %13233 = vmatmul.mubr.f32.gmra.mrb[26].mxu1 %v17700_v3 }
 0x2df   : > { %13235 = vmatprep.mubr.f32.mxu1 %v17703_v5  ;;  %14512 = vmatpush3.bf16.msra.mxu1 %v11653_v61  ;;  %v11668_v61 = vld [vmem:[#allocation10 + $0x130] sm:$0xff]  }
 0x2e0   : > { %14514 = vmatprep.subr.bf16.mxu1 %v11654_v4 }
 0x2e2   : > { %13236 = vmatmul.mubr.f32.gmra.mrb[28].mxu1 %v17706_v8 }
 0x2e3   : > { %13238 = vmatprep.mubr.f32.mxu1 %v17709_v14  ;;  %14516 = vmatpush3.bf16.msra.mxu1 %v11654_v4  ;;  %v11669_v4 = vld [vmem:[#allocation10 + $0x138] sm:$0xff]  }
 0x2e4   : > { %14518 = vmatprep.subr.bf16.mxu1 %v11655_v9 }
 0x2e6   : > { %13239 = vmatmul.mubr.f32.gmra.mrb[30].mxu1 %v17712_v33 }
 0x2e7   : > { %14520 = vmatpush3.bf16.msra.mxu1 %v11655_v9  ;;  %13273 = vmatprep.mubr.f32.mxu1 %v2903_v15  ;;  %v11156_v9 = vld [vmem:[#allocation10 + $0x140] sm:$0xff]   ;;  %v11670_v15 = vld [vmem:[#allocation10 + $0x148] sm:$0xff]  }
 0x2e8   : > { %14522 = vmatprep.subr.bf16.mxu1 %v11092_v35 }
 0x2ea   : > { %13274 = vmatmul.mubr.f32.vlgmr.msra.gmra.mrb[16].mxu1 %v17715_v44 }
 0x2eb   : > { %13276 = vmatprep.mubr.f32.mxu1 %v17718_v53  ;;  %14524 = vmatpush3.bf16.msra.mxu1 %v11092_v35  ;;  %v11671_v35 = vld [vmem:[#allocation10 + $0x150] sm:$0xff]  }
 0x2ec   : > { %14526 = vmatprep.subr.bf16.mxu1 %v11656_v16 }
 0x2ee   : > { %13277 = vmatmul.mubr.f32.gmra.mrb[18].mxu1 %v17721_v58 }
 0x2ef   : > { %13279 = vmatprep.mubr.f32.mxu1 %v17724_v59  ;;  %14528 = vmatpush3.bf16.msra.mxu1 %v11656_v16  ;;  %v11672_v16 = vld [vmem:[#allocation10 + $0x158] sm:$0xff]  }
 0x2f0   : > { %14530 = vmatprep.subr.bf16.mxu1 %v11657_v17 }
 0x2f2   : > { %13280 = vmatmul.mubr.f32.gmra.mrb[20].mxu1 %v17727_v51 }
 0x2f3   : > { %13282 = vmatprep.mubr.f32.mxu1 %v17730_v1  ;;  %14532 = vmatpush3.bf16.msra.mxu1 %v11657_v17  ;;  %v11675_v17 = vld [vmem:[#allocation10 + $0x170] sm:$0xff]  }
 0x2f4   : > { %14534 = vmatprep.subr.bf16.mxu1 %v11658_v0 }
 0x2f6   : > { %13283 = vmatmul.mubr.f32.gmra.mrb[22].mxu1 %v17733_v22 }
 0x2f7   : > { %14536 = vmatpush3.bf16.msra.mxu1 %v11658_v0  ;;  %13285 = vmatprep.mubr.f32.mxu1 %v2911_v10  ;;  %v11676_v0 = vld [vmem:[#allocation10 + $0x178] sm:$0xff]   ;;  %v11316_v10 = vld [vmem:[#allocation13 + $0x40] sm:$0xff]  }
 0x2f8   : > { %14538 = vmatprep.subr.bf16.mxu1 %v11659_v18  ;;  %14714 = vmatprep.subr.bf16.mxu0 %v11316_v10 }
 0x2f9   : > { %14716 = vmatpush3.bf16.msra.mxu0 %v11316_v10 }
 0x2fa   : > { %13286 = vmatmul.mubr.f32.gmra.mrb[24].mxu1 %v17736_v19 }
 0x2fb   : > { %13288 = vmatprep.mubr.f32.mxu1 %v17739_v30  ;;  %14540 = vmatpush3.bf16.msra.mxu1 %v11659_v18  ;;  %v11705_v18 = vld [vmem:[#allocation13 + $0x48] sm:$0xff]  }
 0x2fc   : > { %14542 = vmatprep.subr.bf16.mxu1 %v11660_v23  ;;  %14718 = vmatprep.subr.bf16.mxu0 %v11705_v18 }
 0x2fd   : > { %14720 = vmatpush3.bf16.msra.mxu0 %v11705_v18 }
 0x2fe   : > { %13289 = vmatmul.mubr.f32.gmra.mrb[26].mxu1 %v17742_v11 }
 0x2ff   : > { %13291 = vmatprep.mubr.f32.mxu1 %v17745_v39  ;;  %14544 = vmatpush3.bf16.msra.mxu1 %v11660_v23  ;;  %v11677_v23 = vld [vmem:[#allocation10 + $0x188] sm:$0xff]  }
 0x300   : > { %14546 = vmatprep.subr.bf16.mxu1 %v11661_v31 }
 0x302   : > { %13292 = vmatmul.mubr.f32.gmra.mrb[28].mxu1 %v17748_v48 }
 0x303   : > { %13294 = vmatprep.mubr.f32.mxu1 %v17751_v21  ;;  %14548 = vmatpush3.bf16.msra.mxu1 %v11661_v31  ;;  %v11706_v31 = vld [vmem:[#allocation13 + $0x50] sm:$0xff]  }
 0x304   : > { %14550 = vmatprep.subr.bf16.mxu1 %v11662_v26  ;;  %14722 = vmatprep.subr.bf16.mxu0 %v11706_v31 }
 0x305   : > { %14724 = vmatpush3.bf16.msra.mxu0 %v11706_v31 }
 0x306   : > { %13295 = vmatmul.mubr.f32.gmra.mrb[30].mxu1 %v17754_v24 }
 0x307   : > { %14552 = vmatpush3.bf16.msra.mxu1 %v11662_v26  ;;  %13329 = vmatprep.mubr.f32.mxu1 %v17672_v43  ;;  %v17764_v43 = vld [vmem:[#allocation2 + $0x80] sm:$0xff] }
 0x308   : > { %14554 = vmatprep.subr.bf16.mxu1 %v11124_v27  ;;  %v11678_v26 = vld [vmem:[#allocation10 + $0x190] sm:$0xff]  }
 0x30a   : > { %13330 = vmatmul.mubr.f32.vlgmr.msra.gmra.mrb[16].mxu1 %v17675_v32 }
 0x30b   : > { %13332 = vmatprep.mubr.f32.mxu1 %v17678_v37  ;;  %14556 = vmatpush3.bf16.msra.mxu1 %v11124_v27  ;;  %v11679_v27 = vld [vmem:[#allocation10 + $0x198] sm:$0xff]  }
 0x30c   : > { %14558 = vmatprep.subr.bf16.mxu1 %v11663_v34 }
 0x30e   : > { %13333 = vmatmul.mubr.f32.gmra.mrb[18].mxu1 %v17681_v45 }
 0x30f   : > { %13335 = vmatprep.mubr.f32.mxu1 %v17684_v46  ;;  %14560 = vmatpush3.bf16.msra.mxu1 %v11663_v34  ;;  %v17800_v34 = vld [vmem:[#allocation2 + $0x82] sm:$0xff] }
 0x310   : > { %14562 = vmatprep.subr.bf16.mxu1 %v11664_v29 }
 0x312   : > { %13336 = vmatmul.mubr.f32.gmra.mrb[20].mxu1 %v17687_v54 }
 0x313   : > { %13338 = vmatprep.mubr.f32.mxu1 %v17690_v56  ;;  %14564 = vmatpush3.bf16.msra.mxu1 %v11664_v29  ;;  %v11680_v29 = vld [vmem:[#allocation10 + $0x1a0] sm:$0xff]  }
 0x314   : > { %14566 = vmatprep.subr.bf16.mxu1 %v11665_v41 }
 0x316   : > { %13339 = vmatmul.mubr.f32.gmra.mrb[22].mxu1 %v17764_v43 }
 0x317   : > { %13341 = vmatprep.mubr.f32.mxu1 %v17694_v60  ;;  %14568 = vmatpush3.bf16.msra.mxu1 %v11665_v41  ;;  %v17774_v60 = vld [vmem:[#allocation2 + $0x120] sm:$0xff] }
 0x318   : > { %14570 = vmatprep.subr.bf16.mxu1 %v11666_v49  ;;  %v11681_v41 = vld [vmem:[#allocation10 + $0x1a8] sm:$0xff]  }
 0x31a   : > { %13342 = vmatmul.mubr.f32.gmra.mrb[24].mxu1 %v17697_v63 }
 0x31b   : > { %13344 = vmatprep.mubr.f32.mxu1 %v17700_v3  ;;  %14572 = vmatpush3.bf16.msra.mxu1 %v11666_v49  ;;  %v11682_v49 = vld [vmem:[#allocation10 + $0x1b0] sm:$0xff]  }
 0x31c   : > { %14574 = vmatprep.subr.bf16.mxu1 %v11667_v57 }
 0x31e   : > { %13345 = vmatmul.mubr.f32.gmra.mrb[26].mxu1 %v17703_v5 }
 0x31f   : > { %13347 = vmatprep.mubr.f32.mxu1 %v17706_v8  ;;  %14576 = vmatpush3.bf16.msra.mxu1 %v11667_v57  ;;  %v11683_v57 = vld [vmem:[#allocation10 + $0x1b8] sm:$0xff]  }
 0x320   : > { %14578 = vmatprep.subr.bf16.mxu1 %v11668_v61 }
 0x322   : > { %13348 = vmatmul.mubr.f32.gmra.mrb[28].mxu1 %v17709_v14 }
 0x323   : > { %13350 = vmatprep.mubr.f32.mxu1 %v17712_v33  ;;  %14580 = vmatpush3.bf16.msra.mxu1 %v11668_v61  ;;  %v11220_v61 = vld [vmem:[#allocation10 + $0x1c0] sm:$0xff]  }
 0x324   : > { %14582 = vmatprep.subr.bf16.mxu1 %v11669_v4 }
 0x326   : > { %13351 = vmatmul.mubr.f32.gmra.mrb[30].mxu1 %v17774_v60 }
 0x327   : > { %14584 = vmatpush3.bf16.msra.mxu1 %v11669_v4  ;;  %13385 = vmatprep.mubr.f32.mxu1 %v17576_v12  ;;  %v11673_v12 = vld [vmem:[#allocation10 + $0x160] sm:$0xff]   ;;  %v11684_v4 = vld [vmem:[#allocation10 + $0x1c8] sm:$0xff]  }
 0x328   : > { %14586 = vmatprep.subr.bf16.mxu1 %v11156_v9 }
 0x32a   : > { %13386 = vmatmul.mubr.f32.vlgmr.msra.gmra.mrb[16].mxu1 %v17573_v7  ;;  %v11674_v7 = vld [vmem:[#allocation10 + $0x168] sm:$0xff]  }
 0x32b   : > { %13388 = vmatprep.mubr.f32.mxu1 %v17588_v50  ;;  %14588 = vmatpush3.bf16.msra.mxu1 %v11156_v9  ;;  %v11685_v9 = vld [vmem:[#allocation10 + $0x1d0] sm:$0xff]  }
 0x32c   : > { %14590 = vmatprep.subr.bf16.mxu1 %v11670_v15 }
 0x32e   : > { %13389 = vmatmul.mubr.f32.gmra.mrb[18].mxu1 %v17584_v47 }
 0x32f   : > { %13391 = vmatprep.mubr.f32.mxu1 %v17600_v42  ;;  %14592 = vmatpush3.bf16.msra.mxu1 %v11670_v15  ;;  %v11686_v15 = vld [vmem:[#allocation10 + $0x1d8] sm:$0xff]  }
 0x330   : > { %14594 = vmatprep.subr.bf16.mxu1 %v11671_v35 }
 0x332   : > { %13392 = vmatmul.mubr.f32.gmra.mrb[20].mxu1 %v17596_v38 }
 0x333   : > { %13394 = vmatprep.mubr.f32.mxu1 %v17614_v2  ;;  %14596 = vmatpush3.bf16.msra.mxu1 %v11671_v35 }
 0x334   : > { %14598 = vmatprep.subr.bf16.mxu1 %v11672_v16 }
 0x336   : > { %13395 = vmatmul.mubr.f32.gmra.mrb[22].mxu1 %v17610_v62 }
 0x337   : > { %13397 = vmatprep.mubr.f32.mxu1 %v17627_v52  ;;  %14600 = vmatpush3.bf16.msra.mxu1 %v11672_v16  ;;  %v11188_v52 = vld [vmem:[#allocation10 + $0x180] sm:$0xff]  }
 0x338   : > { %14602 = vmatprep.subr.bf16.mxu1 %v11673_v12 }
 0x33a   : > { %13398 = vmatmul.mubr.f32.gmra.mrb[24].mxu1 %v17624_v36 }
 0x33b   : > { %13400 = vmatprep.mubr.f32.mxu1 %v17641_v13  ;;  %14604 = vmatpush3.bf16.msra.mxu1 %v11673_v12 }
 0x33c   : > { %14606 = vmatprep.subr.bf16.mxu1 %v11674_v7 }
 0x33e   : > { %13401 = vmatmul.mubr.f32.gmra.mrb[26].mxu1 %v17637_v6 }
 0x33f   : > { %13403 = vmatprep.mubr.f32.mxu1 %v17655_v20  ;;  %14608 = vmatpush3.bf16.msra.mxu1 %v11674_v7 }
 0x340   : > { %14610 = vmatprep.subr.bf16.mxu1 %v11675_v17 }
 0x342   : > { %13404 = vmatmul.mubr.f32.gmra.mrb[28].mxu1 %v17651_v40 }
 0x343   : > { %13406 = vmatprep.mubr.f32.mxu1 %v17666_v28  ;;  %14612 = vmatpush3.bf16.msra.mxu1 %v11675_v17 }
 0x344   : > { %14614 = vmatprep.subr.bf16.mxu1 %v11676_v0 }
 0x346   : > { %13407 = vmatmul.mubr.f32.gmra.mrb[30].mxu1 %v17663_v25 }
 0x347   : > { %14616 = vmatpush3.bf16.msra.mxu1 %v11676_v0  ;;  %13441 = vmatprep.mubr.f32.mxu1 %v17715_v44  ;;  %v11707_v44 = vld [vmem:[#allocation13 + $0x58] sm:$0xff]  }
 0x348   : > { %14618 = vmatprep.subr.bf16.mxu1 %v11188_v52  ;;  %14726 = vmatprep.subr.bf16.mxu0 %v11707_v44 }
 0x349   : > { %14728 = vmatpush3.bf16.msra.mxu0 %v11707_v44 }
 0x34a   : > { %13442 = vmatmul.mubr.f32.vlgmr.msra.gmra.mrb[16].mxu1 %v17718_v53 }
 0x34b   : > { %13444 = vmatprep.mubr.f32.mxu1 %v17721_v58  ;;  %14620 = vmatpush3.bf16.msra.mxu1 %v11188_v52  ;;  %v11698_v52 = vld [vmem:[#allocation13 + $0x8] sm:$0xff]  }
 0x34c   : > { %14622 = vmatprep.subr.bf16.mxu1 %v11677_v23 }
 0x34e   : > { %13445 = vmatmul.mubr.f32.gmra.mrb[18].mxu1 %v17724_v59 }
 0x34f   : > { %13447 = vmatprep.mubr.f32.mxu1 %v17727_v51  ;;  %14624 = vmatpush3.bf16.msra.mxu1 %v11677_v23 }
 0x350   : > { %14626 = vmatprep.subr.bf16.mxu1 %v11678_v26 }
 0x352   : > { %13448 = vmatmul.mubr.f32.gmra.mrb[20].mxu1 %v17730_v1 }
 0x353   : > { %13450 = vmatprep.mubr.f32.mxu1 %v17733_v22  ;;  %14628 = vmatpush3.bf16.msra.mxu1 %v11678_v26 }
 0x354   : > { %14630 = vmatprep.subr.bf16.mxu1 %v11679_v27 }
 0x356   : > { %13451 = vmatmul.mubr.f32.gmra.mrb[22].mxu1 %v17800_v34 }
 0x357   : > { %13453 = vmatprep.mubr.f32.mxu1 %v17736_v19  ;;  %14632 = vmatpush3.bf16.msra.mxu1 %v11679_v27  ;;  %v17810_v19 = vld [vmem:[#allocation2 + $0x122] sm:$0xff] }
 0x358   : > { %14634 = vmatprep.subr.bf16.mxu1 %v11680_v29 }
 0x35a   : > { %13454 = vmatmul.mubr.f32.gmra.mrb[24].mxu1 %v17739_v30 }
 0x35b   : > { %13456 = vmatprep.mubr.f32.mxu1 %v17742_v11  ;;  %14636 = vmatpush3.bf16.msra.mxu1 %v11680_v29  ;;  %v11699_v29 = vld [vmem:[#allocation13 + $0x10] sm:$0xff]  }
 0x35c   : > { %14638 = vmatprep.subr.bf16.mxu1 %v11681_v41 }
 0x35e   : > { %13457 = vmatmul.mubr.f32.gmra.mrb[26].mxu1 %v17745_v39 }
 0x35f   : > { %13459 = vmatprep.mubr.f32.mxu1 %v17748_v48  ;;  %14640 = vmatpush3.bf16.msra.mxu1 %v11681_v41 }
 0x360   : > { %14642 = vmatprep.subr.bf16.mxu1 %v11682_v49 }
 0x362   : > { %13460 = vmatmul.mubr.f32.gmra.mrb[28].mxu1 %v17751_v21 }
 0x363   : > { %13462 = vmatprep.mubr.f32.mxu1 %v17754_v24  ;;  %14644 = vmatpush3.bf16.msra.mxu1 %v11682_v49 }
 0x364   : > { %14646 = vmatprep.subr.bf16.mxu1 %v11683_v57 }
 0x366   : > { %13463 = vmatmul.mubr.f32.gmra.mrb[30].mxu1 %v17810_v19 }
 0x367   : > { %14648 = vmatpush3.bf16.msra.mxu1 %v11683_v57  ;;  %13497 = vmatprep.mubr.f32.mxu1 %v17675_v32  ;;  %v11687_v32 = vld [vmem:[#allocation10 + $0x1e0] sm:$0xff]  }
 0x368   : > { %14650 = vmatprep.subr.bf16.mxu1 %v11220_v61 }
 0x36a   : > { %13498 = vmatmul.mubr.f32.vlgmr.msra.gmra.mrb[16].mxu1 %v17678_v37  ;;  %v11688_v37 = vld [vmem:[#allocation10 + $0x1e8] sm:$0xff]  }
 0x36b   : > { %13500 = vmatprep.mubr.f32.mxu1 %v17681_v45  ;;  %14652 = vmatpush3.bf16.msra.mxu1 %v11220_v61  ;;  %v11689_v45 = vld [vmem:[#allocation10 + $0x1f0] sm:$0xff]  }
 0x36c   : > { %14654 = vmatprep.subr.bf16.mxu1 %v11684_v4 }
 0x36e   : > { %13501 = vmatmul.mubr.f32.gmra.mrb[18].mxu1 %v17684_v46  ;;  %v11690_v46 = vld [vmem:[#allocation10 + $0x1f8] sm:$0xff]  }
 0x36f   : > { %13503 = vmatprep.mubr.f32.mxu1 %v17687_v54  ;;  %14656 = vmatpush3.bf16.msra.mxu1 %v11684_v4  ;;  %v11252_v54 = vld [vmem:[#allocation10 + $0x200] sm:$0xff]  }
 0x370   : > { %14658 = vmatprep.subr.bf16.mxu1 %v11685_v9 }
 0x372   : > { %13504 = vmatmul.mubr.f32.gmra.mrb[20].mxu1 %v17690_v56  ;;  %v3954_v56 = vld [vmem:[#allocation2 + $0x21] sm:$0xff] }
 0x373   : > { %13506 = vmatprep.mubr.f32.mxu1 %v17764_v43  ;;  %14660 = vmatpush3.bf16.msra.mxu1 %v11685_v9 }
 0x374   : > { %14662 = vmatprep.subr.bf16.mxu1 %v11686_v15 }
 0x376   : > { %13507 = vmatmul.mubr.f32.gmra.mrb[22].mxu1 %v16706_v55 }
 0x377   : > { %13509 = vmatprep.mubr.f32.mxu1 %v17697_v63  ;;  %14664 = vmatpush3.bf16.msra.mxu1 %v11686_v15  ;;  %v11691_v63 = vld [vmem:[#allocation10 + $0x208] sm:$0xff]  }
 0x378   : > { %14666 = vmatprep.subr.bf16.mxu1 %v11687_v32 }
 0x37a   : > { %13510 = vmatmul.mubr.f32.gmra.mrb[24].mxu1 %v17700_v3  ;;  %v11692_v3 = vld [vmem:[#allocation10 + $0x210] sm:$0xff]  }
 0x37b   : > { %13512 = vmatprep.mubr.f32.mxu1 %v17703_v5  ;;  %14668 = vmatpush3.bf16.msra.mxu1 %v11687_v32  ;;  %v11693_v5 = vld [vmem:[#allocation10 + $0x218] sm:$0xff]  }
 0x37c   : > { %14670 = vmatprep.subr.bf16.mxu1 %v11688_v37  ;;  %v11700_v32 = vld [vmem:[#allocation13 + $0x18] sm:$0xff]  }
 0x37e   : > { %13513 = vmatmul.mubr.f32.gmra.mrb[26].mxu1 %v17706_v8  ;;  %v17860_v8 = vld [vmem:[#allocation13 + $0x208] sm:$0xff]  }
 0x37f   : > { %13515 = vmatprep.mubr.f32.mxu1 %v17709_v14  ;;  %14672 = vmatpush3.bf16.msra.mxu1 %v11688_v37  ;;  %v11284_v14 = vld [vmem:[#allocation13] sm:$0xff]  }
 0x380   : > { %14674 = vmatprep.subr.bf16.mxu1 %v11689_v45 }
 0x382   : > { %13516 = vmatmul.mubr.f32.gmra.mrb[28].mxu1 %v17712_v33  ;;  %v17864_v33 = vld [vmem:[#allocation13 + $0x210] sm:$0xff]  }
 0x383   : > { %13518 = vmatprep.mubr.f32.mxu1 %v17774_v60  ;;  %14676 = vmatpush3.bf16.msra.mxu1 %v11689_v45 }
 0x384   : > { %14678 = vmatprep.subr.bf16.mxu1 %v11690_v46 }
 0x386   : > { %13519 = vmatmul.mubr.f32.gmra.mrb[30].mxu1 %v16706_v55  ;;  %v3961_v55 = vld [vmem:[#allocation2 + $0x91] sm:$0xff] }
 0x387   : > { %14680 = vmatpush3.bf16.msra.mxu1 %v11690_v46  ;;  %13553 = vmatprep.mubr.f32.mxu1 %v3954_v56 }
 0x388   : > { %14682 = vmatprep.subr.bf16.mxu1 %v11252_v54 }
 0x38a   : > { %13554 = vmatmul.mubr.f32.vlgmr.msra.gmra.mrb[16].mxu1 %v17588_v50  ;;  %v11694_v50 = vld [vmem:[#allocation10 + $0x220] sm:$0xff]  }
 0x38b   : > { %13556 = vmatprep.mubr.f32.mxu1 %v17584_v47  ;;  %14684 = vmatpush3.bf16.msra.mxu1 %v11252_v54  ;;  %v11695_v47 = vld [vmem:[#allocation10 + $0x228] sm:$0xff]  }
 0x38c   : > { %14686 = vmatprep.subr.bf16.mxu1 %v11691_v63 }
 0x38e   : > { %13557 = vmatmul.mubr.f32.gmra.mrb[18].mxu1 %v17600_v42  ;;  %v11697_v42 = vld [vmem:[#allocation10 + $0x238] sm:$0xff]  }
 0x38f   : > { %13559 = vmatprep.mubr.f32.mxu1 %v17596_v38  ;;  %14688 = vmatpush3.bf16.msra.mxu1 %v11691_v63  ;;  %v11696_v38 = vld [vmem:[#allocation10 + $0x230] sm:$0xff]  }
 0x390   : > { %14690 = vmatprep.subr.bf16.mxu1 %v11692_v3 }
 0x392   : > { %13560 = vmatmul.mubr.f32.gmra.mrb[20].mxu1 %v17614_v2  ;;  %v4171_v2 = vld [vmem:[#allocation2 + $0x92] sm:$0xff] }
 0x393   : > { %13562 = vmatprep.mubr.f32.mxu1 %v17610_v62  ;;  %14692 = vmatpush3.bf16.msra.mxu1 %v11692_v3  ;;  %v3969_v62 = vld [vmem:[#allocation2 + $0x131] sm:$0xff] }
 0x394   : > { %14694 = vmatprep.subr.bf16.mxu1 %v11693_v5 }
 0x396   : > { %13563 = vmatmul.mubr.f32.gmra.mrb[22].mxu1 %v3961_v55 }
 0x397   : > { %13565 = vmatprep.mubr.f32.mxu1 %v17624_v36  ;;  %14696 = vmatpush3.bf16.msra.mxu1 %v11693_v5  ;;  %v4179_v36 = vld [vmem:[#allocation2 + $0x132] sm:$0xff]  ;;  %v4504_v5 = vld [vmem:[#allocation2 + $0xa1] sm:$0xff] }
 0x398   : > { %14698 = vmatprep.subr.bf16.mxu1 %v11694_v50 }
 0x39a   : > { %13566 = vmatmul.mubr.f32.gmra.mrb[24].mxu1 %v17641_v13  ;;  %v11709_v13 = vld [vmem:[#allocation13 + $0x68] sm:$0xff]  }
 0x39b   : > { %13568 = vmatprep.mubr.f32.mxu1 %v17637_v6  ;;  %14700 = vmatpush3.bf16.msra.mxu1 %v11694_v50  ;;  %v11708_v6 = vld [vmem:[#allocation13 + $0x60] sm:$0xff]  }
 0x39c   : > { %14702 = vmatprep.subr.bf16.mxu1 %v11695_v47  ;;  %14730 = vmatprep.subr.bf16.mxu0 %v11708_v6  ;;  %v11701_v50 = vld [vmem:[#allocation13 + $0x20] sm:$0xff]  }
 0x39d   : > { %14732 = vmatpush3.bf16.msra.mxu0 %v11708_v6 }
 0x39e   : > { %13569 = vmatmul.mubr.f32.gmra.mrb[26].mxu1 %v17655_v20  ;;  %14734 = vmatprep.subr.bf16.mxu0 %v11709_v13  ;;  %v17856_v20 = vld [vmem:[#allocation13 + $0x200] sm:$0xff]  }
 0x39f   : > { %13571 = vmatprep.mubr.f32.mxu1 %v17651_v40  ;;  %14704 = vmatpush3.bf16.msra.mxu1 %v11695_v47  ;;  %v11710_v40 = vld [vmem:[#allocation13 + $0x70] sm:$0xff]  }
 0x3a0   : > { %14706 = vmatprep.subr.bf16.mxu1 %v11696_v38 }
 0x3a1   : > { %14736 = vmatpush3.bf16.msra.mxu0 %v11709_v13 }
 0x3a2   : > { %13572 = vmatmul.mubr.f32.gmra.mrb[28].mxu1 %v17666_v28  ;;  %14738 = vmatprep.subr.bf16.mxu0 %v11710_v40  ;;  %v4496_v28 = vld [vmem:[#allocation2 + $0x1] sm:$0xff] }
 0x3a3   : > { %13574 = vmatprep.mubr.f32.mxu1 %v17663_v25  ;;  %14708 = vmatpush3.bf16.msra.mxu1 %v11696_v38  ;;  %v11711_v25 = vld [vmem:[#allocation13 + $0x78] sm:$0xff]  }
 0x3a4   : > { %14710 = vmatprep.subr.bf16.mxu1 %v11697_v42  ;;  %13665 = vmatprep.mubr.f32.mxu0 %v4496_v28 }
 0x3a5   : > { %14740 = vmatpush3.bf16.msra.mxu0 %v11710_v40  ;;  %v11702_v40 = vld [vmem:[#allocation13 + $0x28] sm:$0xff]  }
 0x3a6   : > { %13575 = vmatmul.mubr.f32.gmra.mrb[30].mxu1 %v3969_v62  ;;  %14742 = vmatprep.subr.bf16.mxu0 %v11711_v25 }
 0x3a7   : > { %14712 = vmatpush3.bf16.msra.mxu1 %v11697_v42  ;;  %13609 = vmatprep.mubr.f32.mxu1 %v17718_v53  ;;  %v17868_v53 = vld [vmem:[#allocation13 + $0x218] sm:$0xff]  }
 0x3a8   : > { %15129 = vmatprep.subr.bf16.mxu1 %v17856_v20 }
 0x3a9   : > { %14744 = vmatpush3.bf16.msra.mxu0 %v11711_v25 }
 0x3aa   : > { %13610 = vmatmul.mubr.f32.vlgmr.msra.gmra.mrb[16].mxu1 %v17721_v58  ;;  %14746 = vmatprep.subr.bf16.mxu0 %v11284_v14  ;;  %v17872_v58 = vld [vmem:[#allocation13 + $0x220] sm:$0xff]  }
 0x3ab   : > { %13612 = vmatprep.mubr.f32.mxu1 %v17724_v59  ;;  %15137 = vmatpush3.bf16.msra.mxu1 %v17856_v20  ;;  %v17876_v59 = vld [vmem:[#allocation13 + $0x228] sm:$0xff]  }
 0x3ac   : > { %15130 = vmatprep.subr.bf16.mxu1 %v17860_v8 }
 0x3ae   : > { %13613 = vmatmul.mubr.f32.gmra.mrb[18].mxu1 %v17727_v51  ;;  %v17880_v51 = vld [vmem:[#allocation13 + $0x230] sm:$0xff]  }
 0x3af   : > { %13615 = vmatprep.mubr.f32.mxu1 %v17730_v1  ;;  %15138 = vmatpush3.bf16.msra.mxu1 %v17860_v8  ;;  %v17884_v1 = vld [vmem:[#allocation13 + $0x238] sm:$0xff]  }
 0x3b0   : > { %15131 = vmatprep.subr.bf16.mxu1 %v17864_v33 }
 0x3b2   : > { %13616 = vmatmul.mubr.f32.gmra.mrb[20].mxu1 %v17733_v22  ;;  %v17888_v22 = vld [vmem:[#allocation11] ss:$0 sm:$0xff] }
 0x3b3   : > { %13618 = vmatprep.mubr.f32.mxu1 %v17800_v34  ;;  %15139 = vmatpush3.bf16.msra.mxu1 %v17864_v33 }
 0x3b4   : > { %15132 = vmatprep.subr.bf16.mxu1 %v17868_v53 }
 0x3b6   : > { %13619 = vmatmul.mubr.f32.gmra.mrb[22].mxu1 %v4171_v2 }
 0x3b7   : > { %13621 = vmatprep.mubr.f32.mxu1 %v17739_v30  ;;  %15140 = vmatpush3.bf16.msra.mxu1 %v17868_v53 }
 0x3b8   : > { %15133 = vmatprep.subr.bf16.mxu1 %v17872_v58 }
 0x3ba   : > { %13622 = vmatmul.mubr.f32.gmra.mrb[24].mxu1 %v17742_v11  ;;  %v17890_v11 = vld [vmem:[#allocation11 + $0x1] ss:$0 sm:$0xff] }
 0x3bb   : > { %13624 = vmatprep.mubr.f32.mxu1 %v17745_v39  ;;  %15141 = vmatpush3.bf16.msra.mxu1 %v17872_v58 }
 0x3bc   : > { %15134 = vmatprep.subr.bf16.mxu1 %v17876_v59 }
 0x3be   : > { %13625 = vmatmul.mubr.f32.gmra.mrb[26].mxu1 %v17748_v48 }
 0x3bf   : > { %13627 = vmatprep.mubr.f32.mxu1 %v17751_v21  ;;  %15142 = vmatpush3.bf16.msra.mxu1 %v17876_v59 }
 0x3c0   : > { %15135 = vmatprep.subr.bf16.mxu1 %v17880_v51 }
 0x3c2   : > { %13628 = vmatmul.mubr.f32.gmra.mrb[28].mxu1 %v17754_v24 }
 0x3c3   : > { %13630 = vmatprep.mubr.f32.mxu1 %v17810_v19  ;;  %15143 = vmatpush3.bf16.msra.mxu1 %v17880_v51 }
 0x3c4   : > { %15136 = vmatprep.subr.bf16.mxu1 %v17884_v1 }
 0x3c6   : > { %13631 = vmatmul.mubr.f32.gmra.mrb[30].mxu1 %v4179_v36 }
 0x3c7   : > { %15144 = vmatpush3.bf16.msra.mxu1 %v17884_v1 }
 0x47d   : > { %v13611_v30 = vpop.f32.mrb[16].mxu1 }
 0x47e   : > { %v4380_v39 = vmul.f32 %v13611_v30, %v17888_v22  ;;  %v4279_v48 = vpop.f32.mrb[17].mxu1 }
 0x47f   : > { %v4379_v21 = vmul.f32 %v17888_v22, %v4279_v48 }
 0x480   : > { %v4401_v24 = vadd.f32 %v17890_v11, %v4380_v39 }
 0x481   : > { %v4400_v43 = vadd.f32 %v17890_v11, %v4379_v21  ;;  %v13614_v60 = vpop.f32.mrb[18].mxu1 }
 0x482   : > { %v17896_v35 = vmax.f32 %v4401_v24, 0.0  ;;  %v4382_v16 = vmul.f32 %v13614_v60, %v17888_v22  ;;  %v4289_v12 = vpop.f32.mrb[19].mxu1 }
 0x483   : > { %v17899_v7 = vmax.f32 %v4400_v43, 0.0  ;;  %v4381_v17 = vmul.f32 %v17888_v22, %v4289_v12  ;;  %v11703_v43 = vld [vmem:[#allocation13 + $0x30] sm:$0xff]  }
 0x484   : > { %4433 = vst [vmem:[#allocation2 + $0x21] sm:$0xff] %v17896_v35  ;;  %v4403_v0 = vadd.f32 %v17890_v11, %v4382_v16 }
 0x485   : > { %4432 = vst [vmem:[#allocation2 + $0x11] sm:$0xff] %v17899_v7  ;;  %v4402_v10 = vadd.f32 %v17890_v11, %v4381_v17  ;;  %v13617_v18 = vpop.f32.mrb[20].mxu1  ;;  %13666 = vmatmul.mubr.f32.vlgmr.msra.gmra.mrb[16].mxu0 %v17899_v7 }
 0x486   : > { %v17907_v23 = vmax.f32 %v4403_v0, 0.0  ;;  %v4384_v31 = vmul.f32 %v13617_v18, %v17888_v22  ;;  %v4299_v26 = vpop.f32.mrb[21].mxu1  ;;  %13668 = vmatprep.mubr.f32.mxu0 %v17896_v35  ;;  %14748 = vmatpush3.bf16.msra.mxu0 %v11284_v14 }
 0x487   : > { %v17911_v44 = vmax.f32 %v4402_v10, 0.0  ;;  %v4383_v27 = vmul.f32 %v17888_v22, %v4299_v26  ;;  %14750 = vmatprep.subr.bf16.mxu0 %v11698_v52  ;;  %v11704_v26 = vld [vmem:[#allocation13 + $0x38] sm:$0xff]  }
 0x488   : > { %4435 = vst [vmem:[#allocation2 + $0x41] sm:$0xff] %v17907_v23  ;;  %v4405_v34 = vadd.f32 %v17890_v11, %v4384_v31 }
 0x489   : > { %4434 = vst [vmem:[#allocation2 + $0x31] sm:$0xff] %v17911_v44  ;;  %v4404_v41 = vadd.f32 %v17890_v11, %v4383_v27  ;;  %v13620_v49 = vpop.f32.mrb[22].mxu1  ;;  %13669 = vmatmul.mubr.f32.gmra.mrb[18].mxu0 %v17911_v44 }
 0x48a   : > { %v17919_v57 = vmax.f32 %v4405_v34, 0.0  ;;  %v4386_v19 = vmul.f32 %v13620_v49, %v17888_v22  ;;  %v4309_v61 = vpop.f32.mrb[23].mxu1  ;;  %13671 = vmatprep.mubr.f32.mxu0 %v17907_v23  ;;  %14752 = vmatpush3.bf16.msra.mxu0 %v11698_v52  ;;  %v17995_v49 = vld [vmem:[#allocation2] sm:$0xff] }
 0x48b   : > { %v17923_v4 = vmax.f32 %v4404_v41, 0.0  ;;  %v4385_v9 = vmul.f32 %v17888_v22, %v4309_v61  ;;  %14754 = vmatprep.subr.bf16.mxu0 %v11699_v29  ;;  %v11348_v41 = vld [vmem:[#allocation13 + $0x80] sm:$0xff]  }
 0x48c   : > { %4437 = vst [vmem:[#allocation2 + $0x61] sm:$0xff] %v17919_v57  ;;  %v4407_v15 = vadd.f32 %v17890_v11, %v4386_v19  ;;  %v18000_v61 = vld [vmem:[#allocation2 + $0x10] sm:$0xff] }
 0x48d   : > { %4436 = vst [vmem:[#allocation2 + $0x51] sm:$0xff] %v17923_v4  ;;  %v4406_v37 = vadd.f32 %v17890_v11, %v4385_v9  ;;  %v13623_v45 = vpop.f32.mrb[24].mxu1  ;;  %13672 = vmatmul.mubr.f32.gmra.mrb[20].mxu0 %v17923_v4 }
 0x48e   : > { %v17931_v46 = vmax.f32 %v4407_v15, 0.0  ;;  %v4388_v54 = vmul.f32 %v13623_v45, %v17888_v22  ;;  %v4319_v56 = vpop.f32.mrb[25].mxu1  ;;  %13674 = vmatprep.mubr.f32.mxu0 %v17919_v57  ;;  %14756 = vmatpush3.bf16.msra.mxu0 %v11699_v29  ;;  %v18006_v15 = vld [vmem:[#allocation2 + $0x20] sm:$0xff] }
 0x48f   : > { %v17935_v63 = vmax.f32 %v4406_v37, 0.0  ;;  %v4387_v3 = vmul.f32 %v17888_v22, %v4319_v56  ;;  %14758 = vmatprep.subr.bf16.mxu0 %v11700_v32  ;;  %v18018_v56 = vld [vmem:[#allocation2 + $0x40] sm:$0xff] }
 0x490   : > { %4439 = vst [vmem:[#allocation2 + $0x81] sm:$0xff] %v17931_v46  ;;  %v4409_v55 = vadd.f32 %v17890_v11, %v4388_v54  ;;  %v18012_v45 = vld [vmem:[#allocation2 + $0x30] sm:$0xff] }
 0x491   : > { %4438 = vst [vmem:[#allocation2 + $0x71] sm:$0xff] %v17935_v63  ;;  %v4408_v47 = vadd.f32 %v17890_v11, %v4387_v3  ;;  %v13626_v38 = vpop.f32.mrb[26].mxu1  ;;  %13675 = vmatmul.mubr.f32.gmra.mrb[22].mxu0 %v17935_v63  ;;  %v11713_v3 = vld [vmem:[#allocation13 + $0x90] sm:$0xff]  }
 0x492   : > { %v17943_v42 = vmax.f32 %v4409_v55, 0.0  ;;  %v4390_v62 = vmul.f32 %v13626_v38, %v17888_v22  ;;  %v4329_v2 = vpop.f32.mrb[27].mxu1  ;;  %14760 = vmatpush3.bf16.msra.mxu0 %v11700_v32  ;;  %13677 = vmatprep.mubr.f32.mxu0 %v4504_v5  ;;  %v11712_v32 = vld [vmem:[#allocation13 + $0x88] sm:$0xff]   ;;  %v11715_v38 = vld [vmem:[#allocation13 + $0xa0] sm:$0xff]  }
 0x493   : > { %v17946_v36 = vmax.f32 %v4408_v47, 0.0  ;;  %v4389_v6 = vmul.f32 %v17888_v22, %v4329_v2  ;;  %14762 = vmatprep.subr.bf16.mxu0 %v11701_v50  ;;  %v18025_v55 = vld [vmem:[#allocation2 + $0x60] sm:$0xff] }
 0x494   : > { %4441 = vst [vmem:[#allocation2 + $0xc1] sm:$0xff] %v17943_v42  ;;  %v4411_v13 = vadd.f32 %v17890_v11, %v4390_v62  ;;  %v18022_v5 = vld [vmem:[#allocation2 + $0x50] sm:$0xff] }
 0x495   : > { %4440 = vst [vmem:[#allocation2 + $0xb1] sm:$0xff] %v17946_v36  ;;  %v4410_v25 = vadd.f32 %v17890_v11, %v4389_v6  ;;  %v13629_v28 = vpop.f32.mrb[28].mxu1  ;;  %13678 = vmatmul.mubr.f32.gmra.mrb[24].mxu0 %v17946_v36  ;;  %v11716_v6 = vld [vmem:[#allocation13 + $0xa8] sm:$0xff]  }
 0x496   : > { %v17954_v14 = vmax.f32 %v4411_v13, 0.0  ;;  %v4392_v30 = vmul.f32 %v13629_v28, %v17888_v22  ;;  %v4339_v39 = vpop.f32.mrb[29].mxu1  ;;  %13680 = vmatprep.mubr.f32.mxu0 %v17943_v42  ;;  %14764 = vmatpush3.bf16.msra.mxu0 %v11701_v50  ;;  %v11714_v50 = vld [vmem:[#allocation13 + $0x98] sm:$0xff]  }
 0x497   : > { %v17958_v48 = vmax.f32 %v4410_v25, 0.0  ;;  %v4391_v21 = vmul.f32 %v17888_v22, %v4339_v39  ;;  %14766 = vmatprep.subr.bf16.mxu0 %v11702_v40  ;;  %v11717_v25 = vld [vmem:[#allocation13 + $0xb0] sm:$0xff]   ;;  %v11718_v39 = vld [vmem:[#allocation13 + $0xb8] sm:$0xff]  }
 0x498   : > { %4443 = vst [vmem:[#allocation2 + $0xe1] sm:$0xff] %v17954_v14  ;;  %v4413_v24 = vadd.f32 %v17890_v11, %v4392_v30  ;;  %v18028_v47 = vld [vmem:[#allocation2 + $0x70] sm:$0xff] }
 0x499   : > { %4442 = vst [vmem:[#allocation2 + $0xd1] sm:$0xff] %v17958_v48  ;;  %v4412_v60 = vadd.f32 %v17890_v11, %v4391_v21  ;;  %v13632_v16 = vpop.f32.mrb[30].mxu1  ;;  %13681 = vmatmul.mubr.f32.gmra.mrb[26].mxu0 %v17958_v48  ;;  %v4835_v21 = vld [vmem:[#allocation2 + $0x2] sm:$0xff] }
 0x49a   : > { %v17966_v12 = vmax.f32 %v4413_v24, 0.0  ;;  %v4394_v17 = vmul.f32 %v13632_v16, %v17888_v22  ;;  %v4349_v0 = vpop.f32.mrb[31].mxu1  ;;  %13683 = vmatprep.mubr.f32.mxu0 %v17954_v14  ;;  %14768 = vmatpush3.bf16.msra.mxu0 %v11702_v40  ;;  %v11719_v16 = vld [vmem:[#allocation13 + $0xc8] sm:$0xff]  }
 0x49b   : > { %v17970_v52 = vmax.f32 %v4412_v60, 0.0  ;;  %v4393_v10 = vmul.f32 %v17888_v22, %v4349_v0  ;;  %v17973_v18 = vld [vmem:[#allocation2 + $0xc2] sm:$0xff]  ;;  %14770 = vmatprep.subr.bf16.mxu0 %v11703_v43  ;;  %v18053_v60 = vld [vmem:[#allocation2 + $0x12] sm:$0xff] }
 0x49c   : > { %4445 = vst [vmem:[#allocation2 + $0x101] sm:$0xff] %v17966_v12  ;;  %v4415_v31 = vadd.f32 %v17890_v11, %v4394_v17  ;;  %14125 = vmatprep.mubr.f32.mxu1 %v17973_v18  ;;  %v18032_v62 = vld [vmem:[#allocation2 + $0xb0] sm:$0xff]  ;;  %v18035_v2 = vld [vmem:[#allocation2 + $0xc0] sm:$0xff] }
 0x49d   : > { %4444 = vst [vmem:[#allocation2 + $0xf1] sm:$0xff] %v17970_v52  ;;  %v4414_v27 = vadd.f32 %v17890_v11, %v4393_v10  ;;  %13684 = vmatmul.mubr.f32.gmra.mrb[28].mxu0 %v17970_v52  ;;  %v18056_v17 = vld [vmem:[#allocation2 + $0x22] sm:$0xff]  ;;  %v18059_v0 = vld [vmem:[#allocation2 + $0x32] sm:$0xff] }
 0x49e   : > { %v17981_v34 = vmax.f32 %v4415_v31, 0.0  ;;  %13686 = vmatprep.mubr.f32.mxu0 %v17966_v12  ;;  %14772 = vmatpush3.bf16.msra.mxu0 %v11703_v43  ;;  %v11380_v43 = vld [vmem:[#allocation13 + $0xc0] sm:$0xff]   ;;  %v11720_v10 = vld [vmem:[#allocation13 + $0xd0] sm:$0xff]  }
 0x49f   : > { %v17984_v22 = vmax.f32 %v4414_v27, 0.0  ;;  %14774 = vmatprep.subr.bf16.mxu0 %v11704_v26  ;;  %v17991_v11 = vld [vmem:[#allocation2 + $0xe2] sm:$0xff]  ;;  %v11721_v27 = vld [vmem:[#allocation13 + $0xd8] sm:$0xff]  }
 0x4a0   : > { %4447 = vst [vmem:[#allocation2 + $0x121] sm:$0xff] %v17981_v34  ;;  %v17987_v29 = vld [vmem:[#allocation2 + $0xd2] sm:$0xff]  ;;  %v18041_v40 = vld [vmem:[#allocation2 + $0xe0] sm:$0xff] }
 0x4a1   : > { %4446 = vst [vmem:[#allocation2 + $0x111] sm:$0xff] %v17984_v22  ;;  %14126 = vmatmul.mubr.f32.vlgmr.msra.gmra.mrb[32].mxu1 %v17987_v29  ;;  %13687 = vmatmul.mubr.f32.gmra.mrb[30].mxu0 %v17984_v22  ;;  %v18038_v13 = vld [vmem:[#allocation2 + $0xd0] sm:$0xff]  ;;  %v18062_v31 = vld [vmem:[#allocation2 + $0x42] sm:$0xff] }
 0x4a2   : > { %14128 = vmatprep.mubr.f32.mxu1 %v17991_v11  ;;  %14776 = vmatpush3.bf16.msra.mxu0 %v11704_v26  ;;  %v18065_v26 = vld [vmem:[#allocation2 + $0x52] sm:$0xff] }
 0x4a3   : > { %13721 = vmatprep.mubr.f32.mxu0 %v17995_v49  ;;  %14778 = vmatprep.subr.bf16.mxu0 %v11348_v41  ;;  %v18003_v9 = vld [vmem:[#allocation2 + $0x102] sm:$0xff] }
 0x4a4   : > { %v17998_v19 = vld [vmem:[#allocation2 + $0xf2] sm:$0xff]  ;;  %v18047_v30 = vld [vmem:[#allocation2 + $0x100] sm:$0xff] }
 0x4a5   : > { %14129 = vmatmul.mubr.f32.gmra.mrb[34].mxu1 %v17998_v19  ;;  %13722 = vmatmul.mubr.f32.vlgmr.msra.gmra.mrb[16].mxu0 %v18000_v61  ;;  %v18044_v28 = vld [vmem:[#allocation2 + $0xf0] sm:$0xff] }
 0x4a6   : > { %14131 = vmatprep.mubr.f32.mxu1 %v18003_v9  ;;  %13724 = vmatprep.mubr.f32.mxu0 %v18006_v15 }
 0x4a7   : > { %14780 = vmatpush3.bf16.msra.mxu0 %v11348_v41  ;;  %v18015_v54 = vld [vmem:[#allocation2 + $0x122] sm:$0xff] }
 0x4a8   : > { %v18010_v37 = vld [vmem:[#allocation2 + $0x112] sm:$0xff]  ;;  %14782 = vmatprep.subr.bf16.mxu0 %v11712_v32  ;;  %v18068_v41 = vld [vmem:[#allocation2 + $0x62] sm:$0xff] }
 0x4a9   : > { %14132 = vmatmul.mubr.f32.gmra.mrb[36].mxu1 %v18010_v37  ;;  %13725 = vmatmul.mubr.f32.gmra.mrb[18].mxu0 %v18012_v45  ;;  %v18050_v24 = vld [vmem:[#allocation2 + $0x110] sm:$0xff] }
 0x4aa   : > { %14134 = vmatprep.mubr.f32.mxu1 %v18015_v54  ;;  %13727 = vmatprep.mubr.f32.mxu0 %v18018_v56 }
 0x4ab   : > { %14784 = vmatpush3.bf16.msra.mxu0 %v11712_v32  ;;  %v4843_v32 = vld [vmem:[#allocation2 + $0xa2] sm:$0xff] }
 0x4ac   : > { %14786 = vmatprep.subr.bf16.mxu0 %v11713_v3 }
 0x4ad   : > { %13728 = vmatmul.mubr.f32.gmra.mrb[20].mxu0 %v18022_v5 }
 0x4ae   : > { %13730 = vmatprep.mubr.f32.mxu0 %v18025_v55 }
 0x4af   : > { %14788 = vmatpush3.bf16.msra.mxu0 %v11713_v3  ;;  %v18071_v3 = vld [vmem:[#allocation2 + $0x72] sm:$0xff] }
 0x4b0   : > { %14790 = vmatprep.subr.bf16.mxu0 %v11714_v50 }
 0x4b1   : > { %13731 = vmatmul.mubr.f32.gmra.mrb[22].mxu0 %v18028_v47 }
 0x4b2   : > { %13733 = vmatprep.mubr.f32.mxu0 %v17995_v49 }
 0x4b3   : > { %14792 = vmatpush3.bf16.msra.mxu0 %v11714_v50  ;;  %v11722_v50 = vld [vmem:[#allocation13 + $0xe0] sm:$0xff]  }
 0x4b4   : > { %14794 = vmatprep.subr.bf16.mxu0 %v11715_v38 }
 0x4b5   : > { %13734 = vmatmul.mubr.f32.gmra.mrb[24].mxu0 %v18032_v62 }
 0x4b6   : > { %13736 = vmatprep.mubr.f32.mxu0 %v18035_v2 }
 0x4b7   : > { %14796 = vmatpush3.bf16.msra.mxu0 %v11715_v38  ;;  %v18074_v38 = vld [vmem:[#allocation2 + $0xb2] sm:$0xff] }
 0x4b8   : > { %14798 = vmatprep.subr.bf16.mxu0 %v11716_v6 }
 0x4b9   : > { %13737 = vmatmul.mubr.f32.gmra.mrb[26].mxu0 %v18038_v13 }
 0x4ba   : > { %13739 = vmatprep.mubr.f32.mxu0 %v18041_v40 }
 0x4bb   : > { %14800 = vmatpush3.bf16.msra.mxu0 %v11716_v6  ;;  %v11723_v6 = vld [vmem:[#allocation13 + $0xe8] sm:$0xff]  }
 0x4bc   : > { %14802 = vmatprep.subr.bf16.mxu0 %v11717_v25 }
 0x4bd   : > { %13740 = vmatmul.mubr.f32.gmra.mrb[28].mxu0 %v18044_v28 }
 0x4be   : > { %13742 = vmatprep.mubr.f32.mxu0 %v18047_v30 }
 0x4bf   : > { %14804 = vmatpush3.bf16.msra.mxu0 %v11717_v25  ;;  %v11724_v25 = vld [vmem:[#allocation13 + $0xf0] sm:$0xff]  }
 0x4c0   : > { %14806 = vmatprep.subr.bf16.mxu0 %v11718_v39 }
 0x4c1   : > { %13743 = vmatmul.mubr.f32.gmra.mrb[30].mxu0 %v18050_v24 }
 0x4c2   : > { %13777 = vmatprep.mubr.f32.mxu0 %v4835_v21  ;;  %v11412_v21 = vld [vmem:[#allocation13 + $0x100] sm:$0xff]  }
 0x4c3   : > { %14808 = vmatpush3.bf16.msra.mxu0 %v11718_v39  ;;  %v11725_v39 = vld [vmem:[#allocation13 + $0xf8] sm:$0xff]  }
 0x4c4   : > { %14810 = vmatprep.subr.bf16.mxu0 %v11380_v43 }
 0x4c6   : > { %13778 = vmatmul.mubr.f32.vlgmr.msra.gmra.mrb[16].mxu0 %v18053_v60 }
 0x4c7   : > { %13780 = vmatprep.mubr.f32.mxu0 %v18056_v17  ;;  %14812 = vmatpush3.bf16.msra.mxu0 %v11380_v43  ;;  %v11726_v43 = vld [vmem:[#allocation13 + $0x108] sm:$0xff]  }
 0x4c8   : > { %14814 = vmatprep.subr.bf16.mxu0 %v11719_v16 }
 0x4ca   : > { %13781 = vmatmul.mubr.f32.gmra.mrb[18].mxu0 %v18059_v0 }
 0x4cb   : > { %13783 = vmatprep.mubr.f32.mxu0 %v18062_v31  ;;  %14816 = vmatpush3.bf16.msra.mxu0 %v11719_v16  ;;  %v11727_v16 = vld [vmem:[#allocation13 + $0x110] sm:$0xff]  }
 0x4cc   : > { %14818 = vmatprep.subr.bf16.mxu0 %v11720_v10 }
 0x4ce   : > { %13784 = vmatmul.mubr.f32.gmra.mrb[20].mxu0 %v18065_v26 }
 0x4cf   : > { %13786 = vmatprep.mubr.f32.mxu0 %v18068_v41  ;;  %14820 = vmatpush3.bf16.msra.mxu0 %v11720_v10  ;;  %v11728_v10 = vld [vmem:[#allocation13 + $0x118] sm:$0xff]  }
 0x4d0   : > { %14822 = vmatprep.subr.bf16.mxu0 %v11721_v27 }
 0x4d2   : > { %13787 = vmatmul.mubr.f32.gmra.mrb[22].mxu0 %v18071_v3 }
 0x4d3   : > { %14824 = vmatpush3.bf16.msra.mxu0 %v11721_v27  ;;  %13789 = vmatprep.mubr.f32.mxu0 %v4843_v32  ;;  %v11729_v27 = vld [vmem:[#allocation13 + $0x120] sm:$0xff]   ;;  %v11730_v32 = vld [vmem:[#allocation13 + $0x128] sm:$0xff]  }
 0x4d4   : > { %14826 = vmatprep.subr.bf16.mxu0 %v11722_v50 }
 0x4d6   : > { %13790 = vmatmul.mubr.f32.gmra.mrb[24].mxu0 %v18074_v38 }
 0x4d7   : > { %13792 = vmatprep.mubr.f32.mxu0 %v17973_v18  ;;  %14828 = vmatpush3.bf16.msra.mxu0 %v11722_v50  ;;  %v11731_v50 = vld [vmem:[#allocation13 + $0x130] sm:$0xff]  }
 0x4d8   : > { %14830 = vmatprep.subr.bf16.mxu0 %v11723_v6 }
 0x4da   : > { %13793 = vmatmul.mubr.f32.gmra.mrb[26].mxu0 %v17987_v29 }
 0x4db   : > { %13795 = vmatprep.mubr.f32.mxu0 %v17991_v11  ;;  %14832 = vmatpush3.bf16.msra.mxu0 %v11723_v6  ;;  %v11732_v6 = vld [vmem:[#allocation13 + $0x138] sm:$0xff]  }
 0x4dc   : > { %14834 = vmatprep.subr.bf16.mxu0 %v11724_v25 }
 0x4de   : > { %13796 = vmatmul.mubr.f32.gmra.mrb[28].mxu0 %v17998_v19 }
 0x4df   : > { %13798 = vmatprep.mubr.f32.mxu0 %v18003_v9  ;;  %14836 = vmatpush3.bf16.msra.mxu0 %v11724_v25  ;;  %v11444_v25 = vld [vmem:[#allocation13 + $0x140] sm:$0xff]  }
 0x4e0   : > { %14838 = vmatprep.subr.bf16.mxu0 %v11725_v39 }
 0x4e2   : > { %13799 = vmatmul.mubr.f32.gmra.mrb[30].mxu0 %v18010_v37 }
 0x4e3   : > { %14840 = vmatpush3.bf16.msra.mxu0 %v11725_v39  ;;  %13833 = vmatprep.mubr.f32.mxu0 %v18000_v61  ;;  %v18090_v61 = vld [vmem:[#allocation2 + $0x80] sm:$0xff]  ;;  %v6110_v39 = vld [vmem:[#allocation2 + $0x132] sm:$0xff] }
 0x4e4   : > { %14842 = vmatprep.subr.bf16.mxu0 %v11412_v21  ;;  %14135 = vmatmul.mubr.f32.gmra.mrb[38].mxu1 %v6110_v39  ;;  %v11744_v39 = vld [vmem:[#allocation13 + $0x1a8] sm:$0xff]  }
 0x4e6   : > { %13834 = vmatmul.mubr.f32.vlgmr.msra.gmra.mrb[16].mxu0 %v18006_v15 }
 0x4e7   : > { %13836 = vmatprep.mubr.f32.mxu0 %v18012_v45  ;;  %14844 = vmatpush3.bf16.msra.mxu0 %v11412_v21  ;;  %v11733_v21 = vld [vmem:[#allocation13 + $0x148] sm:$0xff]  }
 0x4e8   : > { %14846 = vmatprep.subr.bf16.mxu0 %v11726_v43 }
 0x4ea   : > { %13837 = vmatmul.mubr.f32.gmra.mrb[18].mxu0 %v18018_v56 }
 0x4eb   : > { %13839 = vmatprep.mubr.f32.mxu0 %v18022_v5  ;;  %14848 = vmatpush3.bf16.msra.mxu0 %v11726_v43  ;;  %v11734_v43 = vld [vmem:[#allocation13 + $0x150] sm:$0xff]  }
 0x4ec   : > { %14850 = vmatprep.subr.bf16.mxu0 %v11727_v16 }
 0x4ee   : > { %13840 = vmatmul.mubr.f32.gmra.mrb[20].mxu0 %v18025_v55 }
 0x4ef   : > { %13842 = vmatprep.mubr.f32.mxu0 %v18028_v47  ;;  %14852 = vmatpush3.bf16.msra.mxu0 %v11727_v16  ;;  %v11735_v16 = vld [vmem:[#allocation13 + $0x158] sm:$0xff]  }
 0x4f0   : > { %14854 = vmatprep.subr.bf16.mxu0 %v11728_v10 }
 0x4f2   : > { %13843 = vmatmul.mubr.f32.gmra.mrb[22].mxu0 %v18090_v61 }
 0x4f3   : > { %13845 = vmatprep.mubr.f32.mxu0 %v18032_v62  ;;  %14856 = vmatpush3.bf16.msra.mxu0 %v11728_v10  ;;  %v18100_v62 = vld [vmem:[#allocation2 + $0x120] sm:$0xff] }
 0x4f4   : > { %14858 = vmatprep.subr.bf16.mxu0 %v11729_v27  ;;  %v11738_v10 = vld [vmem:[#allocation13 + $0x170] sm:$0xff]  }
 0x4f6   : > { %13846 = vmatmul.mubr.f32.gmra.mrb[24].mxu0 %v18035_v2 }
 0x4f7   : > { %13848 = vmatprep.mubr.f32.mxu0 %v18038_v13  ;;  %14860 = vmatpush3.bf16.msra.mxu0 %v11729_v27  ;;  %v11739_v27 = vld [vmem:[#allocation13 + $0x178] sm:$0xff]  }
 0x4f8   : > { %14862 = vmatprep.subr.bf16.mxu0 %v11730_v32 }
 0x4fa   : > { %13849 = vmatmul.mubr.f32.gmra.mrb[26].mxu0 %v18041_v40 }
 0x4fb   : > { %13851 = vmatprep.mubr.f32.mxu0 %v18044_v28  ;;  %14864 = vmatpush3.bf16.msra.mxu0 %v11730_v32  ;;  %v11740_v32 = vld [vmem:[#allocation13 + $0x188] sm:$0xff]  }
 0x4fc   : > { %14866 = vmatprep.subr.bf16.mxu0 %v11731_v50 }
 0x4fe   : > { %13852 = vmatmul.mubr.f32.gmra.mrb[28].mxu0 %v18047_v30 }
 0x4ff   : > { %13854 = vmatprep.mubr.f32.mxu0 %v18050_v24  ;;  %14868 = vmatpush3.bf16.msra.mxu0 %v11731_v50  ;;  %v11741_v50 = vld [vmem:[#allocation13 + $0x190] sm:$0xff]  }
 0x500   : > { %14870 = vmatprep.subr.bf16.mxu0 %v11732_v6 }
 0x502   : > { %13855 = vmatmul.mubr.f32.gmra.mrb[30].mxu0 %v18100_v62 }
 0x503   : > { %14872 = vmatpush3.bf16.msra.mxu0 %v11732_v6  ;;  %13889 = vmatprep.mubr.f32.mxu0 %v17899_v7  ;;  %v11736_v7 = vld [vmem:[#allocation13 + $0x160] sm:$0xff]   ;;  %v11742_v6 = vld [vmem:[#allocation13 + $0x198] sm:$0xff]  }
 0x504   : > { %14874 = vmatprep.subr.bf16.mxu0 %v11444_v25 }
 0x506   : > { %13890 = vmatmul.mubr.f32.vlgmr.msra.gmra.mrb[16].mxu0 %v17896_v35  ;;  %v11737_v35 = vld [vmem:[#allocation13 + $0x168] sm:$0xff]  }
 0x507   : > { %13892 = vmatprep.mubr.f32.mxu0 %v17911_v44  ;;  %14876 = vmatpush3.bf16.msra.mxu0 %v11444_v25  ;;  %v11743_v25 = vld [vmem:[#allocation13 + $0x1a0] sm:$0xff]  }
 0x508   : > { %14878 = vmatprep.subr.bf16.mxu0 %v11733_v21 }
 0x50a   : > { %13893 = vmatmul.mubr.f32.gmra.mrb[18].mxu0 %v17907_v23 }
 0x50b   : > { %13895 = vmatprep.mubr.f32.mxu0 %v17923_v4  ;;  %14880 = vmatpush3.bf16.msra.mxu0 %v11733_v21  ;;  %v11745_v21 = vld [vmem:[#allocation13 + $0x1b0] sm:$0xff]  }
 0x50c   : > { %14882 = vmatprep.subr.bf16.mxu0 %v11734_v43 }
 0x50e   : > { %13896 = vmatmul.mubr.f32.gmra.mrb[20].mxu0 %v17919_v57 }
 0x50f   : > { %13898 = vmatprep.mubr.f32.mxu0 %v17935_v63  ;;  %14884 = vmatpush3.bf16.msra.mxu0 %v11734_v43  ;;  %v11746_v43 = vld [vmem:[#allocation13 + $0x1b8] sm:$0xff]  }
 0x510   : > { %14886 = vmatprep.subr.bf16.mxu0 %v11735_v16 }
 0x512   : > { %13899 = vmatmul.mubr.f32.gmra.mrb[22].mxu0 %v17931_v46 }
 0x513   : > { %13901 = vmatprep.mubr.f32.mxu0 %v17946_v36  ;;  %14888 = vmatpush3.bf16.msra.mxu0 %v11735_v16  ;;  %v11476_v36 = vld [vmem:[#allocation13 + $0x180] sm:$0xff]  }
 0x514   : > { %14890 = vmatprep.subr.bf16.mxu0 %v11736_v7 }
 0x516   : > { %13902 = vmatmul.mubr.f32.gmra.mrb[24].mxu0 %v17943_v42 }
 0x517   : > { %13904 = vmatprep.mubr.f32.mxu0 %v17958_v48  ;;  %14892 = vmatpush3.bf16.msra.mxu0 %v11736_v7 }
 0x518   : > { %14894 = vmatprep.subr.bf16.mxu0 %v11737_v35 }
 0x51a   : > { %13905 = vmatmul.mubr.f32.gmra.mrb[26].mxu0 %v17954_v14 }
 0x51b   : > { %13907 = vmatprep.mubr.f32.mxu0 %v17970_v52  ;;  %14896 = vmatpush3.bf16.msra.mxu0 %v11737_v35 }
 0x51c   : > { %14898 = vmatprep.subr.bf16.mxu0 %v11738_v10 }
 0x51e   : > { %13908 = vmatmul.mubr.f32.gmra.mrb[28].mxu0 %v17966_v12 }
 0x51f   : > { %13910 = vmatprep.mubr.f32.mxu0 %v17984_v22  ;;  %14900 = vmatpush3.bf16.msra.mxu0 %v11738_v10 }
 0x520   : > { %14902 = vmatprep.subr.bf16.mxu0 %v11739_v27 }
 0x522   : > { %13911 = vmatmul.mubr.f32.gmra.mrb[30].mxu0 %v17981_v34 }
 0x523   : > { %14904 = vmatpush3.bf16.msra.mxu0 %v11739_v27  ;;  %13945 = vmatprep.mubr.f32.mxu0 %v18053_v60  ;;  %v18126_v60 = vld [vmem:[#allocation2 + $0x82] sm:$0xff] }
 0x524   : > { %14906 = vmatprep.subr.bf16.mxu0 %v11476_v36 }
 0x526   : > { %13946 = vmatmul.mubr.f32.vlgmr.msra.gmra.mrb[16].mxu0 %v18056_v17 }
 0x527   : > { %13948 = vmatprep.mubr.f32.mxu0 %v18059_v0  ;;  %14908 = vmatpush3.bf16.msra.mxu0 %v11476_v36 }
 0x528   : > { %14910 = vmatprep.subr.bf16.mxu0 %v11740_v32 }
 0x52a   : > { %13949 = vmatmul.mubr.f32.gmra.mrb[18].mxu0 %v18062_v31 }
 0x52b   : > { %13951 = vmatprep.mubr.f32.mxu0 %v18065_v26  ;;  %14912 = vmatpush3.bf16.msra.mxu0 %v11740_v32 }
 0x52c   : > { %14914 = vmatprep.subr.bf16.mxu0 %v11741_v50 }
 0x52e   : > { %13952 = vmatmul.mubr.f32.gmra.mrb[20].mxu0 %v18068_v41 }
 0x52f   : > { %13954 = vmatprep.mubr.f32.mxu0 %v18071_v3  ;;  %14916 = vmatpush3.bf16.msra.mxu0 %v11741_v50 }
 0x530   : > { %14918 = vmatprep.subr.bf16.mxu0 %v11742_v6 }
 0x532   : > { %13955 = vmatmul.mubr.f32.gmra.mrb[22].mxu0 %v18126_v60 }
 0x533   : > { %13957 = vmatprep.mubr.f32.mxu0 %v18074_v38  ;;  %14920 = vmatpush3.bf16.msra.mxu0 %v11742_v6  ;;  %v11508_v38 = vld [vmem:[#allocation13 + $0x1c0] sm:$0xff]  }
 0x534   : > { %14922 = vmatprep.subr.bf16.mxu0 %v11743_v25 }
 0x536   : > { %13958 = vmatmul.mubr.f32.gmra.mrb[24].mxu0 %v17973_v18  ;;  %v11747_v18 = vld [vmem:[#allocation13 + $0x1c8] sm:$0xff]  }
 0x537   : > { %13960 = vmatprep.mubr.f32.mxu0 %v17987_v29  ;;  %14924 = vmatpush3.bf16.msra.mxu0 %v11743_v25  ;;  %v11748_v29 = vld [vmem:[#allocation13 + $0x1d0] sm:$0xff]  }
 0x538   : > { %14926 = vmatprep.subr.bf16.mxu0 %v11744_v39 }
 0x53a   : > { %13961 = vmatmul.mubr.f32.gmra.mrb[26].mxu0 %v17991_v11  ;;  %v11749_v11 = vld [vmem:[#allocation13 + $0x1d8] sm:$0xff]  }
 0x53b   : > { %13963 = vmatprep.mubr.f32.mxu0 %v17998_v19  ;;  %14928 = vmatpush3.bf16.msra.mxu0 %v11744_v39  ;;  %v11750_v19 = vld [vmem:[#allocation13 + $0x1e0] sm:$0xff]  }
 0x53c   : > { %14930 = vmatprep.subr.bf16.mxu0 %v11745_v21 }
 0x53e   : > { %13964 = vmatmul.mubr.f32.gmra.mrb[28].mxu0 %v18003_v9  ;;  %v11751_v9 = vld [vmem:[#allocation13 + $0x1e8] sm:$0xff]  }
 0x53f   : > { %13966 = vmatprep.mubr.f32.mxu0 %v18010_v37  ;;  %14932 = vmatpush3.bf16.msra.mxu0 %v11745_v21  ;;  %v11753_v37 = vld [vmem:[#allocation13 + $0x1f8] sm:$0xff]  }
 0x540   : > { %14934 = vmatprep.subr.bf16.mxu0 %v11746_v43 }
 0x542   : > { %13967 = vmatmul.mubr.f32.gmra.mrb[30].mxu0 %v18015_v54 }
 0x543   : > { %14936 = vmatpush3.bf16.msra.mxu0 %v11746_v43  ;;  %14001 = vmatprep.mubr.f32.mxu0 %v18006_v15  ;;  %v11752_v15 = vld [vmem:[#allocation13 + $0x1f0] sm:$0xff]  }
 0x544   : > { %14938 = vmatprep.subr.bf16.mxu0 %v11508_v38 }
 0x546   : > { %14002 = vmatmul.mubr.f32.vlgmr.msra.gmra.mrb[16].mxu0 %v18012_v45  ;;  %v5885_v45 = vld [vmem:[#allocation2 + $0x21] sm:$0xff] }
 0x547   : > { %14004 = vmatprep.mubr.f32.mxu0 %v18018_v56  ;;  %14940 = vmatpush3.bf16.msra.mxu0 %v11508_v38 }
 0x548   : > { %14942 = vmatprep.subr.bf16.mxu0 %v11747_v18 }
 0x54a   : > { %14005 = vmatmul.mubr.f32.gmra.mrb[18].mxu0 %v18022_v5 }
 0x54b   : > { %14007 = vmatprep.mubr.f32.mxu0 %v18025_v55  ;;  %14944 = vmatpush3.bf16.msra.mxu0 %v11747_v18 }
 0x54c   : > { %14946 = vmatprep.subr.bf16.mxu0 %v11748_v29 }
 0x54e   : > { %14008 = vmatmul.mubr.f32.gmra.mrb[20].mxu0 %v18028_v47 }
 0x54f   : > { %14010 = vmatprep.mubr.f32.mxu0 %v18090_v61  ;;  %14948 = vmatpush3.bf16.msra.mxu0 %v11748_v29 }
 0x550   : > { %14950 = vmatprep.subr.bf16.mxu0 %v11749_v11 }
 0x552   : > { %14011 = vmatmul.mubr.f32.gmra.mrb[22].mxu0 %v17995_v49 }
 0x553   : > { %14013 = vmatprep.mubr.f32.mxu0 %v18035_v2  ;;  %14952 = vmatpush3.bf16.msra.mxu0 %v11749_v11 }
 0x554   : > { %14954 = vmatprep.subr.bf16.mxu0 %v11750_v19 }
 0x556   : > { %14014 = vmatmul.mubr.f32.gmra.mrb[24].mxu0 %v18038_v13 }
 0x557   : > { %14016 = vmatprep.mubr.f32.mxu0 %v18041_v40  ;;  %14956 = vmatpush3.bf16.msra.mxu0 %v11750_v19 }
 0x558   : > { %14958 = vmatprep.subr.bf16.mxu0 %v11751_v9 }
 0x55a   : > { %14017 = vmatmul.mubr.f32.gmra.mrb[26].mxu0 %v18044_v28 }
 0x55b   : > { %14019 = vmatprep.mubr.f32.mxu0 %v18047_v30  ;;  %14960 = vmatpush3.bf16.msra.mxu0 %v11751_v9 }
 0x55c   : > { %14962 = vmatprep.subr.bf16.mxu0 %v11752_v15 }
 0x55e   : > { %14020 = vmatmul.mubr.f32.gmra.mrb[28].mxu0 %v18050_v24 }
 0x55f   : > { %14022 = vmatprep.mubr.f32.mxu0 %v18100_v62  ;;  %14964 = vmatpush3.bf16.msra.mxu0 %v11752_v15 }
 0x560   : > { %14966 = vmatprep.subr.bf16.mxu0 %v11753_v37 }
 0x562   : > { %14023 = vmatmul.mubr.f32.gmra.mrb[30].mxu0 %v17995_v49 }
 0x563   : > { %14968 = vmatpush3.bf16.msra.mxu0 %v11753_v37  ;;  %14057 = vmatprep.mubr.f32.mxu0 %v5885_v45 }
 0x564   : > { %14970 = vmatprep.subr.bf16.mxu0 %v17856_v20 }
 0x566   : > { %14058 = vmatmul.mubr.f32.vlgmr.msra.gmra.mrb[16].mxu0 %v17911_v44  ;;  %v5892_v44 = vld [vmem:[#allocation2 + $0x91] sm:$0xff] }
 0x567   : > { %14060 = vmatprep.mubr.f32.mxu0 %v17907_v23  ;;  %14972 = vmatpush3.bf16.msra.mxu0 %v17856_v20 }
 0x568   : > { %14974 = vmatprep.subr.bf16.mxu0 %v17860_v8 }
 0x56a   : > { %14061 = vmatmul.mubr.f32.gmra.mrb[18].mxu0 %v17923_v4 }
 0x56b   : > { %14063 = vmatprep.mubr.f32.mxu0 %v17919_v57  ;;  %14976 = vmatpush3.bf16.msra.mxu0 %v17860_v8 }
 0x56c   : > { %14978 = vmatprep.subr.bf16.mxu0 %v17864_v33 }
 0x56e   : > { %14064 = vmatmul.mubr.f32.gmra.mrb[20].mxu0 %v17935_v63 }
 0x56f   : > { %14066 = vmatprep.mubr.f32.mxu0 %v17931_v46  ;;  %14980 = vmatpush3.bf16.msra.mxu0 %v17864_v33 }
 0x570   : > { %14982 = vmatprep.subr.bf16.mxu0 %v17868_v53 }
 0x572   : > { %14067 = vmatmul.mubr.f32.gmra.mrb[22].mxu0 %v5892_v44 }
 0x573   : > { %14069 = vmatprep.mubr.f32.mxu0 %v17943_v42  ;;  %14984 = vmatpush3.bf16.msra.mxu0 %v17868_v53 }
 0x574   : > { %v14127_v20 = vpop.f32.mrb[32].mxu1  ;;  %14986 = vmatprep.subr.bf16.mxu0 %v17872_v58 }
 0x575   : > { %v6250_v8 = vpop.f32.mrb[33].mxu1 }
 0x576   : > { %14070 = vmatmul.mubr.f32.gmra.mrb[24].mxu0 %v17958_v48 }
 0x577   : > { %14072 = vmatprep.mubr.f32.mxu0 %v17954_v14  ;;  %14988 = vmatpush3.bf16.msra.mxu0 %v17872_v58  ;;  %v5900_v58 = vld [vmem:[#allocation2 + $0x131] sm:$0xff] }
 0x578   : > { %v14130_v23 = vpop.f32.mrb[34].mxu1  ;;  %14990 = vmatprep.subr.bf16.mxu0 %v17876_v59  ;;  %v18191_v14 = vld [vmem:[#allocation14 + $0x1] ss:$0 sm:$0xff] }
 0x579   : > { %v6260_v33 = vpop.f32.mrb[35].mxu1 }
 0x57a   : > { %14073 = vmatmul.mubr.f32.gmra.mrb[26].mxu0 %v17970_v52 }
 0x57b   : > { %14075 = vmatprep.mubr.f32.mxu0 %v17966_v12  ;;  %14992 = vmatpush3.bf16.msra.mxu0 %v17876_v59  ;;  %v6102_v59 = vld [vmem:[#allocation2 + $0x92] sm:$0xff] }
 0x57c   : > { %v14133_v53 = vpop.f32.mrb[36].mxu1  ;;  %14994 = vmatprep.subr.bf16.mxu0 %v17880_v51 }
 0x57d   : > { %v6270_v57 = vpop.f32.mrb[37].mxu1 }
 0x57e   : > { %14076 = vmatmul.mubr.f32.gmra.mrb[28].mxu0 %v17984_v22 }
 0x57f   : > { %14078 = vmatprep.mubr.f32.mxu0 %v17981_v34  ;;  %14996 = vmatpush3.bf16.msra.mxu0 %v17880_v51 }
 0x580   : > { %14998 = vmatprep.subr.bf16.mxu0 %v17884_v1 }
 0x582   : > { %14079 = vmatmul.mubr.f32.gmra.mrb[30].mxu0 %v5900_v58 }
 0x583   : > { %15000 = vmatpush3.bf16.msra.mxu0 %v17884_v1  ;;  %14113 = vmatprep.mubr.f32.mxu0 %v18056_v17  ;;  %v18189_v1 = vld [vmem:[#allocation14] ss:$0 sm:$0xff] }
 0x586   : > { %14114 = vmatmul.mubr.f32.vlgmr.msra.gmra.mrb[16].mxu0 %v18059_v0 }
 0x587   : > { %14116 = vmatprep.mubr.f32.mxu0 %v18062_v31 }
 0x58a   : > { %14117 = vmatmul.mubr.f32.gmra.mrb[18].mxu0 %v18065_v26 }
 0x58b   : > { %14119 = vmatprep.mubr.f32.mxu0 %v18068_v41 }
 0x58e   : > { %14120 = vmatmul.mubr.f32.gmra.mrb[20].mxu0 %v18071_v3 }
 0x58f   : > { %14122 = vmatprep.mubr.f32.mxu0 %v18126_v60 }
 0x592   : > { %14123 = vmatmul.mubr.f32.gmra.mrb[22].mxu0 %v6102_v59 }
 0x5b7   : > { %v14136_v51 = vpop.f32.mrb[38].mxu1 }
 0x5b8   : > { %v6280_v4 = vpop.f32.mrb[39].mxu1 }
 0x649   : > { %v14071_v46 = vpop.f32.mrb[24].mxu0 }
 0x64a   : > { %v15161_v63 = vadd.f32 %v14127_v20, %v14071_v46  ;;  %v6040_v42 = vpop.f32.mrb[25].mxu0 }
 0x64b   : > { %v15162_v48 = vadd.f32 %v6250_v8, %v6040_v42 }
 0x64c   : > { %v6319_v12 = vmul.f32 %v15161_v63, %v18189_v1 }
 0x64d   : > { %v6318_v52 = vmul.f32 %v15162_v48, %v18189_v1  ;;  %v14074_v34 = vpop.f32.mrb[26].mxu0 }
 0x64e   : > { %v6340_v22 = vadd.f32 %v18191_v14, %v6319_v12  ;;  %v15163_v49 = vadd.f32 %v14130_v23, %v14074_v34  ;;  %v6050_v54 = vpop.f32.mrb[27].mxu0 }
 0x64f   : > { %v6339_v56 = vadd.f32 %v18191_v14, %v6318_v52  ;;  %v15164_v5 = vadd.f32 %v6260_v33, %v6050_v54 }
 0x650   : > { %v6356_v55 = vmax.f32 %v6340_v22, 0.0  ;;  %v6321_v47 = vmul.f32 %v15163_v49, %v18189_v1 }
 0x651   : > { %v6355_v2 = vmax.f32 %v6339_v56, 0.0  ;;  %v6320_v13 = vmul.f32 %v15164_v5, %v18189_v1  ;;  %v14077_v40 = vpop.f32.mrb[28].mxu0 }
 0x652   : > { %6372 = vst [vmem:[#allocation2 + $0xc1] sm:$0xff] %v6356_v55  ;;  %v6342_v28 = vadd.f32 %v18191_v14, %v6321_v47  ;;  %v15165_v30 = vadd.f32 %v14133_v53, %v14077_v40  ;;  %v6060_v24 = vpop.f32.mrb[29].mxu0 }
 0x653   : > { %6371 = vst [vmem:[#allocation2 + $0xb1] sm:$0xff] %v6355_v2  ;;  %v6341_v17 = vadd.f32 %v18191_v14, %v6320_v13  ;;  %v15166_v0 = vadd.f32 %v6270_v57, %v6060_v24 }
 0x654   : > { %v6358_v31 = vmax.f32 %v6342_v28, 0.0  ;;  %v6323_v26 = vmul.f32 %v15165_v30, %v18189_v1 }
 0x655   : > { %v6357_v41 = vmax.f32 %v6341_v17, 0.0  ;;  %v6322_v3 = vmul.f32 %v15166_v0, %v18189_v1  ;;  %v14080_v61 = vpop.f32.mrb[30].mxu0 }
 0x656   : > { %6374 = vst [vmem:[#allocation2 + $0xe1] sm:$0xff] %v6358_v31  ;;  %v6344_v62 = vadd.f32 %v18191_v14, %v6323_v26  ;;  %v15167_v16 = vadd.f32 %v14136_v51, %v14080_v61  ;;  %v6070_v7 = vpop.f32.mrb[31].mxu0 }
 0x657   : > { %6373 = vst [vmem:[#allocation2 + $0xd1] sm:$0xff] %v6357_v41  ;;  %v6343_v35 = vadd.f32 %v18191_v14, %v6322_v3  ;;  %v15168_v10 = vadd.f32 %v6280_v4, %v6070_v7 }
 0x658   : > { %v6360_v27 = vmax.f32 %v6344_v62, 0.0  ;;  %v6325_v36 = vmul.f32 %v15167_v16, %v18189_v1 }
 0x659   : > { %v6359_v32 = vmax.f32 %v6343_v35, 0.0  ;;  %v6324_v50 = vmul.f32 %v15168_v10, %v18189_v1  ;;  %v14115_v6 = vpop.f32.mrb[16].mxu0  ;;  %v10338_v63 = vld.sshfl [vmem:[#allocation2 + $0xc2] sm:$0x1 pattern:$0x76325410] }
 0x65a   : > { %6376 = vst [vmem:[#allocation2 + $0x101] sm:$0xff] %v6360_v27  ;;  %v6346_v60 = vadd.f32 %v18191_v14, %v6325_v36  ;;  %v6311_v25 = vmul.f32 %v14115_v6, %v18189_v1  ;;  %v6210_v39 = vpop.f32.mrb[17].mxu0  ;;  %v10340_v48 = vld.sshfl [vmem:[#allocation2 + $0xc3] sm:$0x1 pattern:$0x76325410] }
 0x65b   : > { %6375 = vst [vmem:[#allocation2 + $0xf1] sm:$0xff] %v6359_v32  ;;  %v6345_v21 = vadd.f32 %v18191_v14, %v6324_v50  ;;  %v6310_v43 = vmul.f32 %v18189_v1, %v6210_v39  ;;  %v10342_v52 = vld.sshfl [vmem:[#allocation2 + $0xc4] sm:$0x1 pattern:$0x76325410]  ;;  %v18224_v2 = vrot.slane %v10338_v63, 7 }
 0x65c   : > { %v6362_v38 = vmax.f32 %v6346_v60, 0.0  ;;  %v6332_v18 = vadd.f32 %v18191_v14, %v6311_v25  ;;  %v10344_v49 = vld.sshfl [vmem:[#allocation2 + $0xc5] sm:$0x1 pattern:$0x76325410]  ;;  %v18227_v30 = vrot.slane %v10340_v48, 7 }
 0x65d   : > { %v6361_v29 = vmax.f32 %v6345_v21, 0.0  ;;  %v6331_v11 = vadd.f32 %v18191_v14, %v6310_v43  ;;  %v14118_v15 = vpop.f32.mrb[18].mxu0  ;;  %v10346_v54 = vld.sshfl [vmem:[#allocation2 + $0xc6] sm:$0x1 pattern:$0x76325410] }
 0x65e   : > { %6378 = vst [vmem:[#allocation2 + $0x121] sm:$0xff] %v6362_v38  ;;  %v6348_v19 = vmax.f32 %v6332_v18, 0.0  ;;  %v6313_v37 = vmul.f32 %v14118_v15, %v18189_v1  ;;  %v6220_v45 = vpop.f32.mrb[19].mxu0  ;;  %v18229_v31 = vrot.slane %v10342_v52, 7  ;;  %v18231_v3 = vrot.slane %v10344_v49, 7 }
 0x65f   : > { %6377 = vst [vmem:[#allocation2 + $0x111] sm:$0xff] %v6361_v29  ;;  %v6347_v9 = vmax.f32 %v6331_v11, 0.0  ;;  %v6312_v44 = vmul.f32 %v18189_v1, %v6220_v45  ;;  %v10348_v5 = vld.sshfl [vmem:[#allocation2 + $0xc7] sm:$0x1 pattern:$0x76325410] }
 0x660   : > { %6364 = vst [vmem:[#allocation2 + $0x21] sm:$0xff] %v6348_v19  ;;  %v6334_v8 = vadd.f32 %v18191_v14, %v6313_v37  ;;  %v10362_v55 = vld.sshfl [vmem:[#allocation2 + $0xe2] sm:$0x1 pattern:$0x76325410]  ;;  %v18233_v61 = vrot.slane %v10346_v54, 7 }
 0x661   : > { %6363 = vst [vmem:[#allocation2 + $0x11] sm:$0xff] %v6347_v9  ;;  %v14121_v20 = vpop.f32.mrb[20].mxu0  ;;  %v6333_v53 = vadd.f32 %v18191_v14, %v6312_v44  ;;  %v10364_v13 = vld.sshfl [vmem:[#allocation2 + $0xe3] sm:$0x1 pattern:$0x76325410] }
 0x662   : > { %v6315_v23 = vmul.f32 %v14121_v20, %v18189_v1  ;;  %v6230_v33 = vpop.f32.mrb[21].mxu0  ;;  %v6350_v58 = vmax.f32 %v6334_v8, 0.0  ;;  %v10366_v40 = vld.sshfl [vmem:[#allocation2 + $0xe4] sm:$0x1 pattern:$0x76325410] }
 0x663   : > { %v6314_v57 = vmul.f32 %v18189_v1, %v6230_v33  ;;  %v6349_v51 = vmax.f32 %v6333_v53, 0.0  ;;  %v10368_v24 = vld.sshfl [vmem:[#allocation2 + $0xe5] sm:$0x1 pattern:$0x76325410]  ;;  %v18235_v7 = vrot.slane %v10348_v5, 7 }
 0x664   : > { %v6336_v59 = vadd.f32 %v18191_v14, %v6315_v23  ;;  %6366 = vst [vmem:[#allocation2 + $0x41] sm:$0xff] %v6350_v58  ;;  %v10370_v17 = vld.sshfl [vmem:[#allocation2 + $0xe6] sm:$0x1 pattern:$0x76325410]  ;;  %v18239_v27 = vrot.slane %v10364_v13, 7 }
 0x665   : > { %v6335_v4 = vadd.f32 %v18191_v14, %v6314_v57  ;;  %6365 = vst [vmem:[#allocation2 + $0x31] sm:$0xff] %v6349_v51  ;;  %v14124_v12 = vpop.f32.mrb[22].mxu0  ;;  %v10372_v26 = vld.sshfl [vmem:[#allocation2 + $0xe7] sm:$0x1 pattern:$0x76325410] }
 0x666   : > { %v6352_v46 = vmax.f32 %v6336_v59, 0.0  ;;  %v6317_v34 = vmul.f32 %v14124_v12, %v18189_v1  ;;  %v6240_v22 = vpop.f32.mrb[23].mxu0  ;;  %v10350_v41 = vld.sshfl [vmem:[#allocation2 + $0xd2] sm:$0x1 pattern:$0x76325410] }
 0x667   : > { %v6351_v42 = vmax.f32 %v6335_v4, 0.0  ;;  %v6316_v56 = vmul.f32 %v18189_v1, %v6240_v22  ;;  %v10352_v62 = vld.sshfl [vmem:[#allocation2 + $0xd3] sm:$0x1 pattern:$0x76325410]  ;;  %v18241_v36 = vrot.slane %v10366_v40, 7 }
 0x668   : > { %6368 = vst [vmem:[#allocation2 + $0x61] sm:$0xff] %v6352_v46  ;;  %v6338_v47 = vadd.f32 %v18191_v14, %v6317_v34  ;;  %v10354_v16 = vld.sshfl [vmem:[#allocation2 + $0xd4] sm:$0x1 pattern:$0x76325410]  ;;  %v18243_v6 = vrot.slane %v10368_v24, 7 }
 0x669   : > { %6367 = vst [vmem:[#allocation2 + $0x51] sm:$0xff] %v6351_v42  ;;  %v6337_v28 = vadd.f32 %v18191_v14, %v6316_v56  ;;  %v18237_v14 = vrot.slane %v10362_v55, 7  ;;  %v10356_v35 = vld.sshfl [vmem:[#allocation2 + $0xd5] sm:$0x1 pattern:$0x76325410] }
 0x66a   : > { %v6354_v0 = vmax.f32 %v6338_v47, 0.0  ;;  %v10358_v10 = vld.sshfl [vmem:[#allocation2 + $0xd6] sm:$0x1 pattern:$0x76325410]  ;;  %v18245_v60 = vrot.slane %v10370_v17, 7 }
 0x66b   : > { %v6353_v1 = vmax.f32 %v6337_v28, 0.0  ;;  %v10360_v32 = vld.sshfl [vmem:[#allocation2 + $0xd7] sm:$0x1 pattern:$0x76325410]  ;;  %v18247_v21 = vrot.slane %v10372_v26, 7 }
 0x66c   : > { %6370 = vst [vmem:[#allocation2 + $0x81] sm:$0xff] %v6354_v0  ;;  %v10386_v50 = vld.sshfl [vmem:[#allocation2 + $0x102] sm:$0x1 pattern:$0x76325410]  ;;  %v18249_v43 = vrot.slane %v10350_v41, 7 }
 0x66d   : > { %6369 = vst [vmem:[#allocation2 + $0x71] sm:$0xff] %v6353_v1  ;;  %v10388_v25 = vld.sshfl [vmem:[#allocation2 + $0x103] sm:$0x1 pattern:$0x76325410]  ;;  %v18251_v29 = vrot.slane %v10352_v62, 7 }
 0x66e   : > { %v10390_v39 = vld.sshfl [vmem:[#allocation2 + $0x104] sm:$0x1 pattern:$0x76325410]  ;;  %v18253_v11 = vrot.slane %v10354_v16, 7  ;;  %v18255_v15 = vrot.slane %v10356_v35, 7 }
 0x66f   : > { %v10392_v38 = vld.sshfl [vmem:[#allocation2 + $0x105] sm:$0x1 pattern:$0x76325410]  ;;  %v18257_v37 = vrot.slane %v10358_v10, 7  ;;  %v18259_v20 = vrot.slane %v10360_v32, 7 }
 0x670   : > { %v10394_v18 = vld.sshfl [vmem:[#allocation2 + $0x106] sm:$0x1 pattern:$0x76325410]  ;;  %v18261_v8 = vrot.slane %v10386_v50, 7  ;;  %v18263_v53 = vrot.slane %v10388_v25, 7 }
 0x671   : > { %v10396_v19 = vld.sshfl [vmem:[#allocation2 + $0x107] sm:$0x1 pattern:$0x76325410]  ;;  %v18265_v57 = vrot.slane %v10390_v39, 7  ;;  %v18267_v51 = vrot.slane %v10392_v38, 7 }
 0x672   : > { %v10374_v9 = vld.sshfl [vmem:[#allocation2 + $0xf2] sm:$0x1 pattern:$0x76325410]  ;;  %v18269_v4 = vrot.slane %v10394_v18, 7  ;;  %v18271_v42 = vrot.slane %v10396_v19, 7 }
 0x673   : > { %v10376_v45 = vld.sshfl [vmem:[#allocation2 + $0xf3] sm:$0x1 pattern:$0x76325410]  ;;  %v18273_v48 = vrot.slane %v10374_v9, 7 }
 0x674   : > { %v10378_v44 = vld.sshfl [vmem:[#allocation2 + $0xf4] sm:$0x1 pattern:$0x76325410]  ;;  %v18275_v52 = vrot.slane %v10376_v45, 7 }
 0x675   : > { %v10380_v23 = vld.sshfl [vmem:[#allocation2 + $0xf5] sm:$0x1 pattern:$0x76325410]  ;;  %v18277_v34 = vrot.slane %v10378_v44, 7 }
 0x676   : > { %v10382_v33 = vld.sshfl [vmem:[#allocation2 + $0xf6] sm:$0x1 pattern:$0x76325410]  ;;  %v18279_v49 = vrot.slane %v10380_v23, 7 }
 0x677   : > { %v10384_v58 = vld.sshfl [vmem:[#allocation2 + $0xf7] sm:$0x1 pattern:$0x76325410]  ;;  %v18281_v54 = vrot.slane %v10382_v33, 7 }
 0x678   : > { %v10398_v59 = vld.sshfl [vmem:[#allocation2 + $0x112] sm:$0x1 pattern:$0x76325410]  ;;  %v18283_v5 = vrot.slane %v10384_v58, 7 }
 0x679   : > { %v10400_v46 = vld.sshfl [vmem:[#allocation2 + $0x113] sm:$0x1 pattern:$0x76325410]  ;;  %v18285_v55 = vrot.slane %v10398_v59, 7 }
 0x67a   : > { %v10402_v63 = vld.sshfl [vmem:[#allocation2 + $0x114] sm:$0x1 pattern:$0x76325410]  ;;  %v18287_v13 = vrot.slane %v10400_v46, 7 }
 0x67b   : > { %v10404_v12 = vld.sshfl [vmem:[#allocation2 + $0x115] sm:$0x1 pattern:$0x76325410]  ;;  %v18289_v40 = vrot.slane %v10402_v63, 7 }
 0x67c   : > { %v10406_v22 = vld.sshfl [vmem:[#allocation2 + $0x116] sm:$0x1 pattern:$0x76325410]  ;;  %v18293_v17 = vrot.slane %v10404_v12, 7 }
 0x67d   : > { %v10408_v56 = vld.sshfl [vmem:[#allocation2 + $0x117] sm:$0x1 pattern:$0x76325410]  ;;  %v18295_v0 = vrot.slane %v10406_v22, 7 }
 0x67e   : > { %v10337_v47 = vld.sshfl [vmem:[#allocation2 + $0x22] sm:$0x1 pattern:$0x76325410]  ;;  %v18301_v62 = vrot.slane %v10408_v56, 7 }
 0x67f   : > { %v6403_v28 = vsel %vm6402_vm0, %v18224_v2, %v10337_v47  ;;  %v10339_v24 = vld.sshfl [vmem:[#allocation2 + $0x23] sm:$0x1 pattern:$0x76325410] }
 0x680   : > { %v6405_v26 = vsel %vm6404_vm1, %v18224_v2, %v6403_v28  ;;  %v6433_v41 = vsel %vm6402_vm0, %v18227_v30, %v10339_v24  ;;  %v10341_v1 = vld.sshfl [vmem:[#allocation2 + $0x24] sm:$0x1 pattern:$0x76325410] }
 0x681   : > { %v6407_v16 = vsel %vm6406_vm2, %v18224_v2, %v6405_v26  ;;  %v6434_v35 = vsel %vm6404_vm1, %v18227_v30, %v6433_v41  ;;  %v6460_v10 = vsel %vm6402_vm0, %v18229_v31, %v10341_v1  ;;  %v10343_v32 = vld.sshfl [vmem:[#allocation2 + $0x25] sm:$0x1 pattern:$0x76325410] }
 0x682   : > { %v6409_v50 = vsel %vm6408_vm3, %v18224_v2, %v6407_v16  ;;  %v6435_v25 = vsel %vm6406_vm2, %v18227_v30, %v6434_v35  ;;  %v6461_v39 = vsel %vm6404_vm1, %v18229_v31, %v6460_v10  ;;  %v6487_v38 = vsel %vm6402_vm0, %v18231_v3, %v10343_v32  ;;  %v10345_v18 = vld.sshfl [vmem:[#allocation2 + $0x26] sm:$0x1 pattern:$0x76325410] }
 0x683   : > { %6411 = vst [vmem:[#allocation3] sm:$0x3] %v6409_v50  ;;  %v6436_v19 = vsel %vm6408_vm3, %v18227_v30, %v6435_v25  ;;  %v6462_v9 = vsel %vm6406_vm2, %v18229_v31, %v6461_v39  ;;  %v6488_v2 = vsel %vm6404_vm1, %v18231_v3, %v6487_v38  ;;  %v6514_v45 = vsel %vm6402_vm0, %v18233_v61, %v10345_v18  ;;  %v10347_v44 = vld.sshfl [vmem:[#allocation2 + $0x27] sm:$0x1 pattern:$0x76325410] }
 0x684   : > { %6438 = vst [vmem:[#allocation3 + $0x2] sm:$0x3] %v6436_v19  ;;  %v6463_v23 = vsel %vm6408_vm3, %v18229_v31, %v6462_v9  ;;  %v6489_v33 = vsel %vm6406_vm2, %v18231_v3, %v6488_v2  ;;  %v6515_v30 = vsel %vm6404_vm1, %v18233_v61, %v6514_v45  ;;  %v6541_v58 = vsel %vm6402_vm0, %v18235_v7, %v10347_v44  ;;  %v10361_v59 = vld.sshfl [vmem:[#allocation2 + $0x42] sm:$0x1 pattern:$0x76325410] }
 0x685   : > { %6465 = vst [vmem:[#allocation3 + $0x4] sm:$0x3] %v6463_v23  ;;  %v6490_v46 = vsel %vm6408_vm3, %v18231_v3, %v6489_v33  ;;  %v6516_v63 = vsel %vm6406_vm2, %v18233_v61, %v6515_v30  ;;  %v6542_v31 = vsel %vm6404_vm1, %v18235_v7, %v6541_v58  ;;  %v6733_v12 = vsel %vm6402_vm0, %v18237_v14, %v10361_v59  ;;  %v10363_v22 = vld.sshfl [vmem:[#allocation2 + $0x43] sm:$0x1 pattern:$0x76325410] }
 0x686   : > { %6492 = vst [vmem:[#allocation3 + $0x6] sm:$0x3] %v6490_v46  ;;  %v6517_v56 = vsel %vm6408_vm3, %v18233_v61, %v6516_v63  ;;  %v6543_v47 = vsel %vm6406_vm2, %v18235_v7, %v6542_v31  ;;  %v6734_v3 = vsel %vm6404_vm1, %v18237_v14, %v6733_v12  ;;  %v6760_v28 = vsel %vm6402_vm0, %v18239_v27, %v10363_v22  ;;  %v10365_v24 = vld.sshfl [vmem:[#allocation2 + $0x44] sm:$0x1 pattern:$0x76325410] }
 0x687   : > { %6519 = vst [vmem:[#allocation3 + $0x8] sm:$0x3] %v6517_v56  ;;  %v6544_v26 = vsel %vm6408_vm3, %v18235_v7, %v6543_v47  ;;  %v6735_v41 = vsel %vm6406_vm2, %v18237_v14, %v6734_v3  ;;  %v6761_v61 = vsel %vm6404_vm1, %v18239_v27, %v6760_v28  ;;  %v6787_v1 = vsel %vm6402_vm0, %v18241_v36, %v10365_v24  ;;  %v10367_v16 = vld.sshfl [vmem:[#allocation2 + $0x45] sm:$0x1 pattern:$0x76325410] }
 0x688   : > { %6546 = vst [vmem:[#allocation3 + $0xa] sm:$0x3] %v6544_v26  ;;  %v6736_v35 = vsel %vm6408_vm3, %v18237_v14, %v6735_v41  ;;  %v6762_v10 = vsel %vm6406_vm2, %v18239_v27, %v6761_v61  ;;  %v6788_v7 = vsel %vm6404_vm1, %v18241_v36, %v6787_v1  ;;  %v6814_v32 = vsel %vm6402_vm0, %v18243_v6, %v10367_v16  ;;  %v10369_v50 = vld.sshfl [vmem:[#allocation2 + $0x46] sm:$0x1 pattern:$0x76325410] }
 0x689   : > { %6738 = vst [vmem:[#allocation3 + $0x18] sm:$0x3] %v6736_v35  ;;  %v6763_v25 = vsel %vm6408_vm3, %v18239_v27, %v6762_v10  ;;  %v6789_v39 = vsel %vm6406_vm2, %v18241_v36, %v6788_v7  ;;  %v6815_v14 = vsel %vm6404_vm1, %v18243_v6, %v6814_v32  ;;  %v6841_v38 = vsel %vm6402_vm0, %v18245_v60, %v10369_v50  ;;  %v10371_v18 = vld.sshfl [vmem:[#allocation2 + $0x47] sm:$0x1 pattern:$0x76325410] }
 0x68a   : > { %6765 = vst [vmem:[#allocation3 + $0x1a] sm:$0x3] %v6763_v25  ;;  %v6790_v19 = vsel %vm6408_vm3, %v18241_v36, %v6789_v39  ;;  %v6816_v9 = vsel %vm6406_vm2, %v18243_v6, %v6815_v14  ;;  %v6842_v27 = vsel %vm6404_vm1, %v18245_v60, %v6841_v38  ;;  %v6868_v2 = vsel %vm6402_vm0, %v18247_v21, %v10371_v18  ;;  %v10349_v45 = vld.sshfl [vmem:[#allocation2 + $0x32] sm:$0x1 pattern:$0x76325410] }
 0x68b   : > { %6792 = vst [vmem:[#allocation3 + $0x1c] sm:$0x3] %v6790_v19  ;;  %v6817_v44 = vsel %vm6408_vm3, %v18243_v6, %v6816_v9  ;;  %v6843_v23 = vsel %vm6406_vm2, %v18245_v60, %v6842_v27  ;;  %v6869_v36 = vsel %vm6404_vm1, %v18247_v21, %v6868_v2  ;;  %v6569_v33 = vsel %vm6402_vm0, %v18249_v43, %v10349_v45  ;;  %v10351_v30 = vld.sshfl [vmem:[#allocation2 + $0x33] sm:$0x1 pattern:$0x76325410] }
 0x68c   : > { %6819 = vst [vmem:[#allocation3 + $0x1e] sm:$0x3] %v6817_v44  ;;  %v6844_v58 = vsel %vm6408_vm3, %v18245_v60, %v6843_v23  ;;  %v6870_v59 = vsel %vm6406_vm2, %v18247_v21, %v6869_v36  ;;  %v6570_v6 = vsel %vm6404_vm1, %v18249_v43, %v6569_v33  ;;  %v6596_v46 = vsel %vm6402_vm0, %v18251_v29, %v10351_v30  ;;  %v10353_v63 = vld.sshfl [vmem:[#allocation2 + $0x34] sm:$0x1 pattern:$0x76325410] }
 0x68d   : > { %6846 = vst [vmem:[#allocation3 + $0x20] sm:$0x3] %v6844_v58  ;;  %v6871_v31 = vsel %vm6408_vm3, %v18247_v21, %v6870_v59  ;;  %v6571_v12 = vsel %vm6406_vm2, %v18249_v43, %v6570_v6  ;;  %v6597_v60 = vsel %vm6404_vm1, %v18251_v29, %v6596_v46  ;;  %v6623_v22 = vsel %vm6402_vm0, %v18253_v11, %v10353_v63  ;;  %v10355_v56 = vld.sshfl [vmem:[#allocation2 + $0x35] sm:$0x1 pattern:$0x76325410] }
 0x68e   : > { %6873 = vst [vmem:[#allocation3 + $0x22] sm:$0x3] %v6871_v31  ;;  %v6572_v47 = vsel %vm6408_vm3, %v18249_v43, %v6571_v12  ;;  %v6598_v3 = vsel %vm6406_vm2, %v18251_v29, %v6597_v60  ;;  %v6624_v21 = vsel %vm6404_vm1, %v18253_v11, %v6623_v22  ;;  %v6650_v28 = vsel %vm6402_vm0, %v18255_v15, %v10355_v56  ;;  %v10357_v24 = vld.sshfl [vmem:[#allocation2 + $0x36] sm:$0x1 pattern:$0x76325410] }
 0x68f   : > { %6574 = vst [vmem:[#allocation3 + $0xc] sm:$0x3] %v6572_v47  ;;  %v6599_v26 = vsel %vm6408_vm3, %v18251_v29, %v6598_v3  ;;  %v6625_v41 = vsel %vm6406_vm2, %v18253_v11, %v6624_v21  ;;  %v6651_v43 = vsel %vm6404_vm1, %v18255_v15, %v6650_v28  ;;  %v6678_v61 = vsel %vm6402_vm0, %v18257_v37, %v10357_v24  ;;  %v10359_v1 = vld.sshfl [vmem:[#allocation2 + $0x37] sm:$0x1 pattern:$0x76325410] }
 0x690   : > { %6601 = vst [vmem:[#allocation3 + $0xe] sm:$0x3] %v6599_v26  ;;  %v6626_v16 = vsel %vm6408_vm3, %v18253_v11, %v6625_v41  ;;  %v6652_v35 = vsel %vm6406_vm2, %v18255_v15, %v6651_v43  ;;  %v6679_v29 = vsel %vm6404_vm1, %v18257_v37, %v6678_v61  ;;  %v6705_v10 = vsel %vm6402_vm0, %v18259_v20, %v10359_v1  ;;  %v10385_v7 = vld.sshfl [vmem:[#allocation2 + $0x62] sm:$0x1 pattern:$0x76325410] }
 0x691   : > { %6628 = vst [vmem:[#allocation3 + $0x10] sm:$0x3] %v6626_v16  ;;  %v6653_v32 = vsel %vm6408_vm3, %v18255_v15, %v6652_v35  ;;  %v6680_v50 = vsel %vm6406_vm2, %v18257_v37, %v6679_v29  ;;  %v6706_v11 = vsel %vm6404_vm1, %v18259_v20, %v6705_v10  ;;  %v7060_v25 = vsel %vm6402_vm0, %v18261_v8, %v10385_v7  ;;  %v10387_v39 = vld.sshfl [vmem:[#allocation2 + $0x63] sm:$0x1 pattern:$0x76325410] }
 0x692   : > { %6656 = vst [vmem:[#allocation3 + $0x12] sm:$0x3] %v6653_v32  ;;  %v6681_v14 = vsel %vm6408_vm3, %v18257_v37, %v6680_v50  ;;  %v6707_v38 = vsel %vm6406_vm2, %v18259_v20, %v6706_v11  ;;  %v7061_v15 = vsel %vm6404_vm1, %v18261_v8, %v7060_v25  ;;  %v7087_v18 = vsel %vm6402_vm0, %v18263_v53, %v10387_v39  ;;  %v10389_v19 = vld.sshfl [vmem:[#allocation2 + $0x64] sm:$0x1 pattern:$0x76325410] }
 0x693   : > { %6683 = vst [vmem:[#allocation3 + $0x14] sm:$0x3] %v6681_v14  ;;  %v6708_v9 = vsel %vm6408_vm3, %v18259_v20, %v6707_v38  ;;  %v7062_v27 = vsel %vm6406_vm2, %v18261_v8, %v7061_v15  ;;  %v7088_v37 = vsel %vm6404_vm1, %v18263_v53, %v7087_v18  ;;  %v7114_v2 = vsel %vm6402_vm0, %v18265_v57, %v10389_v19  ;;  %v10391_v45 = vld.sshfl [vmem:[#allocation2 + $0x65] sm:$0x1 pattern:$0x76325410] }
 0x694   : > { %6710 = vst [vmem:[#allocation3 + $0x16] sm:$0x3] %v6708_v9  ;;  %v7063_v44 = vsel %vm6408_vm3, %v18261_v8, %v7062_v27  ;;  %v7089_v23 = vsel %vm6406_vm2, %v18263_v53, %v7088_v37  ;;  %v7115_v20 = vsel %vm6404_vm1, %v18265_v57, %v7114_v2  ;;  %v7141_v36 = vsel %vm6402_vm0, %v18267_v51, %v10391_v45  ;;  %v10393_v33 = vld.sshfl [vmem:[#allocation2 + $0x66] sm:$0x1 pattern:$0x76325410] }
 0x695   : > { %7065 = vst [vmem:[#allocation3 + $0x30] sm:$0x3] %v7063_v44  ;;  %v7090_v30 = vsel %vm6408_vm3, %v18263_v53, %v7089_v23  ;;  %v7116_v58 = vsel %vm6406_vm2, %v18265_v57, %v7115_v20  ;;  %v7142_v8 = vsel %vm6404_vm1, %v18267_v51, %v7141_v36  ;;  %v7169_v59 = vsel %vm6402_vm0, %v18269_v4, %v10393_v33  ;;  %v10395_v6 = vld.sshfl [vmem:[#allocation2 + $0x67] sm:$0x1 pattern:$0x76325410] }
 0x696   : > { %7092 = vst [vmem:[#allocation3 + $0x32] sm:$0x3] %v7090_v30  ;;  %v7117_v46 = vsel %vm6408_vm3, %v18265_v57, %v7116_v58  ;;  %v7143_v63 = vsel %vm6406_vm2, %v18267_v51, %v7142_v8  ;;  %v7170_v53 = vsel %vm6404_vm1, %v18269_v4, %v7169_v59  ;;  %v7196_v31 = vsel %vm6402_vm0, %v18271_v42, %v10395_v6  ;;  %v10373_v12 = vld.sshfl [vmem:[#allocation2 + $0x52] sm:$0x1 pattern:$0x76325410] }
 0x697   : > { %7119 = vst [vmem:[#allocation3 + $0x34] sm:$0x3] %v7117_v46  ;;  %v7144_v60 = vsel %vm6408_vm3, %v18267_v51, %v7143_v63  ;;  %v7171_v22 = vsel %vm6406_vm2, %v18269_v4, %v7170_v53  ;;  %v7197_v57 = vsel %vm6404_vm1, %v18271_v42, %v7196_v31  ;;  %v6896_v56 = vsel %vm6402_vm0, %v18273_v48, %v10373_v12  ;;  %v10375_v47 = vld.sshfl [vmem:[#allocation2 + $0x53] sm:$0x1 pattern:$0x76325410] }
 0x698   : > { %7147 = vst [vmem:[#allocation3 + $0x36] sm:$0x3] %v7144_v60  ;;  %v7172_v3 = vsel %vm6408_vm3, %v18269_v4, %v7171_v22  ;;  %v7198_v21 = vsel %vm6406_vm2, %v18271_v42, %v7197_v57  ;;  %v6897_v51 = vsel %vm6404_vm1, %v18273_v48, %v6896_v56  ;;  %v6924_v28 = vsel %vm6402_vm0, %v18275_v52, %v10375_v47  ;;  %v10377_v24 = vld.sshfl [vmem:[#allocation2 + $0x54] sm:$0x1 pattern:$0x76325410] }
 0x699   : > { %7174 = vst [vmem:[#allocation3 + $0x38] sm:$0x3] %v7172_v3  ;;  %v7199_v26 = vsel %vm6408_vm3, %v18271_v42, %v7198_v21  ;;  %v6898_v41 = vsel %vm6406_vm2, %v18273_v48, %v6897_v51  ;;  %v6925_v4 = vsel %vm6404_vm1, %v18275_v52, %v6924_v28  ;;  %v6951_v43 = vsel %vm6402_vm0, %v18277_v34, %v10377_v24  ;;  %v10379_v61 = vld.sshfl [vmem:[#allocation2 + $0x55] sm:$0x1 pattern:$0x76325410] }
 0x69a   : > { %7201 = vst [vmem:[#allocation3 + $0x3a] sm:$0x3] %v7199_v26  ;;  %v6899_v1 = vsel %vm6408_vm3, %v18273_v48, %v6898_v41  ;;  %v6926_v16 = vsel %vm6406_vm2, %v18275_v52, %v6925_v4  ;;  %v6952_v42 = vsel %vm6404_vm1, %v18277_v34, %v6951_v43  ;;  %v6978_v35 = vsel %vm6402_vm0, %v18279_v49, %v10379_v61  ;;  %v10381_v29 = vld.sshfl [vmem:[#allocation2 + $0x56] sm:$0x1 pattern:$0x76325410] }
 0x69b   : > { %6902 = vst [vmem:[#allocation3 + $0x24] sm:$0x3] %v6899_v1  ;;  %v6927_v10 = vsel %vm6408_vm3, %v18275_v52, %v6926_v16  ;;  %v6953_v7 = vsel %vm6406_vm2, %v18277_v34, %v6952_v42  ;;  %v6979_v48 = vsel %vm6404_vm1, %v18279_v49, %v6978_v35  ;;  %v7005_v32 = vsel %vm6402_vm0, %v18281_v54, %v10381_v29  ;;  %v10383_v50 = vld.sshfl [vmem:[#allocation2 + $0x57] sm:$0x1 pattern:$0x76325410] }
 0x69c   : > { %6929 = vst [vmem:[#allocation3 + $0x26] sm:$0x3] %v6927_v10  ;;  %v6954_v11 = vsel %vm6408_vm3, %v18277_v34, %v6953_v7  ;;  %v6980_v25 = vsel %vm6406_vm2, %v18279_v49, %v6979_v48  ;;  %v7006_v52 = vsel %vm6404_vm1, %v18281_v54, %v7005_v32  ;;  %v7032_v39 = vsel %vm6402_vm0, %v18283_v5, %v10383_v50  ;;  %v10397_v14 = vld.sshfl [vmem:[#allocation2 + $0x72] sm:$0x1 pattern:$0x76325410] }
 0x69d   : > { %6956 = vst [vmem:[#allocation3 + $0x28] sm:$0x3] %v6954_v11  ;;  %v6981_v38 = vsel %vm6408_vm3, %v18279_v49, %v6980_v25  ;;  %v7007_v15 = vsel %vm6406_vm2, %v18281_v54, %v7006_v52  ;;  %v7033_v34 = vsel %vm6404_vm1, %v18283_v5, %v7032_v39  ;;  %v7224_v18 = vsel %vm6402_vm0, %v18285_v55, %v10397_v14  ;;  %v10399_v19 = vld.sshfl [vmem:[#allocation2 + $0x73] sm:$0x1 pattern:$0x76325410] }
 0x69e   : > { %6983 = vst [vmem:[#allocation3 + $0x2a] sm:$0x3] %v6981_v38  ;;  %v7008_v9 = vsel %vm6408_vm3, %v18281_v54, %v7007_v15  ;;  %v7034_v27 = vsel %vm6406_vm2, %v18283_v5, %v7033_v34  ;;  %v7225_v49 = vsel %vm6404_vm1, %v18285_v55, %v7224_v18  ;;  %v7251_v37 = vsel %vm6402_vm0, %v18287_v13, %v10399_v19  ;;  %v10401_v2 = vld.sshfl [vmem:[#allocation2 + $0x74] sm:$0x1 pattern:$0x76325410] }
 0x69f   : > { %7010 = vst [vmem:[#allocation3 + $0x2c] sm:$0x3] %v7008_v9  ;;  %v7035_v45 = vsel %vm6408_vm3, %v18283_v5, %v7034_v27  ;;  %v7226_v44 = vsel %vm6406_vm2, %v18285_v55, %v7225_v49  ;;  %v7252_v54 = vsel %vm6404_vm1, %v18287_v13, %v7251_v37  ;;  %v7278_v23 = vsel %vm6402_vm0, %v18289_v40, %v10401_v2  ;;  %v10403_v20 = vld.sshfl [vmem:[#allocation2 + $0x75] sm:$0x1 pattern:$0x76325410] }
 0x6a0   : > { %7037 = vst [vmem:[#allocation3 + $0x2e] sm:$0x3] %v7035_v45  ;;  %v7227_v36 = vsel %vm6408_vm3, %v18285_v55, %v7226_v44  ;;  %v7253_v33 = vsel %vm6406_vm2, %v18287_v13, %v7252_v54  ;;  %v7279_v5 = vsel %vm6404_vm1, %v18289_v40, %v7278_v23  ;;  %v7305_v30 = vsel %vm6402_vm0, %v18293_v17, %v10403_v20  ;;  %v10405_v58 = vld.sshfl [vmem:[#allocation2 + $0x76] sm:$0x1 pattern:$0x76325410] }
 0x6a1   : > { %7229 = vst [vmem:[#allocation3 + $0x3c] sm:$0x3] %v7227_v36  ;;  %v7254_v8 = vsel %vm6408_vm3, %v18287_v13, %v7253_v33  ;;  %v7280_v59 = vsel %vm6406_vm2, %v18289_v40, %v7279_v5  ;;  %v7306_v55 = vsel %vm6404_vm1, %v18293_v17, %v7305_v30  ;;  %v7332_v6 = vsel %vm6402_vm0, %v18295_v0, %v10405_v58  ;;  %v10407_v46 = vld.sshfl [vmem:[#allocation2 + $0x77] sm:$0x1 pattern:$0x76325410] }
 0x6a2   : > { %7256 = vst [vmem:[#allocation3 + $0x3e] sm:$0x3] %v7254_v8  ;;  %v7281_v63 = vsel %vm6408_vm3, %v18289_v40, %v7280_v59  ;;  %v7307_v53 = vsel %vm6406_vm2, %v18293_v17, %v7306_v55  ;;  %v7333_v13 = vsel %vm6404_vm1, %v18295_v0, %v7332_v6  ;;  %v7359_v31 = vsel %vm6402_vm0, %v18301_v62, %v10407_v46 }
 0x6a3   : > { %7283 = vst [vmem:[#allocation3 + $0x40] sm:$0x3] %v7281_v63  ;;  %v7308_v12 = vsel %vm6408_vm3, %v18293_v17, %v7307_v53  ;;  %v7334_v60 = vsel %vm6406_vm2, %v18295_v0, %v7333_v13  ;;  %v7360_v22 = vsel %vm6404_vm1, %v18301_v62, %v7359_v31 }
 0x6a4   : > { %7310 = vst [vmem:[#allocation3 + $0x42] sm:$0x3] %v7308_v12  ;;  %v7335_v40 = vsel %vm6408_vm3, %v18295_v0, %v7334_v60  ;;  %v7361_v57 = vsel %vm6406_vm2, %v18301_v62, %v7360_v22 }
 0x6a5   : > { %7337 = vst [vmem:[#allocation3 + $0x44] sm:$0x3] %v7335_v40  ;;  %v7362_v56 = vsel %vm6408_vm3, %v18301_v62, %v7361_v57 }
 0x6a6   : > { %7364 = vst [vmem:[#allocation3 + $0x46] sm:$0x3] %v7362_v56 }
 0x6a7 PF: > { %v15778_v17 = vld [vmem:[%s17088_s16 + $0x4] ss:$16 sps:$4 sm:$0xff]   ;;  %v15780_v0 = vld [vmem:[%s17088_s16 + $0xc] ss:$16 sps:$4 sm:$0xff]   ;;  %v15782_v47 = vld [vmem:[%s17088_s16] ss:$16 sps:$4 sm:$0xff]   ;;  %v7380_v2 = vlaneseq }
 0x6a8   : > { %9163 = vmatprep.subr.bf16.mxu0 %v15778_v17  ;;  %v15783_v3 = vld [vmem:[%s17088_s16 + $0x8] ss:$16 sps:$4 sm:$0xff]   ;;  %9368 = vmatprep.subr.bf16.mxu1 %v15780_v0  ;;  %v15784_v62 = vld [vmem:[%s17088_s16 + $0x24] ss:$16 sps:$4 sm:$0xff]   ;;  %v15786_v21 = vld [vmem:[%s17088_s16 + $0x2c] ss:$16 sps:$4 sm:$0xff]  }
 0x6a9   : > { %9164 = vmatpush1.bf16.msra.mxu0 %v15782_v47  ;;  %9369 = vmatpush1.bf16.msra.mxu1 %v15783_v3  ;;  %v15788_v51 = vld [vmem:[%s17088_s16 + $0x20] ss:$16 sps:$4 sm:$0xff]   ;;  %v15789_v28 = vld [vmem:[%s17088_s16 + $0x28] ss:$16 sps:$4 sm:$0xff]   ;;  %v15790_v24 = vld [vmem:[%s17088_s16 + $0x44] ss:$16 sps:$4 sm:$0xff]  }
 0x6aa   : > { %9165 = vmatprep.subr.bf16.mxu0 %v15784_v62  ;;  %9370 = vmatprep.subr.bf16.mxu1 %v15786_v21  ;;  %v15792_v26 = vld [vmem:[%s17088_s16 + $0x4c] ss:$16 sps:$4 sm:$0xff]   ;;  %v15794_v41 = vld [vmem:[%s17088_s16 + $0x40] ss:$16 sps:$4 sm:$0xff]   ;;  %v15795_v4 = vld [vmem:[%s17088_s16 + $0x48] ss:$16 sps:$4 sm:$0xff]  }
 0x6ab   : > { %v15796_v43 = vld [vmem:[%s17088_s16 + $0x64] ss:$16 sps:$4 sm:$0xff]   ;;  %v15798_v61 = vld [vmem:[%s17088_s16 + $0x6c] ss:$16 sps:$4 sm:$0xff]   ;;  %v15800_v1 = vld [vmem:[%s17088_s16 + $0x60] ss:$16 sps:$4 sm:$0xff]  }
 0x6ac   : > { %v15801_v16 = vld [vmem:[%s17088_s16 + $0x68] ss:$16 sps:$4 sm:$0xff]   ;;  %v15802_v42 = vld [vmem:[%s17088_s16 + $0x84] ss:$16 sps:$4 sm:$0xff]   ;;  %v15804_v35 = vld [vmem:[%s17088_s16 + $0x8c] ss:$16 sps:$4 sm:$0xff]  }
 0x6ad   : > { %9166 = vmatpush1.bf16.msra.mxu0 %v15788_v51  ;;  %9371 = vmatpush1.bf16.msra.mxu1 %v15789_v28  ;;  %v15806_v29 = vld [vmem:[%s17088_s16 + $0x80] ss:$16 sps:$4 sm:$0xff]   ;;  %v15807_v10 = vld [vmem:[%s17088_s16 + $0x88] ss:$16 sps:$4 sm:$0xff]   ;;  %v15808_v7 = vld [vmem:[%s17088_s16 + $0xa4] ss:$16 sps:$4 sm:$0xff]  }
 0x6ae   : > { %9167 = vmatprep.subr.bf16.mxu0 %v15790_v24  ;;  %9372 = vmatprep.subr.bf16.mxu1 %v15792_v26  ;;  %v15810_v48 = vld [vmem:[%s17088_s16 + $0xac] ss:$16 sps:$4 sm:$0xff]   ;;  %v15812_v32 = vld [vmem:[%s17088_s16 + $0xa0] ss:$16 sps:$4 sm:$0xff]   ;;  %v15813_v50 = vld [vmem:[%s17088_s16 + $0xa8] ss:$16 sps:$4 sm:$0xff]  }
 0x6af   : > { %v15814_v11 = vld [vmem:[%s17088_s16 + $0xc4] ss:$16 sps:$4 sm:$0xff]   ;;  %v15816_v25 = vld [vmem:[%s17088_s16 + $0xcc] ss:$16 sps:$4 sm:$0xff]   ;;  %v15818_v52 = vld [vmem:[%s17088_s16 + $0xc0] ss:$16 sps:$4 sm:$0xff]  }
 0x6b0   : > { %v15819_v39 = vld [vmem:[%s17088_s16 + $0xc8] ss:$16 sps:$4 sm:$0xff]   ;;  %v15820_v14 = vld [vmem:[%s17088_s16 + $0xe4] ss:$16 sps:$4 sm:$0xff]   ;;  %v15822_v38 = vld [vmem:[%s17088_s16 + $0xec] ss:$16 sps:$4 sm:$0xff]  }
 0x6b1   : > { %9168 = vmatpush1.bf16.msra.mxu0 %v15794_v41  ;;  %9373 = vmatpush1.bf16.msra.mxu1 %v15795_v4  ;;  %v15824_v15 = vld [vmem:[%s17088_s16 + $0xe0] ss:$16 sps:$4 sm:$0xff]   ;;  %v15825_v34 = vld [vmem:[%s17088_s16 + $0xe8] ss:$16 sps:$4 sm:$0xff]   ;;  %v15826_v18 = vld [vmem:[%s17088_s16 + $0x104] ss:$16 sps:$4 sm:$0xff]  }
 0x6b2   : > { %9169 = vmatprep.subr.bf16.mxu0 %v15796_v43  ;;  %9374 = vmatprep.subr.bf16.mxu1 %v15798_v61  ;;  %v15828_v19 = vld [vmem:[%s17088_s16 + $0x10c] ss:$16 sps:$4 sm:$0xff]   ;;  %v15830_v9 = vld [vmem:[%s17088_s16 + $0x100] ss:$16 sps:$4 sm:$0xff]   ;;  %v15831_v27 = vld [vmem:[%s17088_s16 + $0x108] ss:$16 sps:$4 sm:$0xff]  }
 0x6b3   : > { %v16707_v49 = vmov 1983009808   ;;  %v15832_v45 = vld [vmem:[%s17088_s16 + $0x124] ss:$16 sps:$4 sm:$0xff]   ;;  %v15834_v44 = vld [vmem:[%s17088_s16 + $0x12c] ss:$16 sps:$4 sm:$0xff]  }
 0x6b4   : > { %v7378_v37 = vunpack.c.l.s4 %v16707_v49  ;;  %v15836_v54 = vld [vmem:[%s17088_s16 + $0x120] ss:$16 sps:$4 sm:$0xff]   ;;  %s10706_s26 = smul.u32 18, %s16796_s27  ;;  %v18625_v20 = vshrl.u32 %v7380_v2, 7  ;;  %v15837_v36 = vld [vmem:[%s17088_s16 + $0x128] ss:$16 sps:$4 sm:$0xff]  }
 0x6b5   : > { %9170 = vmatpush1.bf16.msra.mxu0 %v15800_v1  ;;  %9375 = vmatpush1.bf16.msra.mxu1 %v15801_v16  ;;  %v15838_v33 = vld [vmem:[%s17088_s16 + $0x144] ss:$16 sps:$4 sm:$0xff]   ;;  %v15840_v5 = vld [vmem:[%s17088_s16 + $0x14c] ss:$16 sps:$4 sm:$0xff]   ;;  %v15842_v30 = vld [vmem:[%s17088_s16 + $0x140] ss:$16 sps:$4 sm:$0xff]  }
 0x6b6   : > { %9171 = vmatprep.subr.bf16.mxu0 %v15802_v42  ;;  %9376 = vmatprep.subr.bf16.mxu1 %v15804_v35  ;;  %v7379_v23 = vunpack.c.0.s8 %v7378_v37  ;;  %v15843_v58 = vld [vmem:[%s17088_s16 + $0x148] ss:$16 sps:$4 sm:$0xff]   ;;  %v15844_v59 = vld [vmem:[%s17088_s16 + $0x164] ss:$16 sps:$4 sm:$0xff]   ;;  %v15846_v55 = vld [vmem:[%s17088_s16 + $0x16c] ss:$16 sps:$4 sm:$0xff]  }
 0x6b7   : > { %s18637_s21 = scalar_lea.vmem [#allocation3], %s10706_s26  ;;  %v15848_v46 = vld [vmem:[%s17088_s16 + $0x160] ss:$16 sps:$4 sm:$0xff]   ;;  %v15849_v53 = vld [vmem:[%s17088_s16 + $0x168] ss:$16 sps:$4 sm:$0xff]   ;;  %p10699_p9 = scmp.ne.s32.totalorder %s16796_s27, 3 }
 0x6b8   : > { %v18633_v8 = vsub.s32 %v7379_v23, %v18625_v20  ;;  %v7370_v6 = vld [vmem:[%s18637_s21] sm:$0xff]  ;;  %v15850_v13 = vld [vmem:[%s17088_s16 + $0x184] ss:$16 sps:$4 sm:$0xff]   ;;  %vm10045_vm4 = vcmask (!%p10699_p9), 1041408   ;;  %s19023_s18 = sld [smem:[#allocation35_spill]] (!%p10699_p9) }
 0x6b9   : > { %9172 = vmatpush1.bf16.msra.mxu0 %v15806_v29  ;;  %9377 = vmatpush1.bf16.msra.mxu1 %v15807_v10  ;;  %v15852_v31 = vld [vmem:[%s17088_s16 + $0x18c] ss:$16 sps:$4 sm:$0xff]   ;;  %v15854_v60 = vld [vmem:[%s17088_s16 + $0x180] ss:$16 sps:$4 sm:$0xff]   ;;  %v15855_v40 = vld [vmem:[%s17088_s16 + $0x188] ss:$16 sps:$4 sm:$0xff]   ;;  %v7376_v62 = vcombine.high %v7370_v6, %v7370_v6 }
 0x6ba   : > { %9173 = vmatprep.subr.bf16.mxu0 %v15808_v7  ;;  %9378 = vmatprep.subr.bf16.mxu1 %v15810_v48  ;;  %v7383_v63 = vrot.slane %v7370_v6, %v18633_v8  ;;  %v15856_v57 = vld [vmem:[%s17088_s16 + $0x1a4] ss:$16 sps:$4 sm:$0xff]   ;;  %v15858_v56 = vld [vmem:[%s17088_s16 + $0x1ac] ss:$16 sps:$4 sm:$0xff]   ;;  %v15860_v17 = vld [vmem:[%s17088_s16 + $0x1a0] ss:$16 sps:$4 sm:$0xff]  }
 0x6bb   : > { %v15861_v0 = vld [vmem:[%s17088_s16 + $0x1a8] ss:$16 sps:$4 sm:$0xff]   ;;  %v15862_v47 = vld [vmem:[%s17088_s16 + $0x1c4] ss:$16 sps:$4 sm:$0xff]   ;;  %v15864_v3 = vld [vmem:[%s17088_s16 + $0x1cc] ss:$16 sps:$4 sm:$0xff]   ;;  %v18658_v26 = vrot.slane %v7376_v62, %v18633_v8 }
 0x6bc   : > { %v7391_v12 = vcombine.high %v7383_v63, %v7383_v63  ;;  %v15866_v21 = vld [vmem:[%s17088_s16 + $0x1c0] ss:$16 sps:$4 sm:$0xff]   ;;  %v15867_v51 = vld [vmem:[%s17088_s16 + $0x1c8] ss:$16 sps:$4 sm:$0xff]   ;;  %v15868_v28 = vld [vmem:[%s17088_s16 + $0x1e4] ss:$16 sps:$4 sm:$0xff]   ;;  %v7426_v42 = vpack.c.bf16 %v7383_v63, %v7383_v63 }
 0x6bd   : > { %9174 = vmatpush1.bf16.msra.mxu0 %v15812_v32  ;;  %9379 = vmatpush1.bf16.msra.mxu1 %v15813_v50  ;;  %v15870_v24 = vld [vmem:[%s17088_s16 + $0x1ec] ss:$16 sps:$4 sm:$0xff]   ;;  %v15872_v41 = vld [vmem:[%s17088_s16 + $0x1e0] ss:$16 sps:$4 sm:$0xff]   ;;  %v15873_v4 = vld [vmem:[%s17088_s16 + $0x1e8] ss:$16 sps:$4 sm:$0xff]   ;;  %v7392_v1 = vcombine.high %v18658_v26, %v18658_v26 }
 0x6be   : > { %9175 = vmatprep.subr.bf16.mxu0 %v15814_v11  ;;  %9380 = vmatprep.subr.bf16.mxu1 %v15816_v25  ;;  %v7427_v22 = vpack.c.bf16 %v7391_v12, %v7391_v12  ;;  %v15877_v43 = vld [vmem:[%s17088_s16 + $0x204] ss:$16 sps:$4 sm:$0xff]   ;;  %v15880_v61 = vld [vmem:[%s17088_s16 + $0x20c] ss:$16 sps:$4 sm:$0xff]   ;;  %v15875_v16 = vld [vmem:[%s17088_s16 + $0x200] ss:$16 sps:$4 sm:$0xff]  }
 0x6bf   : > { %v15878_v35 = vld [vmem:[%s17088_s16 + $0x208] ss:$16 sps:$4 sm:$0xff]   ;;  %v15883_v29 = vld [vmem:[%s17088_s16 + $0x224] ss:$16 sps:$4 sm:$0xff]   ;;  %v15886_v10 = vld [vmem:[%s17088_s16 + $0x22c] ss:$16 sps:$4 sm:$0xff]   ;;  %v7429_v7 = vpack.c.bf16 %v7392_v1, %v7392_v1 }
 0x6c0   : > { %9195 = vmatprep.mubr.bf16.mxu0 %v7427_v22  ;;  %9400 = vmatprep.mubr.bf16.mxu1 %v7427_v22  ;;  %v15881_v48 = vld [vmem:[%s17088_s16 + $0x220] ss:$16 sps:$4 sm:$0xff]   ;;  %v15884_v32 = vld [vmem:[%s17088_s16 + $0x228] ss:$16 sps:$4 sm:$0xff]   ;;  %v15889_v50 = vld [vmem:[%s17088_s16 + $0x244] ss:$16 sps:$4 sm:$0xff]  }
 0x6c1   : > { %9176 = vmatpush1.bf16.msra.mxu0 %v15818_v52  ;;  %9381 = vmatpush1.bf16.msra.mxu1 %v15819_v39  ;;  %v15892_v11 = vld [vmem:[%s17088_s16 + $0x24c] ss:$16 sps:$4 sm:$0xff]   ;;  %v15887_v25 = vld [vmem:[%s17088_s16 + $0x240] ss:$16 sps:$4 sm:$0xff]   ;;  %v15890_v52 = vld [vmem:[%s17088_s16 + $0x248] ss:$16 sps:$4 sm:$0xff]  }
 0x6c2   : > { %9177 = vmatprep.subr.bf16.mxu0 %v15820_v14  ;;  %9382 = vmatprep.subr.bf16.mxu1 %v15822_v38  ;;  %v15895_v39 = vld [vmem:[%s17088_s16 + $0x264] ss:$16 sps:$4 sm:$0xff]   ;;  %v15898_v14 = vld [vmem:[%s17088_s16 + $0x26c] ss:$16 sps:$4 sm:$0xff]   ;;  %v15893_v38 = vld [vmem:[%s17088_s16 + $0x260] ss:$16 sps:$4 sm:$0xff]  }
 0x6c3   : > { %v15910_v49 = vld [vmem:[%s17088_s16 + $0x2ac] ss:$16 sps:$4 sm:$0xff]   ;;  %v15905_v37 = vld [vmem:[%s17088_s16 + $0x2a0] ss:$16 sps:$4 sm:$0xff]   ;;  %v15908_v2 = vld [vmem:[%s17088_s16 + $0x2a8] ss:$16 sps:$4 sm:$0xff]  }
 0x6c4   : > { %v15914_v23 = vld [vmem:[%s17088_s16 + $0x2c8] ss:$16 sps:$4 sm:$0xff]   ;;  %v15934_v63 = vld [vmem:[%s17088_s16 + $0x32c] ss:$16 sps:$4 sm:$0xff]   ;;  %v15967_v1 = vld [vmem:[%s17088_s16 + $0x3e4] ss:$16 sps:$4 sm:$0xff]  }
 0x6c5   : > { %9178 = vmatpush1.bf16.msra.mxu0 %v15824_v15  ;;  %9383 = vmatpush1.bf16.msra.mxu1 %v15825_v34  ;;  %v15896_v15 = vld [vmem:[%s17088_s16 + $0x268] ss:$16 sps:$4 sm:$0xff]   ;;  %v15901_v34 = vld [vmem:[%s17088_s16 + $0x284] ss:$16 sps:$4 sm:$0xff]   ;;  %v15940_v12 = vld [vmem:[%s17088_s16 + $0x34c] ss:$16 sps:$4 sm:$0xff]  }
 0x6c6   : > { %9179 = vmatprep.subr.bf16.mxu0 %v15826_v18  ;;  %9384 = vmatprep.subr.bf16.mxu1 %v15828_v19  ;;  %v15904_v18 = vld [vmem:[%s17088_s16 + $0x28c] ss:$16 sps:$4 sm:$0xff]   ;;  %v15899_v19 = vld [vmem:[%s17088_s16 + $0x280] ss:$16 sps:$4 sm:$0xff]   ;;  %v15926_v6 = vld [vmem:[%s17088_s16 + $0x308] ss:$16 sps:$4 sm:$0xff]  }
 0x6c7   : > { %v15938_v22 = vld [vmem:[%s17088_s16 + $0x348] ss:$16 sps:$4 sm:$0xff]  }
 0x6c8   : > { %v15950_v62 = vld [vmem:[%s17088_s16 + $0x388] ss:$16 sps:$4 sm:$0xff]  }
 0x6c9   : > { %9180 = vmatpush1.bf16.msra.mxu0 %v15830_v9  ;;  %9385 = vmatpush1.bf16.msra.mxu1 %v15831_v27  ;;  %v15902_v9 = vld [vmem:[%s17088_s16 + $0x288] ss:$16 sps:$4 sm:$0xff]   ;;  %v15907_v27 = vld [vmem:[%s17088_s16 + $0x2a4] ss:$16 sps:$4 sm:$0xff]  }
 0x6ca   : > { %9181 = vmatprep.subr.bf16.mxu0 %v15832_v45  ;;  %9386 = vmatprep.subr.bf16.mxu1 %v15834_v44  ;;  %v15913_v45 = vld [vmem:[%s17088_s16 + $0x2c4] ss:$16 sps:$4 sm:$0xff]   ;;  %v15916_v44 = vld [vmem:[%s17088_s16 + $0x2cc] ss:$16 sps:$4 sm:$0xff]  }
 0x6cd   : > { %9182 = vmatpush1.bf16.msra.mxu0 %v15836_v54  ;;  %9387 = vmatpush1.bf16.msra.mxu1 %v15837_v36  ;;  %v15911_v54 = vld [vmem:[%s17088_s16 + $0x2c0] ss:$16 sps:$4 sm:$0xff]   ;;  %v15919_v36 = vld [vmem:[%s17088_s16 + $0x2e4] ss:$16 sps:$4 sm:$0xff]  }
 0x6ce   : > { %9183 = vmatprep.subr.bf16.mxu0 %v15838_v33  ;;  %9388 = vmatprep.subr.bf16.mxu1 %v15840_v5  ;;  %v15922_v33 = vld [vmem:[%s17088_s16 + $0x2ec] ss:$16 sps:$4 sm:$0xff]   ;;  %v15917_v5 = vld [vmem:[%s17088_s16 + $0x2e0] ss:$16 sps:$4 sm:$0xff]  }
 0x6d1   : > { %9184 = vmatpush1.bf16.msra.mxu0 %v15842_v30  ;;  %9389 = vmatpush1.bf16.msra.mxu1 %v15843_v58  ;;  %v15920_v30 = vld [vmem:[%s17088_s16 + $0x2e8] ss:$16 sps:$4 sm:$0xff]   ;;  %v15925_v58 = vld [vmem:[%s17088_s16 + $0x304] ss:$16 sps:$4 sm:$0xff]  }
 0x6d2   : > { %9185 = vmatprep.subr.bf16.mxu0 %v15844_v59  ;;  %9390 = vmatprep.subr.bf16.mxu1 %v15846_v55  ;;  %v15928_v59 = vld [vmem:[%s17088_s16 + $0x30c] ss:$16 sps:$4 sm:$0xff]   ;;  %v15923_v55 = vld [vmem:[%s17088_s16 + $0x300] ss:$16 sps:$4 sm:$0xff]  }
 0x6d5   : > { %9186 = vmatpush1.bf16.msra.mxu0 %v15848_v46  ;;  %9391 = vmatpush1.bf16.msra.mxu1 %v15849_v53  ;;  %v15931_v46 = vld [vmem:[%s17088_s16 + $0x324] ss:$16 sps:$4 sm:$0xff]   ;;  %v15929_v53 = vld [vmem:[%s17088_s16 + $0x320] ss:$16 sps:$4 sm:$0xff]  }
 0x6d6   : > { %9187 = vmatprep.subr.bf16.mxu0 %v15850_v13  ;;  %9392 = vmatprep.subr.bf16.mxu1 %v15852_v31  ;;  %v15932_v13 = vld [vmem:[%s17088_s16 + $0x328] ss:$16 sps:$4 sm:$0xff]   ;;  %v15937_v31 = vld [vmem:[%s17088_s16 + $0x344] ss:$16 sps:$4 sm:$0xff]  }
 0x6d9   : > { %9188 = vmatpush1.bf16.msra.mxu0 %v15854_v60  ;;  %9393 = vmatpush1.bf16.msra.mxu1 %v15855_v40  ;;  %v15935_v60 = vld [vmem:[%s17088_s16 + $0x340] ss:$16 sps:$4 sm:$0xff]   ;;  %v15943_v40 = vld [vmem:[%s17088_s16 + $0x364] ss:$16 sps:$4 sm:$0xff]  }
 0x6da   : > { %9189 = vmatprep.subr.bf16.mxu0 %v15856_v57  ;;  %9394 = vmatprep.subr.bf16.mxu1 %v15858_v56  ;;  %v15946_v57 = vld [vmem:[%s17088_s16 + $0x36c] ss:$16 sps:$4 sm:$0xff]   ;;  %v15941_v56 = vld [vmem:[%s17088_s16 + $0x360] ss:$16 sps:$4 sm:$0xff]  }
 0x6dd   : > { %9190 = vmatpush1.bf16.msra.mxu0 %v15860_v17  ;;  %9395 = vmatpush1.bf16.msra.mxu1 %v15861_v0  ;;  %v15944_v17 = vld [vmem:[%s17088_s16 + $0x368] ss:$16 sps:$4 sm:$0xff]   ;;  %v15949_v0 = vld [vmem:[%s17088_s16 + $0x384] ss:$16 sps:$4 sm:$0xff]  }
 0x6de   : > { %9191 = vmatprep.subr.bf16.mxu0 %v15862_v47  ;;  %9396 = vmatprep.subr.bf16.mxu1 %v15864_v3  ;;  %v15952_v47 = vld [vmem:[%s17088_s16 + $0x38c] ss:$16 sps:$4 sm:$0xff]   ;;  %v15947_v3 = vld [vmem:[%s17088_s16 + $0x380] ss:$16 sps:$4 sm:$0xff]  }
 0x6e1   : > { %9192 = vmatpush1.bf16.msra.mxu0 %v15866_v21  ;;  %9397 = vmatpush1.bf16.msra.mxu1 %v15867_v51  ;;  %v15955_v21 = vld [vmem:[%s17088_s16 + $0x3a4] ss:$16 sps:$4 sm:$0xff]   ;;  %v15958_v51 = vld [vmem:[%s17088_s16 + $0x3ac] ss:$16 sps:$4 sm:$0xff]  }
 0x6e2   : > { %9193 = vmatprep.subr.bf16.mxu0 %v15868_v28  ;;  %9398 = vmatprep.subr.bf16.mxu1 %v15870_v24  ;;  %v15953_v28 = vld [vmem:[%s17088_s16 + $0x3a0] ss:$16 sps:$4 sm:$0xff]   ;;  %v15956_v24 = vld [vmem:[%s17088_s16 + $0x3a8] ss:$16 sps:$4 sm:$0xff]  }
 0x6e5   : > { %9194 = vmatpush1.bf16.msra.mxu0 %v15872_v41  ;;  %9399 = vmatpush1.bf16.msra.mxu1 %v15873_v4  ;;  %v15961_v41 = vld [vmem:[%s17088_s16 + $0x3c4] ss:$16 sps:$4 sm:$0xff]   ;;  %v15964_v4 = vld [vmem:[%s17088_s16 + $0x3cc] ss:$16 sps:$4 sm:$0xff]  }
 0x6e6   : > { %9204 = vmatprep.subr.bf16.mxu0 %v15877_v43  ;;  %9409 = vmatprep.subr.bf16.mxu1 %v15880_v61  ;;  %v15959_v43 = vld [vmem:[%s17088_s16 + $0x3c0] ss:$16 sps:$4 sm:$0xff]   ;;  %v15962_v61 = vld [vmem:[%s17088_s16 + $0x3c8] ss:$16 sps:$4 sm:$0xff]  }
 0x6e8   : > { %9196 = vmatmul.mubr.bf16.vlgmr.msra.gmra.mrb[0].mxu0 %v7426_v42  ;;  %9401 = vmatmul.mubr.bf16.vlgmr.msra.gmra.mrb[0].mxu1 %v7426_v42  ;;  %v15965_v42 = vld [vmem:[%s17088_s16 + $0x3e0] ss:$16 sps:$4 sm:$0xff]  }
 0x6e9   : > { %9205 = vmatpush1.bf16.msra.mxu0 %v15875_v16  ;;  %9410 = vmatpush1.bf16.msra.mxu1 %v15878_v35  ;;  %v15970_v16 = vld [vmem:[%s17088_s16 + $0x3ec] ss:$16 sps:$4 sm:$0xff]   ;;  %v15968_v35 = vld [vmem:[%s17088_s16 + $0x3e8] ss:$16 sps:$4 sm:$0xff]  }
 0x6ea   : > { %9206 = vmatprep.subr.bf16.mxu0 %v15883_v29  ;;  %9411 = vmatprep.subr.bf16.mxu1 %v15886_v10  ;;  %v15973_v29 = vld [vmem:[%s17088_s16 + $0x404] ss:$16 sps:$4 sm:$0xff]   ;;  %v15976_v10 = vld [vmem:[%s17088_s16 + $0x40c] ss:$16 sps:$4 sm:$0xff]  }
 0x6eb   : > { %9236 = vmatprep.mubr.bf16.mxu0 %v7429_v7  ;;  %9441 = vmatprep.mubr.bf16.mxu1 %v7429_v7  ;;  %v15971_v7 = vld [vmem:[%s17088_s16 + $0x400] ss:$16 sps:$4 sm:$0xff]  }
 0x6ed   : > { %9207 = vmatpush1.bf16.msra.mxu0 %v15881_v48  ;;  %9412 = vmatpush1.bf16.msra.mxu1 %v15884_v32  ;;  %v7428_v48 = vpack.c.bf16 %v18658_v26, %v18658_v26  ;;  %v15974_v32 = vld [vmem:[%s17088_s16 + $0x408] ss:$16 sps:$4 sm:$0xff]  }
 0x6ee   : > { %9208 = vmatprep.subr.bf16.mxu0 %v15889_v50  ;;  %9413 = vmatprep.subr.bf16.mxu1 %v15892_v11  ;;  %v18735_v50 = vld [vmem:[%s18637_s21 + $0x8] sm:$0xff] }
 0x6ef   : > { %v15979_v11 = vld [vmem:[%s17088_s16 + $0x424] ss:$16 sps:$4 sm:$0xff]  }
 0x6f1   : > { %9209 = vmatpush1.bf16.msra.mxu0 %v15887_v25  ;;  %9414 = vmatpush1.bf16.msra.mxu1 %v15890_v52  ;;  %v15982_v25 = vld [vmem:[%s17088_s16 + $0x42c] ss:$16 sps:$4 sm:$0xff]   ;;  %v18741_v52 = vrot.slane %v18735_v50, %v18633_v8 }
 0x6f2   : > { %9210 = vmatprep.subr.bf16.mxu0 %v15895_v39  ;;  %9415 = vmatprep.subr.bf16.mxu1 %v15898_v14  ;;  %v15977_v39 = vld [vmem:[%s17088_s16 + $0x420] ss:$16 sps:$4 sm:$0xff]   ;;  %v15980_v14 = vld [vmem:[%s17088_s16 + $0x428] ss:$16 sps:$4 sm:$0xff]  }
 0x6f3   : > { %v7408_v26 = vcombine.high %v18741_v52, %v18741_v52 }
 0x6f5   : > { %9211 = vmatpush1.bf16.msra.mxu0 %v15893_v38  ;;  %9416 = vmatpush1.bf16.msra.mxu1 %v15896_v15  ;;  %v15985_v38 = vld [vmem:[%s17088_s16 + $0x444] ss:$16 sps:$4 sm:$0xff]   ;;  %v15988_v15 = vld [vmem:[%s17088_s16 + $0x44c] ss:$16 sps:$4 sm:$0xff]  }
 0x6f6   : > { %9212 = vmatprep.subr.bf16.mxu0 %v15901_v34  ;;  %9417 = vmatprep.subr.bf16.mxu1 %v15904_v18  ;;  %v7431_v34 = vpack.c.bf16 %v7408_v26, %v7408_v26  ;;  %v15983_v18 = vld [vmem:[%s17088_s16 + $0x440] ss:$16 sps:$4 sm:$0xff]   ;;  %v16064_v26 = vld [vmem:[%s17088_s16 + $0x5e8] ss:$16 sps:$4 sm:$0xff]  }
 0x6f9   : > { %9213 = vmatpush1.bf16.msra.mxu0 %v15899_v19  ;;  %9418 = vmatpush1.bf16.msra.mxu1 %v15902_v9  ;;  %v15986_v19 = vld [vmem:[%s17088_s16 + $0x448] ss:$16 sps:$4 sm:$0xff]   ;;  %v15991_v9 = vld [vmem:[%s17088_s16 + $0x464] ss:$16 sps:$4 sm:$0xff]  }
 0x6fa   : > { %9214 = vmatprep.subr.bf16.mxu0 %v15907_v27  ;;  %9419 = vmatprep.subr.bf16.mxu1 %v15910_v49  ;;  %v15994_v27 = vld [vmem:[%s17088_s16 + $0x46c] ss:$16 sps:$4 sm:$0xff]   ;;  %v15989_v49 = vld [vmem:[%s17088_s16 + $0x460] ss:$16 sps:$4 sm:$0xff]  }
 0x6fd   : > { %9215 = vmatpush1.bf16.msra.mxu0 %v15905_v37  ;;  %9420 = vmatpush1.bf16.msra.mxu1 %v15908_v2  ;;  %v15992_v37 = vld [vmem:[%s17088_s16 + $0x468] ss:$16 sps:$4 sm:$0xff]   ;;  %v15997_v2 = vld [vmem:[%s17088_s16 + $0x484] ss:$16 sps:$4 sm:$0xff]  }
 0x6fe   : > { %9216 = vmatprep.subr.bf16.mxu0 %v15913_v45  ;;  %9421 = vmatprep.subr.bf16.mxu1 %v15916_v44  ;;  %v16000_v45 = vld [vmem:[%s17088_s16 + $0x48c] ss:$16 sps:$4 sm:$0xff]   ;;  %v15995_v44 = vld [vmem:[%s17088_s16 + $0x480] ss:$16 sps:$4 sm:$0xff]  }
 0x701   : > { %9217 = vmatpush1.bf16.msra.mxu0 %v15911_v54  ;;  %9422 = vmatpush1.bf16.msra.mxu1 %v15914_v23  ;;  %v15998_v54 = vld [vmem:[%s17088_s16 + $0x488] ss:$16 sps:$4 sm:$0xff]   ;;  %v16003_v23 = vld [vmem:[%s17088_s16 + $0x4a4] ss:$16 sps:$4 sm:$0xff]  }
 0x702   : > { %9218 = vmatprep.subr.bf16.mxu0 %v15919_v36  ;;  %9423 = vmatprep.subr.bf16.mxu1 %v15922_v33  ;;  %v16006_v36 = vld [vmem:[%s17088_s16 + $0x4ac] ss:$16 sps:$4 sm:$0xff]   ;;  %v16001_v33 = vld [vmem:[%s17088_s16 + $0x4a0] ss:$16 sps:$4 sm:$0xff]  }
 0x705   : > { %9219 = vmatpush1.bf16.msra.mxu0 %v15917_v5  ;;  %9424 = vmatpush1.bf16.msra.mxu1 %v15920_v30  ;;  %v16004_v5 = vld [vmem:[%s17088_s16 + $0x4a8] ss:$16 sps:$4 sm:$0xff]   ;;  %v16009_v30 = vld [vmem:[%s17088_s16 + $0x4c4] ss:$16 sps:$4 sm:$0xff]  }
 0x706   : > { %9220 = vmatprep.subr.bf16.mxu0 %v15925_v58  ;;  %9425 = vmatprep.subr.bf16.mxu1 %v15928_v59  ;;  %v16012_v58 = vld [vmem:[%s17088_s16 + $0x4cc] ss:$16 sps:$4 sm:$0xff]   ;;  %v16007_v59 = vld [vmem:[%s17088_s16 + $0x4c0] ss:$16 sps:$4 sm:$0xff]  }
 0x709   : > { %9221 = vmatpush1.bf16.msra.mxu0 %v15923_v55  ;;  %9426 = vmatpush1.bf16.msra.mxu1 %v15926_v6  ;;  %v16010_v55 = vld [vmem:[%s17088_s16 + $0x4c8] ss:$16 sps:$4 sm:$0xff]   ;;  %v16015_v6 = vld [vmem:[%s17088_s16 + $0x4e4] ss:$16 sps:$4 sm:$0xff]  }
 0x70a   : > { %9222 = vmatprep.subr.bf16.mxu0 %v15931_v46  ;;  %9427 = vmatprep.subr.bf16.mxu1 %v15934_v63  ;;  %v16018_v46 = vld [vmem:[%s17088_s16 + $0x4ec] ss:$16 sps:$4 sm:$0xff]   ;;  %v16013_v63 = vld [vmem:[%s17088_s16 + $0x4e0] ss:$16 sps:$4 sm:$0xff]  }
 0x70d   : > { %9223 = vmatpush1.bf16.msra.mxu0 %v15929_v53  ;;  %9428 = vmatpush1.bf16.msra.mxu1 %v15932_v13  ;;  %v16016_v53 = vld [vmem:[%s17088_s16 + $0x4e8] ss:$16 sps:$4 sm:$0xff]   ;;  %v16021_v13 = vld [vmem:[%s17088_s16 + $0x504] ss:$16 sps:$4 sm:$0xff]  }
 0x70e   : > { %9224 = vmatprep.subr.bf16.mxu0 %v15937_v31  ;;  %9429 = vmatprep.subr.bf16.mxu1 %v15940_v12  ;;  %v16024_v31 = vld [vmem:[%s17088_s16 + $0x50c] ss:$16 sps:$4 sm:$0xff]   ;;  %v16019_v12 = vld [vmem:[%s17088_s16 + $0x500] ss:$16 sps:$4 sm:$0xff]  }
 0x711   : > { %9225 = vmatpush1.bf16.msra.mxu0 %v15935_v60  ;;  %9430 = vmatpush1.bf16.msra.mxu1 %v15938_v22  ;;  %v16022_v60 = vld [vmem:[%s17088_s16 + $0x508] ss:$16 sps:$4 sm:$0xff]   ;;  %v16027_v22 = vld [vmem:[%s17088_s16 + $0x524] ss:$16 sps:$4 sm:$0xff]  }
 0x712   : > { %9226 = vmatprep.subr.bf16.mxu0 %v15943_v40  ;;  %9431 = vmatprep.subr.bf16.mxu1 %v15946_v57  ;;  %v16030_v40 = vld [vmem:[%s17088_s16 + $0x52c] ss:$16 sps:$4 sm:$0xff]   ;;  %v16025_v57 = vld [vmem:[%s17088_s16 + $0x520] ss:$16 sps:$4 sm:$0xff]  }
 0x715   : > { %9227 = vmatpush1.bf16.msra.mxu0 %v15941_v56  ;;  %9432 = vmatpush1.bf16.msra.mxu1 %v15944_v17  ;;  %v16028_v56 = vld [vmem:[%s17088_s16 + $0x528] ss:$16 sps:$4 sm:$0xff]   ;;  %v16033_v17 = vld [vmem:[%s17088_s16 + $0x544] ss:$16 sps:$4 sm:$0xff]  }
 0x716   : > { %9228 = vmatprep.subr.bf16.mxu0 %v15949_v0  ;;  %9433 = vmatprep.subr.bf16.mxu1 %v15952_v47  ;;  %v16036_v0 = vld [vmem:[%s17088_s16 + $0x54c] ss:$16 sps:$4 sm:$0xff]   ;;  %v16031_v47 = vld [vmem:[%s17088_s16 + $0x540] ss:$16 sps:$4 sm:$0xff]  }
 0x719   : > { %9229 = vmatpush1.bf16.msra.mxu0 %v15947_v3  ;;  %9434 = vmatpush1.bf16.msra.mxu1 %v15950_v62  ;;  %v16034_v3 = vld [vmem:[%s17088_s16 + $0x548] ss:$16 sps:$4 sm:$0xff]   ;;  %v16039_v62 = vld [vmem:[%s17088_s16 + $0x564] ss:$16 sps:$4 sm:$0xff]  }
 0x71a   : > { %9230 = vmatprep.subr.bf16.mxu0 %v15955_v21  ;;  %9435 = vmatprep.subr.bf16.mxu1 %v15958_v51  ;;  %v16042_v21 = vld [vmem:[%s17088_s16 + $0x56c] ss:$16 sps:$4 sm:$0xff]   ;;  %v16037_v51 = vld [vmem:[%s17088_s16 + $0x560] ss:$16 sps:$4 sm:$0xff]  }
 0x71d   : > { %9231 = vmatpush1.bf16.msra.mxu0 %v15953_v28  ;;  %9436 = vmatpush1.bf16.msra.mxu1 %v15956_v24  ;;  %v16040_v28 = vld [vmem:[%s17088_s16 + $0x568] ss:$16 sps:$4 sm:$0xff]   ;;  %v16045_v24 = vld [vmem:[%s17088_s16 + $0x584] ss:$16 sps:$4 sm:$0xff]  }
 0x71e   : > { %9232 = vmatprep.subr.bf16.mxu0 %v15961_v41  ;;  %9437 = vmatprep.subr.bf16.mxu1 %v15964_v4  ;;  %v16048_v41 = vld [vmem:[%s17088_s16 + $0x58c] ss:$16 sps:$4 sm:$0xff]   ;;  %v16043_v4 = vld [vmem:[%s17088_s16 + $0x580] ss:$16 sps:$4 sm:$0xff]  }
 0x721   : > { %9233 = vmatpush1.bf16.msra.mxu0 %v15959_v43  ;;  %9438 = vmatpush1.bf16.msra.mxu1 %v15962_v61  ;;  %v16046_v43 = vld [vmem:[%s17088_s16 + $0x588] ss:$16 sps:$4 sm:$0xff]   ;;  %v16051_v61 = vld [vmem:[%s17088_s16 + $0x5a4] ss:$16 sps:$4 sm:$0xff]  }
 0x722   : > { %9234 = vmatprep.subr.bf16.mxu0 %v15967_v1  ;;  %9439 = vmatprep.subr.bf16.mxu1 %v15970_v16  ;;  %v16054_v1 = vld [vmem:[%s17088_s16 + $0x5ac] ss:$16 sps:$4 sm:$0xff]   ;;  %v16049_v16 = vld [vmem:[%s17088_s16 + $0x5a0] ss:$16 sps:$4 sm:$0xff]  }
 0x725   : > { %9235 = vmatpush1.bf16.msra.mxu0 %v15965_v42  ;;  %9440 = vmatpush1.bf16.msra.mxu1 %v15968_v35  ;;  %v16052_v42 = vld [vmem:[%s17088_s16 + $0x5a8] ss:$16 sps:$4 sm:$0xff]   ;;  %v16057_v35 = vld [vmem:[%s17088_s16 + $0x5c4] ss:$16 sps:$4 sm:$0xff]  }
 0x726   : > { %9245 = vmatprep.subr.bf16.mxu0 %v15973_v29  ;;  %9450 = vmatprep.subr.bf16.mxu1 %v15976_v10  ;;  %v16060_v29 = vld [vmem:[%s17088_s16 + $0x5cc] ss:$16 sps:$4 sm:$0xff]   ;;  %v7393_v10 = vcombine.high %v18735_v50, %v18735_v50  ;;  %v16061_v50 = vld [vmem:[%s17088_s16 + $0x5e0] ss:$16 sps:$4 sm:$0xff]  }
 0x728   : > { %9237 = vmatmul.mubr.bf16.vlgmr.msra.gmra.mrb[0].mxu0 %v7428_v48  ;;  %9442 = vmatmul.mubr.bf16.vlgmr.msra.gmra.mrb[0].mxu1 %v7428_v48  ;;  %v16058_v48 = vld [vmem:[%s17088_s16 + $0x5c8] ss:$16 sps:$4 sm:$0xff]  }
 0x729   : > { %9246 = vmatpush1.bf16.msra.mxu0 %v15971_v7  ;;  %9451 = vmatpush1.bf16.msra.mxu1 %v15974_v32  ;;  %v16055_v7 = vld [vmem:[%s17088_s16 + $0x5c0] ss:$16 sps:$4 sm:$0xff]   ;;  %v16063_v32 = vld [vmem:[%s17088_s16 + $0x5e4] ss:$16 sps:$4 sm:$0xff]  }
 0x72a   : > { %9247 = vmatprep.subr.bf16.mxu0 %v15979_v11  ;;  %9452 = vmatprep.subr.bf16.mxu1 %v15982_v25  ;;  %v16066_v11 = vld [vmem:[%s17088_s16 + $0x5ec] ss:$16 sps:$4 sm:$0xff]   ;;  %v18804_v25 = vrot.slane %v7393_v10, %v18633_v8  ;;  %v16142_v10 = vld [vmem:[%s17088_s16 + $0x788] ss:$16 sps:$4 sm:$0xff]  }
 0x72b   : > { %9277 = vmatprep.mubr.bf16.mxu0 %v7431_v34  ;;  %9482 = vmatprep.mubr.bf16.mxu1 %v7431_v34  ;;  %v16067_v34 = vld [vmem:[%s17088_s16 + $0x600] ss:$16 sps:$4 sm:$0xff]  }
 0x72d   : > { %9248 = vmatpush1.bf16.msra.mxu0 %v15977_v39  ;;  %9453 = vmatpush1.bf16.msra.mxu1 %v15980_v14  ;;  %v16069_v39 = vld [vmem:[%s17088_s16 + $0x604] ss:$16 sps:$4 sm:$0xff]   ;;  %v16072_v14 = vld [vmem:[%s17088_s16 + $0x60c] ss:$16 sps:$4 sm:$0xff]  }
 0x72e   : > { %9249 = vmatprep.subr.bf16.mxu0 %v15985_v38  ;;  %9454 = vmatprep.subr.bf16.mxu1 %v15988_v15  ;;  %v7409_v38 = vcombine.high %v18804_v25, %v18804_v25  ;;  %v7430_v15 = vpack.c.bf16 %v18741_v52, %v18741_v52  ;;  %v16073_v52 = vld [vmem:[%s17088_s16 + $0x620] ss:$16 sps:$4 sm:$0xff]  }
 0x731   : > { %9250 = vmatpush1.bf16.msra.mxu0 %v15983_v18  ;;  %9455 = vmatpush1.bf16.msra.mxu1 %v15986_v19  ;;  %v16070_v18 = vld [vmem:[%s17088_s16 + $0x608] ss:$16 sps:$4 sm:$0xff]   ;;  %v16075_v19 = vld [vmem:[%s17088_s16 + $0x624] ss:$16 sps:$4 sm:$0xff]  }
 0x732   : > { %9251 = vmatprep.subr.bf16.mxu0 %v15991_v9  ;;  %9456 = vmatprep.subr.bf16.mxu1 %v15994_v27  ;;  %v16078_v9 = vld [vmem:[%s17088_s16 + $0x62c] ss:$16 sps:$4 sm:$0xff]   ;;  %v7433_v27 = vpack.c.bf16 %v7409_v38, %v7409_v38  ;;  %v16159_v38 = vld [vmem:[%s17088_s16 + $0x7e4] ss:$16 sps:$4 sm:$0xff]  }
 0x735   : > { %9252 = vmatpush1.bf16.msra.mxu0 %v15989_v49  ;;  %9457 = vmatpush1.bf16.msra.mxu1 %v15992_v37  ;;  %v16076_v49 = vld [vmem:[%s17088_s16 + $0x628] ss:$16 sps:$4 sm:$0xff]   ;;  %v16081_v37 = vld [vmem:[%s17088_s16 + $0x644] ss:$16 sps:$4 sm:$0xff]  }
 0x736   : > { %9253 = vmatprep.subr.bf16.mxu0 %v15997_v2  ;;  %9458 = vmatprep.subr.bf16.mxu1 %v16000_v45  ;;  %v16084_v2 = vld [vmem:[%s17088_s16 + $0x64c] ss:$16 sps:$4 sm:$0xff]   ;;  %v16079_v45 = vld [vmem:[%s17088_s16 + $0x640] ss:$16 sps:$4 sm:$0xff]  }
 0x739   : > { %9254 = vmatpush1.bf16.msra.mxu0 %v15995_v44  ;;  %9459 = vmatpush1.bf16.msra.mxu1 %v15998_v54  ;;  %v16082_v44 = vld [vmem:[%s17088_s16 + $0x648] ss:$16 sps:$4 sm:$0xff]   ;;  %v16087_v54 = vld [vmem:[%s17088_s16 + $0x664] ss:$16 sps:$4 sm:$0xff]  }
 0x73a   : > { %9255 = vmatprep.subr.bf16.mxu0 %v16003_v23  ;;  %9460 = vmatprep.subr.bf16.mxu1 %v16006_v36  ;;  %v16090_v23 = vld [vmem:[%s17088_s16 + $0x66c] ss:$16 sps:$4 sm:$0xff]   ;;  %v16085_v36 = vld [vmem:[%s17088_s16 + $0x660] ss:$16 sps:$4 sm:$0xff]  }
 0x73d   : > { %9256 = vmatpush1.bf16.msra.mxu0 %v16001_v33  ;;  %9461 = vmatpush1.bf16.msra.mxu1 %v16004_v5  ;;  %v16088_v33 = vld [vmem:[%s17088_s16 + $0x668] ss:$16 sps:$4 sm:$0xff]   ;;  %v16093_v5 = vld [vmem:[%s17088_s16 + $0x684] ss:$16 sps:$4 sm:$0xff]  }
 0x73e   : > { %9257 = vmatprep.subr.bf16.mxu0 %v16009_v30  ;;  %9462 = vmatprep.subr.bf16.mxu1 %v16012_v58  ;;  %v16096_v30 = vld [vmem:[%s17088_s16 + $0x68c] ss:$16 sps:$4 sm:$0xff]   ;;  %v16091_v58 = vld [vmem:[%s17088_s16 + $0x680] ss:$16 sps:$4 sm:$0xff]  }
 0x741   : > { %9258 = vmatpush1.bf16.msra.mxu0 %v16007_v59  ;;  %9463 = vmatpush1.bf16.msra.mxu1 %v16010_v55  ;;  %v16094_v59 = vld [vmem:[%s17088_s16 + $0x688] ss:$16 sps:$4 sm:$0xff]   ;;  %v16099_v55 = vld [vmem:[%s17088_s16 + $0x6a4] ss:$16 sps:$4 sm:$0xff]  }
 0x742   : > { %9259 = vmatprep.subr.bf16.mxu0 %v16015_v6  ;;  %9464 = vmatprep.subr.bf16.mxu1 %v16018_v46  ;;  %v16102_v6 = vld [vmem:[%s17088_s16 + $0x6ac] ss:$16 sps:$4 sm:$0xff]   ;;  %v16097_v46 = vld [vmem:[%s17088_s16 + $0x6a0] ss:$16 sps:$4 sm:$0xff]  }
 0x745   : > { %9260 = vmatpush1.bf16.msra.mxu0 %v16013_v63  ;;  %9465 = vmatpush1.bf16.msra.mxu1 %v16016_v53  ;;  %v16100_v63 = vld [vmem:[%s17088_s16 + $0x6a8] ss:$16 sps:$4 sm:$0xff]   ;;  %v16105_v53 = vld [vmem:[%s17088_s16 + $0x6c4] ss:$16 sps:$4 sm:$0xff]  }
 0x746   : > { %9261 = vmatprep.subr.bf16.mxu0 %v16021_v13  ;;  %9466 = vmatprep.subr.bf16.mxu1 %v16024_v31  ;;  %v16108_v13 = vld [vmem:[%s17088_s16 + $0x6cc] ss:$16 sps:$4 sm:$0xff]   ;;  %v16103_v31 = vld [vmem:[%s17088_s16 + $0x6c0] ss:$16 sps:$4 sm:$0xff]  }
 0x749   : > { %9262 = vmatpush1.bf16.msra.mxu0 %v16019_v12  ;;  %9467 = vmatpush1.bf16.msra.mxu1 %v16022_v60  ;;  %v16106_v12 = vld [vmem:[%s17088_s16 + $0x6c8] ss:$16 sps:$4 sm:$0xff]   ;;  %v16111_v60 = vld [vmem:[%s17088_s16 + $0x6e4] ss:$16 sps:$4 sm:$0xff]  }
 0x74a   : > { %9263 = vmatprep.subr.bf16.mxu0 %v16027_v22  ;;  %9468 = vmatprep.subr.bf16.mxu1 %v16030_v40  ;;  %v16114_v22 = vld [vmem:[%s17088_s16 + $0x6ec] ss:$16 sps:$4 sm:$0xff]   ;;  %v16109_v40 = vld [vmem:[%s17088_s16 + $0x6e0] ss:$16 sps:$4 sm:$0xff]  }
 0x74d   : > { %9264 = vmatpush1.bf16.msra.mxu0 %v16025_v57  ;;  %9469 = vmatpush1.bf16.msra.mxu1 %v16028_v56  ;;  %v16112_v57 = vld [vmem:[%s17088_s16 + $0x6e8] ss:$16 sps:$4 sm:$0xff]   ;;  %v16117_v56 = vld [vmem:[%s17088_s16 + $0x704] ss:$16 sps:$4 sm:$0xff]  }
 0x74e   : > { %9265 = vmatprep.subr.bf16.mxu0 %v16033_v17  ;;  %9470 = vmatprep.subr.bf16.mxu1 %v16036_v0  ;;  %v16120_v17 = vld [vmem:[%s17088_s16 + $0x70c] ss:$16 sps:$4 sm:$0xff]   ;;  %v16115_v0 = vld [vmem:[%s17088_s16 + $0x700] ss:$16 sps:$4 sm:$0xff]  }
 0x751   : > { %9266 = vmatpush1.bf16.msra.mxu0 %v16031_v47  ;;  %9471 = vmatpush1.bf16.msra.mxu1 %v16034_v3  ;;  %v16118_v47 = vld [vmem:[%s17088_s16 + $0x708] ss:$16 sps:$4 sm:$0xff]   ;;  %v16123_v3 = vld [vmem:[%s17088_s16 + $0x724] ss:$16 sps:$4 sm:$0xff]  }
 0x752   : > { %9267 = vmatprep.subr.bf16.mxu0 %v16039_v62  ;;  %9472 = vmatprep.subr.bf16.mxu1 %v16042_v21  ;;  %v16126_v62 = vld [vmem:[%s17088_s16 + $0x72c] ss:$16 sps:$4 sm:$0xff]   ;;  %v16121_v21 = vld [vmem:[%s17088_s16 + $0x720] ss:$16 sps:$4 sm:$0xff]  }
 0x755   : > { %9268 = vmatpush1.bf16.msra.mxu0 %v16037_v51  ;;  %9473 = vmatpush1.bf16.msra.mxu1 %v16040_v28  ;;  %v16124_v51 = vld [vmem:[%s17088_s16 + $0x728] ss:$16 sps:$4 sm:$0xff]   ;;  %v16129_v28 = vld [vmem:[%s17088_s16 + $0x744] ss:$16 sps:$4 sm:$0xff]  }
 0x756   : > { %9269 = vmatprep.subr.bf16.mxu0 %v16045_v24  ;;  %9474 = vmatprep.subr.bf16.mxu1 %v16048_v41  ;;  %v16132_v24 = vld [vmem:[%s17088_s16 + $0x74c] ss:$16 sps:$4 sm:$0xff]   ;;  %v16127_v41 = vld [vmem:[%s17088_s16 + $0x740] ss:$16 sps:$4 sm:$0xff]  }
 0x759   : > { %9270 = vmatpush1.bf16.msra.mxu0 %v16043_v4  ;;  %9475 = vmatpush1.bf16.msra.mxu1 %v16046_v43  ;;  %v16130_v4 = vld [vmem:[%s17088_s16 + $0x748] ss:$16 sps:$4 sm:$0xff]   ;;  %v16135_v43 = vld [vmem:[%s17088_s16 + $0x764] ss:$16 sps:$4 sm:$0xff]  }
 0x75a   : > { %9271 = vmatprep.subr.bf16.mxu0 %v16051_v61  ;;  %9476 = vmatprep.subr.bf16.mxu1 %v16054_v1  ;;  %v16138_v61 = vld [vmem:[%s17088_s16 + $0x76c] ss:$16 sps:$4 sm:$0xff]   ;;  %v16133_v1 = vld [vmem:[%s17088_s16 + $0x760] ss:$16 sps:$4 sm:$0xff]  }
 0x75d   : > { %9272 = vmatpush1.bf16.msra.mxu0 %v16049_v16  ;;  %9477 = vmatpush1.bf16.msra.mxu1 %v16052_v42  ;;  %v16136_v16 = vld [vmem:[%s17088_s16 + $0x768] ss:$16 sps:$4 sm:$0xff]   ;;  %v16141_v42 = vld [vmem:[%s17088_s16 + $0x784] ss:$16 sps:$4 sm:$0xff]  }
 0x75e   : > { %9273 = vmatprep.subr.bf16.mxu0 %v16057_v35  ;;  %9478 = vmatprep.subr.bf16.mxu1 %v16060_v29  ;;  %v16144_v35 = vld [vmem:[%s17088_s16 + $0x78c] ss:$16 sps:$4 sm:$0xff]   ;;  %v16139_v29 = vld [vmem:[%s17088_s16 + $0x780] ss:$16 sps:$4 sm:$0xff]  }
 0x761   : > { %9274 = vmatpush1.bf16.msra.mxu0 %v16055_v7  ;;  %9479 = vmatpush1.bf16.msra.mxu1 %v16058_v48  ;;  %v16147_v7 = vld [vmem:[%s17088_s16 + $0x7a4] ss:$16 sps:$4 sm:$0xff]   ;;  %v16150_v48 = vld [vmem:[%s17088_s16 + $0x7ac] ss:$16 sps:$4 sm:$0xff]  }
 0x762   : > { %9275 = vmatprep.subr.bf16.mxu0 %v16063_v32  ;;  %9480 = vmatprep.subr.bf16.mxu1 %v16066_v11  ;;  %v16145_v32 = vld [vmem:[%s17088_s16 + $0x7a0] ss:$16 sps:$4 sm:$0xff]   ;;  %v16148_v11 = vld [vmem:[%s17088_s16 + $0x7a8] ss:$16 sps:$4 sm:$0xff]  }
 0x765   : > { %9276 = vmatpush1.bf16.msra.mxu0 %v16061_v50  ;;  %9481 = vmatpush1.bf16.msra.mxu1 %v16064_v26  ;;  %v16153_v50 = vld [vmem:[%s17088_s16 + $0x7c4] ss:$16 sps:$4 sm:$0xff]   ;;  %v16156_v26 = vld [vmem:[%s17088_s16 + $0x7cc] ss:$16 sps:$4 sm:$0xff]  }
 0x766   : > { %9286 = vmatprep.subr.bf16.mxu0 %v16069_v39  ;;  %9491 = vmatprep.subr.bf16.mxu1 %v16072_v14  ;;  %v16151_v39 = vld [vmem:[%s17088_s16 + $0x7c0] ss:$16 sps:$4 sm:$0xff]   ;;  %v16154_v14 = vld [vmem:[%s17088_s16 + $0x7c8] ss:$16 sps:$4 sm:$0xff]  }
 0x768   : > { %9278 = vmatmul.mubr.bf16.vlgmr.msra.gmra.mrb[0].mxu0 %v7430_v15  ;;  %9483 = vmatmul.mubr.bf16.vlgmr.msra.gmra.mrb[0].mxu1 %v7430_v15  ;;  %v16162_v15 = vld [vmem:[%s17088_s16 + $0x7ec] ss:$16 sps:$4 sm:$0xff]  }
 0x769   : > { %9287 = vmatpush1.bf16.msra.mxu0 %v16067_v34  ;;  %9492 = vmatpush1.bf16.msra.mxu1 %v16070_v18  ;;  %v16157_v34 = vld [vmem:[%s17088_s16 + $0x7e0] ss:$16 sps:$4 sm:$0xff]   ;;  %v16160_v18 = vld [vmem:[%s17088_s16 + $0x7e8] ss:$16 sps:$4 sm:$0xff]  }
 0x76a   : > { %9288 = vmatprep.subr.bf16.mxu0 %v16075_v19  ;;  %9493 = vmatprep.subr.bf16.mxu1 %v16078_v9  ;;  %v16166_v19 = vld [vmem:[%s17088_s16 + $0x804] ss:$16 sps:$4 sm:$0xff]   ;;  %v16169_v9 = vld [vmem:[%s17088_s16 + $0x80c] ss:$16 sps:$4 sm:$0xff]  }
 0x76b   : > { %9318 = vmatprep.mubr.bf16.mxu0 %v7433_v27  ;;  %9523 = vmatprep.mubr.bf16.mxu1 %v7433_v27  ;;  %v7432_v27 = vpack.c.bf16 %v18804_v25, %v18804_v25  ;;  %v16173_v25 = vld [vmem:[%s17088_s16 + $0x828] ss:$16 sps:$4 sm:$0xff]  }
 0x76d   : > { %9289 = vmatpush1.bf16.msra.mxu0 %v16073_v52  ;;  %9494 = vmatpush1.bf16.msra.mxu1 %v16076_v49  ;;  %v16164_v52 = vld [vmem:[%s17088_s16 + $0x800] ss:$16 sps:$4 sm:$0xff]   ;;  %v16167_v49 = vld [vmem:[%s17088_s16 + $0x808] ss:$16 sps:$4 sm:$0xff]  }
 0x76e   : > { %9290 = vmatprep.subr.bf16.mxu0 %v16081_v37  ;;  %9495 = vmatprep.subr.bf16.mxu1 %v16084_v2  ;;  %v16172_v37 = vld [vmem:[%s17088_s16 + $0x824] ss:$16 sps:$4 sm:$0xff]   ;;  %v16175_v2 = vld [vmem:[%s17088_s16 + $0x82c] ss:$16 sps:$4 sm:$0xff]  }
 0x771   : > { %9291 = vmatpush1.bf16.msra.mxu0 %v16079_v45  ;;  %9496 = vmatpush1.bf16.msra.mxu1 %v16082_v44  ;;  %v16170_v45 = vld [vmem:[%s17088_s16 + $0x820] ss:$16 sps:$4 sm:$0xff]   ;;  %v16178_v44 = vld [vmem:[%s17088_s16 + $0x844] ss:$16 sps:$4 sm:$0xff]  }
 0x772   : > { %9292 = vmatprep.subr.bf16.mxu0 %v16087_v54  ;;  %9497 = vmatprep.subr.bf16.mxu1 %v16090_v23  ;;  %v16181_v54 = vld [vmem:[%s17088_s16 + $0x84c] ss:$16 sps:$4 sm:$0xff]   ;;  %v16708_v23 = vmov 0  }
 0x775   : > { %9293 = vmatpush1.bf16.msra.mxu0 %v16085_v36  ;;  %9498 = vmatpush1.bf16.msra.mxu1 %v16088_v33  ;;  %v16176_v36 = vld [vmem:[%s17088_s16 + $0x840] ss:$16 sps:$4 sm:$0xff]   ;;  %v16179_v33 = vld [vmem:[%s17088_s16 + $0x848] ss:$16 sps:$4 sm:$0xff]  }
 0x776   : > { %9294 = vmatprep.subr.bf16.mxu0 %v16093_v5  ;;  %9499 = vmatprep.subr.bf16.mxu1 %v16096_v30  ;;  %v16184_v5 = vld [vmem:[%s17088_s16 + $0x864] ss:$16 sps:$4 sm:$0xff]   ;;  %v16187_v30 = vld [vmem:[%s17088_s16 + $0x86c] ss:$16 sps:$4 sm:$0xff]  }
 0x779   : > { %9295 = vmatpush1.bf16.msra.mxu0 %v16091_v58  ;;  %9500 = vmatpush1.bf16.msra.mxu1 %v16094_v59  ;;  %v16182_v58 = vld [vmem:[%s17088_s16 + $0x860] ss:$16 sps:$4 sm:$0xff]   ;;  %v16185_v59 = vld [vmem:[%s17088_s16 + $0x868] ss:$16 sps:$4 sm:$0xff]  }
 0x77a   : > { %9296 = vmatprep.subr.bf16.mxu0 %v16099_v55  ;;  %9501 = vmatprep.subr.bf16.mxu1 %v16102_v6  ;;  %v16190_v55 = vld [vmem:[%s17088_s16 + $0x884] ss:$16 sps:$4 sm:$0xff]   ;;  %v16193_v6 = vld [vmem:[%s17088_s16 + $0x88c] ss:$16 sps:$4 sm:$0xff]  }
 0x77d   : > { %9297 = vmatpush1.bf16.msra.mxu0 %v16097_v46  ;;  %9502 = vmatpush1.bf16.msra.mxu1 %v16100_v63  ;;  %v16188_v46 = vld [vmem:[%s17088_s16 + $0x880] ss:$16 sps:$4 sm:$0xff]   ;;  %v16191_v63 = vld [vmem:[%s17088_s16 + $0x888] ss:$16 sps:$4 sm:$0xff]  }
 0x77e   : > { %9298 = vmatprep.subr.bf16.mxu0 %v16105_v53  ;;  %9503 = vmatprep.subr.bf16.mxu1 %v16108_v13  ;;  %v16196_v53 = vld [vmem:[%s17088_s16 + $0x8a4] ss:$16 sps:$4 sm:$0xff]   ;;  %v16199_v13 = vld [vmem:[%s17088_s16 + $0x8ac] ss:$16 sps:$4 sm:$0xff]  }
 0x781   : > { %9299 = vmatpush1.bf16.msra.mxu0 %v16103_v31  ;;  %9504 = vmatpush1.bf16.msra.mxu1 %v16106_v12  ;;  %v16194_v31 = vld [vmem:[%s17088_s16 + $0x8a0] ss:$16 sps:$4 sm:$0xff]   ;;  %v16197_v12 = vld [vmem:[%s17088_s16 + $0x8a8] ss:$16 sps:$4 sm:$0xff]  }
 0x782   : > { %9300 = vmatprep.subr.bf16.mxu0 %v16111_v60  ;;  %9505 = vmatprep.subr.bf16.mxu1 %v16114_v22  ;;  %v16202_v60 = vld [vmem:[%s17088_s16 + $0x8c4] ss:$16 sps:$4 sm:$0xff]   ;;  %v16205_v22 = vld [vmem:[%s17088_s16 + $0x8cc] ss:$16 sps:$4 sm:$0xff]  }
 0x785   : > { %9301 = vmatpush1.bf16.msra.mxu0 %v16109_v40  ;;  %9506 = vmatpush1.bf16.msra.mxu1 %v16112_v57  ;;  %v16200_v40 = vld [vmem:[%s17088_s16 + $0x8c0] ss:$16 sps:$4 sm:$0xff]   ;;  %v16203_v57 = vld [vmem:[%s17088_s16 + $0x8c8] ss:$16 sps:$4 sm:$0xff]  }
 0x786   : > { %9302 = vmatprep.subr.bf16.mxu0 %v16117_v56  ;;  %9507 = vmatprep.subr.bf16.mxu1 %v16120_v17  ;;  %v16208_v56 = vld [vmem:[%s17088_s16 + $0x8e4] ss:$16 sps:$4 sm:$0xff]   ;;  %v16211_v17 = vld [vmem:[%s17088_s16 + $0x8ec] ss:$16 sps:$4 sm:$0xff]  }
 0x789   : > { %9303 = vmatpush1.bf16.msra.mxu0 %v16115_v0  ;;  %9508 = vmatpush1.bf16.msra.mxu1 %v16118_v47  ;;  %v16206_v0 = vld [vmem:[%s17088_s16 + $0x8e0] ss:$16 sps:$4 sm:$0xff]   ;;  %v16209_v47 = vld [vmem:[%s17088_s16 + $0x8e8] ss:$16 sps:$4 sm:$0xff]  }
 0x78a   : > { %9304 = vmatprep.subr.bf16.mxu0 %v16123_v3  ;;  %9509 = vmatprep.subr.bf16.mxu1 %v16126_v62  ;;  %v10410_v3 = vld.sshfl [vmem:[%s18637_s21 + $0x10] sm:$0x3 pattern:$0x76325410] }
 0x78b   : > { %v7434_v62 = vpack.c.bf16 %v10410_v3, %v10410_v3  ;;  %v16278_v3 = vld [vmem:[#allocation18 + $0xb4] ss:$8 sps:$4 sm:$0xff] (!%p10699_p9)  }
 0x78d   : > { %9305 = vmatpush1.bf16.msra.mxu0 %v16121_v21  ;;  %9510 = vmatpush1.bf16.msra.mxu1 %v16124_v51 }
 0x78e   : > { %9306 = vmatprep.subr.bf16.mxu0 %v16129_v28  ;;  %9511 = vmatprep.subr.bf16.mxu1 %v16132_v24 }
 0x791   : > { %9307 = vmatpush1.bf16.msra.mxu0 %v16127_v41  ;;  %9512 = vmatpush1.bf16.msra.mxu1 %v16130_v4 }
 0x792   : > { %9308 = vmatprep.subr.bf16.mxu0 %v16135_v43  ;;  %9513 = vmatprep.subr.bf16.mxu1 %v16138_v61 }
 0x795   : > { %9309 = vmatpush1.bf16.msra.mxu0 %v16133_v1  ;;  %9514 = vmatpush1.bf16.msra.mxu1 %v16136_v16 }
 0x796   : > { %9310 = vmatprep.subr.bf16.mxu0 %v16141_v42  ;;  %9515 = vmatprep.subr.bf16.mxu1 %v16144_v35 }
 0x799   : > { %9311 = vmatpush1.bf16.msra.mxu0 %v16139_v29  ;;  %9516 = vmatpush1.bf16.msra.mxu1 %v16142_v10  ;;  %v7366_v29 = vld [vmem:[#allocation4] sm:$0xff] }
 0x79a   : > { %9312 = vmatprep.subr.bf16.mxu0 %v16147_v7  ;;  %9517 = vmatprep.subr.bf16.mxu1 %v16150_v48  ;;  %v16212_v48 = vld [vmem:[#allocation18 + $0x4] ss:$8 sps:$4 sm:$0xff] (!%p10699_p9)  }
 0x79d   : > { %9313 = vmatpush1.bf16.msra.mxu0 %v16145_v32  ;;  %9518 = vmatpush1.bf16.msra.mxu1 %v16148_v11  ;;  %v16214_v32 = vld [vmem:[#allocation18] ss:$8 sps:$4 sm:$0xff] (!%p10699_p9)   ;;  %v16215_v11 = vld [vmem:[#allocation18 + $0x104] ss:$8 sps:$4 sm:$0xff] (!%p10699_p9)  }
 0x79e   : > { %9314 = vmatprep.subr.bf16.mxu0 %v16153_v50  ;;  %9519 = vmatprep.subr.bf16.mxu1 %v16156_v26  ;;  %v16217_v50 = vld [vmem:[#allocation18 + $0x100] ss:$8 sps:$4 sm:$0xff] (!%p10699_p9)   ;;  %v16218_v26 = vld [vmem:[#allocation18 + $0x14] ss:$8 sps:$4 sm:$0xff] (!%p10699_p9)  }
 0x7a1   : > { %9315 = vmatpush1.bf16.msra.mxu0 %v16151_v39  ;;  %9520 = vmatpush1.bf16.msra.mxu1 %v16154_v14  ;;  %v16220_v39 = vld [vmem:[#allocation18 + $0x10] ss:$8 sps:$4 sm:$0xff] (!%p10699_p9)   ;;  %v16221_v14 = vld [vmem:[#allocation18 + $0x114] ss:$8 sps:$4 sm:$0xff] (!%p10699_p9)  }
 0x7a2   : > { %9316 = vmatprep.subr.bf16.mxu0 %v16159_v38  ;;  %9521 = vmatprep.subr.bf16.mxu1 %v16162_v15  ;;  %v16223_v38 = vld [vmem:[#allocation18 + $0x110] ss:$8 sps:$4 sm:$0xff] (!%p10699_p9)   ;;  %v16224_v15 = vld [vmem:[#allocation18 + $0x24] ss:$8 sps:$4 sm:$0xff] (!%p10699_p9)  }
 0x7a5   : > { %9317 = vmatpush1.bf16.msra.mxu0 %v16157_v34  ;;  %9522 = vmatpush1.bf16.msra.mxu1 %v16160_v18  ;;  %v16226_v34 = vld [vmem:[#allocation18 + $0x20] ss:$8 sps:$4 sm:$0xff] (!%p10699_p9)   ;;  %v16227_v18 = vld [vmem:[#allocation18 + $0x124] ss:$8 sps:$4 sm:$0xff] (!%p10699_p9)  }
 0x7a6   : > { %9327 = vmatprep.subr.bf16.mxu0 %v16166_v19  ;;  %9532 = vmatprep.subr.bf16.mxu1 %v16169_v9  ;;  %v16230_v19 = vld [vmem:[#allocation18 + $0x34] ss:$8 sps:$4 sm:$0xff] (!%p10699_p9)   ;;  %v16229_v9 = vld [vmem:[#allocation18 + $0x120] ss:$8 sps:$4 sm:$0xff] (!%p10699_p9)  }
 0x7a8   : > { %9319 = vmatmul.mubr.bf16.vlgmr.msra.gmra.mrb[0].mxu0 %v7432_v27  ;;  %9524 = vmatmul.mubr.bf16.vlgmr.msra.gmra.mrb[0].mxu1 %v7432_v27  ;;  %v16233_v27 = vld [vmem:[#allocation18 + $0x134] ss:$8 sps:$4 sm:$0xff] (!%p10699_p9)  }
 0x7a9   : > { %9328 = vmatpush1.bf16.msra.mxu0 %v16164_v52  ;;  %9533 = vmatpush1.bf16.msra.mxu1 %v16167_v49  ;;  %v16232_v52 = vld [vmem:[#allocation18 + $0x30] ss:$8 sps:$4 sm:$0xff] (!%p10699_p9)   ;;  %v16236_v49 = vld [vmem:[#allocation18 + $0x44] ss:$8 sps:$4 sm:$0xff] (!%p10699_p9)  }
 0x7aa   : > { %9329 = vmatprep.subr.bf16.mxu0 %v16172_v37  ;;  %9534 = vmatprep.subr.bf16.mxu1 %v16175_v2  ;;  %v16235_v37 = vld [vmem:[#allocation18 + $0x130] ss:$8 sps:$4 sm:$0xff] (!%p10699_p9)   ;;  %v16239_v2 = vld [vmem:[#allocation18 + $0x144] ss:$8 sps:$4 sm:$0xff] (!%p10699_p9)  }
 0x7ab   : > { %9359 = vmatprep.mubr.bf16.mxu0 %v16708_v23  ;;  %9564 = vmatprep.mubr.bf16.mxu1 %v16708_v23  ;;  %v16244_v23 = vld [vmem:[#allocation18 + $0x50] ss:$8 sps:$4 sm:$0xff] (!%p10699_p9)  }
 0x7ad   : > { %9330 = vmatpush1.bf16.msra.mxu0 %v16170_v45  ;;  %9535 = vmatpush1.bf16.msra.mxu1 %v16173_v25  ;;  %v16238_v45 = vld [vmem:[#allocation18 + $0x40] ss:$8 sps:$4 sm:$0xff] (!%p10699_p9)   ;;  %v16242_v25 = vld [vmem:[#allocation18 + $0x54] ss:$8 sps:$4 sm:$0xff] (!%p10699_p9)  }
 0x7ae   : > { %9331 = vmatprep.subr.bf16.mxu0 %v16178_v44  ;;  %9536 = vmatprep.subr.bf16.mxu1 %v16181_v54  ;;  %v16241_v44 = vld [vmem:[#allocation18 + $0x140] ss:$8 sps:$4 sm:$0xff] (!%p10699_p9)   ;;  %v16245_v54 = vld [vmem:[#allocation18 + $0x154] ss:$8 sps:$4 sm:$0xff] (!%p10699_p9)  }
 0x7b1   : > { %9332 = vmatpush1.bf16.msra.mxu0 %v16176_v36  ;;  %9537 = vmatpush1.bf16.msra.mxu1 %v16179_v33  ;;  %v16248_v36 = vld [vmem:[#allocation18 + $0x64] ss:$8 sps:$4 sm:$0xff] (!%p10699_p9)   ;;  %v16247_v33 = vld [vmem:[#allocation18 + $0x150] ss:$8 sps:$4 sm:$0xff] (!%p10699_p9)  }
 0x7b2   : > { %9333 = vmatprep.subr.bf16.mxu0 %v16184_v5  ;;  %9538 = vmatprep.subr.bf16.mxu1 %v16187_v30  ;;  %v16251_v5 = vld [vmem:[#allocation18 + $0x164] ss:$8 sps:$4 sm:$0xff] (!%p10699_p9)   ;;  %v16250_v30 = vld [vmem:[#allocation18 + $0x60] ss:$8 sps:$4 sm:$0xff] (!%p10699_p9)  }
 0x7b5   : > { %9334 = vmatpush1.bf16.msra.mxu0 %v16182_v58  ;;  %9539 = vmatpush1.bf16.msra.mxu1 %v16185_v59  ;;  %v16254_v58 = vld [vmem:[#allocation18 + $0x74] ss:$8 sps:$4 sm:$0xff] (!%p10699_p9)   ;;  %v16253_v59 = vld [vmem:[#allocation18 + $0x160] ss:$8 sps:$4 sm:$0xff] (!%p10699_p9)  }
 0x7b6   : > { %9335 = vmatprep.subr.bf16.mxu0 %v16190_v55  ;;  %9540 = vmatprep.subr.bf16.mxu1 %v16193_v6  ;;  %v16257_v55 = vld [vmem:[#allocation18 + $0x174] ss:$8 sps:$4 sm:$0xff] (!%p10699_p9)   ;;  %v16256_v6 = vld [vmem:[#allocation18 + $0x70] ss:$8 sps:$4 sm:$0xff] (!%p10699_p9)  }
 0x7b9   : > { %9336 = vmatpush1.bf16.msra.mxu0 %v16188_v46  ;;  %9541 = vmatpush1.bf16.msra.mxu1 %v16191_v63  ;;  %v16260_v46 = vld [vmem:[#allocation18 + $0x84] ss:$8 sps:$4 sm:$0xff] (!%p10699_p9)   ;;  %v16259_v63 = vld [vmem:[#allocation18 + $0x170] ss:$8 sps:$4 sm:$0xff] (!%p10699_p9)  }
 0x7ba   : > { %9337 = vmatprep.subr.bf16.mxu0 %v16196_v53  ;;  %9542 = vmatprep.subr.bf16.mxu1 %v16199_v13  ;;  %v16263_v53 = vld [vmem:[#allocation18 + $0x184] ss:$8 sps:$4 sm:$0xff] (!%p10699_p9)   ;;  %v16262_v13 = vld [vmem:[#allocation18 + $0x80] ss:$8 sps:$4 sm:$0xff] (!%p10699_p9)  }
 0x7bd   : > { %9338 = vmatpush1.bf16.msra.mxu0 %v16194_v31  ;;  %9543 = vmatpush1.bf16.msra.mxu1 %v16197_v12  ;;  %v16266_v31 = vld [vmem:[#allocation18 + $0x94] ss:$8 sps:$4 sm:$0xff] (!%p10699_p9)   ;;  %v16265_v12 = vld [vmem:[#allocation18 + $0x180] ss:$8 sps:$4 sm:$0xff] (!%p10699_p9)  }
 0x7be   : > { %9339 = vmatprep.subr.bf16.mxu0 %v16202_v60  ;;  %9544 = vmatprep.subr.bf16.mxu1 %v16205_v22  ;;  %v16269_v60 = vld [vmem:[#allocation18 + $0x194] ss:$8 sps:$4 sm:$0xff] (!%p10699_p9)   ;;  %v16268_v22 = vld [vmem:[#allocation18 + $0x90] ss:$8 sps:$4 sm:$0xff] (!%p10699_p9)  }
 0x7c1   : > { %9340 = vmatpush1.bf16.msra.mxu0 %v16200_v40  ;;  %9545 = vmatpush1.bf16.msra.mxu1 %v16203_v57  ;;  %v16272_v40 = vld [vmem:[#allocation18 + $0xa4] ss:$8 sps:$4 sm:$0xff] (!%p10699_p9)   ;;  %v16271_v57 = vld [vmem:[#allocation18 + $0x190] ss:$8 sps:$4 sm:$0xff] (!%p10699_p9)  }
 0x7c2   : > { %9341 = vmatprep.subr.bf16.mxu0 %v16208_v56  ;;  %9546 = vmatprep.subr.bf16.mxu1 %v16211_v17  ;;  %v16275_v56 = vld [vmem:[#allocation18 + $0x1a4] ss:$8 sps:$4 sm:$0xff] (!%p10699_p9)   ;;  %v16274_v17 = vld [vmem:[#allocation18 + $0xa0] ss:$8 sps:$4 sm:$0xff] (!%p10699_p9)  }
 0x7c5   : > { %9342 = vmatpush1.bf16.msra.mxu0 %v16206_v0  ;;  %9547 = vmatpush1.bf16.msra.mxu1 %v16209_v47  ;;  %v18915_v0 = vsub.s32 (!%p10699_p9), 0, %v18625_v20  ;;  %v18918_v47 = vsub.s32 (!%p10699_p9), 1, %v18625_v20 }
 0x7c6   : > { %15002 = vmatprep.subr.bf16.mxu1 (!%p10699_p9), %v16212_v48  ;;  %15066 = vmatprep.subr.bf16.mxu0 (!%p10699_p9), %v16215_v11  ;;  %v16287_v48 = vld [vmem:[#allocation18 + $0x1c4] ss:$8 sps:$4 sm:$0xff] (!%p10699_p9)  }
 0x7c8   : > { %9360 = vmatmul.mubr.bf16.vlgmr.msra.gmra.mrb[0].mxu0 %v7434_v62  ;;  %9565 = vmatmul.mubr.bf16.vlgmr.msra.gmra.mrb[0].mxu1 %v7434_v62  ;;  %v9614_v62 = vsub.s32 (!%p10699_p9), 2, %v18625_v20 }
 0x7c9   : > { %15004 = vmatpush1.bf16.msra.mxu1 (!%p10699_p9), %v16214_v32  ;;  %15068 = vmatpush1.bf16.msra.mxu0 (!%p10699_p9), %v16217_v50  ;;  %v16286_v50 = vld [vmem:[#allocation18 + $0xc0] ss:$8 sps:$4 sm:$0xff] (!%p10699_p9)  }
 0x7ca   : > { %15006 = vmatprep.subr.bf16.mxu1 (!%p10699_p9), %v16218_v26  ;;  %15070 = vmatprep.subr.bf16.mxu0 (!%p10699_p9), %v16221_v14  ;;  %v16290_v14 = vld [vmem:[#allocation18 + $0xd4] ss:$8 sps:$4 sm:$0xff] (!%p10699_p9)  }
 0x7cd   : > { %15008 = vmatpush1.bf16.msra.mxu1 (!%p10699_p9), %v16220_v39  ;;  %15072 = vmatpush1.bf16.msra.mxu0 (!%p10699_p9), %v16223_v38 }
 0x7ce   : > { %15010 = vmatprep.subr.bf16.mxu1 (!%p10699_p9), %v16224_v15  ;;  %15074 = vmatprep.subr.bf16.mxu0 (!%p10699_p9), %v16227_v18 }
 0x7d1   : > { %15012 = vmatpush1.bf16.msra.mxu1 (!%p10699_p9), %v16226_v34  ;;  %15076 = vmatpush1.bf16.msra.mxu0 (!%p10699_p9), %v16229_v9  ;;  %v16289_v34 = vld [vmem:[#allocation18 + $0x1c0] ss:$8 sps:$4 sm:$0xff] (!%p10699_p9)  }
 0x7d2   : > { %15014 = vmatprep.subr.bf16.mxu1 (!%p10699_p9), %v16230_v19  ;;  %15078 = vmatprep.subr.bf16.mxu0 (!%p10699_p9), %v16233_v27  ;;  %v16293_v27 = vld [vmem:[#allocation18 + $0x1d4] ss:$8 sps:$4 sm:$0xff] (!%p10699_p9)  }
 0x7d5   : > { %15016 = vmatpush1.bf16.msra.mxu1 (!%p10699_p9), %v16232_v52  ;;  %15080 = vmatpush1.bf16.msra.mxu0 (!%p10699_p9), %v16235_v37 }
 0x7d6   : > { %15018 = vmatprep.subr.bf16.mxu1 (!%p10699_p9), %v16236_v49  ;;  %15082 = vmatprep.subr.bf16.mxu0 (!%p10699_p9), %v16239_v2  ;;  %v16292_v49 = vld [vmem:[#allocation18 + $0xd0] ss:$8 sps:$4 sm:$0xff] (!%p10699_p9)   ;;  %v16296_v2 = vld [vmem:[#allocation18 + $0xe4] ss:$8 sps:$4 sm:$0xff] (!%p10699_p9)  }
 0x7d9   : > { %15020 = vmatpush1.bf16.msra.mxu1 (!%p10699_p9), %v16238_v45  ;;  %15084 = vmatpush1.bf16.msra.mxu0 (!%p10699_p9), %v16241_v44  ;;  %v16299_v44 = vld [vmem:[#allocation18 + $0x1e4] ss:$8 sps:$4 sm:$0xff] (!%p10699_p9)  }
 0x7da   : > { %15022 = vmatprep.subr.bf16.mxu1 (!%p10699_p9), %v16242_v25  ;;  %15086 = vmatprep.subr.bf16.mxu0 (!%p10699_p9), %v16245_v54  ;;  %v16295_v25 = vld [vmem:[#allocation18 + $0x1d0] ss:$8 sps:$4 sm:$0xff] (!%p10699_p9)  }
 0x7dd   : > { %15024 = vmatpush1.bf16.msra.mxu1 (!%p10699_p9), %v16244_v23  ;;  %15088 = vmatpush1.bf16.msra.mxu0 (!%p10699_p9), %v16247_v33  ;;  %v16298_v23 = vld [vmem:[#allocation18 + $0xe0] ss:$8 sps:$4 sm:$0xff] (!%p10699_p9)  }
 0x7de   : > { %15026 = vmatprep.subr.bf16.mxu1 (!%p10699_p9), %v16248_v36  ;;  %15090 = vmatprep.subr.bf16.mxu0 (!%p10699_p9), %v16251_v5  ;;  %v16302_v36 = vld [vmem:[#allocation18 + $0xf4] ss:$8 sps:$4 sm:$0xff] (!%p10699_p9)  }
 0x7e1   : > { %15028 = vmatpush1.bf16.msra.mxu1 (!%p10699_p9), %v16250_v30  ;;  %15092 = vmatpush1.bf16.msra.mxu0 (!%p10699_p9), %v16253_v59  ;;  %v16301_v30 = vld [vmem:[#allocation18 + $0x1e0] ss:$8 sps:$4 sm:$0xff] (!%p10699_p9)  }
 0x7e2   : > { %15030 = vmatprep.subr.bf16.mxu1 (!%p10699_p9), %v16254_v58  ;;  %15094 = vmatprep.subr.bf16.mxu0 (!%p10699_p9), %v16257_v55  ;;  %v16305_v58 = vld [vmem:[#allocation18 + $0x1f4] ss:$8 sps:$4 sm:$0xff] (!%p10699_p9)  }
 0x7e5   : > { %15032 = vmatpush1.bf16.msra.mxu1 (!%p10699_p9), %v16256_v6  ;;  %15096 = vmatpush1.bf16.msra.mxu0 (!%p10699_p9), %v16259_v63  ;;  %v16304_v6 = vld [vmem:[#allocation18 + $0xf0] ss:$8 sps:$4 sm:$0xff] (!%p10699_p9)  }
 0x7e6   : > { %15034 = vmatprep.subr.bf16.mxu1 (!%p10699_p9), %v16260_v46  ;;  %15098 = vmatprep.subr.bf16.mxu0 (!%p10699_p9), %v16263_v53  ;;  %v16307_v63 = vld [vmem:[#allocation18 + $0x1f0] ss:$8 sps:$4 sm:$0xff] (!%p10699_p9)   ;;  %v9869_v53 = vld [vmem:[#allocation19] sm:$0x3] (!%p10699_p9) }
 0x7e9   : > { %15036 = vmatpush1.bf16.msra.mxu1 (!%p10699_p9), %v16262_v13  ;;  %15100 = vmatpush1.bf16.msra.mxu0 (!%p10699_p9), %v16265_v12  ;;  %v9874_v13 = vrot.slane (!%p10699_p9), %v9869_v53, %v18915_v0 }
 0x7ea   : > { %15038 = vmatprep.subr.bf16.mxu1 (!%p10699_p9), %v16266_v31  ;;  %15102 = vmatprep.subr.bf16.mxu0 (!%p10699_p9), %v16269_v60  ;;  %v9878_v31 = vrot.slane (!%p10699_p9), %v9869_v53, %v18918_v47 }
 0x7ed   : > { %15040 = vmatpush1.bf16.msra.mxu1 (!%p10699_p9), %v16268_v22  ;;  %15104 = vmatpush1.bf16.msra.mxu0 (!%p10699_p9), %v16271_v57 }
 0x7ee   : > { %15042 = vmatprep.subr.bf16.mxu1 (!%p10699_p9), %v16272_v40  ;;  %15106 = vmatprep.subr.bf16.mxu0 (!%p10699_p9), %v16275_v56 }
 0x7f1   : > { %15044 = vmatpush1.bf16.msra.mxu1 (!%p10699_p9), %v16274_v17 }
 0x7f2   : > { %15046 = vmatprep.subr.bf16.mxu1 (!%p10699_p9), %v16278_v3 }
 0x89b   : > { %v9361_v21 = vpop.f32.mrb[0].mxu0  ;;  %v9566_v51 = vpop.f32.mrb[0].mxu1 }
 0x89c   : > { %v9363_v28 = vpop.f32.mrb[1].mxu0  ;;  %v9568_v24 = vpop.f32.mrb[1].mxu1 }
 0x89d   : > { %v9577_v41 = vcombine.low %v9361_v21, %v9363_v28  ;;  %v9578_v4 = vcombine.low %v9566_v51, %v9568_v24  ;;  %v9365_v43 = vpop.f32.mrb[2].mxu0  ;;  %v9570_v61 = vpop.f32.mrb[2].mxu1  ;;  %v9618_v21 = vsub.s32 (!%p10699_p9), 3, %v18625_v20  ;;  %v16277_v51 = vld [vmem:[#allocation18 + $0x1a0] ss:$8 sps:$4 sm:$0xff] (!%p10699_p9)  }
 0x89e   : > { %v9366_v1 = vpop.f32.mrb[3].mxu0  ;;  %v9571_v16 = vpop.f32.mrb[3].mxu1  ;;  %v16280_v28 = vld [vmem:[#allocation18 + $0xb0] ss:$8 sps:$4 sm:$0xff] (!%p10699_p9)   ;;  %v16281_v24 = vld [vmem:[#allocation18 + $0x1b4] ss:$8 sps:$4 sm:$0xff] (!%p10699_p9)   ;;  %15108 = vmatpush1.bf16.msra.mxu0 (!%p10699_p9), %v16277_v51 }
 0x89f   : > { %v9585_v42 = vrot.slane %v9577_v41, %v18633_v8  ;;  %v9592_v35 = vrot.slane %v9578_v4, %v18633_v8  ;;  %9600 = sbr.rel (%p10699_p9) target bundleno = 2763 (0xacb), region = 112  ;;  %v9602_v41 = vld [vmem:[#allocation17] ss:$2 sm:$0xf] (!%p10699_p9)  ;;  %v16284_v43 = vld [vmem:[#allocation18 + $0xc4] ss:$8 sps:$4 sm:$0xff] (!%p10699_p9)   ;;  %15110 = vmatprep.subr.bf16.mxu0 (!%p10699_p9), %v16281_v24  ;;  %15048 = vmatpush1.bf16.msra.mxu1 (!%p10699_p9), %v16280_v28 }
 0x8a0   : > { %v9640_v4 = vld [vmem:[#allocation17 + $0x1] ss:$2 sm:$0xf] (!%p10699_p9)  ;;  %v9607_v61 = vrot.slane (!%p10699_p9), %v9602_v41, %v18915_v0  ;;  %v9611_v1 = vrot.slane (!%p10699_p9), %v9602_v41, %v18918_v47  ;;  %v9615_v16 = vrot.slane (!%p10699_p9), %v9602_v41, %v9614_v62  ;;  %15050 = vmatprep.subr.bf16.mxu1 (!%p10699_p9), %v16284_v43 }
 0x8a1   : > { %v9593_v10 = vcombine.low %v9585_v42, %v9592_v35  ;;  %v9619_v42 = vrot.slane (!%p10699_p9), %v9602_v41, %v9618_v21  ;;  %v16283_v35 = vld [vmem:[#allocation18 + $0x1b0] ss:$8 sps:$4 sm:$0xff] (!%p10699_p9)   ;;  %v9645_v20 = vrot.slane (!%p10699_p9), %v9640_v4, %v18915_v0 }
 0x8a2   : > { %v9620_v32 = vcombine.low (!%p10699_p9), %v9607_v61, %v9611_v1  ;;  %15112 = vmatpush1.bf16.msra.mxu0 (!%p10699_p9), %v16283_v35 }
 0x8a3   : > { %v9595_v7 = vadd.f32 %v9593_v10, %v7366_v29  ;;  %v9649_v29 = vrot.slane (!%p10699_p9), %v9640_v4, %v18918_v47  ;;  %v9653_v10 = vrot.slane (!%p10699_p9), %v9640_v4, %v9614_v62  ;;  %v9621_v11 = vcombine.low (!%p10699_p9), %v9615_v16, %v9619_v42  ;;  %15114 = vmatprep.subr.bf16.mxu0 (!%p10699_p9), %v16287_v48 }
 0x8a4   : > { %v9628_v38 = vrot.slane (!%p10699_p9), %v9620_v32, %v18633_v8  ;;  %15052 = vmatpush1.bf16.msra.mxu1 (!%p10699_p9), %v16286_v50 }
 0x8a5   : > { %9596 = vst [vmem:[#allocation4] sm:$0xff] %v9595_v7  ;;  %v9657_v7 = vrot.slane (!%p10699_p9), %v9640_v4, %v9618_v21  ;;  %v9658_v26 = vcombine.low (!%p10699_p9), %v9645_v20, %v9649_v29  ;;  %v9635_v15 = vrot.slane (!%p10699_p9), %v9621_v11, %v18633_v8  ;;  %15054 = vmatprep.subr.bf16.mxu1 (!%p10699_p9), %v16290_v14 }
 0x8a6   : > { %15116 = vmatpush1.bf16.msra.mxu0 %v16289_v34 }
 0x8a7   : > { %v9659_v39 = vcombine.low %v9653_v10, %v9657_v7  ;;  %v9666_v19 = vrot.slane %v9658_v26, %v18633_v8  ;;  %v9636_v52 = vcombine.low %v9628_v38, %v9635_v15  ;;  %15118 = vmatprep.subr.bf16.mxu0 %v16293_v27 }
 0x8a8   : > { %15056 = vmatpush1.bf16.msra.mxu1 %v16292_v49 }
 0x8a9   : > { %v9673_v9 = vrot.slane %v9659_v39, %v18633_v8  ;;  %15058 = vmatprep.subr.bf16.mxu1 %v16296_v2 }
 0x8aa   : > { %15120 = vmatpush1.bf16.msra.mxu0 %v16295_v25 }
 0x8ab   : > { %v9674_v37 = vcombine.low %v9666_v19, %v9673_v9  ;;  %15122 = vmatprep.subr.bf16.mxu0 %v16299_v44 }
 0x8ac   : > { %v9601_v18 = vld [vmem:[#allocation4] sm:$0xff]  ;;  %15060 = vmatpush1.bf16.msra.mxu1 %v16298_v23 }
 0x8ad   : > { %v9638_v45 = vmul.f32 %v9636_v52, %v9601_v18  ;;  %15062 = vmatprep.subr.bf16.mxu1 %v16302_v36 }
 0x8ae   : > { %15124 = vmatpush1.bf16.msra.mxu0 %v16301_v30 }
 0x8af   : > { %v9676_v54 = vadd.f32 %v9674_v37, %v9638_v45  ;;  %15126 = vmatprep.subr.bf16.mxu0 %v16305_v58 }
 0x8b0   : > { %15064 = vmatpush1.bf16.msra.mxu1 %v16304_v6 }
 0x8b1   : > { %v9889_v33 = vrot.slane %v9676_v54, %v18633_v8  ;;  %v9882_v5 = vcombine.high %v9676_v54, %v9676_v54 }
 0x8b2   : > { %15128 = vmatpush1.bf16.msra.mxu0 %v16307_v63 }
 0x8b3   : > { %v9897_v59 = vcombine.high %v9889_v33, %v9889_v33  ;;  %v9896_v55 = vrot.slane %v9882_v5, %v18633_v8 }
 0x8b5   : > { %9967 = vmatprep.mubr.f32.mxu1 %v9897_v59  ;;  %v9898_v46 = vcombine.high %v9896_v55, %v9896_v55 }
 0x8b6   : > { %9968 = vmatmul.mubr.f32.vlgmr.msra.gmra.mrb[0].mxu1 %v9889_v33 }
 0x8b7   : > { %10038 = vmatprep.mubr.f32.mxu0 %v9898_v46 }
 0x8b8   : > { %10039 = vmatmul.mubr.f32.vlgmr.msra.gmra.mrb[0].mxu0 %v9896_v55 }
 0x989   : > { %v9969_v12 = vpop.f32.mrb[0].mxu1 }
 0x98a   : > { %v9970_v8 = vadd.f32 %v9969_v12, %v9874_v13  ;;  %v9971_v60 = vpop.f32.mrb[1].mxu1 }
 0x98b   : > { %v9972_v22 = vadd.f32 %v9971_v60, %v9878_v31  ;;  %v10040_v40 = vpop.f32.mrb[0].mxu0 }
 0x98c   : > { %v10041_v57 = vadd.f32 %v10040_v40, %v9970_v8  ;;  %v10042_v56 = vpop.f32.mrb[1].mxu0 }
 0x98d   : > { %v10043_v17 = vadd.f32 %v10042_v56, %v9972_v22 }
 0x98e   : > { %v10046_v3 = vsel %vm10045_vm4, %v10041_v57, -inf }
 0x98f   : > { %16308 = vtanh.f32 %v10043_v17  ;;  %10047 = vmax.xlane.f32.xlu0 %v10046_v3 }
 0x999   : > { %v16309_v62 = vpop.eup %16308 }
 0x99a   : > { %10060 = vst [vmem:[%s19023_s18] sm:$0x3] %v16309_v62 }
 0xa1c   : > { %v10048_v0 = vpop.xlane.xlu0 %10047 }
 0xa1d   : > { %v10049_v21 = vsub.f32 %v10041_v57, %v10048_v0 }
 0xa1f   : > { %v10050_v47 = vmul.f32 1.442695, %v10049_v21 }
 0xa21   : > { %16310 = vpow2.f32 %v10050_v47 }
 0xa2b   : > { %v16311_v51 = vpop.eup %16310 }
 0xa2c   : > { %v10052_v28 = vsel %vm10045_vm4, %v16311_v51, 0.0 }
 0xa2d   : > { %10053 = vadd.xlane.f32.xlu0 %v10052_v28 }
 0xaba   : > { %v10054_v24 = vpop.xlane.xlu0 %10053 }
 0xabb   : > { %16312 = vlog2.f32 %v10054_v24 }
 0xac5   : > { %v16313_v41 = vpop.eup %16312 }
 0xac6   : > { %v10056_v4 = vmul.f32 0.6931472, %v16313_v41 }
 0xac8   : > { %v10057_v43 = vsub.f32 %v10049_v21, %v10056_v4 }
 0xaca   : > { %10058 = vst [vmem:[#allocation20] sm:$0x3] %v10057_v43 }
 0xacb PF: > { %p15724_p3 = scmp.eq.s32.totalorder %s16796_s27, 3  ;;  %s16709_s13 = smov [#allocation20]  }
 0xacc   : > { %s10068_s29 = sshll.u32 %s16709_s13, 4  ;;  %s10069_s29 = int_to_ptr.vmem [resolvable:$true] %s10068_s29 }
 0xacd   : > { %s16596_s30 = scalar_lea.vmem %s10069_s29, 32  ;;  %p16603_p11 = scmp.lt.s32.totalorder %s10069_s29, %s10069_s29 }
 0xace   : > { %p16597_p1 = scmp.ne.s32.totalorder %s10069_s29, %s16596_s30  ;;  %p16604_p12 = scmp.lt.s32.totalorder %s16596_s30, %s16596_s30 }
 0xad0   : > { %p16598_p4 = pnand %p16597_p1, %p15724_p3  ;;  %p16605_p0 = por %p16604_p12, %p16603_p11 }
 0xad2   : > { %p16599_p6 = pneg %p16598_p4 }
 0xad4   : > { %p16606_p5 = pnand %p16605_p0, %p16599_p6 }
 0xad6   : > { %16609 = shalt.err (!%p16606_p5)
}
 0xad7   : > { %s19024_s24 = sld [smem:[#allocation34_spill]] }
 0xadd   : > { %s19025_s4 = smov %s19024_s24  ;;  %s16610_s15 = scalar_lea.hbm %s19024_s24, 32 }
 0xade   : > { %p16611_p8 = scmp.ne.s32.totalorder %s19025_s4, %s16610_s15  ;;  %p16616_p2 = scmp.lt.u32.totalorder %s16610_s15, %s19025_s4 }
 0xae0   : > { %p16612_p7 = pnand %p16611_p8, %p15724_p3 }
 0xae2   : > { %p16613_p13 = pneg %p16612_p7 }
 0xae4   : > { %p16618_p10 = pnand %p16616_p2, %p16613_p13 }
 0xae6   : > { %16621 = shalt.err (!%p16618_p10)
}
 0xae7   : > { %15670 = dma.vmem_to_hbm [thread:$0]  (%p15724_p3), %s10069_s29, 32, %s19025_s4, [#allocation7]  }
 0xae8   : > { %16671 = dma.done.wait (%p15724_p3), [#allocation7], 32  }
 0xae9   : > { %16673 = vsyncadd (%p15724_p3), [#allocation7], 4294967264 }
 0xaea PF: > { %p25_p9 = scmp.ge.s32.totalorder %s17006_s25, 6   ;;  %s19026_s21 = smov %s16680_s22 }
 0xaeb   : > { %s19027_s22 = smov %s16684_s23  ;;  %s19028_s23 = smov %s17017_s12 }
 0xaec   : > { %s19029_s24 = smov %s17006_s25  ;;  %27 = sbr.rel (!%p25_p9) target bundleno = 12 (0xc), region = 190 }
 0xaf3   :  { %10087 = vsyncpa [#allocation6], 1 }
 0xaf4   :  { %10089 = vsyncpa [#allocation6 + $0x1], 1 }
 0xaf5   :  { %10090 = vsyncpa [#allocation9], 1 }
 0xaf6   :  { %10091 = vsyncpa [#allocation12], 1 }
 0xaf7   :  { %10092 = vsyncpa [#allocation15], 1 }
 0xaf8   :  { %10093 = vsyncpa [#allocation7], 1 }
 0xaf9   :  { %10095 = vsyncpa [#allocation7 + $0x1], 1 }

</bundles_post_ra>
